<compile_context>
chip_gen: v7x
topology: tpu7x:2x2x1
jax: 0.10.0
libtpu: 0.0.40
codegen_flags: <defaults>
</compile_context>

<pallas_src>
import functools

import jax
import jax.numpy as jnp
from jax.experimental import pallas as pl
from jax.experimental.pallas import tpu as pltpu


# ----------------------------------------------------------------------------
# Pallas kernel: tiled matmul, f32 accumulation, fused bias + optional ReLU
# ----------------------------------------------------------------------------
def _mm_kernel(a_ref, b_ref, bias_ref, o_ref, acc_ref, *, relu):
    @pl.when(pl.program_id(2) == 0)
    def _():
        acc_ref[...] = jnp.zeros_like(acc_ref)

    acc_ref[...] += jnp.dot(a_ref[...], b_ref[...],
                            preferred_element_type=jnp.float32)

    @pl.when(pl.program_id(2) == pl.num_programs(2) - 1)
    def _():
        out = acc_ref[...] + bias_ref[...]
        if relu:
            out = jnp.maximum(out, 0.0)
        o_ref[...] = out.astype(o_ref.dtype)


def _round_up(x, m):
    return ((x + m - 1) // m) * m


_TM_MAX = 256   # sublane-aligned M tile
_TN_MAX = 512   # lane-aligned N tile (multiple of 128 / 256)
_TK_MAX = 512   # lane-aligned K tile


def pallas_matmul(a, b, bias=None, relu=False):
    """out[M,N] = relu(a[M,K] @ b[K,N] + bias[N]); bf16 MXU, f32 accumulate."""
    M, K = a.shape
    K2, N = b.shape
    assert K == K2, (a.shape, b.shape)

    tm = min(_TM_MAX, _round_up(M, 8))
    tn = min(_TN_MAX, _round_up(N, 128))
    tk = min(_TK_MAX, _round_up(K, 128))
    Mp, Kp, Np = _round_up(M, tm), _round_up(K, tk), _round_up(N, tn)

    a_p = jnp.pad(a.astype(jnp.bfloat16), ((0, Mp - M), (0, Kp - K)))
    b_p = jnp.pad(b.astype(jnp.bfloat16), ((0, Kp - K), (0, Np - N)))
    if bias is None:
        bias_p = jnp.zeros((1, Np), jnp.float32)
    else:
        bias_p = jnp.pad(bias.reshape(1, N).astype(jnp.float32),
                         ((0, 0), (0, Np - N)))

    out = pl.pallas_call(
        functools.partial(_mm_kernel, relu=relu),
        out_shape=jax.ShapeDtypeStruct((Mp, Np), jnp.float32),
        grid_spec=pltpu.PrefetchScalarGridSpec(
            num_scalar_prefetch=0,
            grid=(Mp // tm, Np // tn, Kp // tk),
            in_specs=[
                pl.BlockSpec((tm, tk), lambda i, j, k: (i, k)),
                pl.BlockSpec((tk, tn), lambda i, j, k: (k, j)),
                pl.BlockSpec((1, tn), lambda i, j, k: (0, j)),
            ],
            out_specs=pl.BlockSpec((tm, tn), lambda i, j, k: (i, j)),
            scratch_shapes=[pltpu.VMEM((tm, tn), jnp.float32)],
        ),
        compiler_params=pltpu.CompilerParams(
            dimension_semantics=("parallel", "parallel", "arbitrary"),
            vmem_limit_bytes=48 * 1024 * 1024,
        ),
    )(a_p, b_p, bias_p)
    return out[:M, :N]


# ----------------------------------------------------------------------------
# Conv = im2col (glue, fused by jit) + Pallas tiled matmul
# ----------------------------------------------------------------------------
def im2col(x, kh, kw, stride, dilation, padding):
    # x: [N, H, W, C] (NHWC)
    N, H, W, C = x.shape
    xp = jnp.pad(x, ((0, 0), (padding, padding), (padding, padding), (0, 0)))
    Hout = (H + 2 * padding - dilation * (kh - 1) - 1) // stride + 1
    Wout = (W + 2 * padding - dilation * (kw - 1) - 1) // stride + 1
    cols = []
    for i in range(kh):
        for j in range(kw):
            hs = i * dilation
            ws = j * dilation
            patch = xp[:, hs:hs + (Hout - 1) * stride + 1:stride,
                       ws:ws + (Wout - 1) * stride + 1:stride, :]
            cols.append(patch)
    cols = jnp.concatenate(cols, axis=-1)  # [N, Hout, Wout, kh*kw*C]
    return cols.reshape(N * Hout * Wout, kh * kw * C), (N, Hout, Wout)


def make_conv(key, cin, cout, k):
    fan_in = cin * k * k
    # weight stored as (k, k, cin, cout) so the kernel size is recoverable from
    # the (static) shape even under jit.
    w = jax.random.normal(key, (k, k, cin, cout), jnp.float32) / jnp.sqrt(
        float(fan_in))
    b = jnp.zeros((cout,), jnp.float32)
    return {"w": w, "b": b}


def apply_conv(p, x, stride=1, dilation=1, padding=None, relu=False):
    k = p["w"].shape[0]
    cin = p["w"].shape[2]
    cout = p["w"].shape[3]
    if padding is None:
        padding = dilation * (k - 1) // 2
    cols, (N, Ho, Wo) = im2col(x, k, k, stride, dilation, padding)
    w2d = p["w"].reshape(k * k * cin, cout)
    out = pallas_matmul(cols, w2d, p["b"], relu=relu)
    return out.reshape(N, Ho, Wo, cout)


# ----------------------------------------------------------------------------
# Bilinear (align_corners=True) / nearest upsampling -- plain JAX (mem-bound)
# ----------------------------------------------------------------------------
def _interp_matrix(n_out, n_in):
    if n_in == 1:
        return jnp.ones((n_out, 1), jnp.float32)
    pos = jnp.arange(n_out, dtype=jnp.float32) * (n_in - 1) / max(n_out - 1, 1)
    lo = jnp.clip(jnp.floor(pos).astype(jnp.int32), 0, n_in - 2)
    w = pos - lo.astype(jnp.float32)
    m = (jax.nn.one_hot(lo, n_in, dtype=jnp.float32) * (1.0 - w)[:, None]
         + jax.nn.one_hot(lo + 1, n_in, dtype=jnp.float32) * w[:, None])
    return m


def bilinear_upsample(x, hout, wout):
    # x: [N, H, W, C] -> [N, hout, wout, C], align_corners=True
    N, H, W, C = x.shape
    Ah = _interp_matrix(hout, H)          # (hout, H)
    Aw = _interp_matrix(wout, W)          # (wout, W)
    y = jnp.einsum("oh,nhwc->nowc", Ah, x)
    y = jnp.einsum("pw,nowc->nopc", Aw, y)
    return y


def nearest_upsample_2x(x):
    return jnp.repeat(jnp.repeat(x, 2, axis=1), 2, axis=2)


# ----------------------------------------------------------------------------
# Model configuration (small synthetic args)
# ----------------------------------------------------------------------------
NUM_CLASSES = 3
FILTER_MULT = 2
BLOCK_MULT = 2
F = FILTER_MULT * BLOCK_MULT          # filter_multiplier * block_multiplier = 4
FILTER_PARAM = {0: 1, 1: 2, 2: 4, 3: 8}
NETWORK_PATH_LAST = 3                 # network_path[-1] == 3  ->  mmax == 3
FPN_DIM = 16                          # args.dim
ASPP_OUT = 256
LOW_LEVEL_CH = 48


def init_params(key):
    keys = iter(jax.random.split(key, 64))
    p = {}
    # --- simplified encoder (NAS cells replaced, see TODO above) ---
    p["stem1"] = make_conv(next(keys), 3, 2 * F, 3)                     # os2
    p["stem2"] = make_conv(next(keys), 2 * F, F * FILTER_PARAM[0], 3)   # os4
    p["down8"] = make_conv(next(keys), F * 1, F * FILTER_PARAM[1], 3)   # os8
    p["down16"] = make_conv(next(keys), F * 2, F * FILTER_PARAM[2], 3)  # os16
    p["down32"] = make_conv(next(keys), F * 4, F * FILTER_PARAM[3], 3)  # os32
    enc_ch = F * FILTER_PARAM[NETWORK_PATH_LAST]                        # 32
    # --- ASPP ---
    p["aspp_b0"] = make_conv(next(keys), enc_ch, ASPP_OUT, 1)
    p["aspp_b1"] = make_conv(next(keys), enc_ch, ASPP_OUT, 3)
    p["aspp_b2"] = make_conv(next(keys), enc_ch, ASPP_OUT, 3)
    p["aspp_b3"] = make_conv(next(keys), enc_ch, ASPP_OUT, 3)
    p["aspp_b4"] = make_conv(next(keys), enc_ch, ASPP_OUT, 1)
    p["aspp_proj"] = make_conv(next(keys), 5 * ASPP_OUT, ASPP_OUT, 1)
    # --- FPN (in_channels_list = [4, 8, 16, 32], out = FPN_DIM) ---
    in_list = [F * FILTER_PARAM[i] for i in range(4)]
    p["fpn_lat"] = [make_conv(next(keys), cin, FPN_DIM, 1) for cin in in_list]
    p["fpn_smooth"] = [make_conv(next(keys), FPN_DIM, FPN_DIM, 3)
                       for _ in range(4)]
    # --- AssymetricDecoder (strides 4, 8, 16, 32 -> stride 4) ---
    out_ch = F * FILTER_PARAM[0]  # 4
    p["asdec"] = []
    for i in range(4):
        n_layers = max(i, 1)
        block = []
        for j in range(n_layers):
            cin = FPN_DIM if j == 0 else out_ch
            block.append(make_conv(next(keys), cin, out_ch, 3))
        p["asdec"].append(block)
    # --- DeepLabV3+ decoder ---
    p["dec_low"] = make_conv(next(keys), out_ch, LOW_LEVEL_CH, 1)
    p["dec_c1"] = make_conv(next(keys), ASPP_OUT + LOW_LEVEL_CH, ASPP_OUT, 3)
    p["dec_c2"] = make_conv(next(keys), ASPP_OUT, ASPP_OUT, 3)
    p["dec_cls"] = make_conv(next(keys), ASPP_OUT, NUM_CLASSES, 1)
    return p


# ----------------------------------------------------------------------------
# Forward pass (mirrors Retrain_Autodeeplab.forward with mmax == 3)
# ----------------------------------------------------------------------------
def forward(params, x_nchw):
    x = jnp.transpose(x_nchw, (0, 2, 3, 1)).astype(jnp.float32)  # -> NHWC
    N, H, W, _ = x.shape

    # encoder -> encoder_output, os4, os8, os16, os32
    h = apply_conv(params["stem1"], x, stride=2, relu=True)
    os4 = apply_conv(params["stem2"], h, stride=2, relu=True)
    os8 = apply_conv(params["down8"], os4, stride=2, relu=True)
    os16 = apply_conv(params["down16"], os8, stride=2, relu=True)
    os32 = apply_conv(params["down32"], os16, stride=2, relu=True)
    encoder_output = os32

    # ASPP -> high_level_feature
    b0 = apply_conv(params["aspp_b0"], encoder_output, relu=True)
    b1 = apply_conv(params["aspp_b1"], encoder_output, dilation=6, relu=True)
    b2 = apply_conv(params["aspp_b2"], encoder_output, dilation=12, relu=True)
    b3 = apply_conv(params["aspp_b3"], encoder_output, dilation=18, relu=True)
    pooled = jnp.mean(encoder_output, axis=(1, 2), keepdims=True)
    b4 = apply_conv(params["aspp_b4"], pooled, relu=True)
    b4 = jnp.broadcast_to(b4, b0.shape)
    high = apply_conv(params["aspp_proj"],
                      jnp.concatenate([b0, b1, b2, b3, b4], axis=-1),
                      relu=True)

    # FPN over [os4, os8, os16, os32]
    feats = [os4, os8, os16, os32]
    lats = [apply_conv(params["fpn_lat"][i], feats[i]) for i in range(4)]
    for i in range(3, 0, -1):
        lats[i - 1] = lats[i - 1] + nearest_upsample_2x(lats[i])
    pyr = [apply_conv(params["fpn_smooth"][i], lats[i]) for i in range(4)]

    # AssymetricDecoder -> os4_feature (stride 4)
    outs = []
    for i, feat in enumerate(pyr):
        y = feat
        n_up = i  # log2(stride_i) - log2(4)
        for j in range(max(n_up, 1)):
            y = apply_conv(params["asdec"][i][j], y, relu=True)
            if n_up != 0:
                y = bilinear_upsample(y, y.shape[1] * 2, y.shape[2] * 2)
        outs.append(y)
    os4_feature = sum(outs) / float(len(outs))

    # Decoder (DeepLabV3+ style)
    low = apply_conv(params["dec_low"], os4_feature, relu=True)
    high_up = bilinear_upsample(high, low.shape[1], low.shape[2])
    y = jnp.concatenate([high_up, low], axis=-1)
    y = apply_conv(params["dec_c1"], y, relu=True)
    y = apply_conv(params["dec_c2"], y, relu=True)
    y = apply_conv(params["dec_cls"], y)

    # final bilinear upsample (align_corners=True) to input spatial size
    y = bilinear_upsample(y, H, W)
    return jnp.transpose(y, (0, 3, 1, 2))  # back to NCHW


if __name__ == "__main__":
    key = jax.random.PRNGKey(0)
    pkey, xkey = jax.random.split(key)
    params = init_params(pkey)
    x = jax.random.normal(xkey, (2, 3, 32, 32), jnp.float32)  # NCHW like PyTorch
    fwd = jax.jit(forward)
    out = fwd(params, x)
    out = jax.block_until_ready(out)
    assert out.shape == (2, NUM_CLASSES, 32, 32), out.shape
    assert bool(jnp.all(jnp.isfinite(out)))
    print("KERNEL_OK")
</pallas_src>

<mosaic_0001>
module attributes {stable_mosaic.version = 11 : i64} {
  func.func @_mm_kernel(%arg0: i32, %arg1: i32, %arg2: i32, %arg3: memref<256x128xbf16, #tpu.memory_space<vmem>>, %arg4: memref<128x128xbf16, #tpu.memory_space<vmem>>, %arg5: memref<1x128xf32, #tpu.memory_space<vmem>>, %arg6: memref<256x128xf32, #tpu.memory_space<vmem>>, %arg7: memref<256x128xf32, #tpu.memory_space<vmem>>) attributes {dimension_semantics = [#tpu.dimension_semantics<parallel>, #tpu.dimension_semantics<parallel>, #tpu.dimension_semantics<arbitrary>], iteration_bounds = array<i64: 2, 1, 1>, scalar_prefetch = 0 : i64, scratch_operands = 1 : i64, tpu.core_type = #tpu.core_type<tc>, window_params = [{transform_indices = @transform_0, window_bounds = array<i64: 256, 128>}, {transform_indices = @transform_1, window_bounds = array<i64: 128, 128>}, {transform_indices = @transform_2, window_bounds = array<i64: 1, 128>}, {transform_indices = @transform_3, window_bounds = array<i64: 256, 128>}]} {
    %c0_i32 = arith.constant 0 : i32
    %0 = arith.cmpi eq, %arg2, %c0_i32 : i32
    %1 = arith.extui %0 : i1 to i32
    %c0_i32_0 = arith.constant 0 : i32
    %2 = arith.cmpi ne, %1, %c0_i32_0 : i32
    scf.if %2 {
      %cst_10 = arith.constant 0.000000e+00 : f32
      %12 = vector.broadcast %cst_10 : f32 to vector<256x128xf32>
      %c0_11 = arith.constant 0 : index
      %c0_12 = arith.constant 0 : index
      %13 = vector.load %arg7[%c0_11, %c0_12] : memref<256x128xf32, #tpu.memory_space<vmem>>, vector<256x128xf32>
      tpu.vector_store %arg7[%c0_11, %c0_12], %12 {strides = array<i32>} : memref<256x128xf32, #tpu.memory_space<vmem>>, vector<256x128xf32>,
    } else {
    }
    %c0 = arith.constant 0 : index
    %c0_1 = arith.constant 0 : index
    %3 = vector.load %arg7[%c0, %c0_1] : memref<256x128xf32, #tpu.memory_space<vmem>>, vector<256x128xf32>
    %c0_2 = arith.constant 0 : index
    %c0_3 = arith.constant 0 : index
    %4 = vector.load %arg3[%c0_2, %c0_3] : memref<256x128xbf16, #tpu.memory_space<vmem>>, vector<256x128xbf16>
    %c0_4 = arith.constant 0 : index
    %c0_5 = arith.constant 0 : index
    %5 = vector.load %arg4[%c0_4, %c0_5] : memref<128x128xbf16, #tpu.memory_space<vmem>>, vector<128x128xbf16>
    %cst = arith.constant dense<0.000000e+00> : vector<256x128xf32>
    %6 = tpu.matmul %4, %5, %cst {dimension_numbers = #tpu.dot_dimension_numbers<[1], [0], [0], [1], [0, 0, 1, 1], [], []>} : vector<256x128xbf16>, vector<128x128xbf16>, vector<256x128xf32> -> vector<256x128xf32>
    %7 = arith.addf %3, %6 : vector<256x128xf32>
    %c0_6 = arith.constant 0 : index
    %c0_7 = arith.constant 0 : index
    %8 = vector.load %arg7[%c0_6, %c0_7] : memref<256x128xf32, #tpu.memory_space<vmem>>, vector<256x128xf32>
    tpu.vector_store %arg7[%c0_6, %c0_7], %7 {strides = array<i32>} : memref<256x128xf32, #tpu.memory_space<vmem>>, vector<256x128xf32>,
    %c0_i32_8 = arith.constant 0 : i32
    %9 = arith.cmpi eq, %arg2, %c0_i32_8 : i32
    %10 = arith.extui %9 : i1 to i32
    %c0_i32_9 = arith.constant 0 : i32
    %11 = arith.cmpi ne, %10, %c0_i32_9 : i32
    scf.if %11 {
      %c0_10 = arith.constant 0 : index
      %c0_11 = arith.constant 0 : index
      %12 = vector.load %arg7[%c0_10, %c0_11] : memref<256x128xf32, #tpu.memory_space<vmem>>, vector<256x128xf32>
      %c0_12 = arith.constant 0 : index
      %c0_13 = arith.constant 0 : index
      %13 = vector.load %arg5[%c0_12, %c0_13] : memref<1x128xf32, #tpu.memory_space<vmem>>, vector<1x128xf32>
      %14 = vector.broadcast %13 : vector<1x128xf32> to vector<256x128xf32>
      %15 = arith.addf %12, %14 : vector<256x128xf32>
      %cst_14 = arith.constant 0.000000e+00 : f32
      %16 = vector.broadcast %cst_14 : f32 to vector<256x128xf32>
      %17 = arith.maximumf %15, %16 : vector<256x128xf32>
      %c0_15 = arith.constant 0 : index
      %c0_16 = arith.constant 0 : index
      %18 = vector.load %arg6[%c0_15, %c0_16] : memref<256x128xf32, #tpu.memory_space<vmem>>, vector<256x128xf32>
      tpu.vector_store %arg6[%c0_15, %c0_16], %17 {strides = array<i32>} : memref<256x128xf32, #tpu.memory_space<vmem>>, vector<256x128xf32>,
    } else {
    }
    return
  }
  func.func @transform_0(%arg0: i32, %arg1: i32, %arg2: i32) -> (i32, i32) {
    %c0_i32 = arith.constant 0 : i32
    return %arg0, %arg2 : i32, i32
  }
  func.func @transform_1(%arg0: i32, %arg1: i32, %arg2: i32) -> (i32, i32) {
    %c0_i32 = arith.constant 0 : i32
    return %arg2, %arg1 : i32, i32
  }
  func.func @transform_2(%arg0: i32, %arg1: i32, %arg2: i32) -> (i32, i32) {
    %c0_i32 = arith.constant 0 : i32
    %c0_i32_0 = arith.constant 0 : i32
    return %c0_i32, %arg1 : i32, i32
  }
  func.func @transform_3(%arg0: i32, %arg1: i32, %arg2: i32) -> (i32, i32) {
    %c0_i32 = arith.constant 0 : i32
    return %arg0, %arg1 : i32, i32
  }
}

module attributes {stable_mosaic.version = 11 : i64} {
  func.func @_mm_kernel(%arg0: i32, %arg1: i32, %arg2: i32, %arg3: memref<128x128xbf16, #tpu.memory_space<vmem>>, %arg4: memref<128x128xbf16, #tpu.memory_space<vmem>>, %arg5: memref<1x128xf32, #tpu.memory_space<vmem>>, %arg6: memref<128x128xf32, #tpu.memory_space<vmem>>, %arg7: memref<128x128xf32, #tpu.memory_space<vmem>>) attributes {dimension_semantics = [#tpu.dimension_semantics<parallel>, #tpu.dimension_semantics<parallel>, #tpu.dimension_semantics<arbitrary>], iteration_bounds = array<i64: 1, 1, 1>, scalar_prefetch = 0 : i64, scratch_operands = 1 : i64, tpu.core_type = #tpu.core_type<tc>, window_params = [{transform_indices = @transform_0, window_bounds = array<i64: 128, 128>}, {transform_indices = @transform_1, window_bounds = array<i64: 128, 128>}, {transform_indices = @transform_2, window_bounds = array<i64: 1, 128>}, {transform_indices = @transform_3, window_bounds = array<i64: 128, 128>}]} {
    %c0_i32 = arith.constant 0 : i32
    %0 = arith.cmpi eq, %arg2, %c0_i32 : i32
    %1 = arith.extui %0 : i1 to i32
    %c0_i32_0 = arith.constant 0 : i32
    %2 = arith.cmpi ne, %1, %c0_i32_0 : i32
    scf.if %2 {
      %cst_10 = arith.constant 0.000000e+00 : f32
      %12 = vector.broadcast %cst_10 : f32 to vector<128x128xf32>
      %c0_11 = arith.constant 0 : index
      %c0_12 = arith.constant 0 : index
      %13 = vector.load %arg7[%c0_11, %c0_12] : memref<128x128xf32, #tpu.memory_space<vmem>>, vector<128x128xf32>
      tpu.vector_store %arg7[%c0_11, %c0_12], %12 {strides = array<i32>} : memref<128x128xf32, #tpu.memory_space<vmem>>, vector<128x128xf32>,
    } else {
    }
    %c0 = arith.constant 0 : index
    %c0_1 = arith.constant 0 : index
    %3 = vector.load %arg7[%c0, %c0_1] : memref<128x128xf32, #tpu.memory_space<vmem>>, vector<128x128xf32>
    %c0_2 = arith.constant 0 : index
    %c0_3 = arith.constant 0 : index
    %4 = vector.load %arg3[%c0_2, %c0_3] : memref<128x128xbf16, #tpu.memory_space<vmem>>, vector<128x128xbf16>
    %c0_4 = arith.constant 0 : index
    %c0_5 = arith.constant 0 : index
    %5 = vector.load %arg4[%c0_4, %c0_5] : memref<128x128xbf16, #tpu.memory_space<vmem>>, vector<128x128xbf16>
    %cst = arith.constant dense<0.000000e+00> : vector<128x128xf32>
    %6 = tpu.matmul %4, %5, %cst {dimension_numbers = #tpu.dot_dimension_numbers<[1], [0], [0], [1], [0, 0, 1, 1], [], []>} : vector<128x128xbf16>, vector<128x128xbf16>, vector<128x128xf32> -> vector<128x128xf32>
    %7 = arith.addf %3, %6 : vector<128x128xf32>
    %c0_6 = arith.constant 0 : index
    %c0_7 = arith.constant 0 : index
    %8 = vector.load %arg7[%c0_6, %c0_7] : memref<128x128xf32, #tpu.memory_space<vmem>>, vector<128x128xf32>
    tpu.vector_store %arg7[%c0_6, %c0_7], %7 {strides = array<i32>} : memref<128x128xf32, #tpu.memory_space<vmem>>, vector<128x128xf32>,
    %c0_i32_8 = arith.constant 0 : i32
    %9 = arith.cmpi eq, %arg2, %c0_i32_8 : i32
    %10 = arith.extui %9 : i1 to i32
    %c0_i32_9 = arith.constant 0 : i32
    %11 = arith.cmpi ne, %10, %c0_i32_9 : i32
    scf.if %11 {
      %c0_10 = arith.constant 0 : index
      %c0_11 = arith.constant 0 : index
      %12 = vector.load %arg7[%c0_10, %c0_11] : memref<128x128xf32, #tpu.memory_space<vmem>>, vector<128x128xf32>
      %c0_12 = arith.constant 0 : index
      %c0_13 = arith.constant 0 : index
      %13 = vector.load %arg5[%c0_12, %c0_13] : memref<1x128xf32, #tpu.memory_space<vmem>>, vector<1x128xf32>
      %14 = vector.broadcast %13 : vector<1x128xf32> to vector<128x128xf32>
      %15 = arith.addf %12, %14 : vector<128x128xf32>
      %cst_14 = arith.constant 0.000000e+00 : f32
      %16 = vector.broadcast %cst_14 : f32 to vector<128x128xf32>
      %17 = arith.maximumf %15, %16 : vector<128x128xf32>
      %c0_15 = arith.constant 0 : index
      %c0_16 = arith.constant 0 : index
      %18 = vector.load %arg6[%c0_15, %c0_16] : memref<128x128xf32, #tpu.memory_space<vmem>>, vector<128x128xf32>
      tpu.vector_store %arg6[%c0_15, %c0_16], %17 {strides = array<i32>} : memref<128x128xf32, #tpu.memory_space<vmem>>, vector<128x128xf32>,
    } else {
    }
    return
  }
  func.func @transform_0(%arg0: i32, %arg1: i32, %arg2: i32) -> (i32, i32) {
    %c0_i32 = arith.constant 0 : i32
    return %arg0, %arg2 : i32, i32
  }
  func.func @transform_1(%arg0: i32, %arg1: i32, %arg2: i32) -> (i32, i32) {
    %c0_i32 = arith.constant 0 : i32
    return %arg2, %arg1 : i32, i32
  }
  func.func @transform_2(%arg0: i32, %arg1: i32, %arg2: i32) -> (i32, i32) {
    %c0_i32 = arith.constant 0 : i32
    %c0_i32_0 = arith.constant 0 : i32
    return %c0_i32, %arg1 : i32, i32
  }
  func.func @transform_3(%arg0: i32, %arg1: i32, %arg2: i32) -> (i32, i32) {
    %c0_i32 = arith.constant 0 : i32
    return %arg0, %arg1 : i32, i32
  }
}

module attributes {stable_mosaic.version = 11 : i64} {
  func.func @_mm_kernel(%arg0: i32, %arg1: i32, %arg2: i32, %arg3: memref<32x128xbf16, #tpu.memory_space<vmem>>, %arg4: memref<128x128xbf16, #tpu.memory_space<vmem>>, %arg5: memref<1x128xf32, #tpu.memory_space<vmem>>, %arg6: memref<32x128xf32, #tpu.memory_space<vmem>>, %arg7: memref<32x128xf32, #tpu.memory_space<vmem>>) attributes {dimension_semantics = [#tpu.dimension_semantics<parallel>, #tpu.dimension_semantics<parallel>, #tpu.dimension_semantics<arbitrary>], iteration_bounds = array<i64: 1, 1, 1>, scalar_prefetch = 0 : i64, scratch_operands = 1 : i64, tpu.core_type = #tpu.core_type<tc>, window_params = [{transform_indices = @transform_0, window_bounds = array<i64: 32, 128>}, {transform_indices = @transform_1, window_bounds = array<i64: 128, 128>}, {transform_indices = @transform_2, window_bounds = array<i64: 1, 128>}, {transform_indices = @transform_3, window_bounds = array<i64: 32, 128>}]} {
    %c0_i32 = arith.constant 0 : i32
    %0 = arith.cmpi eq, %arg2, %c0_i32 : i32
    %1 = arith.extui %0 : i1 to i32
    %c0_i32_0 = arith.constant 0 : i32
    %2 = arith.cmpi ne, %1, %c0_i32_0 : i32
    scf.if %2 {
      %cst_10 = arith.constant 0.000000e+00 : f32
      %12 = vector.broadcast %cst_10 : f32 to vector<32x128xf32>
      %c0_11 = arith.constant 0 : index
      %c0_12 = arith.constant 0 : index
      %13 = vector.load %arg7[%c0_11, %c0_12] : memref<32x128xf32, #tpu.memory_space<vmem>>, vector<32x128xf32>
      tpu.vector_store %arg7[%c0_11, %c0_12], %12 {strides = array<i32>} : memref<32x128xf32, #tpu.memory_space<vmem>>, vector<32x128xf32>,
    } else {
    }
    %c0 = arith.constant 0 : index
    %c0_1 = arith.constant 0 : index
    %3 = vector.load %arg7[%c0, %c0_1] : memref<32x128xf32, #tpu.memory_space<vmem>>, vector<32x128xf32>
    %c0_2 = arith.constant 0 : index
    %c0_3 = arith.constant 0 : index
    %4 = vector.load %arg3[%c0_2, %c0_3] : memref<32x128xbf16, #tpu.memory_space<vmem>>, vector<32x128xbf16>
    %c0_4 = arith.constant 0 : index
    %c0_5 = arith.constant 0 : index
    %5 = vector.load %arg4[%c0_4, %c0_5] : memref<128x128xbf16, #tpu.memory_space<vmem>>, vector<128x128xbf16>
    %cst = arith.constant dense<0.000000e+00> : vector<32x128xf32>
    %6 = tpu.matmul %4, %5, %cst {dimension_numbers = #tpu.dot_dimension_numbers<[1], [0], [0], [1], [0, 0, 1, 1], [], []>} : vector<32x128xbf16>, vector<128x128xbf16>, vector<32x128xf32> -> vector<32x128xf32>
    %7 = arith.addf %3, %6 : vector<32x128xf32>
    %c0_6 = arith.constant 0 : index
    %c0_7 = arith.constant 0 : index
    %8 = vector.load %arg7[%c0_6, %c0_7] : memref<32x128xf32, #tpu.memory_space<vmem>>, vector<32x128xf32>
    tpu.vector_store %arg7[%c0_6, %c0_7], %7 {strides = array<i32>} : memref<32x128xf32, #tpu.memory_space<vmem>>, vector<32x128xf32>,
    %c0_i32_8 = arith.constant 0 : i32
    %9 = arith.cmpi eq, %arg2, %c0_i32_8 : i32
    %10 = arith.extui %9 : i1 to i32
    %c0_i32_9 = arith.constant 0 : i32
    %11 = arith.cmpi ne, %10, %c0_i32_9 : i32
    scf.if %11 {
      %c0_10 = arith.constant 0 : index
      %c0_11 = arith.constant 0 : index
      %12 = vector.load %arg7[%c0_10, %c0_11] : memref<32x128xf32, #tpu.memory_space<vmem>>, vector<32x128xf32>
      %c0_12 = arith.constant 0 : index
      %c0_13 = arith.constant 0 : index
      %13 = vector.load %arg5[%c0_12, %c0_13] : memref<1x128xf32, #tpu.memory_space<vmem>>, vector<1x128xf32>
      %14 = vector.broadcast %13 : vector<1x128xf32> to vector<32x128xf32>
      %15 = arith.addf %12, %14 : vector<32x128xf32>
      %cst_14 = arith.constant 0.000000e+00 : f32
      %16 = vector.broadcast %cst_14 : f32 to vector<32x128xf32>
      %17 = arith.maximumf %15, %16 : vector<32x128xf32>
      %c0_15 = arith.constant 0 : index
      %c0_16 = arith.constant 0 : index
      %18 = vector.load %arg6[%c0_15, %c0_16] : memref<32x128xf32, #tpu.memory_space<vmem>>, vector<32x128xf32>
      tpu.vector_store %arg6[%c0_15, %c0_16], %17 {strides = array<i32>} : memref<32x128xf32, #tpu.memory_space<vmem>>, vector<32x128xf32>,
    } else {
    }
    return
  }
  func.func @transform_0(%arg0: i32, %arg1: i32, %arg2: i32) -> (i32, i32) {
    %c0_i32 = arith.constant 0 : i32
    return %arg0, %arg2 : i32, i32
  }
  func.func @transform_1(%arg0: i32, %arg1: i32, %arg2: i32) -> (i32, i32) {
    %c0_i32 = arith.constant 0 : i32
    return %arg2, %arg1 : i32, i32
  }
  func.func @transform_2(%arg0: i32, %arg1: i32, %arg2: i32) -> (i32, i32) {
    %c0_i32 = arith.constant 0 : i32
    %c0_i32_0 = arith.constant 0 : i32
    return %c0_i32, %arg1 : i32, i32
  }
  func.func @transform_3(%arg0: i32, %arg1: i32, %arg2: i32) -> (i32, i32) {
    %c0_i32 = arith.constant 0 : i32
    return %arg0, %arg1 : i32, i32
  }
}

module attributes {stable_mosaic.version = 11 : i64} {
  func.func @_mm_kernel(%arg0: i32, %arg1: i32, %arg2: i32, %arg3: memref<8x128xbf16, #tpu.memory_space<vmem>>, %arg4: memref<128x128xbf16, #tpu.memory_space<vmem>>, %arg5: memref<1x128xf32, #tpu.memory_space<vmem>>, %arg6: memref<8x128xf32, #tpu.memory_space<vmem>>, %arg7: memref<8x128xf32, #tpu.memory_space<vmem>>) attributes {dimension_semantics = [#tpu.dimension_semantics<parallel>, #tpu.dimension_semantics<parallel>, #tpu.dimension_semantics<arbitrary>], iteration_bounds = array<i64: 1, 1, 1>, scalar_prefetch = 0 : i64, scratch_operands = 1 : i64, tpu.core_type = #tpu.core_type<tc>, window_params = [{transform_indices = @transform_0, window_bounds = array<i64: 8, 128>}, {transform_indices = @transform_1, window_bounds = array<i64: 128, 128>}, {transform_indices = @transform_2, window_bounds = array<i64: 1, 128>}, {transform_indices = @transform_3, window_bounds = array<i64: 8, 128>}]} {
    %c0_i32 = arith.constant 0 : i32
    %0 = arith.cmpi eq, %arg2, %c0_i32 : i32
    %1 = arith.extui %0 : i1 to i32
    %c0_i32_0 = arith.constant 0 : i32
    %2 = arith.cmpi ne, %1, %c0_i32_0 : i32
    scf.if %2 {
      %cst_10 = arith.constant 0.000000e+00 : f32
      %12 = vector.broadcast %cst_10 : f32 to vector<8x128xf32>
      %c0_11 = arith.constant 0 : index
      %c0_12 = arith.constant 0 : index
      %13 = vector.load %arg7[%c0_11, %c0_12] : memref<8x128xf32, #tpu.memory_space<vmem>>, vector<8x128xf32>
      tpu.vector_store %arg7[%c0_11, %c0_12], %12 {strides = array<i32>} : memref<8x128xf32, #tpu.memory_space<vmem>>, vector<8x128xf32>,
    } else {
    }
    %c0 = arith.constant 0 : index
    %c0_1 = arith.constant 0 : index
    %3 = vector.load %arg7[%c0, %c0_1] : memref<8x128xf32, #tpu.memory_space<vmem>>, vector<8x128xf32>
    %c0_2 = arith.constant 0 : index
    %c0_3 = arith.constant 0 : index
    %4 = vector.load %arg3[%c0_2, %c0_3] : memref<8x128xbf16, #tpu.memory_space<vmem>>, vector<8x128xbf16>
    %c0_4 = arith.constant 0 : index
    %c0_5 = arith.constant 0 : index
    %5 = vector.load %arg4[%c0_4, %c0_5] : memref<128x128xbf16, #tpu.memory_space<vmem>>, vector<128x128xbf16>
    %cst = arith.constant dense<0.000000e+00> : vector<8x128xf32>
    %6 = tpu.matmul %4, %5, %cst {dimension_numbers = #tpu.dot_dimension_numbers<[1], [0], [0], [1], [0, 0, 1, 1], [], []>} : vector<8x128xbf16>, vector<128x128xbf16>, vector<8x128xf32> -> vector<8x128xf32>
    %7 = arith.addf %3, %6 : vector<8x128xf32>
    %c0_6 = arith.constant 0 : index
    %c0_7 = arith.constant 0 : index
    %8 = vector.load %arg7[%c0_6, %c0_7] : memref<8x128xf32, #tpu.memory_space<vmem>>, vector<8x128xf32>
    tpu.vector_store %arg7[%c0_6, %c0_7], %7 {strides = array<i32>} : memref<8x128xf32, #tpu.memory_space<vmem>>, vector<8x128xf32>,
    %c0_i32_8 = arith.constant 0 : i32
    %9 = arith.cmpi eq, %arg2, %c0_i32_8 : i32
    %10 = arith.extui %9 : i1 to i32
    %c0_i32_9 = arith.constant 0 : i32
    %11 = arith.cmpi ne, %10, %c0_i32_9 : i32
    scf.if %11 {
      %c0_10 = arith.constant 0 : index
      %c0_11 = arith.constant 0 : index
      %12 = vector.load %arg7[%c0_10, %c0_11] : memref<8x128xf32, #tpu.memory_space<vmem>>, vector<8x128xf32>
      %c0_12 = arith.constant 0 : index
      %c0_13 = arith.constant 0 : index
      %13 = vector.load %arg5[%c0_12, %c0_13] : memref<1x128xf32, #tpu.memory_space<vmem>>, vector<1x128xf32>
      %14 = vector.broadcast %13 : vector<1x128xf32> to vector<8x128xf32>
      %15 = arith.addf %12, %14 : vector<8x128xf32>
      %cst_14 = arith.constant 0.000000e+00 : f32
      %16 = vector.broadcast %cst_14 : f32 to vector<8x128xf32>
      %17 = arith.maximumf %15, %16 : vector<8x128xf32>
      %c0_15 = arith.constant 0 : index
      %c0_16 = arith.constant 0 : index
      %18 = vector.load %arg6[%c0_15, %c0_16] : memref<8x128xf32, #tpu.memory_space<vmem>>, vector<8x128xf32>
      tpu.vector_store %arg6[%c0_15, %c0_16], %17 {strides = array<i32>} : memref<8x128xf32, #tpu.memory_space<vmem>>, vector<8x128xf32>,
    } else {
    }
    return
  }
  func.func @transform_0(%arg0: i32, %arg1: i32, %arg2: i32) -> (i32, i32) {
    %c0_i32 = arith.constant 0 : i32
    return %arg0, %arg2 : i32, i32
  }
  func.func @transform_1(%arg0: i32, %arg1: i32, %arg2: i32) -> (i32, i32) {
    %c0_i32 = arith.constant 0 : i32
    return %arg2, %arg1 : i32, i32
  }
  func.func @transform_2(%arg0: i32, %arg1: i32, %arg2: i32) -> (i32, i32) {
    %c0_i32 = arith.constant 0 : i32
    %c0_i32_0 = arith.constant 0 : i32
    return %c0_i32, %arg1 : i32, i32
  }
  func.func @transform_3(%arg0: i32, %arg1: i32, %arg2: i32) -> (i32, i32) {
    %c0_i32 = arith.constant 0 : i32
    return %arg0, %arg1 : i32, i32
  }
}

module attributes {stable_mosaic.version = 11 : i64} {
  func.func @_mm_kernel(%arg0: i32, %arg1: i32, %arg2: i32, %arg3: memref<8x256xbf16, #tpu.memory_space<vmem>>, %arg4: memref<256x128xbf16, #tpu.memory_space<vmem>>, %arg5: memref<1x128xf32, #tpu.memory_space<vmem>>, %arg6: memref<8x128xf32, #tpu.memory_space<vmem>>, %arg7: memref<8x128xf32, #tpu.memory_space<vmem>>) attributes {dimension_semantics = [#tpu.dimension_semantics<parallel>, #tpu.dimension_semantics<parallel>, #tpu.dimension_semantics<arbitrary>], iteration_bounds = array<i64: 1, 1, 1>, scalar_prefetch = 0 : i64, scratch_operands = 1 : i64, tpu.core_type = #tpu.core_type<tc>, window_params = [{transform_indices = @transform_0, window_bounds = array<i64: 8, 256>}, {transform_indices = @transform_1, window_bounds = array<i64: 256, 128>}, {transform_indices = @transform_2, window_bounds = array<i64: 1, 128>}, {transform_indices = @transform_3, window_bounds = array<i64: 8, 128>}]} {
    %c0_i32 = arith.constant 0 : i32
    %0 = arith.cmpi eq, %arg2, %c0_i32 : i32
    %1 = arith.extui %0 : i1 to i32
    %c0_i32_0 = arith.constant 0 : i32
    %2 = arith.cmpi ne, %1, %c0_i32_0 : i32
    scf.if %2 {
      %cst_10 = arith.constant 0.000000e+00 : f32
      %12 = vector.broadcast %cst_10 : f32 to vector<8x128xf32>
      %c0_11 = arith.constant 0 : index
      %c0_12 = arith.constant 0 : index
      %13 = vector.load %arg7[%c0_11, %c0_12] : memref<8x128xf32, #tpu.memory_space<vmem>>, vector<8x128xf32>
      tpu.vector_store %arg7[%c0_11, %c0_12], %12 {strides = array<i32>} : memref<8x128xf32, #tpu.memory_space<vmem>>, vector<8x128xf32>,
    } else {
    }
    %c0 = arith.constant 0 : index
    %c0_1 = arith.constant 0 : index
    %3 = vector.load %arg7[%c0, %c0_1] : memref<8x128xf32, #tpu.memory_space<vmem>>, vector<8x128xf32>
    %c0_2 = arith.constant 0 : index
    %c0_3 = arith.constant 0 : index
    %4 = vector.load %arg3[%c0_2, %c0_3] : memref<8x256xbf16, #tpu.memory_space<vmem>>, vector<8x256xbf16>
    %c0_4 = arith.constant 0 : index
    %c0_5 = arith.constant 0 : index
    %5 = vector.load %arg4[%c0_4, %c0_5] : memref<256x128xbf16, #tpu.memory_space<vmem>>, vector<256x128xbf16>
    %cst = arith.constant dense<0.000000e+00> : vector<8x128xf32>
    %6 = tpu.matmul %4, %5, %cst {dimension_numbers = #tpu.dot_dimension_numbers<[1], [0], [0], [1], [0, 0, 1, 1], [], []>} : vector<8x256xbf16>, vector<256x128xbf16>, vector<8x128xf32> -> vector<8x128xf32>
    %7 = arith.addf %3, %6 : vector<8x128xf32>
    %c0_6 = arith.constant 0 : index
    %c0_7 = arith.constant 0 : index
    %8 = vector.load %arg7[%c0_6, %c0_7] : memref<8x128xf32, #tpu.memory_space<vmem>>, vector<8x128xf32>
    tpu.vector_store %arg7[%c0_6, %c0_7], %7 {strides = array<i32>} : memref<8x128xf32, #tpu.memory_space<vmem>>, vector<8x128xf32>,
    %c0_i32_8 = arith.constant 0 : i32
    %9 = arith.cmpi eq, %arg2, %c0_i32_8 : i32
    %10 = arith.extui %9 : i1 to i32
    %c0_i32_9 = arith.constant 0 : i32
    %11 = arith.cmpi ne, %10, %c0_i32_9 : i32
    scf.if %11 {
      %c0_10 = arith.constant 0 : index
      %c0_11 = arith.constant 0 : index
      %12 = vector.load %arg7[%c0_10, %c0_11] : memref<8x128xf32, #tpu.memory_space<vmem>>, vector<8x128xf32>
      %c0_12 = arith.constant 0 : index
      %c0_13 = arith.constant 0 : index
      %13 = vector.load %arg5[%c0_12, %c0_13] : memref<1x128xf32, #tpu.memory_space<vmem>>, vector<1x128xf32>
      %14 = vector.broadcast %13 : vector<1x128xf32> to vector<8x128xf32>
      %15 = arith.addf %12, %14 : vector<8x128xf32>
      %cst_14 = arith.constant 0.000000e+00 : f32
      %16 = vector.broadcast %cst_14 : f32 to vector<8x128xf32>
      %17 = arith.maximumf %15, %16 : vector<8x128xf32>
      %c0_15 = arith.constant 0 : index
      %c0_16 = arith.constant 0 : index
      %18 = vector.load %arg6[%c0_15, %c0_16] : memref<8x128xf32, #tpu.memory_space<vmem>>, vector<8x128xf32>
      tpu.vector_store %arg6[%c0_15, %c0_16], %17 {strides = array<i32>} : memref<8x128xf32, #tpu.memory_space<vmem>>, vector<8x128xf32>,
    } else {
    }
    return
  }
  func.func @transform_0(%arg0: i32, %arg1: i32, %arg2: i32) -> (i32, i32) {
    %c0_i32 = arith.constant 0 : i32
    return %arg0, %arg2 : i32, i32
  }
  func.func @transform_1(%arg0: i32, %arg1: i32, %arg2: i32) -> (i32, i32) {
    %c0_i32 = arith.constant 0 : i32
    return %arg2, %arg1 : i32, i32
  }
  func.func @transform_2(%arg0: i32, %arg1: i32, %arg2: i32) -> (i32, i32) {
    %c0_i32 = arith.constant 0 : i32
    %c0_i32_0 = arith.constant 0 : i32
    return %c0_i32, %arg1 : i32, i32
  }
  func.func @transform_3(%arg0: i32, %arg1: i32, %arg2: i32) -> (i32, i32) {
    %c0_i32 = arith.constant 0 : i32
    return %arg0, %arg1 : i32, i32
  }
}

module attributes {stable_mosaic.version = 11 : i64} {
  func.func @_mm_kernel(%arg0: i32, %arg1: i32, %arg2: i32, %arg3: memref<8x384xbf16, #tpu.memory_space<vmem>>, %arg4: memref<384x256xbf16, #tpu.memory_space<vmem>>, %arg5: memref<1x256xf32, #tpu.memory_space<vmem>>, %arg6: memref<8x256xf32, #tpu.memory_space<vmem>>, %arg7: memref<8x256xf32, #tpu.memory_space<vmem>>) attributes {dimension_semantics = [#tpu.dimension_semantics<parallel>, #tpu.dimension_semantics<parallel>, #tpu.dimension_semantics<arbitrary>], iteration_bounds = array<i64: 1, 1, 1>, scalar_prefetch = 0 : i64, scratch_operands = 1 : i64, tpu.core_type = #tpu.core_type<tc>, window_params = [{transform_indices = @transform_0, window_bounds = array<i64: 8, 384>}, {transform_indices = @transform_1, window_bounds = array<i64: 384, 256>}, {transform_indices = @transform_2, window_bounds = array<i64: 1, 256>}, {transform_indices = @transform_3, window_bounds = array<i64: 8, 256>}]} {
    %c0_i32 = arith.constant 0 : i32
    %0 = arith.cmpi eq, %arg2, %c0_i32 : i32
    %1 = arith.extui %0 : i1 to i32
    %c0_i32_0 = arith.constant 0 : i32
    %2 = arith.cmpi ne, %1, %c0_i32_0 : i32
    scf.if %2 {
      %cst_10 = arith.constant 0.000000e+00 : f32
      %12 = vector.broadcast %cst_10 : f32 to vector<8x256xf32>
      %c0_11 = arith.constant 0 : index
      %c0_12 = arith.constant 0 : index
      %13 = vector.load %arg7[%c0_11, %c0_12] : memref<8x256xf32, #tpu.memory_space<vmem>>, vector<8x256xf32>
      tpu.vector_store %arg7[%c0_11, %c0_12], %12 {strides = array<i32>} : memref<8x256xf32, #tpu.memory_space<vmem>>, vector<8x256xf32>,
    } else {
    }
    %c0 = arith.constant 0 : index
    %c0_1 = arith.constant 0 : index
    %3 = vector.load %arg7[%c0, %c0_1] : memref<8x256xf32, #tpu.memory_space<vmem>>, vector<8x256xf32>
    %c0_2 = arith.constant 0 : index
    %c0_3 = arith.constant 0 : index
    %4 = vector.load %arg3[%c0_2, %c0_3] : memref<8x384xbf16, #tpu.memory_space<vmem>>, vector<8x384xbf16>
    %c0_4 = arith.constant 0 : index
    %c0_5 = arith.constant 0 : index
    %5 = vector.load %arg4[%c0_4, %c0_5] : memref<384x256xbf16, #tpu.memory_space<vmem>>, vector<384x256xbf16>
    %cst = arith.constant dense<0.000000e+00> : vector<8x256xf32>
    %6 = tpu.matmul %4, %5, %cst {dimension_numbers = #tpu.dot_dimension_numbers<[1], [0], [0], [1], [0, 0, 1, 1], [], []>} : vector<8x384xbf16>, vector<384x256xbf16>, vector<8x256xf32> -> vector<8x256xf32>
    %7 = arith.addf %3, %6 : vector<8x256xf32>
    %c0_6 = arith.constant 0 : index
    %c0_7 = arith.constant 0 : index
    %8 = vector.load %arg7[%c0_6, %c0_7] : memref<8x256xf32, #tpu.memory_space<vmem>>, vector<8x256xf32>
    tpu.vector_store %arg7[%c0_6, %c0_7], %7 {strides = array<i32>} : memref<8x256xf32, #tpu.memory_space<vmem>>, vector<8x256xf32>,
    %c0_i32_8 = arith.constant 0 : i32
    %9 = arith.cmpi eq, %arg2, %c0_i32_8 : i32
    %10 = arith.extui %9 : i1 to i32
    %c0_i32_9 = arith.constant 0 : i32
    %11 = arith.cmpi ne, %10, %c0_i32_9 : i32
    scf.if %11 {
      %c0_10 = arith.constant 0 : index
      %c0_11 = arith.constant 0 : index
      %12 = vector.load %arg7[%c0_10, %c0_11] : memref<8x256xf32, #tpu.memory_space<vmem>>, vector<8x256xf32>
      %c0_12 = arith.constant 0 : index
      %c0_13 = arith.constant 0 : index
      %13 = vector.load %arg5[%c0_12, %c0_13] : memref<1x256xf32, #tpu.memory_space<vmem>>, vector<1x256xf32>
      %14 = vector.broadcast %13 : vector<1x256xf32> to vector<8x256xf32>
      %15 = arith.addf %12, %14 : vector<8x256xf32>
      %cst_14 = arith.constant 0.000000e+00 : f32
      %16 = vector.broadcast %cst_14 : f32 to vector<8x256xf32>
      %17 = arith.maximumf %15, %16 : vector<8x256xf32>
      %c0_15 = arith.constant 0 : index
      %c0_16 = arith.constant 0 : index
      %18 = vector.load %arg6[%c0_15, %c0_16] : memref<8x256xf32, #tpu.memory_space<vmem>>, vector<8x256xf32>
      tpu.vector_store %arg6[%c0_15, %c0_16], %17 {strides = array<i32>} : memref<8x256xf32, #tpu.memory_space<vmem>>, vector<8x256xf32>,
    } else {
    }
    return
  }
  func.func @transform_0(%arg0: i32, %arg1: i32, %arg2: i32) -> (i32, i32) {
    %c0_i32 = arith.constant 0 : i32
    return %arg0, %arg2 : i32, i32
  }
  func.func @transform_1(%arg0: i32, %arg1: i32, %arg2: i32) -> (i32, i32) {
    %c0_i32 = arith.constant 0 : i32
    return %arg2, %arg1 : i32, i32
  }
  func.func @transform_2(%arg0: i32, %arg1: i32, %arg2: i32) -> (i32, i32) {
    %c0_i32 = arith.constant 0 : i32
    %c0_i32_0 = arith.constant 0 : i32
    return %c0_i32, %arg1 : i32, i32
  }
  func.func @transform_3(%arg0: i32, %arg1: i32, %arg2: i32) -> (i32, i32) {
    %c0_i32 = arith.constant 0 : i32
    return %arg0, %arg1 : i32, i32
  }
}

module attributes {stable_mosaic.version = 11 : i64} {
  func.func @_mm_kernel(%arg0: i32, %arg1: i32, %arg2: i32, %arg3: memref<8x128xbf16, #tpu.memory_space<vmem>>, %arg4: memref<128x256xbf16, #tpu.memory_space<vmem>>, %arg5: memref<1x256xf32, #tpu.memory_space<vmem>>, %arg6: memref<8x256xf32, #tpu.memory_space<vmem>>, %arg7: memref<8x256xf32, #tpu.memory_space<vmem>>) attributes {dimension_semantics = [#tpu.dimension_semantics<parallel>, #tpu.dimension_semantics<parallel>, #tpu.dimension_semantics<arbitrary>], iteration_bounds = array<i64: 1, 1, 1>, scalar_prefetch = 0 : i64, scratch_operands = 1 : i64, tpu.core_type = #tpu.core_type<tc>, window_params = [{transform_indices = @transform_0, window_bounds = array<i64: 8, 128>}, {transform_indices = @transform_1, window_bounds = array<i64: 128, 256>}, {transform_indices = @transform_2, window_bounds = array<i64: 1, 256>}, {transform_indices = @transform_3, window_bounds = array<i64: 8, 256>}]} {
    %c0_i32 = arith.constant 0 : i32
    %0 = arith.cmpi eq, %arg2, %c0_i32 : i32
    %1 = arith.extui %0 : i1 to i32
    %c0_i32_0 = arith.constant 0 : i32
    %2 = arith.cmpi ne, %1, %c0_i32_0 : i32
    scf.if %2 {
      %cst_10 = arith.constant 0.000000e+00 : f32
      %12 = vector.broadcast %cst_10 : f32 to vector<8x256xf32>
      %c0_11 = arith.constant 0 : index
      %c0_12 = arith.constant 0 : index
      %13 = vector.load %arg7[%c0_11, %c0_12] : memref<8x256xf32, #tpu.memory_space<vmem>>, vector<8x256xf32>
      tpu.vector_store %arg7[%c0_11, %c0_12], %12 {strides = array<i32>} : memref<8x256xf32, #tpu.memory_space<vmem>>, vector<8x256xf32>,
    } else {
    }
    %c0 = arith.constant 0 : index
    %c0_1 = arith.constant 0 : index
    %3 = vector.load %arg7[%c0, %c0_1] : memref<8x256xf32, #tpu.memory_space<vmem>>, vector<8x256xf32>
    %c0_2 = arith.constant 0 : index
    %c0_3 = arith.constant 0 : index
    %4 = vector.load %arg3[%c0_2, %c0_3] : memref<8x128xbf16, #tpu.memory_space<vmem>>, vector<8x128xbf16>
    %c0_4 = arith.constant 0 : index
    %c0_5 = arith.constant 0 : index
    %5 = vector.load %arg4[%c0_4, %c0_5] : memref<128x256xbf16, #tpu.memory_space<vmem>>, vector<128x256xbf16>
    %cst = arith.constant dense<0.000000e+00> : vector<8x256xf32>
    %6 = tpu.matmul %4, %5, %cst {dimension_numbers = #tpu.dot_dimension_numbers<[1], [0], [0], [1], [0, 0, 1, 1], [], []>} : vector<8x128xbf16>, vector<128x256xbf16>, vector<8x256xf32> -> vector<8x256xf32>
    %7 = arith.addf %3, %6 : vector<8x256xf32>
    %c0_6 = arith.constant 0 : index
    %c0_7 = arith.constant 0 : index
    %8 = vector.load %arg7[%c0_6, %c0_7] : memref<8x256xf32, #tpu.memory_space<vmem>>, vector<8x256xf32>
    tpu.vector_store %arg7[%c0_6, %c0_7], %7 {strides = array<i32>} : memref<8x256xf32, #tpu.memory_space<vmem>>, vector<8x256xf32>,
    %c0_i32_8 = arith.constant 0 : i32
    %9 = arith.cmpi eq, %arg2, %c0_i32_8 : i32
    %10 = arith.extui %9 : i1 to i32
    %c0_i32_9 = arith.constant 0 : i32
    %11 = arith.cmpi ne, %10, %c0_i32_9 : i32
    scf.if %11 {
      %c0_10 = arith.constant 0 : index
      %c0_11 = arith.constant 0 : index
      %12 = vector.load %arg7[%c0_10, %c0_11] : memref<8x256xf32, #tpu.memory_space<vmem>>, vector<8x256xf32>
      %c0_12 = arith.constant 0 : index
      %c0_13 = arith.constant 0 : index
      %13 = vector.load %arg5[%c0_12, %c0_13] : memref<1x256xf32, #tpu.memory_space<vmem>>, vector<1x256xf32>
      %14 = vector.broadcast %13 : vector<1x256xf32> to vector<8x256xf32>
      %15 = arith.addf %12, %14 : vector<8x256xf32>
      %cst_14 = arith.constant 0.000000e+00 : f32
      %16 = vector.broadcast %cst_14 : f32 to vector<8x256xf32>
      %17 = arith.maximumf %15, %16 : vector<8x256xf32>
      %c0_15 = arith.constant 0 : index
      %c0_16 = arith.constant 0 : index
      %18 = vector.load %arg6[%c0_15, %c0_16] : memref<8x256xf32, #tpu.memory_space<vmem>>, vector<8x256xf32>
      tpu.vector_store %arg6[%c0_15, %c0_16], %17 {strides = array<i32>} : memref<8x256xf32, #tpu.memory_space<vmem>>, vector<8x256xf32>,
    } else {
    }
    return
  }
  func.func @transform_0(%arg0: i32, %arg1: i32, %arg2: i32) -> (i32, i32) {
    %c0_i32 = arith.constant 0 : i32
    return %arg0, %arg2 : i32, i32
  }
  func.func @transform_1(%arg0: i32, %arg1: i32, %arg2: i32) -> (i32, i32) {
    %c0_i32 = arith.constant 0 : i32
    return %arg2, %arg1 : i32, i32
  }
  func.func @transform_2(%arg0: i32, %arg1: i32, %arg2: i32) -> (i32, i32) {
    %c0_i32 = arith.constant 0 : i32
    %c0_i32_0 = arith.constant 0 : i32
    return %c0_i32, %arg1 : i32, i32
  }
  func.func @transform_3(%arg0: i32, %arg1: i32, %arg2: i32) -> (i32, i32) {
    %c0_i32 = arith.constant 0 : i32
    return %arg0, %arg1 : i32, i32
  }
}

module attributes {stable_mosaic.version = 11 : i64} {
  func.func @_mm_kernel(%arg0: i32, %arg1: i32, %arg2: i32, %arg3: memref<8x512xbf16, #tpu.memory_space<vmem>>, %arg4: memref<512x256xbf16, #tpu.memory_space<vmem>>, %arg5: memref<1x256xf32, #tpu.memory_space<vmem>>, %arg6: memref<8x256xf32, #tpu.memory_space<vmem>>, %arg7: memref<8x256xf32, #tpu.memory_space<vmem>>) attributes {dimension_semantics = [#tpu.dimension_semantics<parallel>, #tpu.dimension_semantics<parallel>, #tpu.dimension_semantics<arbitrary>], iteration_bounds = array<i64: 1, 1, 3>, scalar_prefetch = 0 : i64, scratch_operands = 1 : i64, tpu.core_type = #tpu.core_type<tc>, window_params = [{transform_indices = @transform_0, window_bounds = array<i64: 8, 512>}, {transform_indices = @transform_1, window_bounds = array<i64: 512, 256>}, {transform_indices = @transform_2, window_bounds = array<i64: 1, 256>}, {transform_indices = @transform_3, window_bounds = array<i64: 8, 256>}]} {
    %c0_i32 = arith.constant 0 : i32
    %0 = arith.cmpi eq, %arg2, %c0_i32 : i32
    %1 = arith.extui %0 : i1 to i32
    %c0_i32_0 = arith.constant 0 : i32
    %2 = arith.cmpi ne, %1, %c0_i32_0 : i32
    scf.if %2 {
      %cst_9 = arith.constant 0.000000e+00 : f32
      %12 = vector.broadcast %cst_9 : f32 to vector<8x256xf32>
      %c0_10 = arith.constant 0 : index
      %c0_11 = arith.constant 0 : index
      %13 = vector.load %arg7[%c0_10, %c0_11] : memref<8x256xf32, #tpu.memory_space<vmem>>, vector<8x256xf32>
      tpu.vector_store %arg7[%c0_10, %c0_11], %12 {strides = array<i32>} : memref<8x256xf32, #tpu.memory_space<vmem>>, vector<8x256xf32>,
    } else {
    }
    %c0 = arith.constant 0 : index
    %c0_1 = arith.constant 0 : index
    %3 = vector.load %arg7[%c0, %c0_1] : memref<8x256xf32, #tpu.memory_space<vmem>>, vector<8x256xf32>
    %c0_2 = arith.constant 0 : index
    %c0_3 = arith.constant 0 : index
    %4 = vector.load %arg3[%c0_2, %c0_3] : memref<8x512xbf16, #tpu.memory_space<vmem>>, vector<8x512xbf16>
    %c0_4 = arith.constant 0 : index
    %c0_5 = arith.constant 0 : index
    %5 = vector.load %arg4[%c0_4, %c0_5] : memref<512x256xbf16, #tpu.memory_space<vmem>>, vector<512x256xbf16>
    %cst = arith.constant dense<0.000000e+00> : vector<8x256xf32>
    %6 = tpu.matmul %4, %5, %cst {dimension_numbers = #tpu.dot_dimension_numbers<[1], [0], [0], [1], [0, 0, 1, 1], [], []>} : vector<8x512xbf16>, vector<512x256xbf16>, vector<8x256xf32> -> vector<8x256xf32>
    %7 = arith.addf %3, %6 : vector<8x256xf32>
    %c0_6 = arith.constant 0 : index
    %c0_7 = arith.constant 0 : index
    %8 = vector.load %arg7[%c0_6, %c0_7] : memref<8x256xf32, #tpu.memory_space<vmem>>, vector<8x256xf32>
    tpu.vector_store %arg7[%c0_6, %c0_7], %7 {strides = array<i32>} : memref<8x256xf32, #tpu.memory_space<vmem>>, vector<8x256xf32>,
    %c2_i32 = arith.constant 2 : i32
    %9 = arith.cmpi eq, %arg2, %c2_i32 : i32
    %10 = arith.extui %9 : i1 to i32
    %c0_i32_8 = arith.constant 0 : i32
    %11 = arith.cmpi ne, %10, %c0_i32_8 : i32
    scf.if %11 {
      %c0_9 = arith.constant 0 : index
      %c0_10 = arith.constant 0 : index
      %12 = vector.load %arg7[%c0_9, %c0_10] : memref<8x256xf32, #tpu.memory_space<vmem>>, vector<8x256xf32>
      %c0_11 = arith.constant 0 : index
      %c0_12 = arith.constant 0 : index
      %13 = vector.load %arg5[%c0_11, %c0_12] : memref<1x256xf32, #tpu.memory_space<vmem>>, vector<1x256xf32>
      %14 = vector.broadcast %13 : vector<1x256xf32> to vector<8x256xf32>
      %15 = arith.addf %12, %14 : vector<8x256xf32>
      %cst_13 = arith.constant 0.000000e+00 : f32
      %16 = vector.broadcast %cst_13 : f32 to vector<8x256xf32>
      %17 = arith.maximumf %15, %16 : vector<8x256xf32>
      %c0_14 = arith.constant 0 : index
      %c0_15 = arith.constant 0 : index
      %18 = vector.load %arg6[%c0_14, %c0_15] : memref<8x256xf32, #tpu.memory_space<vmem>>, vector<8x256xf32>
      tpu.vector_store %arg6[%c0_14, %c0_15], %17 {strides = array<i32>} : memref<8x256xf32, #tpu.memory_space<vmem>>, vector<8x256xf32>,
    } else {
    }
    return
  }
  func.func @transform_0(%arg0: i32, %arg1: i32, %arg2: i32) -> (i32, i32) {
    %c0_i32 = arith.constant 0 : i32
    return %arg0, %arg2 : i32, i32
  }
  func.func @transform_1(%arg0: i32, %arg1: i32, %arg2: i32) -> (i32, i32) {
    %c0_i32 = arith.constant 0 : i32
    return %arg2, %arg1 : i32, i32
  }
  func.func @transform_2(%arg0: i32, %arg1: i32, %arg2: i32) -> (i32, i32) {
    %c0_i32 = arith.constant 0 : i32
    %c0_i32_0 = arith.constant 0 : i32
    return %c0_i32, %arg1 : i32, i32
  }
  func.func @transform_3(%arg0: i32, %arg1: i32, %arg2: i32) -> (i32, i32) {
    %c0_i32 = arith.constant 0 : i32
    return %arg0, %arg1 : i32, i32
  }
}

module attributes {stable_mosaic.version = 11 : i64} {
  func.func @_mm_kernel(%arg0: i32, %arg1: i32, %arg2: i32, %arg3: memref<8x128xbf16, #tpu.memory_space<vmem>>, %arg4: memref<128x128xbf16, #tpu.memory_space<vmem>>, %arg5: memref<1x128xf32, #tpu.memory_space<vmem>>, %arg6: memref<8x128xf32, #tpu.memory_space<vmem>>, %arg7: memref<8x128xf32, #tpu.memory_space<vmem>>) attributes {dimension_semantics = [#tpu.dimension_semantics<parallel>, #tpu.dimension_semantics<parallel>, #tpu.dimension_semantics<arbitrary>], iteration_bounds = array<i64: 1, 1, 1>, scalar_prefetch = 0 : i64, scratch_operands = 1 : i64, tpu.core_type = #tpu.core_type<tc>, window_params = [{transform_indices = @transform_0, window_bounds = array<i64: 8, 128>}, {transform_indices = @transform_1, window_bounds = array<i64: 128, 128>}, {transform_indices = @transform_2, window_bounds = array<i64: 1, 128>}, {transform_indices = @transform_3, window_bounds = array<i64: 8, 128>}]} {
    %c0_i32 = arith.constant 0 : i32
    %0 = arith.cmpi eq, %arg2, %c0_i32 : i32
    %1 = arith.extui %0 : i1 to i32
    %c0_i32_0 = arith.constant 0 : i32
    %2 = arith.cmpi ne, %1, %c0_i32_0 : i32
    scf.if %2 {
      %cst_10 = arith.constant 0.000000e+00 : f32
      %12 = vector.broadcast %cst_10 : f32 to vector<8x128xf32>
      %c0_11 = arith.constant 0 : index
      %c0_12 = arith.constant 0 : index
      %13 = vector.load %arg7[%c0_11, %c0_12] : memref<8x128xf32, #tpu.memory_space<vmem>>, vector<8x128xf32>
      tpu.vector_store %arg7[%c0_11, %c0_12], %12 {strides = array<i32>} : memref<8x128xf32, #tpu.memory_space<vmem>>, vector<8x128xf32>,
    } else {
    }
    %c0 = arith.constant 0 : index
    %c0_1 = arith.constant 0 : index
    %3 = vector.load %arg7[%c0, %c0_1] : memref<8x128xf32, #tpu.memory_space<vmem>>, vector<8x128xf32>
    %c0_2 = arith.constant 0 : index
    %c0_3 = arith.constant 0 : index
    %4 = vector.load %arg3[%c0_2, %c0_3] : memref<8x128xbf16, #tpu.memory_space<vmem>>, vector<8x128xbf16>
    %c0_4 = arith.constant 0 : index
    %c0_5 = arith.constant 0 : index
    %5 = vector.load %arg4[%c0_4, %c0_5] : memref<128x128xbf16, #tpu.memory_space<vmem>>, vector<128x128xbf16>
    %cst = arith.constant dense<0.000000e+00> : vector<8x128xf32>
    %6 = tpu.matmul %4, %5, %cst {dimension_numbers = #tpu.dot_dimension_numbers<[1], [0], [0], [1], [0, 0, 1, 1], [], []>} : vector<8x128xbf16>, vector<128x128xbf16>, vector<8x128xf32> -> vector<8x128xf32>
    %7 = arith.addf %3, %6 : vector<8x128xf32>
    %c0_6 = arith.constant 0 : index
    %c0_7 = arith.constant 0 : index
    %8 = vector.load %arg7[%c0_6, %c0_7] : memref<8x128xf32, #tpu.memory_space<vmem>>, vector<8x128xf32>
    tpu.vector_store %arg7[%c0_6, %c0_7], %7 {strides = array<i32>} : memref<8x128xf32, #tpu.memory_space<vmem>>, vector<8x128xf32>,
    %c0_i32_8 = arith.constant 0 : i32
    %9 = arith.cmpi eq, %arg2, %c0_i32_8 : i32
    %10 = arith.extui %9 : i1 to i32
    %c0_i32_9 = arith.constant 0 : i32
    %11 = arith.cmpi ne, %10, %c0_i32_9 : i32
    scf.if %11 {
      %c0_10 = arith.constant 0 : index
      %c0_11 = arith.constant 0 : index
      %12 = vector.load %arg7[%c0_10, %c0_11] : memref<8x128xf32, #tpu.memory_space<vmem>>, vector<8x128xf32>
      %c0_12 = arith.constant 0 : index
      %c0_13 = arith.constant 0 : index
      %13 = vector.load %arg5[%c0_12, %c0_13] : memref<1x128xf32, #tpu.memory_space<vmem>>, vector<1x128xf32>
      %14 = vector.broadcast %13 : vector<1x128xf32> to vector<8x128xf32>
      %15 = arith.addf %12, %14 : vector<8x128xf32>
      %c0_14 = arith.constant 0 : index
      %c0_15 = arith.constant 0 : index
      %16 = vector.load %arg6[%c0_14, %c0_15] : memref<8x128xf32, #tpu.memory_space<vmem>>, vector<8x128xf32>
      tpu.vector_store %arg6[%c0_14, %c0_15], %15 {strides = array<i32>} : memref<8x128xf32, #tpu.memory_space<vmem>>, vector<8x128xf32>,
    } else {
    }
    return
  }
  func.func @transform_0(%arg0: i32, %arg1: i32, %arg2: i32) -> (i32, i32) {
    %c0_i32 = arith.constant 0 : i32
    return %arg0, %arg2 : i32, i32
  }
  func.func @transform_1(%arg0: i32, %arg1: i32, %arg2: i32) -> (i32, i32) {
    %c0_i32 = arith.constant 0 : i32
    return %arg2, %arg1 : i32, i32
  }
  func.func @transform_2(%arg0: i32, %arg1: i32, %arg2: i32) -> (i32, i32) {
    %c0_i32 = arith.constant 0 : i32
    %c0_i32_0 = arith.constant 0 : i32
    return %c0_i32, %arg1 : i32, i32
  }
  func.func @transform_3(%arg0: i32, %arg1: i32, %arg2: i32) -> (i32, i32) {
    %c0_i32 = arith.constant 0 : i32
    return %arg0, %arg1 : i32, i32
  }
}

module attributes {stable_mosaic.version = 11 : i64} {
  func.func @_mm_kernel(%arg0: i32, %arg1: i32, %arg2: i32, %arg3: memref<8x256xbf16, #tpu.memory_space<vmem>>, %arg4: memref<256x128xbf16, #tpu.memory_space<vmem>>, %arg5: memref<1x128xf32, #tpu.memory_space<vmem>>, %arg6: memref<8x128xf32, #tpu.memory_space<vmem>>, %arg7: memref<8x128xf32, #tpu.memory_space<vmem>>) attributes {dimension_semantics = [#tpu.dimension_semantics<parallel>, #tpu.dimension_semantics<parallel>, #tpu.dimension_semantics<arbitrary>], iteration_bounds = array<i64: 1, 1, 1>, scalar_prefetch = 0 : i64, scratch_operands = 1 : i64, tpu.core_type = #tpu.core_type<tc>, window_params = [{transform_indices = @transform_0, window_bounds = array<i64: 8, 256>}, {transform_indices = @transform_1, window_bounds = array<i64: 256, 128>}, {transform_indices = @transform_2, window_bounds = array<i64: 1, 128>}, {transform_indices = @transform_3, window_bounds = array<i64: 8, 128>}]} {
    %c0_i32 = arith.constant 0 : i32
    %0 = arith.cmpi eq, %arg2, %c0_i32 : i32
    %1 = arith.extui %0 : i1 to i32
    %c0_i32_0 = arith.constant 0 : i32
    %2 = arith.cmpi ne, %1, %c0_i32_0 : i32
    scf.if %2 {
      %cst_10 = arith.constant 0.000000e+00 : f32
      %12 = vector.broadcast %cst_10 : f32 to vector<8x128xf32>
      %c0_11 = arith.constant 0 : index
      %c0_12 = arith.constant 0 : index
      %13 = vector.load %arg7[%c0_11, %c0_12] : memref<8x128xf32, #tpu.memory_space<vmem>>, vector<8x128xf32>
      tpu.vector_store %arg7[%c0_11, %c0_12], %12 {strides = array<i32>} : memref<8x128xf32, #tpu.memory_space<vmem>>, vector<8x128xf32>,
    } else {
    }
    %c0 = arith.constant 0 : index
    %c0_1 = arith.constant 0 : index
    %3 = vector.load %arg7[%c0, %c0_1] : memref<8x128xf32, #tpu.memory_space<vmem>>, vector<8x128xf32>
    %c0_2 = arith.constant 0 : index
    %c0_3 = arith.constant 0 : index
    %4 = vector.load %arg3[%c0_2, %c0_3] : memref<8x256xbf16, #tpu.memory_space<vmem>>, vector<8x256xbf16>
    %c0_4 = arith.constant 0 : index
    %c0_5 = arith.constant 0 : index
    %5 = vector.load %arg4[%c0_4, %c0_5] : memref<256x128xbf16, #tpu.memory_space<vmem>>, vector<256x128xbf16>
    %cst = arith.constant dense<0.000000e+00> : vector<8x128xf32>
    %6 = tpu.matmul %4, %5, %cst {dimension_numbers = #tpu.dot_dimension_numbers<[1], [0], [0], [1], [0, 0, 1, 1], [], []>} : vector<8x256xbf16>, vector<256x128xbf16>, vector<8x128xf32> -> vector<8x128xf32>
    %7 = arith.addf %3, %6 : vector<8x128xf32>
    %c0_6 = arith.constant 0 : index
    %c0_7 = arith.constant 0 : index
    %8 = vector.load %arg7[%c0_6, %c0_7] : memref<8x128xf32, #tpu.memory_space<vmem>>, vector<8x128xf32>
    tpu.vector_store %arg7[%c0_6, %c0_7], %7 {strides = array<i32>} : memref<8x128xf32, #tpu.memory_space<vmem>>, vector<8x128xf32>,
    %c0_i32_8 = arith.constant 0 : i32
    %9 = arith.cmpi eq, %arg2, %c0_i32_8 : i32
    %10 = arith.extui %9 : i1 to i32
    %c0_i32_9 = arith.constant 0 : i32
    %11 = arith.cmpi ne, %10, %c0_i32_9 : i32
    scf.if %11 {
      %c0_10 = arith.constant 0 : index
      %c0_11 = arith.constant 0 : index
      %12 = vector.load %arg7[%c0_10, %c0_11] : memref<8x128xf32, #tpu.memory_space<vmem>>, vector<8x128xf32>
      %c0_12 = arith.constant 0 : index
      %c0_13 = arith.constant 0 : index
      %13 = vector.load %arg5[%c0_12, %c0_13] : memref<1x128xf32, #tpu.memory_space<vmem>>, vector<1x128xf32>
      %14 = vector.broadcast %13 : vector<1x128xf32> to vector<8x128xf32>
      %15 = arith.addf %12, %14 : vector<8x128xf32>
      %c0_14 = arith.constant 0 : index
      %c0_15 = arith.constant 0 : index
      %16 = vector.load %arg6[%c0_14, %c0_15] : memref<8x128xf32, #tpu.memory_space<vmem>>, vector<8x128xf32>
      tpu.vector_store %arg6[%c0_14, %c0_15], %15 {strides = array<i32>} : memref<8x128xf32, #tpu.memory_space<vmem>>, vector<8x128xf32>,
    } else {
    }
    return
  }
  func.func @transform_0(%arg0: i32, %arg1: i32, %arg2: i32) -> (i32, i32) {
    %c0_i32 = arith.constant 0 : i32
    return %arg0, %arg2 : i32, i32
  }
  func.func @transform_1(%arg0: i32, %arg1: i32, %arg2: i32) -> (i32, i32) {
    %c0_i32 = arith.constant 0 : i32
    return %arg2, %arg1 : i32, i32
  }
  func.func @transform_2(%arg0: i32, %arg1: i32, %arg2: i32) -> (i32, i32) {
    %c0_i32 = arith.constant 0 : i32
    %c0_i32_0 = arith.constant 0 : i32
    return %c0_i32, %arg1 : i32, i32
  }
  func.func @transform_3(%arg0: i32, %arg1: i32, %arg2: i32) -> (i32, i32) {
    %c0_i32 = arith.constant 0 : i32
    return %arg0, %arg1 : i32, i32
  }
}

module attributes {stable_mosaic.version = 11 : i64} {
  func.func @_mm_kernel(%arg0: i32, %arg1: i32, %arg2: i32, %arg3: memref<32x128xbf16, #tpu.memory_space<vmem>>, %arg4: memref<128x128xbf16, #tpu.memory_space<vmem>>, %arg5: memref<1x128xf32, #tpu.memory_space<vmem>>, %arg6: memref<32x128xf32, #tpu.memory_space<vmem>>, %arg7: memref<32x128xf32, #tpu.memory_space<vmem>>) attributes {dimension_semantics = [#tpu.dimension_semantics<parallel>, #tpu.dimension_semantics<parallel>, #tpu.dimension_semantics<arbitrary>], iteration_bounds = array<i64: 1, 1, 1>, scalar_prefetch = 0 : i64, scratch_operands = 1 : i64, tpu.core_type = #tpu.core_type<tc>, window_params = [{transform_indices = @transform_0, window_bounds = array<i64: 32, 128>}, {transform_indices = @transform_1, window_bounds = array<i64: 128, 128>}, {transform_indices = @transform_2, window_bounds = array<i64: 1, 128>}, {transform_indices = @transform_3, window_bounds = array<i64: 32, 128>}]} {
    %c0_i32 = arith.constant 0 : i32
    %0 = arith.cmpi eq, %arg2, %c0_i32 : i32
    %1 = arith.extui %0 : i1 to i32
    %c0_i32_0 = arith.constant 0 : i32
    %2 = arith.cmpi ne, %1, %c0_i32_0 : i32
    scf.if %2 {
      %cst_10 = arith.constant 0.000000e+00 : f32
      %12 = vector.broadcast %cst_10 : f32 to vector<32x128xf32>
      %c0_11 = arith.constant 0 : index
      %c0_12 = arith.constant 0 : index
      %13 = vector.load %arg7[%c0_11, %c0_12] : memref<32x128xf32, #tpu.memory_space<vmem>>, vector<32x128xf32>
      tpu.vector_store %arg7[%c0_11, %c0_12], %12 {strides = array<i32>} : memref<32x128xf32, #tpu.memory_space<vmem>>, vector<32x128xf32>,
    } else {
    }
    %c0 = arith.constant 0 : index
    %c0_1 = arith.constant 0 : index
    %3 = vector.load %arg7[%c0, %c0_1] : memref<32x128xf32, #tpu.memory_space<vmem>>, vector<32x128xf32>
    %c0_2 = arith.constant 0 : index
    %c0_3 = arith.constant 0 : index
    %4 = vector.load %arg3[%c0_2, %c0_3] : memref<32x128xbf16, #tpu.memory_space<vmem>>, vector<32x128xbf16>
    %c0_4 = arith.constant 0 : index
    %c0_5 = arith.constant 0 : index
    %5 = vector.load %arg4[%c0_4, %c0_5] : memref<128x128xbf16, #tpu.memory_space<vmem>>, vector<128x128xbf16>
    %cst = arith.constant dense<0.000000e+00> : vector<32x128xf32>
    %6 = tpu.matmul %4, %5, %cst {dimension_numbers = #tpu.dot_dimension_numbers<[1], [0], [0], [1], [0, 0, 1, 1], [], []>} : vector<32x128xbf16>, vector<128x128xbf16>, vector<32x128xf32> -> vector<32x128xf32>
    %7 = arith.addf %3, %6 : vector<32x128xf32>
    %c0_6 = arith.constant 0 : index
    %c0_7 = arith.constant 0 : index
    %8 = vector.load %arg7[%c0_6, %c0_7] : memref<32x128xf32, #tpu.memory_space<vmem>>, vector<32x128xf32>
    tpu.vector_store %arg7[%c0_6, %c0_7], %7 {strides = array<i32>} : memref<32x128xf32, #tpu.memory_space<vmem>>, vector<32x128xf32>,
    %c0_i32_8 = arith.constant 0 : i32
    %9 = arith.cmpi eq, %arg2, %c0_i32_8 : i32
    %10 = arith.extui %9 : i1 to i32
    %c0_i32_9 = arith.constant 0 : i32
    %11 = arith.cmpi ne, %10, %c0_i32_9 : i32
    scf.if %11 {
      %c0_10 = arith.constant 0 : index
      %c0_11 = arith.constant 0 : index
      %12 = vector.load %arg7[%c0_10, %c0_11] : memref<32x128xf32, #tpu.memory_space<vmem>>, vector<32x128xf32>
      %c0_12 = arith.constant 0 : index
      %c0_13 = arith.constant 0 : index
      %13 = vector.load %arg5[%c0_12, %c0_13] : memref<1x128xf32, #tpu.memory_space<vmem>>, vector<1x128xf32>
      %14 = vector.broadcast %13 : vector<1x128xf32> to vector<32x128xf32>
      %15 = arith.addf %12, %14 : vector<32x128xf32>
      %c0_14 = arith.constant 0 : index
      %c0_15 = arith.constant 0 : index
      %16 = vector.load %arg6[%c0_14, %c0_15] : memref<32x128xf32, #tpu.memory_space<vmem>>, vector<32x128xf32>
      tpu.vector_store %arg6[%c0_14, %c0_15], %15 {strides = array<i32>} : memref<32x128xf32, #tpu.memory_space<vmem>>, vector<32x128xf32>,
    } else {
    }
    return
  }
  func.func @transform_0(%arg0: i32, %arg1: i32, %arg2: i32) -> (i32, i32) {
    %c0_i32 = arith.constant 0 : i32
    return %arg0, %arg2 : i32, i32
  }
  func.func @transform_1(%arg0: i32, %arg1: i32, %arg2: i32) -> (i32, i32) {
    %c0_i32 = arith.constant 0 : i32
    return %arg2, %arg1 : i32, i32
  }
  func.func @transform_2(%arg0: i32, %arg1: i32, %arg2: i32) -> (i32, i32) {
    %c0_i32 = arith.constant 0 : i32
    %c0_i32_0 = arith.constant 0 : i32
    return %c0_i32, %arg1 : i32, i32
  }
  func.func @transform_3(%arg0: i32, %arg1: i32, %arg2: i32) -> (i32, i32) {
    %c0_i32 = arith.constant 0 : i32
    return %arg0, %arg1 : i32, i32
  }
}

module attributes {stable_mosaic.version = 11 : i64} {
  func.func @_mm_kernel(%arg0: i32, %arg1: i32, %arg2: i32, %arg3: memref<32x256xbf16, #tpu.memory_space<vmem>>, %arg4: memref<256x128xbf16, #tpu.memory_space<vmem>>, %arg5: memref<1x128xf32, #tpu.memory_space<vmem>>, %arg6: memref<32x128xf32, #tpu.memory_space<vmem>>, %arg7: memref<32x128xf32, #tpu.memory_space<vmem>>) attributes {dimension_semantics = [#tpu.dimension_semantics<parallel>, #tpu.dimension_semantics<parallel>, #tpu.dimension_semantics<arbitrary>], iteration_bounds = array<i64: 1, 1, 1>, scalar_prefetch = 0 : i64, scratch_operands = 1 : i64, tpu.core_type = #tpu.core_type<tc>, window_params = [{transform_indices = @transform_0, window_bounds = array<i64: 32, 256>}, {transform_indices = @transform_1, window_bounds = array<i64: 256, 128>}, {transform_indices = @transform_2, window_bounds = array<i64: 1, 128>}, {transform_indices = @transform_3, window_bounds = array<i64: 32, 128>}]} {
    %c0_i32 = arith.constant 0 : i32
    %0 = arith.cmpi eq, %arg2, %c0_i32 : i32
    %1 = arith.extui %0 : i1 to i32
    %c0_i32_0 = arith.constant 0 : i32
    %2 = arith.cmpi ne, %1, %c0_i32_0 : i32
    scf.if %2 {
      %cst_10 = arith.constant 0.000000e+00 : f32
      %12 = vector.broadcast %cst_10 : f32 to vector<32x128xf32>
      %c0_11 = arith.constant 0 : index
      %c0_12 = arith.constant 0 : index
      %13 = vector.load %arg7[%c0_11, %c0_12] : memref<32x128xf32, #tpu.memory_space<vmem>>, vector<32x128xf32>
      tpu.vector_store %arg7[%c0_11, %c0_12], %12 {strides = array<i32>} : memref<32x128xf32, #tpu.memory_space<vmem>>, vector<32x128xf32>,
    } else {
    }
    %c0 = arith.constant 0 : index
    %c0_1 = arith.constant 0 : index
    %3 = vector.load %arg7[%c0, %c0_1] : memref<32x128xf32, #tpu.memory_space<vmem>>, vector<32x128xf32>
    %c0_2 = arith.constant 0 : index
    %c0_3 = arith.constant 0 : index
    %4 = vector.load %arg3[%c0_2, %c0_3] : memref<32x256xbf16, #tpu.memory_space<vmem>>, vector<32x256xbf16>
    %c0_4 = arith.constant 0 : index
    %c0_5 = arith.constant 0 : index
    %5 = vector.load %arg4[%c0_4, %c0_5] : memref<256x128xbf16, #tpu.memory_space<vmem>>, vector<256x128xbf16>
    %cst = arith.constant dense<0.000000e+00> : vector<32x128xf32>
    %6 = tpu.matmul %4, %5, %cst {dimension_numbers = #tpu.dot_dimension_numbers<[1], [0], [0], [1], [0, 0, 1, 1], [], []>} : vector<32x256xbf16>, vector<256x128xbf16>, vector<32x128xf32> -> vector<32x128xf32>
    %7 = arith.addf %3, %6 : vector<32x128xf32>
    %c0_6 = arith.constant 0 : index
    %c0_7 = arith.constant 0 : index
    %8 = vector.load %arg7[%c0_6, %c0_7] : memref<32x128xf32, #tpu.memory_space<vmem>>, vector<32x128xf32>
    tpu.vector_store %arg7[%c0_6, %c0_7], %7 {strides = array<i32>} : memref<32x128xf32, #tpu.memory_space<vmem>>, vector<32x128xf32>,
    %c0_i32_8 = arith.constant 0 : i32
    %9 = arith.cmpi eq, %arg2, %c0_i32_8 : i32
    %10 = arith.extui %9 : i1 to i32
    %c0_i32_9 = arith.constant 0 : i32
    %11 = arith.cmpi ne, %10, %c0_i32_9 : i32
    scf.if %11 {
      %c0_10 = arith.constant 0 : index
      %c0_11 = arith.constant 0 : index
      %12 = vector.load %arg7[%c0_10, %c0_11] : memref<32x128xf32, #tpu.memory_space<vmem>>, vector<32x128xf32>
      %c0_12 = arith.constant 0 : index
      %c0_13 = arith.constant 0 : index
      %13 = vector.load %arg5[%c0_12, %c0_13] : memref<1x128xf32, #tpu.memory_space<vmem>>, vector<1x128xf32>
      %14 = vector.broadcast %13 : vector<1x128xf32> to vector<32x128xf32>
      %15 = arith.addf %12, %14 : vector<32x128xf32>
      %c0_14 = arith.constant 0 : index
      %c0_15 = arith.constant 0 : index
      %16 = vector.load %arg6[%c0_14, %c0_15] : memref<32x128xf32, #tpu.memory_space<vmem>>, vector<32x128xf32>
      tpu.vector_store %arg6[%c0_14, %c0_15], %15 {strides = array<i32>} : memref<32x128xf32, #tpu.memory_space<vmem>>, vector<32x128xf32>,
    } else {
    }
    return
  }
  func.func @transform_0(%arg0: i32, %arg1: i32, %arg2: i32) -> (i32, i32) {
    %c0_i32 = arith.constant 0 : i32
    return %arg0, %arg2 : i32, i32
  }
  func.func @transform_1(%arg0: i32, %arg1: i32, %arg2: i32) -> (i32, i32) {
    %c0_i32 = arith.constant 0 : i32
    return %arg2, %arg1 : i32, i32
  }
  func.func @transform_2(%arg0: i32, %arg1: i32, %arg2: i32) -> (i32, i32) {
    %c0_i32 = arith.constant 0 : i32
    %c0_i32_0 = arith.constant 0 : i32
    return %c0_i32, %arg1 : i32, i32
  }
  func.func @transform_3(%arg0: i32, %arg1: i32, %arg2: i32) -> (i32, i32) {
    %c0_i32 = arith.constant 0 : i32
    return %arg0, %arg1 : i32, i32
  }
}

module attributes {stable_mosaic.version = 11 : i64} {
  func.func @_mm_kernel(%arg0: i32, %arg1: i32, %arg2: i32, %arg3: memref<32x256xbf16, #tpu.memory_space<vmem>>, %arg4: memref<256x128xbf16, #tpu.memory_space<vmem>>, %arg5: memref<1x128xf32, #tpu.memory_space<vmem>>, %arg6: memref<32x128xf32, #tpu.memory_space<vmem>>, %arg7: memref<32x128xf32, #tpu.memory_space<vmem>>) attributes {dimension_semantics = [#tpu.dimension_semantics<parallel>, #tpu.dimension_semantics<parallel>, #tpu.dimension_semantics<arbitrary>], iteration_bounds = array<i64: 1, 1, 1>, scalar_prefetch = 0 : i64, scratch_operands = 1 : i64, tpu.core_type = #tpu.core_type<tc>, window_params = [{transform_indices = @transform_0, window_bounds = array<i64: 32, 256>}, {transform_indices = @transform_1, window_bounds = array<i64: 256, 128>}, {transform_indices = @transform_2, window_bounds = array<i64: 1, 128>}, {transform_indices = @transform_3, window_bounds = array<i64: 32, 128>}]} {
    %c0_i32 = arith.constant 0 : i32
    %0 = arith.cmpi eq, %arg2, %c0_i32 : i32
    %1 = arith.extui %0 : i1 to i32
    %c0_i32_0 = arith.constant 0 : i32
    %2 = arith.cmpi ne, %1, %c0_i32_0 : i32
    scf.if %2 {
      %cst_10 = arith.constant 0.000000e+00 : f32
      %12 = vector.broadcast %cst_10 : f32 to vector<32x128xf32>
      %c0_11 = arith.constant 0 : index
      %c0_12 = arith.constant 0 : index
      %13 = vector.load %arg7[%c0_11, %c0_12] : memref<32x128xf32, #tpu.memory_space<vmem>>, vector<32x128xf32>
      tpu.vector_store %arg7[%c0_11, %c0_12], %12 {strides = array<i32>} : memref<32x128xf32, #tpu.memory_space<vmem>>, vector<32x128xf32>,
    } else {
    }
    %c0 = arith.constant 0 : index
    %c0_1 = arith.constant 0 : index
    %3 = vector.load %arg7[%c0, %c0_1] : memref<32x128xf32, #tpu.memory_space<vmem>>, vector<32x128xf32>
    %c0_2 = arith.constant 0 : index
    %c0_3 = arith.constant 0 : index
    %4 = vector.load %arg3[%c0_2, %c0_3] : memref<32x256xbf16, #tpu.memory_space<vmem>>, vector<32x256xbf16>
    %c0_4 = arith.constant 0 : index
    %c0_5 = arith.constant 0 : index
    %5 = vector.load %arg4[%c0_4, %c0_5] : memref<256x128xbf16, #tpu.memory_space<vmem>>, vector<256x128xbf16>
    %cst = arith.constant dense<0.000000e+00> : vector<32x128xf32>
    %6 = tpu.matmul %4, %5, %cst {dimension_numbers = #tpu.dot_dimension_numbers<[1], [0], [0], [1], [0, 0, 1, 1], [], []>} : vector<32x256xbf16>, vector<256x128xbf16>, vector<32x128xf32> -> vector<32x128xf32>
    %7 = arith.addf %3, %6 : vector<32x128xf32>
    %c0_6 = arith.constant 0 : index
    %c0_7 = arith.constant 0 : index
    %8 = vector.load %arg7[%c0_6, %c0_7] : memref<32x128xf32, #tpu.memory_space<vmem>>, vector<32x128xf32>
    tpu.vector_store %arg7[%c0_6, %c0_7], %7 {strides = array<i32>} : memref<32x128xf32, #tpu.memory_space<vmem>>, vector<32x128xf32>,
    %c0_i32_8 = arith.constant 0 : i32
    %9 = arith.cmpi eq, %arg2, %c0_i32_8 : i32
    %10 = arith.extui %9 : i1 to i32
    %c0_i32_9 = arith.constant 0 : i32
    %11 = arith.cmpi ne, %10, %c0_i32_9 : i32
    scf.if %11 {
      %c0_10 = arith.constant 0 : index
      %c0_11 = arith.constant 0 : index
      %12 = vector.load %arg7[%c0_10, %c0_11] : memref<32x128xf32, #tpu.memory_space<vmem>>, vector<32x128xf32>
      %c0_12 = arith.constant 0 : index
      %c0_13 = arith.constant 0 : index
      %13 = vector.load %arg5[%c0_12, %c0_13] : memref<1x128xf32, #tpu.memory_space<vmem>>, vector<1x128xf32>
      %14 = vector.broadcast %13 : vector<1x128xf32> to vector<32x128xf32>
      %15 = arith.addf %12, %14 : vector<32x128xf32>
      %cst_14 = arith.constant 0.000000e+00 : f32
      %16 = vector.broadcast %cst_14 : f32 to vector<32x128xf32>
      %17 = arith.maximumf %15, %16 : vector<32x128xf32>
      %c0_15 = arith.constant 0 : index
      %c0_16 = arith.constant 0 : index
      %18 = vector.load %arg6[%c0_15, %c0_16] : memref<32x128xf32, #tpu.memory_space<vmem>>, vector<32x128xf32>
      tpu.vector_store %arg6[%c0_15, %c0_16], %17 {strides = array<i32>} : memref<32x128xf32, #tpu.memory_space<vmem>>, vector<32x128xf32>,
    } else {
    }
    return
  }
  func.func @transform_0(%arg0: i32, %arg1: i32, %arg2: i32) -> (i32, i32) {
    %c0_i32 = arith.constant 0 : i32
    return %arg0, %arg2 : i32, i32
  }
  func.func @transform_1(%arg0: i32, %arg1: i32, %arg2: i32) -> (i32, i32) {
    %c0_i32 = arith.constant 0 : i32
    return %arg2, %arg1 : i32, i32
  }
  func.func @transform_2(%arg0: i32, %arg1: i32, %arg2: i32) -> (i32, i32) {
    %c0_i32 = arith.constant 0 : i32
    %c0_i32_0 = arith.constant 0 : i32
    return %c0_i32, %arg1 : i32, i32
  }
  func.func @transform_3(%arg0: i32, %arg1: i32, %arg2: i32) -> (i32, i32) {
    %c0_i32 = arith.constant 0 : i32
    return %arg0, %arg1 : i32, i32
  }
}

module attributes {stable_mosaic.version = 11 : i64} {
  func.func @_mm_kernel(%arg0: i32, %arg1: i32, %arg2: i32, %arg3: memref<128x128xbf16, #tpu.memory_space<vmem>>, %arg4: memref<128x128xbf16, #tpu.memory_space<vmem>>, %arg5: memref<1x128xf32, #tpu.memory_space<vmem>>, %arg6: memref<128x128xf32, #tpu.memory_space<vmem>>, %arg7: memref<128x128xf32, #tpu.memory_space<vmem>>) attributes {dimension_semantics = [#tpu.dimension_semantics<parallel>, #tpu.dimension_semantics<parallel>, #tpu.dimension_semantics<arbitrary>], iteration_bounds = array<i64: 1, 1, 1>, scalar_prefetch = 0 : i64, scratch_operands = 1 : i64, tpu.core_type = #tpu.core_type<tc>, window_params = [{transform_indices = @transform_0, window_bounds = array<i64: 128, 128>}, {transform_indices = @transform_1, window_bounds = array<i64: 128, 128>}, {transform_indices = @transform_2, window_bounds = array<i64: 1, 128>}, {transform_indices = @transform_3, window_bounds = array<i64: 128, 128>}]} {
    %c0_i32 = arith.constant 0 : i32
    %0 = arith.cmpi eq, %arg2, %c0_i32 : i32
    %1 = arith.extui %0 : i1 to i32
    %c0_i32_0 = arith.constant 0 : i32
    %2 = arith.cmpi ne, %1, %c0_i32_0 : i32
    scf.if %2 {
      %cst_10 = arith.constant 0.000000e+00 : f32
      %12 = vector.broadcast %cst_10 : f32 to vector<128x128xf32>
      %c0_11 = arith.constant 0 : index
      %c0_12 = arith.constant 0 : index
      %13 = vector.load %arg7[%c0_11, %c0_12] : memref<128x128xf32, #tpu.memory_space<vmem>>, vector<128x128xf32>
      tpu.vector_store %arg7[%c0_11, %c0_12], %12 {strides = array<i32>} : memref<128x128xf32, #tpu.memory_space<vmem>>, vector<128x128xf32>,
    } else {
    }
    %c0 = arith.constant 0 : index
    %c0_1 = arith.constant 0 : index
    %3 = vector.load %arg7[%c0, %c0_1] : memref<128x128xf32, #tpu.memory_space<vmem>>, vector<128x128xf32>
    %c0_2 = arith.constant 0 : index
    %c0_3 = arith.constant 0 : index
    %4 = vector.load %arg3[%c0_2, %c0_3] : memref<128x128xbf16, #tpu.memory_space<vmem>>, vector<128x128xbf16>
    %c0_4 = arith.constant 0 : index
    %c0_5 = arith.constant 0 : index
    %5 = vector.load %arg4[%c0_4, %c0_5] : memref<128x128xbf16, #tpu.memory_space<vmem>>, vector<128x128xbf16>
    %cst = arith.constant dense<0.000000e+00> : vector<128x128xf32>
    %6 = tpu.matmul %4, %5, %cst {dimension_numbers = #tpu.dot_dimension_numbers<[1], [0], [0], [1], [0, 0, 1, 1], [], []>} : vector<128x128xbf16>, vector<128x128xbf16>, vector<128x128xf32> -> vector<128x128xf32>
    %7 = arith.addf %3, %6 : vector<128x128xf32>
    %c0_6 = arith.constant 0 : index
    %c0_7 = arith.constant 0 : index
    %8 = vector.load %arg7[%c0_6, %c0_7] : memref<128x128xf32, #tpu.memory_space<vmem>>, vector<128x128xf32>
    tpu.vector_store %arg7[%c0_6, %c0_7], %7 {strides = array<i32>} : memref<128x128xf32, #tpu.memory_space<vmem>>, vector<128x128xf32>,
    %c0_i32_8 = arith.constant 0 : i32
    %9 = arith.cmpi eq, %arg2, %c0_i32_8 : i32
    %10 = arith.extui %9 : i1 to i32
    %c0_i32_9 = arith.constant 0 : i32
    %11 = arith.cmpi ne, %10, %c0_i32_9 : i32
    scf.if %11 {
      %c0_10 = arith.constant 0 : index
      %c0_11 = arith.constant 0 : index
      %12 = vector.load %arg7[%c0_10, %c0_11] : memref<128x128xf32, #tpu.memory_space<vmem>>, vector<128x128xf32>
      %c0_12 = arith.constant 0 : index
      %c0_13 = arith.constant 0 : index
      %13 = vector.load %arg5[%c0_12, %c0_13] : memref<1x128xf32, #tpu.memory_space<vmem>>, vector<1x128xf32>
      %14 = vector.broadcast %13 : vector<1x128xf32> to vector<128x128xf32>
      %15 = arith.addf %12, %14 : vector<128x128xf32>
      %c0_14 = arith.constant 0 : index
      %c0_15 = arith.constant 0 : index
      %16 = vector.load %arg6[%c0_14, %c0_15] : memref<128x128xf32, #tpu.memory_space<vmem>>, vector<128x128xf32>
      tpu.vector_store %arg6[%c0_14, %c0_15], %15 {strides = array<i32>} : memref<128x128xf32, #tpu.memory_space<vmem>>, vector<128x128xf32>,
    } else {
    }
    return
  }
  func.func @transform_0(%arg0: i32, %arg1: i32, %arg2: i32) -> (i32, i32) {
    %c0_i32 = arith.constant 0 : i32
    return %arg0, %arg2 : i32, i32
  }
  func.func @transform_1(%arg0: i32, %arg1: i32, %arg2: i32) -> (i32, i32) {
    %c0_i32 = arith.constant 0 : i32
    return %arg2, %arg1 : i32, i32
  }
  func.func @transform_2(%arg0: i32, %arg1: i32, %arg2: i32) -> (i32, i32) {
    %c0_i32 = arith.constant 0 : i32
    %c0_i32_0 = arith.constant 0 : i32
    return %c0_i32, %arg1 : i32, i32
  }
  func.func @transform_3(%arg0: i32, %arg1: i32, %arg2: i32) -> (i32, i32) {
    %c0_i32 = arith.constant 0 : i32
    return %arg0, %arg1 : i32, i32
  }
}

module attributes {stable_mosaic.version = 11 : i64} {
  func.func @_mm_kernel(%arg0: i32, %arg1: i32, %arg2: i32, %arg3: memref<128x256xbf16, #tpu.memory_space<vmem>>, %arg4: memref<256x128xbf16, #tpu.memory_space<vmem>>, %arg5: memref<1x128xf32, #tpu.memory_space<vmem>>, %arg6: memref<128x128xf32, #tpu.memory_space<vmem>>, %arg7: memref<128x128xf32, #tpu.memory_space<vmem>>) attributes {dimension_semantics = [#tpu.dimension_semantics<parallel>, #tpu.dimension_semantics<parallel>, #tpu.dimension_semantics<arbitrary>], iteration_bounds = array<i64: 1, 1, 1>, scalar_prefetch = 0 : i64, scratch_operands = 1 : i64, tpu.core_type = #tpu.core_type<tc>, window_params = [{transform_indices = @transform_0, window_bounds = array<i64: 128, 256>}, {transform_indices = @transform_1, window_bounds = array<i64: 256, 128>}, {transform_indices = @transform_2, window_bounds = array<i64: 1, 128>}, {transform_indices = @transform_3, window_bounds = array<i64: 128, 128>}]} {
    %c0_i32 = arith.constant 0 : i32
    %0 = arith.cmpi eq, %arg2, %c0_i32 : i32
    %1 = arith.extui %0 : i1 to i32
    %c0_i32_0 = arith.constant 0 : i32
    %2 = arith.cmpi ne, %1, %c0_i32_0 : i32
    scf.if %2 {
      %cst_10 = arith.constant 0.000000e+00 : f32
      %12 = vector.broadcast %cst_10 : f32 to vector<128x128xf32>
      %c0_11 = arith.constant 0 : index
      %c0_12 = arith.constant 0 : index
      %13 = vector.load %arg7[%c0_11, %c0_12] : memref<128x128xf32, #tpu.memory_space<vmem>>, vector<128x128xf32>
      tpu.vector_store %arg7[%c0_11, %c0_12], %12 {strides = array<i32>} : memref<128x128xf32, #tpu.memory_space<vmem>>, vector<128x128xf32>,
    } else {
    }
    %c0 = arith.constant 0 : index
    %c0_1 = arith.constant 0 : index
    %3 = vector.load %arg7[%c0, %c0_1] : memref<128x128xf32, #tpu.memory_space<vmem>>, vector<128x128xf32>
    %c0_2 = arith.constant 0 : index
    %c0_3 = arith.constant 0 : index
    %4 = vector.load %arg3[%c0_2, %c0_3] : memref<128x256xbf16, #tpu.memory_space<vmem>>, vector<128x256xbf16>
    %c0_4 = arith.constant 0 : index
    %c0_5 = arith.constant 0 : index
    %5 = vector.load %arg4[%c0_4, %c0_5] : memref<256x128xbf16, #tpu.memory_space<vmem>>, vector<256x128xbf16>
    %cst = arith.constant dense<0.000000e+00> : vector<128x128xf32>
    %6 = tpu.matmul %4, %5, %cst {dimension_numbers = #tpu.dot_dimension_numbers<[1], [0], [0], [1], [0, 0, 1, 1], [], []>} : vector<128x256xbf16>, vector<256x128xbf16>, vector<128x128xf32> -> vector<128x128xf32>
    %7 = arith.addf %3, %6 : vector<128x128xf32>
    %c0_6 = arith.constant 0 : index
    %c0_7 = arith.constant 0 : index
    %8 = vector.load %arg7[%c0_6, %c0_7] : memref<128x128xf32, #tpu.memory_space<vmem>>, vector<128x128xf32>
    tpu.vector_store %arg7[%c0_6, %c0_7], %7 {strides = array<i32>} : memref<128x128xf32, #tpu.memory_space<vmem>>, vector<128x128xf32>,
    %c0_i32_8 = arith.constant 0 : i32
    %9 = arith.cmpi eq, %arg2, %c0_i32_8 : i32
    %10 = arith.extui %9 : i1 to i32
    %c0_i32_9 = arith.constant 0 : i32
    %11 = arith.cmpi ne, %10, %c0_i32_9 : i32
    scf.if %11 {
      %c0_10 = arith.constant 0 : index
      %c0_11 = arith.constant 0 : index
      %12 = vector.load %arg7[%c0_10, %c0_11] : memref<128x128xf32, #tpu.memory_space<vmem>>, vector<128x128xf32>
      %c0_12 = arith.constant 0 : index
      %c0_13 = arith.constant 0 : index
      %13 = vector.load %arg5[%c0_12, %c0_13] : memref<1x128xf32, #tpu.memory_space<vmem>>, vector<1x128xf32>
      %14 = vector.broadcast %13 : vector<1x128xf32> to vector<128x128xf32>
      %15 = arith.addf %12, %14 : vector<128x128xf32>
      %c0_14 = arith.constant 0 : index
      %c0_15 = arith.constant 0 : index
      %16 = vector.load %arg6[%c0_14, %c0_15] : memref<128x128xf32, #tpu.memory_space<vmem>>, vector<128x128xf32>
      tpu.vector_store %arg6[%c0_14, %c0_15], %15 {strides = array<i32>} : memref<128x128xf32, #tpu.memory_space<vmem>>, vector<128x128xf32>,
    } else {
    }
    return
  }
  func.func @transform_0(%arg0: i32, %arg1: i32, %arg2: i32) -> (i32, i32) {
    %c0_i32 = arith.constant 0 : i32
    return %arg0, %arg2 : i32, i32
  }
  func.func @transform_1(%arg0: i32, %arg1: i32, %arg2: i32) -> (i32, i32) {
    %c0_i32 = arith.constant 0 : i32
    return %arg2, %arg1 : i32, i32
  }
  func.func @transform_2(%arg0: i32, %arg1: i32, %arg2: i32) -> (i32, i32) {
    %c0_i32 = arith.constant 0 : i32
    %c0_i32_0 = arith.constant 0 : i32
    return %c0_i32, %arg1 : i32, i32
  }
  func.func @transform_3(%arg0: i32, %arg1: i32, %arg2: i32) -> (i32, i32) {
    %c0_i32 = arith.constant 0 : i32
    return %arg0, %arg1 : i32, i32
  }
}

module attributes {stable_mosaic.version = 11 : i64} {
  func.func @_mm_kernel(%arg0: i32, %arg1: i32, %arg2: i32, %arg3: memref<128x256xbf16, #tpu.memory_space<vmem>>, %arg4: memref<256x128xbf16, #tpu.memory_space<vmem>>, %arg5: memref<1x128xf32, #tpu.memory_space<vmem>>, %arg6: memref<128x128xf32, #tpu.memory_space<vmem>>, %arg7: memref<128x128xf32, #tpu.memory_space<vmem>>) attributes {dimension_semantics = [#tpu.dimension_semantics<parallel>, #tpu.dimension_semantics<parallel>, #tpu.dimension_semantics<arbitrary>], iteration_bounds = array<i64: 1, 1, 1>, scalar_prefetch = 0 : i64, scratch_operands = 1 : i64, tpu.core_type = #tpu.core_type<tc>, window_params = [{transform_indices = @transform_0, window_bounds = array<i64: 128, 256>}, {transform_indices = @transform_1, window_bounds = array<i64: 256, 128>}, {transform_indices = @transform_2, window_bounds = array<i64: 1, 128>}, {transform_indices = @transform_3, window_bounds = array<i64: 128, 128>}]} {
    %c0_i32 = arith.constant 0 : i32
    %0 = arith.cmpi eq, %arg2, %c0_i32 : i32
    %1 = arith.extui %0 : i1 to i32
    %c0_i32_0 = arith.constant 0 : i32
    %2 = arith.cmpi ne, %1, %c0_i32_0 : i32
    scf.if %2 {
      %cst_10 = arith.constant 0.000000e+00 : f32
      %12 = vector.broadcast %cst_10 : f32 to vector<128x128xf32>
      %c0_11 = arith.constant 0 : index
      %c0_12 = arith.constant 0 : index
      %13 = vector.load %arg7[%c0_11, %c0_12] : memref<128x128xf32, #tpu.memory_space<vmem>>, vector<128x128xf32>
      tpu.vector_store %arg7[%c0_11, %c0_12], %12 {strides = array<i32>} : memref<128x128xf32, #tpu.memory_space<vmem>>, vector<128x128xf32>,
    } else {
    }
    %c0 = arith.constant 0 : index
    %c0_1 = arith.constant 0 : index
    %3 = vector.load %arg7[%c0, %c0_1] : memref<128x128xf32, #tpu.memory_space<vmem>>, vector<128x128xf32>
    %c0_2 = arith.constant 0 : index
    %c0_3 = arith.constant 0 : index
    %4 = vector.load %arg3[%c0_2, %c0_3] : memref<128x256xbf16, #tpu.memory_space<vmem>>, vector<128x256xbf16>
    %c0_4 = arith.constant 0 : index
    %c0_5 = arith.constant 0 : index
    %5 = vector.load %arg4[%c0_4, %c0_5] : memref<256x128xbf16, #tpu.memory_space<vmem>>, vector<256x128xbf16>
    %cst = arith.constant dense<0.000000e+00> : vector<128x128xf32>
    %6 = tpu.matmul %4, %5, %cst {dimension_numbers = #tpu.dot_dimension_numbers<[1], [0], [0], [1], [0, 0, 1, 1], [], []>} : vector<128x256xbf16>, vector<256x128xbf16>, vector<128x128xf32> -> vector<128x128xf32>
    %7 = arith.addf %3, %6 : vector<128x128xf32>
    %c0_6 = arith.constant 0 : index
    %c0_7 = arith.constant 0 : index
    %8 = vector.load %arg7[%c0_6, %c0_7] : memref<128x128xf32, #tpu.memory_space<vmem>>, vector<128x128xf32>
    tpu.vector_store %arg7[%c0_6, %c0_7], %7 {strides = array<i32>} : memref<128x128xf32, #tpu.memory_space<vmem>>, vector<128x128xf32>,
    %c0_i32_8 = arith.constant 0 : i32
    %9 = arith.cmpi eq, %arg2, %c0_i32_8 : i32
    %10 = arith.extui %9 : i1 to i32
    %c0_i32_9 = arith.constant 0 : i32
    %11 = arith.cmpi ne, %10, %c0_i32_9 : i32
    scf.if %11 {
      %c0_10 = arith.constant 0 : index
      %c0_11 = arith.constant 0 : index
      %12 = vector.load %arg7[%c0_10, %c0_11] : memref<128x128xf32, #tpu.memory_space<vmem>>, vector<128x128xf32>
      %c0_12 = arith.constant 0 : index
      %c0_13 = arith.constant 0 : index
      %13 = vector.load %arg5[%c0_12, %c0_13] : memref<1x128xf32, #tpu.memory_space<vmem>>, vector<1x128xf32>
      %14 = vector.broadcast %13 : vector<1x128xf32> to vector<128x128xf32>
      %15 = arith.addf %12, %14 : vector<128x128xf32>
      %cst_14 = arith.constant 0.000000e+00 : f32
      %16 = vector.broadcast %cst_14 : f32 to vector<128x128xf32>
      %17 = arith.maximumf %15, %16 : vector<128x128xf32>
      %c0_15 = arith.constant 0 : index
      %c0_16 = arith.constant 0 : index
      %18 = vector.load %arg6[%c0_15, %c0_16] : memref<128x128xf32, #tpu.memory_space<vmem>>, vector<128x128xf32>
      tpu.vector_store %arg6[%c0_15, %c0_16], %17 {strides = array<i32>} : memref<128x128xf32, #tpu.memory_space<vmem>>, vector<128x128xf32>,
    } else {
    }
    return
  }
  func.func @transform_0(%arg0: i32, %arg1: i32, %arg2: i32) -> (i32, i32) {
    %c0_i32 = arith.constant 0 : i32
    return %arg0, %arg2 : i32, i32
  }
  func.func @transform_1(%arg0: i32, %arg1: i32, %arg2: i32) -> (i32, i32) {
    %c0_i32 = arith.constant 0 : i32
    return %arg2, %arg1 : i32, i32
  }
  func.func @transform_2(%arg0: i32, %arg1: i32, %arg2: i32) -> (i32, i32) {
    %c0_i32 = arith.constant 0 : i32
    %c0_i32_0 = arith.constant 0 : i32
    return %c0_i32, %arg1 : i32, i32
  }
  func.func @transform_3(%arg0: i32, %arg1: i32, %arg2: i32) -> (i32, i32) {
    %c0_i32 = arith.constant 0 : i32
    return %arg0, %arg1 : i32, i32
  }
}

module attributes {stable_mosaic.version = 11 : i64} {
  func.func @_mm_kernel(%arg0: i32, %arg1: i32, %arg2: i32, %arg3: memref<128x512xbf16, #tpu.memory_space<vmem>>, %arg4: memref<512x256xbf16, #tpu.memory_space<vmem>>, %arg5: memref<1x256xf32, #tpu.memory_space<vmem>>, %arg6: memref<128x256xf32, #tpu.memory_space<vmem>>, %arg7: memref<128x256xf32, #tpu.memory_space<vmem>>) attributes {dimension_semantics = [#tpu.dimension_semantics<parallel>, #tpu.dimension_semantics<parallel>, #tpu.dimension_semantics<arbitrary>], iteration_bounds = array<i64: 1, 1, 6>, scalar_prefetch = 0 : i64, scratch_operands = 1 : i64, tpu.core_type = #tpu.core_type<tc>, window_params = [{transform_indices = @transform_0, window_bounds = array<i64: 128, 512>}, {transform_indices = @transform_1, window_bounds = array<i64: 512, 256>}, {transform_indices = @transform_2, window_bounds = array<i64: 1, 256>}, {transform_indices = @transform_3, window_bounds = array<i64: 128, 256>}]} {
    %c0_i32 = arith.constant 0 : i32
    %0 = arith.cmpi eq, %arg2, %c0_i32 : i32
    %1 = arith.extui %0 : i1 to i32
    %c0_i32_0 = arith.constant 0 : i32
    %2 = arith.cmpi ne, %1, %c0_i32_0 : i32
    scf.if %2 {
      %cst_9 = arith.constant 0.000000e+00 : f32
      %12 = vector.broadcast %cst_9 : f32 to vector<128x256xf32>
      %c0_10 = arith.constant 0 : index
      %c0_11 = arith.constant 0 : index
      %13 = vector.load %arg7[%c0_10, %c0_11] : memref<128x256xf32, #tpu.memory_space<vmem>>, vector<128x256xf32>
      tpu.vector_store %arg7[%c0_10, %c0_11], %12 {strides = array<i32>} : memref<128x256xf32, #tpu.memory_space<vmem>>, vector<128x256xf32>,
    } else {
    }
    %c0 = arith.constant 0 : index
    %c0_1 = arith.constant 0 : index
    %3 = vector.load %arg7[%c0, %c0_1] : memref<128x256xf32, #tpu.memory_space<vmem>>, vector<128x256xf32>
    %c0_2 = arith.constant 0 : index
    %c0_3 = arith.constant 0 : index
    %4 = vector.load %arg3[%c0_2, %c0_3] : memref<128x512xbf16, #tpu.memory_space<vmem>>, vector<128x512xbf16>
    %c0_4 = arith.constant 0 : index
    %c0_5 = arith.constant 0 : index
    %5 = vector.load %arg4[%c0_4, %c0_5] : memref<512x256xbf16, #tpu.memory_space<vmem>>, vector<512x256xbf16>
    %cst = arith.constant dense<0.000000e+00> : vector<128x256xf32>
    %6 = tpu.matmul %4, %5, %cst {dimension_numbers = #tpu.dot_dimension_numbers<[1], [0], [0], [1], [0, 0, 1, 1], [], []>} : vector<128x512xbf16>, vector<512x256xbf16>, vector<128x256xf32> -> vector<128x256xf32>
    %7 = arith.addf %3, %6 : vector<128x256xf32>
    %c0_6 = arith.constant 0 : index
    %c0_7 = arith.constant 0 : index
    %8 = vector.load %arg7[%c0_6, %c0_7] : memref<128x256xf32, #tpu.memory_space<vmem>>, vector<128x256xf32>
    tpu.vector_store %arg7[%c0_6, %c0_7], %7 {strides = array<i32>} : memref<128x256xf32, #tpu.memory_space<vmem>>, vector<128x256xf32>,
    %c5_i32 = arith.constant 5 : i32
    %9 = arith.cmpi eq, %arg2, %c5_i32 : i32
    %10 = arith.extui %9 : i1 to i32
    %c0_i32_8 = arith.constant 0 : i32
    %11 = arith.cmpi ne, %10, %c0_i32_8 : i32
    scf.if %11 {
      %c0_9 = arith.constant 0 : index
      %c0_10 = arith.constant 0 : index
      %12 = vector.load %arg7[%c0_9, %c0_10] : memref<128x256xf32, #tpu.memory_space<vmem>>, vector<128x256xf32>
      %c0_11 = arith.constant 0 : index
      %c0_12 = arith.constant 0 : index
      %13 = vector.load %arg5[%c0_11, %c0_12] : memref<1x256xf32, #tpu.memory_space<vmem>>, vector<1x256xf32>
      %14 = vector.broadcast %13 : vector<1x256xf32> to vector<128x256xf32>
      %15 = arith.addf %12, %14 : vector<128x256xf32>
      %cst_13 = arith.constant 0.000000e+00 : f32
      %16 = vector.broadcast %cst_13 : f32 to vector<128x256xf32>
      %17 = arith.maximumf %15, %16 : vector<128x256xf32>
      %c0_14 = arith.constant 0 : index
      %c0_15 = arith.constant 0 : index
      %18 = vector.load %arg6[%c0_14, %c0_15] : memref<128x256xf32, #tpu.memory_space<vmem>>, vector<128x256xf32>
      tpu.vector_store %arg6[%c0_14, %c0_15], %17 {strides = array<i32>} : memref<128x256xf32, #tpu.memory_space<vmem>>, vector<128x256xf32>,
    } else {
    }
    return
  }
  func.func @transform_0(%arg0: i32, %arg1: i32, %arg2: i32) -> (i32, i32) {
    %c0_i32 = arith.constant 0 : i32
    return %arg0, %arg2 : i32, i32
  }
  func.func @transform_1(%arg0: i32, %arg1: i32, %arg2: i32) -> (i32, i32) {
    %c0_i32 = arith.constant 0 : i32
    return %arg2, %arg1 : i32, i32
  }
  func.func @transform_2(%arg0: i32, %arg1: i32, %arg2: i32) -> (i32, i32) {
    %c0_i32 = arith.constant 0 : i32
    %c0_i32_0 = arith.constant 0 : i32
    return %c0_i32, %arg1 : i32, i32
  }
  func.func @transform_3(%arg0: i32, %arg1: i32, %arg2: i32) -> (i32, i32) {
    %c0_i32 = arith.constant 0 : i32
    return %arg0, %arg1 : i32, i32
  }
}

module attributes {stable_mosaic.version = 11 : i64} {
  func.func @_mm_kernel(%arg0: i32, %arg1: i32, %arg2: i32, %arg3: memref<128x512xbf16, #tpu.memory_space<vmem>>, %arg4: memref<512x256xbf16, #tpu.memory_space<vmem>>, %arg5: memref<1x256xf32, #tpu.memory_space<vmem>>, %arg6: memref<128x256xf32, #tpu.memory_space<vmem>>, %arg7: memref<128x256xf32, #tpu.memory_space<vmem>>) attributes {dimension_semantics = [#tpu.dimension_semantics<parallel>, #tpu.dimension_semantics<parallel>, #tpu.dimension_semantics<arbitrary>], iteration_bounds = array<i64: 1, 1, 5>, scalar_prefetch = 0 : i64, scratch_operands = 1 : i64, tpu.core_type = #tpu.core_type<tc>, window_params = [{transform_indices = @transform_0, window_bounds = array<i64: 128, 512>}, {transform_indices = @transform_1, window_bounds = array<i64: 512, 256>}, {transform_indices = @transform_2, window_bounds = array<i64: 1, 256>}, {transform_indices = @transform_3, window_bounds = array<i64: 128, 256>}]} {
    %c0_i32 = arith.constant 0 : i32
    %0 = arith.cmpi eq, %arg2, %c0_i32 : i32
    %1 = arith.extui %0 : i1 to i32
    %c0_i32_0 = arith.constant 0 : i32
    %2 = arith.cmpi ne, %1, %c0_i32_0 : i32
    scf.if %2 {
      %cst_9 = arith.constant 0.000000e+00 : f32
      %12 = vector.broadcast %cst_9 : f32 to vector<128x256xf32>
      %c0_10 = arith.constant 0 : index
      %c0_11 = arith.constant 0 : index
      %13 = vector.load %arg7[%c0_10, %c0_11] : memref<128x256xf32, #tpu.memory_space<vmem>>, vector<128x256xf32>
      tpu.vector_store %arg7[%c0_10, %c0_11], %12 {strides = array<i32>} : memref<128x256xf32, #tpu.memory_space<vmem>>, vector<128x256xf32>,
    } else {
    }
    %c0 = arith.constant 0 : index
    %c0_1 = arith.constant 0 : index
    %3 = vector.load %arg7[%c0, %c0_1] : memref<128x256xf32, #tpu.memory_space<vmem>>, vector<128x256xf32>
    %c0_2 = arith.constant 0 : index
    %c0_3 = arith.constant 0 : index
    %4 = vector.load %arg3[%c0_2, %c0_3] : memref<128x512xbf16, #tpu.memory_space<vmem>>, vector<128x512xbf16>
    %c0_4 = arith.constant 0 : index
    %c0_5 = arith.constant 0 : index
    %5 = vector.load %arg4[%c0_4, %c0_5] : memref<512x256xbf16, #tpu.memory_space<vmem>>, vector<512x256xbf16>
    %cst = arith.constant dense<0.000000e+00> : vector<128x256xf32>
    %6 = tpu.matmul %4, %5, %cst {dimension_numbers = #tpu.dot_dimension_numbers<[1], [0], [0], [1], [0, 0, 1, 1], [], []>} : vector<128x512xbf16>, vector<512x256xbf16>, vector<128x256xf32> -> vector<128x256xf32>
    %7 = arith.addf %3, %6 : vector<128x256xf32>
    %c0_6 = arith.constant 0 : index
    %c0_7 = arith.constant 0 : index
    %8 = vector.load %arg7[%c0_6, %c0_7] : memref<128x256xf32, #tpu.memory_space<vmem>>, vector<128x256xf32>
    tpu.vector_store %arg7[%c0_6, %c0_7], %7 {strides = array<i32>} : memref<128x256xf32, #tpu.memory_space<vmem>>, vector<128x256xf32>,
    %c4_i32 = arith.constant 4 : i32
    %9 = arith.cmpi eq, %arg2, %c4_i32 : i32
    %10 = arith.extui %9 : i1 to i32
    %c0_i32_8 = arith.constant 0 : i32
    %11 = arith.cmpi ne, %10, %c0_i32_8 : i32
    scf.if %11 {
      %c0_9 = arith.constant 0 : index
      %c0_10 = arith.constant 0 : index
      %12 = vector.load %arg7[%c0_9, %c0_10] : memref<128x256xf32, #tpu.memory_space<vmem>>, vector<128x256xf32>
      %c0_11 = arith.constant 0 : index
      %c0_12 = arith.constant 0 : index
      %13 = vector.load %arg5[%c0_11, %c0_12] : memref<1x256xf32, #tpu.memory_space<vmem>>, vector<1x256xf32>
      %14 = vector.broadcast %13 : vector<1x256xf32> to vector<128x256xf32>
      %15 = arith.addf %12, %14 : vector<128x256xf32>
      %cst_13 = arith.constant 0.000000e+00 : f32
      %16 = vector.broadcast %cst_13 : f32 to vector<128x256xf32>
      %17 = arith.maximumf %15, %16 : vector<128x256xf32>
      %c0_14 = arith.constant 0 : index
      %c0_15 = arith.constant 0 : index
      %18 = vector.load %arg6[%c0_14, %c0_15] : memref<128x256xf32, #tpu.memory_space<vmem>>, vector<128x256xf32>
      tpu.vector_store %arg6[%c0_14, %c0_15], %17 {strides = array<i32>} : memref<128x256xf32, #tpu.memory_space<vmem>>, vector<128x256xf32>,
    } else {
    }
    return
  }
  func.func @transform_0(%arg0: i32, %arg1: i32, %arg2: i32) -> (i32, i32) {
    %c0_i32 = arith.constant 0 : i32
    return %arg0, %arg2 : i32, i32
  }
  func.func @transform_1(%arg0: i32, %arg1: i32, %arg2: i32) -> (i32, i32) {
    %c0_i32 = arith.constant 0 : i32
    return %arg2, %arg1 : i32, i32
  }
  func.func @transform_2(%arg0: i32, %arg1: i32, %arg2: i32) -> (i32, i32) {
    %c0_i32 = arith.constant 0 : i32
    %c0_i32_0 = arith.constant 0 : i32
    return %c0_i32, %arg1 : i32, i32
  }
  func.func @transform_3(%arg0: i32, %arg1: i32, %arg2: i32) -> (i32, i32) {
    %c0_i32 = arith.constant 0 : i32
    return %arg0, %arg1 : i32, i32
  }
}

</mosaic_0001>

<bundles_post_ra>
// kernel: forward.30
= control target key start
LH: loop header
LB: loop body
LE: loop exit
PB: predicated region body
PF: predicated region fallthrough
CT: control target
= control target key end

     0   :  { %s1212_s12 = smov 0   ;;  %s1214_s13 = smov 0   ;;  %s1362_s0 = inlined_call_operand.vmem [shape: bf16[512,128], index: 0, kind: input, shape index: {}]   ;;  %s1363_s1 = inlined_call_operand.vmem [shape: bf16[128,128], index: 1, kind: input, shape index: {}]   ;;  %s1364_s2 = inlined_call_operand.vmem [shape: f32[1,128], index: 2, kind: input, shape index: {}]   ;;  %s1365_s3 = inlined_call_operand.vmem [shape: f32[512,128], index: 3, kind: output, shape index: {}]  }
   0x1   :  { %s1216_s14 = smov 0  }
   0x2 LB: > { %s32_s15 = sadd.s32 1, %s1186_s13  ;;  %p1000_p0 = scmp.ge.s32.totalorder %s1190_s14, 1  ;;  %s1190_s14 = sphi %s1216_s14, %s13_s14   ;;  %s1186_s13 = sphi %s1214_s13, %s1367_s13   ;;  %s1182_s12 = sphi %s1212_s12, %s1366_s12  }
   0x3   : > { %p34_p1 = scmp.ge.s32.totalorder %s32_s15, 2  ;;  %p188_p2 = scmp.lt.s32.totalorder %s1190_s14, 3 }
   0x5   : > { %s1369_s15 = smov (%p34_p1, %s32_s15), 0  ;;  %p189_p3 = pnand %p1000_p0, %p188_p2 }
   0x6   : > { %v1144_v0 = vld [vmem:[%s1363_s1] sm:$0xff] (!%p189_p3)   ;;  %s1001_s18 = sshll.u32 (!%p189_p3), %s1182_s12, 5  ;;  %v1145_v1 = vld [vmem:[%s1363_s1 + $0x8] sm:$0xff] (!%p189_p3)   ;;  %v1146_v2 = vld [vmem:[%s1363_s1 + $0x10] sm:$0xff] (!%p189_p3)  }
   0x7   : > { %192 = sbr.rel (%p189_p3) target bundleno = 283 (0x11b), region = 32  ;;  %p230_p4 = scmp.lt.s32.totalorder (!%p189_p3), %s1001_s18, 63  ;;  %1056 = vmatprep.subr.bf16.mxu0 (!%p189_p3), %v1144_v0  ;;  %1104 = vmatprep.subr.bf16.mxu1 (!%p189_p3), %v1144_v0  ;;  %v1147_v3 = vld [vmem:[%s1363_s1 + $0x18] sm:$0xff] (!%p189_p3)   ;;  %v1148_v6 = vld [vmem:[%s1363_s1 + $0x20] sm:$0xff] (!%p189_p3)   ;;  %v1149_v7 = vld [vmem:[%s1363_s1 + $0x28] sm:$0xff] (!%p189_p3)  }
   0x8   : > { %1057 = vmatpush3.bf16.msra.mxu0 (!%p189_p3), %v1144_v0  ;;  %1112 = vmatpush3.bf16.msra.mxu1 (!%p189_p3), %v1144_v0  ;;  %v1150_v8 = vld [vmem:[%s1363_s1 + $0x30] sm:$0xff] (!%p189_p3)   ;;  %v1151_v9 = vld [vmem:[%s1363_s1 + $0x38] sm:$0xff] (!%p189_p3)   ;;  %v1281_v24 = vld [vmem:[%s1364_s2] ss:$0 sm:$0xff] (!%p189_p3) }
   0x9   : > { %1058 = vmatprep.subr.bf16.mxu0 (!%p189_p3), %v1145_v1  ;;  %1105 = vmatprep.subr.bf16.mxu1 (!%p189_p3), %v1145_v1 }
   0xc   : > { %1059 = vmatpush3.bf16.msra.mxu0 (!%p189_p3), %v1145_v1  ;;  %1113 = vmatpush3.bf16.msra.mxu1 (!%p189_p3), %v1145_v1 }
   0xd   : > { %1060 = vmatprep.subr.bf16.mxu0 (!%p189_p3), %v1146_v2  ;;  %1106 = vmatprep.subr.bf16.mxu1 (!%p189_p3), %v1146_v2 }
   0xe   : > { %s1371_s18 = smov (!%p230_p4, %s1001_s18), 63 }
   0xf   : > { %s1002_s23 = sshll.u32 %s1371_s18, 2  ;;  %s1004_s12 = sshll.u32 %s1371_s18, 3 }
  0x10   : > { %s1245_s26 = scalar_lea.vmem %s1362_s0, %s1002_s23  ;;  %1061 = vmatpush3.bf16.msra.mxu0 %v1146_v2  ;;  %1114 = vmatpush3.bf16.msra.mxu1 %v1146_v2  ;;  %s1289_s19 = scalar_lea.vmem %s1365_s3, %s1004_s12 }
  0x11   : > { %v1152_v4 = vld [vmem:[%s1245_s26] sm:$0xff]   ;;  %1062 = vmatprep.subr.bf16.mxu0 %v1147_v3  ;;  %1107 = vmatprep.subr.bf16.mxu1 %v1147_v3  ;;  %v1154_v10 = vld [vmem:[%s1245_s26 + $0x8] sm:$0xff]   ;;  %v1156_v12 = vld [vmem:[%s1245_s26 + $0x10] sm:$0xff]  }
  0x12   : > { %v1153_v5 = vld [vmem:[%s1245_s26 + $0x40] sm:$0xff]   ;;  %1072 = vmatprep.mubr.bf16.mxu0 %v1152_v4  ;;  %v1155_v11 = vld [vmem:[%s1245_s26 + $0x48] sm:$0xff]   ;;  %v1157_v13 = vld [vmem:[%s1245_s26 + $0x50] sm:$0xff]  }
  0x13   : > { %1088 = vmatprep.mubr.bf16.mxu1 %v1153_v5  ;;  %v1158_v14 = vld [vmem:[%s1245_s26 + $0x18] sm:$0xff]   ;;  %v1160_v16 = vld [vmem:[%s1245_s26 + $0x20] sm:$0xff]   ;;  %v1162_v18 = vld [vmem:[%s1245_s26 + $0x28] sm:$0xff]  }
  0x14   : > { %1063 = vmatpush3.bf16.msra.mxu0 %v1147_v3  ;;  %1115 = vmatpush3.bf16.msra.mxu1 %v1147_v3  ;;  %v1159_v15 = vld [vmem:[%s1245_s26 + $0x58] sm:$0xff]   ;;  %v1161_v17 = vld [vmem:[%s1245_s26 + $0x60] sm:$0xff]   ;;  %v1163_v19 = vld [vmem:[%s1245_s26 + $0x68] sm:$0xff]  }
  0x15   : > { %1064 = vmatprep.subr.bf16.mxu0 %v1148_v6  ;;  %1108 = vmatprep.subr.bf16.mxu1 %v1148_v6  ;;  %v1164_v20 = vld [vmem:[%s1245_s26 + $0x30] sm:$0xff]   ;;  %v1166_v22 = vld [vmem:[%s1245_s26 + $0x38] sm:$0xff]  }
  0x16   : > { %v1165_v21 = vld [vmem:[%s1245_s26 + $0x70] sm:$0xff]   ;;  %v1167_v23 = vld [vmem:[%s1245_s26 + $0x78] sm:$0xff]  }
  0x18   : > { %1065 = vmatpush3.bf16.msra.mxu0 %v1148_v6  ;;  %1116 = vmatpush3.bf16.msra.mxu1 %v1148_v6 }
  0x19   : > { %1066 = vmatprep.subr.bf16.mxu0 %v1149_v7  ;;  %1109 = vmatprep.subr.bf16.mxu1 %v1149_v7 }
  0x1c   : > { %1067 = vmatpush3.bf16.msra.mxu0 %v1149_v7  ;;  %1117 = vmatpush3.bf16.msra.mxu1 %v1149_v7 }
  0x1d   : > { %1068 = vmatprep.subr.bf16.mxu0 %v1150_v8  ;;  %1110 = vmatprep.subr.bf16.mxu1 %v1150_v8 }
  0x20   : > { %1069 = vmatpush3.bf16.msra.mxu0 %v1150_v8  ;;  %1118 = vmatpush3.bf16.msra.mxu1 %v1150_v8 }
  0x21   : > { %1070 = vmatprep.subr.bf16.mxu0 %v1151_v9  ;;  %1111 = vmatprep.subr.bf16.mxu1 %v1151_v9 }
  0x24   : > { %1071 = vmatpush3.bf16.msra.mxu0 %v1151_v9  ;;  %1119 = vmatpush3.bf16.msra.mxu1 %v1151_v9 }
  0x27   : > { %1073 = vmatmul.mubr.bf16.vlgmr.msra.gmra.mrb[0].mxu0 %v1154_v10  ;;  %1089 = vmatmul.mubr.bf16.vlgmr.msra.gmra.mrb[0].mxu1 %v1155_v11 }
  0x28   : > { %1076 = vmatprep.mubr.bf16.mxu0 %v1156_v12  ;;  %1092 = vmatprep.mubr.bf16.mxu1 %v1157_v13 }
  0x2f   : > { %1077 = vmatmul.mubr.bf16.gmra.mrb[4].mxu0 %v1158_v14  ;;  %1093 = vmatmul.mubr.bf16.gmra.mrb[4].mxu1 %v1159_v15 }
  0x30   : > { %1080 = vmatprep.mubr.bf16.mxu0 %v1160_v16  ;;  %1096 = vmatprep.mubr.bf16.mxu1 %v1161_v17 }
  0x37   : > { %1081 = vmatmul.mubr.bf16.gmra.mrb[8].mxu0 %v1162_v18  ;;  %1097 = vmatmul.mubr.bf16.gmra.mrb[8].mxu1 %v1163_v19 }
  0x38   : > { %1084 = vmatprep.mubr.bf16.mxu0 %v1164_v20  ;;  %1100 = vmatprep.mubr.bf16.mxu1 %v1165_v21 }
  0x3f   : > { %1085 = vmatmul.mubr.bf16.gmra.mrb[12].mxu0 %v1166_v22  ;;  %1101 = vmatmul.mubr.bf16.gmra.mrb[12].mxu1 %v1167_v23 }
  0xfa   : > { %v1074_v25 = vpop.f32.mrb[0].mxu0  ;;  %v1090_v26 = vpop.f32.mrb[0].mxu1 }
  0xfb   : > { %v789_v27 = vadd.f32 %v1074_v25, %v1281_v24  ;;  %v805_v28 = vadd.f32 %v1090_v26, %v1281_v24  ;;  %v554_v29 = vpop.f32.mrb[1].mxu0  ;;  %v618_v30 = vpop.f32.mrb[1].mxu1 }
  0xfc   : > { %v787_v31 = vadd.f32 %v1281_v24, %v554_v29  ;;  %v803_v32 = vadd.f32 %v1281_v24, %v618_v30  ;;  %v1075_v33 = vpop.f32.mrb[2].mxu0  ;;  %v1091_v34 = vpop.f32.mrb[2].mxu1 }
  0xfd   : > { %v821_v35 = vmax.f32 %v789_v27, 0.0  ;;  %v837_v36 = vmax.f32 %v805_v28, 0.0  ;;  %v790_v37 = vadd.f32 %v1075_v33, %v1281_v24  ;;  %v806_v38 = vadd.f32 %v1091_v34, %v1281_v24  ;;  %v557_v39 = vpop.f32.mrb[3].mxu0  ;;  %v621_v40 = vpop.f32.mrb[3].mxu1 }
  0xfe   : > { %v819_v41 = vmax.f32 %v787_v31, 0.0  ;;  %v835_v42 = vmax.f32 %v803_v32, 0.0  ;;  %v788_v43 = vadd.f32 %v1281_v24, %v557_v39  ;;  %v804_v44 = vadd.f32 %v1281_v24, %v621_v40 }
  0xff   : > { %853 = vst [vmem:[%s1289_s19 + $0x10] sm:$0xff] %v821_v35  ;;  %869 = vst [vmem:[%s1289_s19 + $0x90] sm:$0xff] %v837_v36  ;;  %v822_v45 = vmax.f32 %v790_v37, 0.0  ;;  %v838_v46 = vmax.f32 %v806_v38, 0.0 }
 0x100   : > { %851 = vst [vmem:[%s1289_s19] sm:$0xff] %v819_v41  ;;  %867 = vst [vmem:[%s1289_s19 + $0x80] sm:$0xff] %v835_v42  ;;  %v820_v47 = vmax.f32 %v788_v43, 0.0  ;;  %v836_v48 = vmax.f32 %v804_v44, 0.0 }
 0x101   : > { %854 = vst [vmem:[%s1289_s19 + $0x18] sm:$0xff] %v822_v45  ;;  %870 = vst [vmem:[%s1289_s19 + $0x98] sm:$0xff] %v838_v46 }
 0x102   : > { %852 = vst [vmem:[%s1289_s19 + $0x8] sm:$0xff] %v820_v47  ;;  %868 = vst [vmem:[%s1289_s19 + $0x88] sm:$0xff] %v836_v48  ;;  %v1078_v49 = vpop.f32.mrb[4].mxu0  ;;  %v1094_v50 = vpop.f32.mrb[4].mxu1 }
 0x103   : > { %v793_v51 = vadd.f32 %v1078_v49, %v1281_v24  ;;  %v809_v52 = vadd.f32 %v1094_v50, %v1281_v24  ;;  %v570_v53 = vpop.f32.mrb[5].mxu0  ;;  %v634_v54 = vpop.f32.mrb[5].mxu1 }
 0x104   : > { %v791_v55 = vadd.f32 %v1281_v24, %v570_v53  ;;  %v807_v56 = vadd.f32 %v1281_v24, %v634_v54  ;;  %v1079_v57 = vpop.f32.mrb[6].mxu0  ;;  %v1095_v58 = vpop.f32.mrb[6].mxu1 }
 0x105   : > { %v825_v59 = vmax.f32 %v793_v51, 0.0  ;;  %v841_v60 = vmax.f32 %v809_v52, 0.0  ;;  %v794_v61 = vadd.f32 %v1079_v57, %v1281_v24  ;;  %v810_v62 = vadd.f32 %v1095_v58, %v1281_v24  ;;  %v573_v63 = vpop.f32.mrb[7].mxu0  ;;  %v637_v0 = vpop.f32.mrb[7].mxu1 }
 0x106   : > { %v823_v1 = vmax.f32 %v791_v55, 0.0  ;;  %v839_v2 = vmax.f32 %v807_v56, 0.0  ;;  %v792_v3 = vadd.f32 %v1281_v24, %v573_v63  ;;  %v808_v4 = vadd.f32 %v1281_v24, %v637_v0 }
 0x107   : > { %857 = vst [vmem:[%s1289_s19 + $0x30] sm:$0xff] %v825_v59  ;;  %873 = vst [vmem:[%s1289_s19 + $0xb0] sm:$0xff] %v841_v60  ;;  %v826_v5 = vmax.f32 %v794_v61, 0.0  ;;  %v842_v6 = vmax.f32 %v810_v62, 0.0 }
 0x108   : > { %855 = vst [vmem:[%s1289_s19 + $0x20] sm:$0xff] %v823_v1  ;;  %871 = vst [vmem:[%s1289_s19 + $0xa0] sm:$0xff] %v839_v2  ;;  %v824_v7 = vmax.f32 %v792_v3, 0.0  ;;  %v840_v8 = vmax.f32 %v808_v4, 0.0 }
 0x109   : > { %858 = vst [vmem:[%s1289_s19 + $0x38] sm:$0xff] %v826_v5  ;;  %874 = vst [vmem:[%s1289_s19 + $0xb8] sm:$0xff] %v842_v6 }
 0x10a   : > { %856 = vst [vmem:[%s1289_s19 + $0x28] sm:$0xff] %v824_v7  ;;  %872 = vst [vmem:[%s1289_s19 + $0xa8] sm:$0xff] %v840_v8  ;;  %v1082_v9 = vpop.f32.mrb[8].mxu0  ;;  %v1098_v10 = vpop.f32.mrb[8].mxu1 }
 0x10b   : > { %v797_v11 = vadd.f32 %v1082_v9, %v1281_v24  ;;  %v813_v12 = vadd.f32 %v1098_v10, %v1281_v24  ;;  %v586_v13 = vpop.f32.mrb[9].mxu0  ;;  %v650_v14 = vpop.f32.mrb[9].mxu1 }
 0x10c   : > { %v795_v15 = vadd.f32 %v1281_v24, %v586_v13  ;;  %v811_v16 = vadd.f32 %v1281_v24, %v650_v14  ;;  %v1083_v17 = vpop.f32.mrb[10].mxu0  ;;  %v1099_v18 = vpop.f32.mrb[10].mxu1 }
 0x10d   : > { %v829_v19 = vmax.f32 %v797_v11, 0.0  ;;  %v845_v20 = vmax.f32 %v813_v12, 0.0  ;;  %v798_v21 = vadd.f32 %v1083_v17, %v1281_v24  ;;  %v814_v22 = vadd.f32 %v1099_v18, %v1281_v24  ;;  %v589_v23 = vpop.f32.mrb[11].mxu0  ;;  %v653_v25 = vpop.f32.mrb[11].mxu1 }
 0x10e   : > { %v827_v26 = vmax.f32 %v795_v15, 0.0  ;;  %v843_v27 = vmax.f32 %v811_v16, 0.0  ;;  %v796_v28 = vadd.f32 %v1281_v24, %v589_v23  ;;  %v812_v29 = vadd.f32 %v1281_v24, %v653_v25 }
 0x10f   : > { %861 = vst [vmem:[%s1289_s19 + $0x50] sm:$0xff] %v829_v19  ;;  %877 = vst [vmem:[%s1289_s19 + $0xd0] sm:$0xff] %v845_v20  ;;  %v830_v30 = vmax.f32 %v798_v21, 0.0  ;;  %v846_v31 = vmax.f32 %v814_v22, 0.0 }
 0x110   : > { %859 = vst [vmem:[%s1289_s19 + $0x40] sm:$0xff] %v827_v26  ;;  %875 = vst [vmem:[%s1289_s19 + $0xc0] sm:$0xff] %v843_v27  ;;  %v828_v32 = vmax.f32 %v796_v28, 0.0  ;;  %v844_v33 = vmax.f32 %v812_v29, 0.0 }
 0x111   : > { %862 = vst [vmem:[%s1289_s19 + $0x58] sm:$0xff] %v830_v30  ;;  %878 = vst [vmem:[%s1289_s19 + $0xd8] sm:$0xff] %v846_v31 }
 0x112   : > { %860 = vst [vmem:[%s1289_s19 + $0x48] sm:$0xff] %v828_v32  ;;  %876 = vst [vmem:[%s1289_s19 + $0xc8] sm:$0xff] %v844_v33  ;;  %v1086_v34 = vpop.f32.mrb[12].mxu0  ;;  %v1102_v35 = vpop.f32.mrb[12].mxu1 }
 0x113   : > { %v801_v36 = vadd.f32 %v1086_v34, %v1281_v24  ;;  %v817_v37 = vadd.f32 %v1102_v35, %v1281_v24  ;;  %v602_v38 = vpop.f32.mrb[13].mxu0  ;;  %v666_v39 = vpop.f32.mrb[13].mxu1 }
 0x114   : > { %v799_v40 = vadd.f32 %v1281_v24, %v602_v38  ;;  %v815_v41 = vadd.f32 %v1281_v24, %v666_v39  ;;  %v1087_v42 = vpop.f32.mrb[14].mxu0  ;;  %v1103_v43 = vpop.f32.mrb[14].mxu1 }
 0x115   : > { %v833_v44 = vmax.f32 %v801_v36, 0.0  ;;  %v849_v45 = vmax.f32 %v817_v37, 0.0  ;;  %v802_v46 = vadd.f32 %v1087_v42, %v1281_v24  ;;  %v818_v47 = vadd.f32 %v1103_v43, %v1281_v24  ;;  %v605_v48 = vpop.f32.mrb[15].mxu0  ;;  %v669_v49 = vpop.f32.mrb[15].mxu1 }
 0x116   : > { %v831_v50 = vmax.f32 %v799_v40, 0.0  ;;  %v847_v51 = vmax.f32 %v815_v41, 0.0  ;;  %v800_v52 = vadd.f32 %v1281_v24, %v605_v48  ;;  %v816_v53 = vadd.f32 %v1281_v24, %v669_v49 }
 0x117   : > { %865 = vst [vmem:[%s1289_s19 + $0x70] sm:$0xff] %v833_v44  ;;  %881 = vst [vmem:[%s1289_s19 + $0xf0] sm:$0xff] %v849_v45  ;;  %v834_v54 = vmax.f32 %v802_v46, 0.0  ;;  %v850_v55 = vmax.f32 %v818_v47, 0.0 }
 0x118   : > { %863 = vst [vmem:[%s1289_s19 + $0x60] sm:$0xff] %v831_v50  ;;  %879 = vst [vmem:[%s1289_s19 + $0xe0] sm:$0xff] %v847_v51  ;;  %v832_v56 = vmax.f32 %v800_v52, 0.0  ;;  %v848_v57 = vmax.f32 %v816_v53, 0.0 }
 0x119   : > { %866 = vst [vmem:[%s1289_s19 + $0x78] sm:$0xff] %v834_v54  ;;  %882 = vst [vmem:[%s1289_s19 + $0xf8] sm:$0xff] %v850_v55 }
 0x11a   : > { %864 = vst [vmem:[%s1289_s19 + $0x68] sm:$0xff] %v832_v56  ;;  %880 = vst [vmem:[%s1289_s19 + $0xe8] sm:$0xff] %v848_v57 }
 0x11b PF: > { %s13_s14 = sadd.s32 1, %s1190_s14   ;;  %s1366_s12 = smov %s1186_s13 }
 0x11c   : > { %p10_p5 = scmp.ge.s32.totalorder %s13_s14, 4   ;;  %s1367_s13 = smov %s1369_s15 }
 0x11e   :  { %12 = sbr.rel (!%p10_p5) target bundleno = 2 (0x2), region = 76 }

// kernel: forward.31
= control target key start
LH: loop header
LB: loop body
LE: loop exit
PB: predicated region body
PF: predicated region fallthrough
CT: control target
= control target key end

     0   :  { %s602_s1 = inlined_call_operand.vmem [shape: bf16[128,128], index: 1, kind: input, shape index: {}]   ;;  %s603_s0 = inlined_call_operand.vmem [shape: bf16[128,128], index: 0, kind: input, shape index: {}]   ;;  %s604_s2 = inlined_call_operand.vmem [shape: f32[1,128], index: 2, kind: input, shape index: {}]   ;;  %s605_s3 = inlined_call_operand.vmem [shape: f32[128,128], index: 3, kind: output, shape index: {}]  }
   0x1   :  { %v467_v0 = vld [vmem:[%s602_s1] sm:$0xff]   ;;  %v468_v1 = vld [vmem:[%s602_s1 + $0x8] sm:$0xff]   ;;  %v469_v2 = vld [vmem:[%s602_s1 + $0x10] sm:$0xff]  }
   0x2   :  { %419 = vmatprep.subr.bf16.mxu0 %v467_v0  ;;  %451 = vmatprep.subr.bf16.mxu1 %v467_v0  ;;  %v470_v3 = vld [vmem:[%s602_s1 + $0x18] sm:$0xff]   ;;  %v475_v4 = vld [vmem:[%s603_s0] sm:$0xff]   ;;  %v472_v7 = vld [vmem:[%s602_s1 + $0x28] sm:$0xff]  }
   0x3   :  { %420 = vmatpush3.bf16.msra.mxu0 %v467_v0  ;;  %459 = vmatpush3.bf16.msra.mxu1 %v467_v0  ;;  %v476_v5 = vld [vmem:[%s603_s0 + $0x20] sm:$0xff]   ;;  %v473_v8 = vld [vmem:[%s602_s1 + $0x30] sm:$0xff]   ;;  %v474_v9 = vld [vmem:[%s602_s1 + $0x38] sm:$0xff]  }
   0x4   :  { %421 = vmatprep.subr.bf16.mxu0 %v468_v1  ;;  %452 = vmatprep.subr.bf16.mxu1 %v468_v1  ;;  %v471_v6 = vld [vmem:[%s602_s1 + $0x20] sm:$0xff]   ;;  %v477_v10 = vld [vmem:[%s603_s0 + $0x8] sm:$0xff]   ;;  %v479_v12 = vld [vmem:[%s603_s0 + $0x10] sm:$0xff]  }
   0x5   :  { %435 = vmatprep.mubr.bf16.mxu0 %v475_v4  ;;  %443 = vmatprep.mubr.bf16.mxu1 %v476_v5  ;;  %v478_v11 = vld [vmem:[%s603_s0 + $0x28] sm:$0xff]   ;;  %v480_v13 = vld [vmem:[%s603_s0 + $0x30] sm:$0xff]   ;;  %v481_v14 = vld [vmem:[%s603_s0 + $0x18] sm:$0xff]  }
   0x6   :  { %v482_v15 = vld [vmem:[%s603_s0 + $0x38] sm:$0xff]   ;;  %v402_v16 = vld [vmem:[%s604_s2] ss:$0 sm:$0xff] }
   0x7   :  { %422 = vmatpush3.bf16.msra.mxu0 %v468_v1  ;;  %460 = vmatpush3.bf16.msra.mxu1 %v468_v1 }
   0x8   :  { %423 = vmatprep.subr.bf16.mxu0 %v469_v2  ;;  %453 = vmatprep.subr.bf16.mxu1 %v469_v2 }
   0xb   :  { %424 = vmatpush3.bf16.msra.mxu0 %v469_v2  ;;  %461 = vmatpush3.bf16.msra.mxu1 %v469_v2 }
   0xc   :  { %425 = vmatprep.subr.bf16.mxu0 %v470_v3  ;;  %454 = vmatprep.subr.bf16.mxu1 %v470_v3 }
   0xf   :  { %426 = vmatpush3.bf16.msra.mxu0 %v470_v3  ;;  %462 = vmatpush3.bf16.msra.mxu1 %v470_v3 }
  0x10   :  { %427 = vmatprep.subr.bf16.mxu0 %v471_v6  ;;  %455 = vmatprep.subr.bf16.mxu1 %v471_v6 }
  0x13   :  { %428 = vmatpush3.bf16.msra.mxu0 %v471_v6  ;;  %463 = vmatpush3.bf16.msra.mxu1 %v471_v6 }
  0x14   :  { %429 = vmatprep.subr.bf16.mxu0 %v472_v7  ;;  %456 = vmatprep.subr.bf16.mxu1 %v472_v7 }
  0x17   :  { %430 = vmatpush3.bf16.msra.mxu0 %v472_v7  ;;  %464 = vmatpush3.bf16.msra.mxu1 %v472_v7 }
  0x18   :  { %431 = vmatprep.subr.bf16.mxu0 %v473_v8  ;;  %457 = vmatprep.subr.bf16.mxu1 %v473_v8 }
  0x1b   :  { %432 = vmatpush3.bf16.msra.mxu0 %v473_v8  ;;  %465 = vmatpush3.bf16.msra.mxu1 %v473_v8 }
  0x1c   :  { %433 = vmatprep.subr.bf16.mxu0 %v474_v9  ;;  %458 = vmatprep.subr.bf16.mxu1 %v474_v9 }
  0x1f   :  { %434 = vmatpush3.bf16.msra.mxu0 %v474_v9  ;;  %466 = vmatpush3.bf16.msra.mxu1 %v474_v9 }
  0x22   :  { %436 = vmatmul.mubr.bf16.vlgmr.msra.gmra.mrb[0].mxu0 %v477_v10  ;;  %444 = vmatmul.mubr.bf16.vlgmr.msra.gmra.mrb[0].mxu1 %v478_v11 }
  0x23   :  { %439 = vmatprep.mubr.bf16.mxu0 %v479_v12  ;;  %447 = vmatprep.mubr.bf16.mxu1 %v480_v13 }
  0x2a   :  { %440 = vmatmul.mubr.bf16.gmra.mrb[4].mxu0 %v481_v14  ;;  %448 = vmatmul.mubr.bf16.gmra.mrb[4].mxu1 %v482_v15 }
  0xf5   :  { %v437_v17 = vpop.f32.mrb[0].mxu0  ;;  %v445_v18 = vpop.f32.mrb[0].mxu1 }
  0xf6   :  { %v336_v19 = vadd.f32 %v437_v17, %v402_v16  ;;  %v344_v20 = vadd.f32 %v445_v18, %v402_v16  ;;  %v213_v21 = vpop.f32.mrb[1].mxu0  ;;  %v245_v22 = vpop.f32.mrb[1].mxu1 }
  0xf7   :  { %v334_v23 = vadd.f32 %v402_v16, %v213_v21  ;;  %v342_v24 = vadd.f32 %v402_v16, %v245_v22  ;;  %v438_v25 = vpop.f32.mrb[2].mxu0  ;;  %v446_v26 = vpop.f32.mrb[2].mxu1 }
  0xf8   :  { %v352_v27 = vmax.f32 %v336_v19, 0.0  ;;  %v360_v28 = vmax.f32 %v344_v20, 0.0  ;;  %v337_v29 = vadd.f32 %v438_v25, %v402_v16  ;;  %v345_v30 = vadd.f32 %v446_v26, %v402_v16  ;;  %v216_v31 = vpop.f32.mrb[3].mxu0  ;;  %v248_v32 = vpop.f32.mrb[3].mxu1 }
  0xf9   :  { %v350_v33 = vmax.f32 %v334_v23, 0.0  ;;  %v358_v34 = vmax.f32 %v342_v24, 0.0  ;;  %v335_v35 = vadd.f32 %v402_v16, %v216_v31  ;;  %v343_v36 = vadd.f32 %v402_v16, %v248_v32 }
  0xfa   :  { %368 = vst [vmem:[%s605_s3 + $0x10] sm:$0xff] %v352_v27  ;;  %376 = vst [vmem:[%s605_s3 + $0x50] sm:$0xff] %v360_v28  ;;  %v353_v37 = vmax.f32 %v337_v29, 0.0  ;;  %v361_v38 = vmax.f32 %v345_v30, 0.0 }
  0xfb   :  { %366 = vst [vmem:[%s605_s3] sm:$0xff] %v350_v33  ;;  %374 = vst [vmem:[%s605_s3 + $0x40] sm:$0xff] %v358_v34  ;;  %v351_v39 = vmax.f32 %v335_v35, 0.0  ;;  %v359_v40 = vmax.f32 %v343_v36, 0.0 }
  0xfc   :  { %369 = vst [vmem:[%s605_s3 + $0x18] sm:$0xff] %v353_v37  ;;  %377 = vst [vmem:[%s605_s3 + $0x58] sm:$0xff] %v361_v38 }
  0xfd   :  { %367 = vst [vmem:[%s605_s3 + $0x8] sm:$0xff] %v351_v39  ;;  %375 = vst [vmem:[%s605_s3 + $0x48] sm:$0xff] %v359_v40  ;;  %v441_v41 = vpop.f32.mrb[4].mxu0  ;;  %v449_v42 = vpop.f32.mrb[4].mxu1 }
  0xfe   :  { %v340_v43 = vadd.f32 %v441_v41, %v402_v16  ;;  %v348_v44 = vadd.f32 %v449_v42, %v402_v16  ;;  %v229_v45 = vpop.f32.mrb[5].mxu0  ;;  %v261_v46 = vpop.f32.mrb[5].mxu1 }
  0xff   :  { %v338_v47 = vadd.f32 %v402_v16, %v229_v45  ;;  %v346_v48 = vadd.f32 %v402_v16, %v261_v46  ;;  %v442_v49 = vpop.f32.mrb[6].mxu0  ;;  %v450_v50 = vpop.f32.mrb[6].mxu1 }
 0x100   :  { %v356_v51 = vmax.f32 %v340_v43, 0.0  ;;  %v364_v52 = vmax.f32 %v348_v44, 0.0  ;;  %v341_v53 = vadd.f32 %v442_v49, %v402_v16  ;;  %v349_v54 = vadd.f32 %v450_v50, %v402_v16  ;;  %v232_v55 = vpop.f32.mrb[7].mxu0  ;;  %v264_v56 = vpop.f32.mrb[7].mxu1 }
 0x101   :  { %v354_v57 = vmax.f32 %v338_v47, 0.0  ;;  %v362_v58 = vmax.f32 %v346_v48, 0.0  ;;  %v339_v59 = vadd.f32 %v402_v16, %v232_v55  ;;  %v347_v60 = vadd.f32 %v402_v16, %v264_v56 }
 0x102   :  { %372 = vst [vmem:[%s605_s3 + $0x30] sm:$0xff] %v356_v51  ;;  %380 = vst [vmem:[%s605_s3 + $0x70] sm:$0xff] %v364_v52  ;;  %v357_v61 = vmax.f32 %v341_v53, 0.0  ;;  %v365_v62 = vmax.f32 %v349_v54, 0.0 }
 0x103   :  { %370 = vst [vmem:[%s605_s3 + $0x20] sm:$0xff] %v354_v57  ;;  %378 = vst [vmem:[%s605_s3 + $0x60] sm:$0xff] %v362_v58  ;;  %v355_v63 = vmax.f32 %v339_v59, 0.0  ;;  %v363_v0 = vmax.f32 %v347_v60, 0.0 }
 0x104   :  { %373 = vst [vmem:[%s605_s3 + $0x38] sm:$0xff] %v357_v61  ;;  %381 = vst [vmem:[%s605_s3 + $0x78] sm:$0xff] %v365_v62 }
 0x105   :  { %371 = vst [vmem:[%s605_s3 + $0x28] sm:$0xff] %v355_v63  ;;  %379 = vst [vmem:[%s605_s3 + $0x68] sm:$0xff] %v363_v0 }

// kernel: forward.32
= control target key start
LH: loop header
LB: loop body
LE: loop exit
PB: predicated region body
PF: predicated region fallthrough
CT: control target
= control target key end

     0   :  { %s310_s1 = inlined_call_operand.vmem [shape: bf16[128,128], index: 1, kind: input, shape index: {}]   ;;  %s311_s0 = inlined_call_operand.vmem [shape: bf16[32,128], index: 0, kind: input, shape index: {}]   ;;  %s312_s2 = inlined_call_operand.vmem [shape: f32[1,128], index: 2, kind: input, shape index: {}]   ;;  %s313_s3 = inlined_call_operand.vmem [shape: f32[32,128], index: 3, kind: output, shape index: {}]  }
   0x1   :  { %v235_v0 = vld [vmem:[%s310_s1] sm:$0xff]   ;;  %v236_v1 = vld [vmem:[%s310_s1 + $0x8] sm:$0xff]   ;;  %v237_v2 = vld [vmem:[%s310_s1 + $0x10] sm:$0xff]  }
   0x2   :  { %215 = vmatprep.subr.bf16.mxu0 %v235_v0  ;;  %v238_v3 = vld [vmem:[%s310_s1 + $0x18] sm:$0xff]   ;;  %v243_v4 = vld [vmem:[%s311_s0] sm:$0xff]   ;;  %v240_v6 = vld [vmem:[%s310_s1 + $0x28] sm:$0xff]  }
   0x3   :  { %216 = vmatpush3.bf16.msra.mxu0 %v235_v0  ;;  %231 = vmatprep.mubr.bf16.mxu0 %v243_v4  ;;  %v239_v5 = vld [vmem:[%s310_s1 + $0x20] sm:$0xff]   ;;  %v241_v7 = vld [vmem:[%s310_s1 + $0x30] sm:$0xff]   ;;  %v242_v8 = vld [vmem:[%s310_s1 + $0x38] sm:$0xff]  }
   0x4   :  { %217 = vmatprep.subr.bf16.mxu0 %v236_v1  ;;  %v244_v9 = vld [vmem:[%s311_s0 + $0x8] sm:$0xff]   ;;  %v204_v10 = vld [vmem:[%s312_s2] ss:$0 sm:$0xff] }
   0x7   :  { %218 = vmatpush3.bf16.msra.mxu0 %v236_v1 }
   0x8   :  { %219 = vmatprep.subr.bf16.mxu0 %v237_v2 }
   0xb   :  { %220 = vmatpush3.bf16.msra.mxu0 %v237_v2 }
   0xc   :  { %221 = vmatprep.subr.bf16.mxu0 %v238_v3 }
   0xf   :  { %222 = vmatpush3.bf16.msra.mxu0 %v238_v3 }
  0x10   :  { %223 = vmatprep.subr.bf16.mxu0 %v239_v5 }
  0x13   :  { %224 = vmatpush3.bf16.msra.mxu0 %v239_v5 }
  0x14   :  { %225 = vmatprep.subr.bf16.mxu0 %v240_v6 }
  0x17   :  { %226 = vmatpush3.bf16.msra.mxu0 %v240_v6 }
  0x18   :  { %227 = vmatprep.subr.bf16.mxu0 %v241_v7 }
  0x1b   :  { %228 = vmatpush3.bf16.msra.mxu0 %v241_v7 }
  0x1c   :  { %229 = vmatprep.subr.bf16.mxu0 %v242_v8 }
  0x1f   :  { %230 = vmatpush3.bf16.msra.mxu0 %v242_v8 }
  0x22   :  { %232 = vmatmul.mubr.bf16.vlgmr.msra.gmra.mrb[0].mxu0 %v244_v9 }
  0xf5   :  { %v233_v11 = vpop.f32.mrb[0].mxu0 }
  0xf6   :  { %v180_v12 = vadd.f32 %v233_v11, %v204_v10  ;;  %v141_v13 = vpop.f32.mrb[1].mxu0 }
  0xf7   :  { %v178_v14 = vadd.f32 %v204_v10, %v141_v13  ;;  %v234_v15 = vpop.f32.mrb[2].mxu0 }
  0xf8   :  { %v184_v16 = vmax.f32 %v180_v12, 0.0  ;;  %v181_v17 = vadd.f32 %v234_v15, %v204_v10  ;;  %v144_v18 = vpop.f32.mrb[3].mxu0 }
  0xf9   :  { %v182_v19 = vmax.f32 %v178_v14, 0.0  ;;  %v179_v20 = vadd.f32 %v204_v10, %v144_v18 }
  0xfa   :  { %188 = vst [vmem:[%s313_s3 + $0x10] sm:$0xff] %v184_v16  ;;  %v185_v21 = vmax.f32 %v181_v17, 0.0 }
  0xfb   :  { %186 = vst [vmem:[%s313_s3] sm:$0xff] %v182_v19  ;;  %v183_v22 = vmax.f32 %v179_v20, 0.0 }
  0xfc   :  { %189 = vst [vmem:[%s313_s3 + $0x18] sm:$0xff] %v185_v21 }
  0xfd   :  { %187 = vst [vmem:[%s313_s3 + $0x8] sm:$0xff] %v183_v22 }

// kernel: forward.33
= control target key start
LH: loop header
LB: loop body
LE: loop exit
PB: predicated region body
PF: predicated region fallthrough
CT: control target
= control target key end

     0   :  { %v194_v0 = vmov 0.0   ;;  %vm195_vm0 = vmmov 0   ;;  %s249_s1 = inlined_call_operand.vmem [shape: bf16[128,128], index: 1, kind: input, shape index: {}]   ;;  %s250_s0 = inlined_call_operand.vmem [shape: bf16[8,128], index: 0, kind: input, shape index: {}]   ;;  %s251_s2 = inlined_call_operand.vmem [shape: f32[1,128], index: 2, kind: input, shape index: {}]   ;;  %s252_s3 = inlined_call_operand.vmem [shape: f32[8,128], index: 3, kind: output, shape index: {}]  }
   0x1   :  { %164 = vmatprep.subr.bf16.mxu0 %v194_v0  ;;  %v186_v1 = vld [vmem:[%s249_s1] sm:$0xff]   ;;  %180 = vmatprep.mubr.msk.bf16.mxu0 %vm195_vm0, %v194_v0  ;;  %v187_v2 = vld [vmem:[%s249_s1 + $0x8] sm:$0xff]   ;;  %v188_v3 = vld [vmem:[%s249_s1 + $0x10] sm:$0xff]  }
   0x2   :  { %165 = vmatpush3.bf16.msra.mxu0 %v186_v1  ;;  %v189_v4 = vld [vmem:[%s249_s1 + $0x18] sm:$0xff]   ;;  %v190_v5 = vld [vmem:[%s249_s1 + $0x20] sm:$0xff]   ;;  %v191_v6 = vld [vmem:[%s249_s1 + $0x28] sm:$0xff]  }
   0x3   :  { %166 = vmatprep.subr.bf16.mxu0 %v194_v0  ;;  %v192_v7 = vld [vmem:[%s249_s1 + $0x30] sm:$0xff]   ;;  %v193_v8 = vld [vmem:[%s249_s1 + $0x38] sm:$0xff]   ;;  %v21_v9 = vld [vmem:[%s250_s0] sm:$0xf] }
   0x4   :  { %v154_v10 = vld [vmem:[%s251_s2] ss:$0 sm:$0xff] }
   0x6   :  { %167 = vmatpush3.bf16.msra.mxu0 %v187_v2 }
   0x7   :  { %168 = vmatprep.subr.bf16.mxu0 %v194_v0 }
   0xa   :  { %169 = vmatpush3.bf16.msra.mxu0 %v188_v3 }
   0xb   :  { %170 = vmatprep.subr.bf16.mxu0 %v194_v0 }
   0xe   :  { %171 = vmatpush3.bf16.msra.mxu0 %v189_v4 }
   0xf   :  { %172 = vmatprep.subr.bf16.mxu0 %v194_v0 }
  0x12   :  { %173 = vmatpush3.bf16.msra.mxu0 %v190_v5 }
  0x13   :  { %174 = vmatprep.subr.bf16.mxu0 %v194_v0 }
  0x16   :  { %175 = vmatpush3.bf16.msra.mxu0 %v191_v6 }
  0x17   :  { %176 = vmatprep.subr.bf16.mxu0 %v194_v0 }
  0x1a   :  { %177 = vmatpush3.bf16.msra.mxu0 %v192_v7 }
  0x1b   :  { %178 = vmatprep.subr.bf16.mxu0 %v194_v0 }
  0x1e   :  { %179 = vmatpush3.bf16.msra.mxu0 %v193_v8 }
  0x21   :  { %181 = vmatmul.mubr.bf16.vlgmr.msra.gmra.mrb[0].mxu0 %v21_v9 }
  0xf4   :  { %v120_v11 = vpop.f32.mrb[0].mxu0 }
  0xf5   :  { %v139_v12 = vadd.f32 %v154_v10, %v120_v11  ;;  %v182_v13 = vpop.f32.mrb[1].mxu0 }
  0xf6   :  { %v123_v14 = vpop.f32.mrb[2].mxu0 }
  0xf7   :  { %v140_v15 = vmax.f32 %v139_v12, 0.0  ;;  %v183_v16 = vpop.f32.mrb[3].mxu0 }
  0xf9   :  { %141 = vst [vmem:[%s252_s3] sm:$0xff] %v140_v15 }

// kernel: forward.34
= control target key start
LH: loop header
LB: loop body
LE: loop exit
PB: predicated region body
PF: predicated region fallthrough
CT: control target
= control target key end

     0   :  { %s353_s1 = inlined_call_operand.vmem [shape: bf16[256,128], index: 1, kind: input, shape index: {}]   ;;  %s354_s0 = inlined_call_operand.vmem [shape: bf16[8,256], index: 0, kind: input, shape index: {}]   ;;  %s355_s2 = inlined_call_operand.vmem [shape: f32[1,128], index: 2, kind: input, shape index: {}]   ;;  %s356_s3 = inlined_call_operand.vmem [shape: f32[8,128], index: 3, kind: output, shape index: {}]  }
   0x1   :  { %v258_v0 = vld [vmem:[%s353_s1 + $0x40] sm:$0xff]   ;;  %v260_v2 = vld [vmem:[%s353_s1 + $0x48] sm:$0xff]   ;;  %v262_v4 = vld [vmem:[%s353_s1 + $0x50] sm:$0xff]  }
   0x2   :  { %v259_v1 = vld [vmem:[%s353_s1] sm:$0xff]   ;;  %236 = vmatprep.subr.bf16.mxu0 %v258_v0  ;;  %v261_v3 = vld [vmem:[%s353_s1 + $0x8] sm:$0xff]   ;;  %v263_v5 = vld [vmem:[%s353_s1 + $0x10] sm:$0xff]  }
   0x3   :  { %237 = vmatpush3.bf16.msra.mxu0 %v259_v1  ;;  %v264_v6 = vld [vmem:[%s353_s1 + $0x58] sm:$0xff]   ;;  %v266_v8 = vld [vmem:[%s353_s1 + $0x60] sm:$0xff]   ;;  %v268_v10 = vld [vmem:[%s353_s1 + $0x68] sm:$0xff]  }
   0x4   :  { %238 = vmatprep.subr.bf16.mxu0 %v260_v2  ;;  %v265_v7 = vld [vmem:[%s353_s1 + $0x18] sm:$0xff]   ;;  %v267_v9 = vld [vmem:[%s353_s1 + $0x20] sm:$0xff]   ;;  %v269_v13 = vld [vmem:[%s353_s1 + $0x28] sm:$0xff]  }
   0x5   :  { %v21_v11 = vld [vmem:[%s354_s0] sm:$0xff]  ;;  %v270_v14 = vld [vmem:[%s353_s1 + $0x70] sm:$0xff]   ;;  %v272_v16 = vld [vmem:[%s353_s1 + $0x78] sm:$0xff]  }
   0x6   :  { %v218_v12 = vcombine.high %v21_v11, %v21_v11  ;;  %v271_v15 = vld [vmem:[%s353_s1 + $0x30] sm:$0xff]   ;;  %v273_v17 = vld [vmem:[%s353_s1 + $0x38] sm:$0xff]   ;;  %v217_v18 = vcombine.low %v21_v11, %v21_v11  ;;  %v235_v21 = vld [vmem:[%s355_s2] ss:$0 sm:$0xff] }
   0x7   :  { %239 = vmatpush3.bf16.msra.mxu0 %v261_v3 }
   0x8   :  { %240 = vmatprep.subr.bf16.mxu0 %v262_v4  ;;  %189 = vmatprep.mubr.bf16.mxu0 %v218_v12 }
   0xb   :  { %241 = vmatpush3.bf16.msra.mxu0 %v263_v5 }
   0xc   :  { %242 = vmatprep.subr.bf16.mxu0 %v264_v6 }
   0xf   :  { %243 = vmatpush3.bf16.msra.mxu0 %v265_v7 }
  0x10   :  { %244 = vmatprep.subr.bf16.mxu0 %v266_v8 }
  0x13   :  { %245 = vmatpush3.bf16.msra.mxu0 %v267_v9 }
  0x14   :  { %246 = vmatprep.subr.bf16.mxu0 %v268_v10 }
  0x17   :  { %247 = vmatpush3.bf16.msra.mxu0 %v269_v13 }
  0x18   :  { %248 = vmatprep.subr.bf16.mxu0 %v270_v14 }
  0x1b   :  { %249 = vmatpush3.bf16.msra.mxu0 %v271_v15 }
  0x1c   :  { %250 = vmatprep.subr.bf16.mxu0 %v272_v16 }
  0x1f   :  { %251 = vmatpush3.bf16.msra.mxu0 %v273_v17 }
  0x22   :  { %190 = vmatmul.mubr.bf16.vlgmr.msra.gmra.mrb[0].mxu0 %v217_v18 }
  0xf5   :  { %v252_v19 = vpop.f32.mrb[0].mxu0 }
  0xf6   :  { %v253_v20 = vpop.f32.mrb[1].mxu0 }
  0xf7   :  { %v254_v22 = vadd.f32 %v253_v20, %v252_v19  ;;  %v255_v23 = vpop.f32.mrb[2].mxu0 }
  0xf8   :  { %v256_v24 = vpop.f32.mrb[3].mxu0 }
  0xf9   :  { %v210_v25 = vadd.f32 %v254_v22, %v235_v21 }
  0xfb   :  { %v211_v26 = vmax.f32 %v210_v25, 0.0 }
  0xfd   :  { %212 = vst [vmem:[%s356_s3] sm:$0xff] %v211_v26 }

// kernel: forward.35
= control target key start
LH: loop header
LB: loop body
LE: loop exit
PB: predicated region body
PF: predicated region fallthrough
CT: control target
= control target key end

     0   :  { %v233_v1 = vmov 0   ;;  %v172_v18 = vlaneseq  ;;  %s314_s1 = inlined_call_operand.vmem [shape: bf16[128,256], index: 1, kind: input, shape index: {}]   ;;  %s315_s0 = inlined_call_operand.vmem [shape: bf16[8,128], index: 0, kind: input, shape index: {}]   ;;  %s316_s2 = inlined_call_operand.vmem [shape: f32[1,256], index: 2, kind: input, shape index: {}]   ;;  %s317_s3 = inlined_call_operand.vmem [shape: f32[8,256], index: 3, kind: output, shape index: {}]  }
   0x1   :  { %v209_v0 = vld [vmem:[%s314_s1 + $0x4] ss:$8 sps:$4 sm:$0xff]   ;;  %152 = vmatprep.mubr.bf16.mxu0 %v233_v1  ;;  %v211_v2 = vld [vmem:[%s314_s1] ss:$8 sps:$4 sm:$0xff]   ;;  %v212_v3 = vld [vmem:[%s314_s1 + $0x14] ss:$8 sps:$4 sm:$0xff]  }
   0x2   :  { %120 = vmatprep.subr.bf16.mxu0 %v209_v0  ;;  %v214_v4 = vld [vmem:[%s314_s1 + $0x10] ss:$8 sps:$4 sm:$0xff]   ;;  %v215_v5 = vld [vmem:[%s314_s1 + $0x24] ss:$8 sps:$4 sm:$0xff]   ;;  %v217_v6 = vld [vmem:[%s314_s1 + $0x20] ss:$8 sps:$4 sm:$0xff]  }
   0x3   :  { %121 = vmatpush1.bf16.msra.mxu0 %v211_v2  ;;  %v218_v7 = vld [vmem:[%s314_s1 + $0x34] ss:$8 sps:$4 sm:$0xff]   ;;  %v220_v8 = vld [vmem:[%s314_s1 + $0x30] ss:$8 sps:$4 sm:$0xff]   ;;  %v221_v9 = vld [vmem:[%s314_s1 + $0x44] ss:$8 sps:$4 sm:$0xff]  }
   0x4   :  { %122 = vmatprep.subr.bf16.mxu0 %v212_v3  ;;  %v223_v10 = vld [vmem:[%s314_s1 + $0x40] ss:$8 sps:$4 sm:$0xff]   ;;  %v224_v11 = vld [vmem:[%s314_s1 + $0x54] ss:$8 sps:$4 sm:$0xff]   ;;  %v226_v12 = vld [vmem:[%s314_s1 + $0x50] ss:$8 sps:$4 sm:$0xff]  }
   0x5   :  { %v227_v13 = vld [vmem:[%s314_s1 + $0x64] ss:$8 sps:$4 sm:$0xff]   ;;  %v229_v14 = vld [vmem:[%s314_s1 + $0x60] ss:$8 sps:$4 sm:$0xff]   ;;  %v230_v15 = vld [vmem:[%s314_s1 + $0x74] ss:$8 sps:$4 sm:$0xff]  }
   0x6   :  { %v232_v16 = vld [vmem:[%s314_s1 + $0x70] ss:$8 sps:$4 sm:$0xff]   ;;  %v23_v17 = vld [vmem:[%s315_s0] sm:$0xf]  ;;  %v173_v19 = vshrl.u32 %v172_v18, 7 }
   0x7   :  { %123 = vmatpush1.bf16.msra.mxu0 %v214_v4  ;;  %v170_v21 = vld [vmem:[%s316_s2] sm:$0x3] }
   0x8   :  { %124 = vmatprep.subr.bf16.mxu0 %v215_v5  ;;  %v174_v20 = vsub.s32 0, %v173_v19  ;;  %v178_v22 = vsub.s32 1, %v173_v19 }
   0xa   :  { %v175_v23 = vrot.slane %v170_v21, %v174_v20  ;;  %v179_v24 = vrot.slane %v170_v21, %v178_v22 }
   0xb   :  { %125 = vmatpush1.bf16.msra.mxu0 %v217_v6 }
   0xc   :  { %126 = vmatprep.subr.bf16.mxu0 %v218_v7 }
   0xf   :  { %127 = vmatpush1.bf16.msra.mxu0 %v220_v8 }
  0x10   :  { %128 = vmatprep.subr.bf16.mxu0 %v221_v9 }
  0x13   :  { %129 = vmatpush1.bf16.msra.mxu0 %v223_v10 }
  0x14   :  { %130 = vmatprep.subr.bf16.mxu0 %v224_v11 }
  0x17   :  { %131 = vmatpush1.bf16.msra.mxu0 %v226_v12 }
  0x18   :  { %132 = vmatprep.subr.bf16.mxu0 %v227_v13 }
  0x1b   :  { %133 = vmatpush1.bf16.msra.mxu0 %v229_v14 }
  0x1c   :  { %134 = vmatprep.subr.bf16.mxu0 %v230_v15 }
  0x1f   :  { %135 = vmatpush1.bf16.msra.mxu0 %v232_v16 }
  0x22   :  { %153 = vmatmul.mubr.bf16.vlgmr.msra.gmra.mrb[0].mxu0 %v23_v17 }
  0xf5   :  { %v154_v25 = vpop.f32.mrb[0].mxu0 }
  0xf6   :  { %v182_v26 = vadd.f32 %v175_v23, %v154_v25  ;;  %v156_v27 = vpop.f32.mrb[1].mxu0 }
  0xf7   :  { %v183_v28 = vadd.f32 %v179_v24, %v156_v27  ;;  %v158_v29 = vpop.f32.mrb[2].mxu0 }
  0xf8   :  { %v184_v30 = vmax.f32 %v182_v26, 0.0  ;;  %v159_v31 = vpop.f32.mrb[3].mxu0 }
  0xf9   :  { %v185_v32 = vmax.f32 %v183_v28, 0.0 }
  0xfa   :  { %186 = vst [vmem:[%s317_s3] sm:$0xff] %v184_v30 }
  0xfb   :  { %187 = vst [vmem:[%s317_s3 + $0x8] sm:$0xff] %v185_v32 }

// kernel: forward.36
= control target key start
LH: loop header
LB: loop body
LE: loop exit
PB: predicated region body
PF: predicated region fallthrough
CT: control target
= control target key end

     0   :  { %v564_v1 = vmov 0   ;;  %v417_v57 = vlaneseq  ;;  %s744_s1 = inlined_call_operand.vmem [shape: bf16[384,256], index: 1, kind: input, shape index: {}]   ;;  %s745_s0 = inlined_call_operand.vmem [shape: bf16[8,384], index: 0, kind: input, shape index: {}]   ;;  %s746_s2 = inlined_call_operand.vmem [shape: f32[1,256], index: 2, kind: input, shape index: {}]   ;;  %s747_s3 = inlined_call_operand.vmem [shape: f32[8,256], index: 3, kind: output, shape index: {}]  }
   0x1   :  { %v489_v0 = vld [vmem:[%s744_s1 + $0x4] ss:$8 sps:$4 sm:$0xff]   ;;  %397 = vmatprep.mubr.bf16.mxu1 %v564_v1  ;;  %v491_v2 = vld [vmem:[%s744_s1] ss:$8 sps:$4 sm:$0xff]   ;;  %v492_v3 = vld [vmem:[%s744_s1 + $0x14] ss:$8 sps:$4 sm:$0xff]  }
   0x2   :  { %324 = vmatprep.subr.bf16.mxu0 %v489_v0  ;;  %v494_v4 = vld [vmem:[%s744_s1 + $0x10] ss:$8 sps:$4 sm:$0xff]   ;;  %v495_v5 = vld [vmem:[%s744_s1 + $0x24] ss:$8 sps:$4 sm:$0xff]   ;;  %v497_v6 = vld [vmem:[%s744_s1 + $0x20] ss:$8 sps:$4 sm:$0xff]  }
   0x3   :  { %325 = vmatpush1.bf16.msra.mxu0 %v491_v2  ;;  %v498_v7 = vld [vmem:[%s744_s1 + $0x34] ss:$8 sps:$4 sm:$0xff]   ;;  %v500_v8 = vld [vmem:[%s744_s1 + $0x30] ss:$8 sps:$4 sm:$0xff]   ;;  %v513_v9 = vld [vmem:[%s744_s1 + $0x104] ss:$8 sps:$4 sm:$0xff]  }
   0x4   :  { %326 = vmatprep.subr.bf16.mxu0 %v492_v3  ;;  %v515_v10 = vld [vmem:[%s744_s1 + $0x100] ss:$8 sps:$4 sm:$0xff]   ;;  %v501_v11 = vld [vmem:[%s744_s1 + $0x44] ss:$8 sps:$4 sm:$0xff]   ;;  %365 = vmatprep.subr.bf16.mxu1 %v513_v9  ;;  %v519_v12 = vld [vmem:[%s744_s1 + $0x114] ss:$8 sps:$4 sm:$0xff]  }
   0x5   :  { %366 = vmatpush1.bf16.msra.mxu1 %v515_v10  ;;  %v521_v13 = vld [vmem:[%s744_s1 + $0x110] ss:$8 sps:$4 sm:$0xff]   ;;  %v503_v14 = vld [vmem:[%s744_s1 + $0x40] ss:$8 sps:$4 sm:$0xff]   ;;  %v504_v15 = vld [vmem:[%s744_s1 + $0x54] ss:$8 sps:$4 sm:$0xff]  }
   0x6   :  { %367 = vmatprep.subr.bf16.mxu1 %v519_v12  ;;  %v525_v16 = vld [vmem:[%s744_s1 + $0x124] ss:$8 sps:$4 sm:$0xff]   ;;  %v527_v17 = vld [vmem:[%s744_s1 + $0x120] ss:$8 sps:$4 sm:$0xff]   ;;  %v506_v18 = vld [vmem:[%s744_s1 + $0x50] ss:$8 sps:$4 sm:$0xff]  }
   0x7   :  { %327 = vmatpush1.bf16.msra.mxu0 %v494_v4  ;;  %v531_v19 = vld [vmem:[%s744_s1 + $0x134] ss:$8 sps:$4 sm:$0xff]   ;;  %v507_v20 = vld [vmem:[%s744_s1 + $0x64] ss:$8 sps:$4 sm:$0xff]   ;;  %v533_v21 = vld [vmem:[%s744_s1 + $0x130] ss:$8 sps:$4 sm:$0xff]  }
   0x8   :  { %328 = vmatprep.subr.bf16.mxu0 %v495_v5  ;;  %v509_v22 = vld [vmem:[%s744_s1 + $0x60] ss:$8 sps:$4 sm:$0xff]   ;;  %v537_v23 = vld [vmem:[%s744_s1 + $0x144] ss:$8 sps:$4 sm:$0xff]   ;;  %v510_v24 = vld [vmem:[%s744_s1 + $0x74] ss:$8 sps:$4 sm:$0xff]  }
   0x9   :  { %368 = vmatpush1.bf16.msra.mxu1 %v521_v13  ;;  %v539_v25 = vld [vmem:[%s744_s1 + $0x140] ss:$8 sps:$4 sm:$0xff]   ;;  %v512_v26 = vld [vmem:[%s744_s1 + $0x70] ss:$8 sps:$4 sm:$0xff]   ;;  %v543_v27 = vld [vmem:[%s744_s1 + $0x154] ss:$8 sps:$4 sm:$0xff]  }
   0xa   :  { %369 = vmatprep.subr.bf16.mxu1 %v525_v16  ;;  %v516_v28 = vld [vmem:[%s744_s1 + $0x84] ss:$8 sps:$4 sm:$0xff]   ;;  %v545_v29 = vld [vmem:[%s744_s1 + $0x150] ss:$8 sps:$4 sm:$0xff]   ;;  %v518_v30 = vld [vmem:[%s744_s1 + $0x80] ss:$8 sps:$4 sm:$0xff]  }
   0xb   :  { %329 = vmatpush1.bf16.msra.mxu0 %v497_v6  ;;  %v549_v31 = vld [vmem:[%s744_s1 + $0x164] ss:$8 sps:$4 sm:$0xff]   ;;  %v522_v32 = vld [vmem:[%s744_s1 + $0x94] ss:$8 sps:$4 sm:$0xff]   ;;  %v551_v35 = vld [vmem:[%s744_s1 + $0x160] ss:$8 sps:$4 sm:$0xff]  }
   0xc   :  { %330 = vmatprep.subr.bf16.mxu0 %v498_v7  ;;  %v23_v33 = vld [vmem:[%s745_s0] sm:$0xff]  ;;  %v524_v36 = vld [vmem:[%s744_s1 + $0x90] ss:$8 sps:$4 sm:$0xff]   ;;  %v555_v37 = vld [vmem:[%s744_s1 + $0x174] ss:$8 sps:$4 sm:$0xff]   ;;  %v418_v58 = vshrl.u32 %v417_v57, 7 }
   0xd   :  { %370 = vmatpush1.bf16.msra.mxu1 %v527_v17  ;;  %v438_v34 = vcombine.high %v23_v33, %v23_v33  ;;  %v528_v38 = vld [vmem:[%s744_s1 + $0xa4] ss:$8 sps:$4 sm:$0xff]   ;;  %v557_v39 = vld [vmem:[%s744_s1 + $0x170] ss:$8 sps:$4 sm:$0xff]   ;;  %v530_v40 = vld [vmem:[%s744_s1 + $0xa0] ss:$8 sps:$4 sm:$0xff]   ;;  %v437_v52 = vcombine.low %v23_v33, %v23_v33 }
   0xe   :  { %371 = vmatprep.subr.bf16.mxu1 %v531_v19  ;;  %v534_v41 = vld [vmem:[%s744_s1 + $0xb4] ss:$8 sps:$4 sm:$0xff]   ;;  %v561_v42 = vld [vmem:[%s745_s0 + $0x8] ss:$0 sps:$4 sm:$0xff]   ;;  %v536_v43 = vld [vmem:[%s744_s1 + $0xb0] ss:$8 sps:$4 sm:$0xff]  }
   0xf   :  { %331 = vmatpush1.bf16.msra.mxu0 %v500_v8  ;;  %356 = vmatprep.mubr.bf16.mxu0 %v438_v34  ;;  %v540_v44 = vld [vmem:[%s744_s1 + $0xc4] ss:$8 sps:$4 sm:$0xff]   ;;  %v542_v45 = vld [vmem:[%s744_s1 + $0xc0] ss:$8 sps:$4 sm:$0xff]   ;;  %v546_v46 = vld [vmem:[%s744_s1 + $0xd4] ss:$8 sps:$4 sm:$0xff]  }
  0x10   :  { %332 = vmatprep.subr.bf16.mxu0 %v501_v11  ;;  %v548_v47 = vld [vmem:[%s744_s1 + $0xd0] ss:$8 sps:$4 sm:$0xff]   ;;  %v552_v48 = vld [vmem:[%s744_s1 + $0xe4] ss:$8 sps:$4 sm:$0xff]   ;;  %v554_v49 = vld [vmem:[%s744_s1 + $0xe0] ss:$8 sps:$4 sm:$0xff]  }
  0x11   :  { %372 = vmatpush1.bf16.msra.mxu1 %v533_v21  ;;  %v558_v50 = vld [vmem:[%s744_s1 + $0xf4] ss:$8 sps:$4 sm:$0xff]   ;;  %v560_v51 = vld [vmem:[%s744_s1 + $0xf0] ss:$8 sps:$4 sm:$0xff]   ;;  %v419_v59 = vsub.s32 0, %v418_v58  ;;  %v423_v61 = vsub.s32 1, %v418_v58 }
  0x12   :  { %373 = vmatprep.subr.bf16.mxu1 %v537_v23  ;;  %v415_v60 = vld [vmem:[%s746_s2] sm:$0x3] }
  0x13   :  { %333 = vmatpush1.bf16.msra.mxu0 %v503_v14  ;;  %v420_v62 = vrot.slane %v415_v60, %v419_v59  ;;  %v424_v0 = vrot.slane %v415_v60, %v423_v61 }
  0x14   :  { %334 = vmatprep.subr.bf16.mxu0 %v504_v15 }
  0x15   :  { %374 = vmatpush1.bf16.msra.mxu1 %v539_v25 }
  0x16   :  { %375 = vmatprep.subr.bf16.mxu1 %v543_v27 }
  0x17   :  { %335 = vmatpush1.bf16.msra.mxu0 %v506_v18 }
  0x18   :  { %336 = vmatprep.subr.bf16.mxu0 %v507_v20 }
  0x19   :  { %376 = vmatpush1.bf16.msra.mxu1 %v545_v29 }
  0x1a   :  { %377 = vmatprep.subr.bf16.mxu1 %v549_v31 }
  0x1b   :  { %337 = vmatpush1.bf16.msra.mxu0 %v509_v22 }
  0x1c   :  { %338 = vmatprep.subr.bf16.mxu0 %v510_v24 }
  0x1d   :  { %378 = vmatpush1.bf16.msra.mxu1 %v551_v35 }
  0x1e   :  { %379 = vmatprep.subr.bf16.mxu1 %v555_v37 }
  0x1f   :  { %339 = vmatpush1.bf16.msra.mxu0 %v512_v26 }
  0x20   :  { %340 = vmatprep.subr.bf16.mxu0 %v516_v28 }
  0x21   :  { %380 = vmatpush1.bf16.msra.mxu1 %v557_v39 }
  0x23   :  { %341 = vmatpush1.bf16.msra.mxu0 %v518_v30 }
  0x24   :  { %342 = vmatprep.subr.bf16.mxu0 %v522_v32  ;;  %398 = vmatmul.mubr.bf16.vlgmr.msra.gmra.mrb[0].mxu1 %v561_v42 }
  0x27   :  { %343 = vmatpush1.bf16.msra.mxu0 %v524_v36 }
  0x28   :  { %344 = vmatprep.subr.bf16.mxu0 %v528_v38 }
  0x2b   :  { %345 = vmatpush1.bf16.msra.mxu0 %v530_v40 }
  0x2c   :  { %346 = vmatprep.subr.bf16.mxu0 %v534_v41 }
  0x2f   :  { %347 = vmatpush1.bf16.msra.mxu0 %v536_v43 }
  0x30   :  { %348 = vmatprep.subr.bf16.mxu0 %v540_v44 }
  0x33   :  { %349 = vmatpush1.bf16.msra.mxu0 %v542_v45 }
  0x34   :  { %350 = vmatprep.subr.bf16.mxu0 %v546_v46 }
  0x37   :  { %351 = vmatpush1.bf16.msra.mxu0 %v548_v47 }
  0x38   :  { %352 = vmatprep.subr.bf16.mxu0 %v552_v48 }
  0x3b   :  { %353 = vmatpush1.bf16.msra.mxu0 %v554_v49 }
  0x3c   :  { %354 = vmatprep.subr.bf16.mxu0 %v558_v50 }
  0x3f   :  { %355 = vmatpush1.bf16.msra.mxu0 %v560_v51 }
  0x42   :  { %357 = vmatmul.mubr.bf16.vlgmr.msra.gmra.mrb[0].mxu0 %v437_v52 }
  0xf7   :  { %v399_v53 = vpop.f32.mrb[0].mxu1 }
  0xf8   :  { %v401_v54 = vpop.f32.mrb[1].mxu1 }
  0xf9   :  { %v403_v55 = vpop.f32.mrb[2].mxu1 }
  0xfa   :  { %v404_v56 = vpop.f32.mrb[3].mxu1 }
 0x115   :  { %v358_v63 = vpop.f32.mrb[0].mxu0 }
 0x116   :  { %v400_v1 = vadd.f32 %v399_v53, %v358_v63  ;;  %v360_v2 = vpop.f32.mrb[1].mxu0 }
 0x117   :  { %v402_v3 = vadd.f32 %v401_v54, %v360_v2  ;;  %v362_v4 = vpop.f32.mrb[2].mxu0 }
 0x118   :  { %v427_v5 = vadd.f32 %v420_v62, %v400_v1  ;;  %v363_v6 = vpop.f32.mrb[3].mxu0 }
 0x119   :  { %v428_v7 = vadd.f32 %v424_v0, %v402_v3 }
 0x11a   :  { %v429_v8 = vmax.f32 %v427_v5, 0.0 }
 0x11b   :  { %v430_v9 = vmax.f32 %v428_v7, 0.0 }
 0x11c   :  { %431 = vst [vmem:[%s747_s3] sm:$0xff] %v429_v8 }
 0x11d   :  { %432 = vst [vmem:[%s747_s3 + $0x8] sm:$0xff] %v430_v9 }

// kernel: forward.44
= control target key start
LH: loop header
LB: loop body
LE: loop exit
PB: predicated region body
PF: predicated region fallthrough
CT: control target
= control target key end

     0   :  { %v193_v0 = vmov 0.0   ;;  %vm194_vm0 = vmmov 0   ;;  %s248_s1 = inlined_call_operand.vmem [shape: bf16[128,128], index: 1, kind: input, shape index: {}]   ;;  %s249_s0 = inlined_call_operand.vmem [shape: bf16[8,128], index: 0, kind: input, shape index: {}]   ;;  %s250_s2 = inlined_call_operand.vmem [shape: f32[1,128], index: 2, kind: input, shape index: {}]   ;;  %s251_s3 = inlined_call_operand.vmem [shape: f32[8,128], index: 3, kind: output, shape index: {}]  }
   0x1   :  { %163 = vmatprep.subr.bf16.mxu0 %v193_v0  ;;  %v185_v1 = vld [vmem:[%s248_s1] sm:$0xff]   ;;  %179 = vmatprep.mubr.msk.bf16.mxu0 %vm194_vm0, %v193_v0  ;;  %v186_v2 = vld [vmem:[%s248_s1 + $0x8] sm:$0xff]   ;;  %v187_v3 = vld [vmem:[%s248_s1 + $0x10] sm:$0xff]  }
   0x2   :  { %164 = vmatpush3.bf16.msra.mxu0 %v185_v1  ;;  %v188_v4 = vld [vmem:[%s248_s1 + $0x18] sm:$0xff]   ;;  %v189_v5 = vld [vmem:[%s248_s1 + $0x20] sm:$0xff]   ;;  %v190_v6 = vld [vmem:[%s248_s1 + $0x28] sm:$0xff]  }
   0x3   :  { %165 = vmatprep.subr.bf16.mxu0 %v193_v0  ;;  %v191_v7 = vld [vmem:[%s248_s1 + $0x30] sm:$0xff]   ;;  %v192_v8 = vld [vmem:[%s248_s1 + $0x38] sm:$0xff]   ;;  %v21_v9 = vld [vmem:[%s249_s0] sm:$0xf] }
   0x4   :  { %v153_v10 = vld [vmem:[%s250_s2] ss:$0 sm:$0xff] }
   0x6   :  { %166 = vmatpush3.bf16.msra.mxu0 %v186_v2 }
   0x7   :  { %167 = vmatprep.subr.bf16.mxu0 %v193_v0 }
   0xa   :  { %168 = vmatpush3.bf16.msra.mxu0 %v187_v3 }
   0xb   :  { %169 = vmatprep.subr.bf16.mxu0 %v193_v0 }
   0xe   :  { %170 = vmatpush3.bf16.msra.mxu0 %v188_v4 }
   0xf   :  { %171 = vmatprep.subr.bf16.mxu0 %v193_v0 }
  0x12   :  { %172 = vmatpush3.bf16.msra.mxu0 %v189_v5 }
  0x13   :  { %173 = vmatprep.subr.bf16.mxu0 %v193_v0 }
  0x16   :  { %174 = vmatpush3.bf16.msra.mxu0 %v190_v6 }
  0x17   :  { %175 = vmatprep.subr.bf16.mxu0 %v193_v0 }
  0x1a   :  { %176 = vmatpush3.bf16.msra.mxu0 %v191_v7 }
  0x1b   :  { %177 = vmatprep.subr.bf16.mxu0 %v193_v0 }
  0x1e   :  { %178 = vmatpush3.bf16.msra.mxu0 %v192_v8 }
  0x21   :  { %180 = vmatmul.mubr.bf16.vlgmr.msra.gmra.mrb[0].mxu0 %v21_v9 }
  0xf4   :  { %v120_v11 = vpop.f32.mrb[0].mxu0 }
  0xf5   :  { %v139_v12 = vadd.f32 %v153_v10, %v120_v11  ;;  %v181_v13 = vpop.f32.mrb[1].mxu0 }
  0xf6   :  { %v123_v14 = vpop.f32.mrb[2].mxu0 }
  0xf7   :  { %140 = vst [vmem:[%s251_s3] sm:$0xff] %v139_v12  ;;  %v182_v15 = vpop.f32.mrb[3].mxu0 }

// kernel: forward.40
= control target key start
LH: loop header
LB: loop body
LE: loop exit
PB: predicated region body
PF: predicated region fallthrough
CT: control target
= control target key end

     0   :  { %s1167_s12 = smov 0   ;;  %s1169_s13 = smov 0   ;;  %s1285_s0 = inlined_call_operand.vmem [shape: bf16[8,1536], index: 0, kind: input, shape index: {}]   ;;  %s1286_s1 = inlined_call_operand.vmem [shape: bf16[1536,256], index: 1, kind: input, shape index: {}]   ;;  %s1287_s2 = inlined_call_operand.vmem [shape: f32[1,256], index: 2, kind: input, shape index: {}]   ;;  %s1288_s3 = inlined_call_operand.vmem [shape: f32[8,256], index: 3, kind: output, shape index: {}]  }
   0x1   :  { %s1171_s14 = smov 0  }
   0x2 LB: > { %s25_s15 = sadd.s32 1, %s1140_s13  ;;  %p916_p0 = scmp.ge.s32.totalorder %s1144_s14, 1  ;;  %s1144_s14 = sphi %s1171_s14, %s13_s14   ;;  %s1140_s13 = sphi %s1169_s13, %s1290_s13   ;;  %s1136_s12 = sphi %s1167_s12, %s1289_s12  }
   0x3   : > { %p26_p1 = scmp.ge.s32.totalorder %s25_s15, 3  ;;  %p194_p2 = scmp.lt.s32.totalorder %s1144_s14, 4 }
   0x5   : > { %s1292_s15 = smov (%p26_p1, %s25_s15), 0  ;;  %p195_p3 = pnand %p916_p0, %p194_p2 }
   0x6   : > { %s917_s16 = sshll.u32 (!%p195_p3), %s1136_s12, 2  ;;  %s919_s17 = sshll.u32 (!%p195_p3), %s1136_s12, 6 }
   0x7   : > { %198 = sbr.rel (%p195_p3) target bundleno = 320 (0x140), region = 32  ;;  %p243_p4 = scmp.lt.s32.totalorder (!%p195_p3), %s917_s16, 11 }
   0x8   : > { %p252_p5 = scmp.lt.s32.totalorder (!%p195_p3), %s919_s17, 191  ;;  %p922_p6 = scmp.ne.s32.totalorder (!%p195_p3), %s1136_s12, 0 }
   0xe   : > { %s1294_s16 = smov (!%p243_p4, %s917_s16), 11  ;;  %s1296_s17 = smov (!%p252_p5, %s919_s17), 191 }
   0xf   : > { %s918_s18 = sshll.u32 %s1294_s16, 2  ;;  %s996_s22 = sshll.u32 %s1296_s17, 3  ;;  %v1146_v0 = vmov (!%p922_p6), 0.0  }
  0x10   : > { %s1192_s21 = scalar_lea.vmem %s1285_s0, %s918_s18  ;;  %s1197_s25 = scalar_lea.vmem %s1286_s1, %s996_s22  ;;  %281 = vst [vmem:[#allocation2] sm:$0xff] (!%p922_p6), %v1146_v0  ;;  %282 = vst [vmem:[#allocation2 + $0x8] sm:$0xff] (!%p922_p6), %v1146_v0 }
  0x11   : > { %280 = sbr.rel (%p922_p6) target bundleno = 24 (0x18), region = 36 }
  0x18 PF: > { %v1022_v1 = vld [vmem:[%s1197_s25 + $0x4] ss:$8 sps:$4 sm:$0xff]   ;;  %v1026_v3 = vld [vmem:[%s1197_s25] ss:$8 sps:$4 sm:$0xff]   ;;  %v1028_v5 = vld [vmem:[%s1197_s25 + $0x14] ss:$8 sps:$4 sm:$0xff]  }
  0x19   : > { %v1024_v2 = vld [vmem:[%s1197_s25 + $0x104] ss:$8 sps:$4 sm:$0xff]   ;;  %685 = vmatprep.subr.bf16.mxu0 %v1022_v1  ;;  %v1027_v4 = vld [vmem:[%s1197_s25 + $0x100] ss:$8 sps:$4 sm:$0xff]   ;;  %v1030_v6 = vld [vmem:[%s1197_s25 + $0x114] ss:$8 sps:$4 sm:$0xff]  }
  0x1a   : > { %726 = vmatprep.subr.bf16.mxu1 %v1024_v2  ;;  %686 = vmatpush1.bf16.msra.mxu0 %v1026_v3  ;;  %v1032_v7 = vld [vmem:[%s1197_s25 + $0x10] ss:$8 sps:$4 sm:$0xff]   ;;  %v1034_v9 = vld [vmem:[%s1197_s25 + $0x24] ss:$8 sps:$4 sm:$0xff]   ;;  %v1038_v11 = vld [vmem:[%s1197_s25 + $0x20] ss:$8 sps:$4 sm:$0xff]  }
  0x1b   : > { %727 = vmatpush1.bf16.msra.mxu1 %v1027_v4  ;;  %687 = vmatprep.subr.bf16.mxu0 %v1028_v5  ;;  %v1033_v8 = vld [vmem:[%s1197_s25 + $0x110] ss:$8 sps:$4 sm:$0xff]   ;;  %v1036_v10 = vld [vmem:[%s1197_s25 + $0x124] ss:$8 sps:$4 sm:$0xff]   ;;  %v1039_v12 = vld [vmem:[%s1197_s25 + $0x120] ss:$8 sps:$4 sm:$0xff]  }
  0x1c   : > { %728 = vmatprep.subr.bf16.mxu1 %v1030_v6  ;;  %v1040_v13 = vld [vmem:[%s1197_s25 + $0x34] ss:$8 sps:$4 sm:$0xff]   ;;  %v1044_v15 = vld [vmem:[%s1197_s25 + $0x30] ss:$8 sps:$4 sm:$0xff]   ;;  %v1046_v17 = vld [vmem:[%s1197_s25 + $0x44] ss:$8 sps:$4 sm:$0xff]  }
  0x1d   : > { %v1042_v14 = vld [vmem:[%s1197_s25 + $0x134] ss:$8 sps:$4 sm:$0xff]   ;;  %v1045_v16 = vld [vmem:[%s1197_s25 + $0x130] ss:$8 sps:$4 sm:$0xff]   ;;  %v1048_v18 = vld [vmem:[%s1197_s25 + $0x144] ss:$8 sps:$4 sm:$0xff]  }
  0x1e   : > { %688 = vmatpush1.bf16.msra.mxu0 %v1032_v7  ;;  %v1050_v19 = vld [vmem:[%s1197_s25 + $0x40] ss:$8 sps:$4 sm:$0xff]   ;;  %v1052_v21 = vld [vmem:[%s1197_s25 + $0x54] ss:$8 sps:$4 sm:$0xff]   ;;  %v1056_v23 = vld [vmem:[%s1197_s25 + $0x50] ss:$8 sps:$4 sm:$0xff]  }
  0x1f   : > { %729 = vmatpush1.bf16.msra.mxu1 %v1033_v8  ;;  %689 = vmatprep.subr.bf16.mxu0 %v1034_v9  ;;  %v1051_v20 = vld [vmem:[%s1197_s25 + $0x140] ss:$8 sps:$4 sm:$0xff]   ;;  %v1054_v22 = vld [vmem:[%s1197_s25 + $0x154] ss:$8 sps:$4 sm:$0xff]   ;;  %v1057_v24 = vld [vmem:[%s1197_s25 + $0x150] ss:$8 sps:$4 sm:$0xff]  }
  0x20   : > { %730 = vmatprep.subr.bf16.mxu1 %v1036_v10  ;;  %v1058_v25 = vld [vmem:[%s1197_s25 + $0x64] ss:$8 sps:$4 sm:$0xff]   ;;  %v1062_v27 = vld [vmem:[%s1197_s25 + $0x60] ss:$8 sps:$4 sm:$0xff]   ;;  %v1064_v29 = vld [vmem:[%s1197_s25 + $0x74] ss:$8 sps:$4 sm:$0xff]  }
  0x21   : > { %v1060_v26 = vld [vmem:[%s1197_s25 + $0x164] ss:$8 sps:$4 sm:$0xff]   ;;  %v1063_v28 = vld [vmem:[%s1197_s25 + $0x160] ss:$8 sps:$4 sm:$0xff]   ;;  %v1066_v30 = vld [vmem:[%s1197_s25 + $0x174] ss:$8 sps:$4 sm:$0xff]  }
  0x22   : > { %690 = vmatpush1.bf16.msra.mxu0 %v1038_v11  ;;  %v1068_v31 = vld [vmem:[%s1197_s25 + $0x70] ss:$8 sps:$4 sm:$0xff]   ;;  %v1070_v33 = vld [vmem:[%s1197_s25 + $0x84] ss:$8 sps:$4 sm:$0xff]   ;;  %v1074_v35 = vld [vmem:[%s1197_s25 + $0x80] ss:$8 sps:$4 sm:$0xff]  }
  0x23   : > { %731 = vmatpush1.bf16.msra.mxu1 %v1039_v12  ;;  %691 = vmatprep.subr.bf16.mxu0 %v1040_v13  ;;  %v1069_v32 = vld [vmem:[%s1197_s25 + $0x170] ss:$8 sps:$4 sm:$0xff]   ;;  %v1072_v34 = vld [vmem:[%s1197_s25 + $0x184] ss:$8 sps:$4 sm:$0xff]   ;;  %v1075_v36 = vld [vmem:[%s1197_s25 + $0x180] ss:$8 sps:$4 sm:$0xff]  }
  0x24   : > { %732 = vmatprep.subr.bf16.mxu1 %v1042_v14  ;;  %v1076_v37 = vld [vmem:[%s1197_s25 + $0x94] ss:$8 sps:$4 sm:$0xff]   ;;  %v1080_v39 = vld [vmem:[%s1197_s25 + $0x90] ss:$8 sps:$4 sm:$0xff]   ;;  %v1082_v41 = vld [vmem:[%s1197_s25 + $0xa4] ss:$8 sps:$4 sm:$0xff]  }
  0x25   : > { %v1078_v38 = vld [vmem:[%s1197_s25 + $0x194] ss:$8 sps:$4 sm:$0xff]   ;;  %v1081_v40 = vld [vmem:[%s1197_s25 + $0x190] ss:$8 sps:$4 sm:$0xff]   ;;  %v1084_v42 = vld [vmem:[%s1197_s25 + $0x1a4] ss:$8 sps:$4 sm:$0xff]  }
  0x26   : > { %692 = vmatpush1.bf16.msra.mxu0 %v1044_v15  ;;  %v1086_v43 = vld [vmem:[%s1197_s25 + $0xa0] ss:$8 sps:$4 sm:$0xff]   ;;  %v1088_v45 = vld [vmem:[%s1197_s25 + $0xb4] ss:$8 sps:$4 sm:$0xff]   ;;  %v1092_v50 = vld [vmem:[%s1197_s25 + $0xb0] ss:$8 sps:$4 sm:$0xff]  }
  0x27   : > { %733 = vmatpush1.bf16.msra.mxu1 %v1045_v16  ;;  %693 = vmatprep.subr.bf16.mxu0 %v1046_v17  ;;  %v1087_v44 = vld [vmem:[%s1197_s25 + $0x1a0] ss:$8 sps:$4 sm:$0xff]   ;;  %v1090_v46 = vld [vmem:[%s1197_s25 + $0x1b4] ss:$8 sps:$4 sm:$0xff]   ;;  %v1093_v51 = vld [vmem:[%s1197_s25 + $0x1b0] ss:$8 sps:$4 sm:$0xff]  }
  0x28   : > { %734 = vmatprep.subr.bf16.mxu1 %v1048_v18  ;;  %v285_v47 = vld [vmem:[%s1192_s21] sm:$0xff]  ;;  %v286_v49 = vld [vmem:[%s1192_s21 + $0x8] sm:$0xff]  ;;  %v1100_v57 = vld [vmem:[%s1197_s25 + $0xd4] ss:$8 sps:$4 sm:$0xff]   ;;  %p991_p7 = scmp.ne.s32.totalorder %s1136_s12, 2 }
  0x29   : > { %v924_v48 = vcombine.high %v285_v47, %v285_v47  ;;  %v926_v52 = vcombine.high %v286_v49, %v286_v49  ;;  %v1094_v53 = vld [vmem:[%s1197_s25 + $0xc4] ss:$8 sps:$4 sm:$0xff]   ;;  %v1098_v55 = vld [vmem:[%s1197_s25 + $0xc0] ss:$8 sps:$4 sm:$0xff]   ;;  %v1102_v58 = vld [vmem:[%s1197_s25 + $0x1d4] ss:$8 sps:$4 sm:$0xff]   ;;  %v923_v5 = vcombine.low %v285_v47, %v285_v47  ;;  %v925_v6 = vcombine.low %v286_v49, %v286_v49 }
  0x2a   : > { %694 = vmatpush1.bf16.msra.mxu0 %v1050_v19  ;;  %v1096_v54 = vld [vmem:[%s1197_s25 + $0x1c4] ss:$8 sps:$4 sm:$0xff]   ;;  %v1099_v56 = vld [vmem:[%s1197_s25 + $0x1c0] ss:$8 sps:$4 sm:$0xff]   ;;  %v1104_v59 = vld [vmem:[%s1197_s25 + $0xd0] ss:$8 sps:$4 sm:$0xff]  }
  0x2b   : > { %735 = vmatpush1.bf16.msra.mxu1 %v1051_v20  ;;  %695 = vmatprep.subr.bf16.mxu0 %v1052_v21  ;;  %v1105_v60 = vld [vmem:[%s1197_s25 + $0x1d0] ss:$8 sps:$4 sm:$0xff]   ;;  %v1106_v61 = vld [vmem:[%s1197_s25 + $0xe4] ss:$8 sps:$4 sm:$0xff]   ;;  %v1110_v63 = vld [vmem:[%s1197_s25 + $0xe0] ss:$8 sps:$4 sm:$0xff]   ;;  %v779_v21 = vlaneseq (!%p991_p7) }
  0x2c   : > { %736 = vmatprep.subr.bf16.mxu1 %v1054_v22  ;;  %717 = vmatprep.mubr.bf16.mxu0 %v924_v48  ;;  %v1108_v62 = vld [vmem:[%s1197_s25 + $0x1e4] ss:$8 sps:$4 sm:$0xff]   ;;  %v1111_v0 = vld [vmem:[%s1197_s25 + $0x1e0] ss:$8 sps:$4 sm:$0xff]   ;;  %v1112_v1 = vld [vmem:[%s1197_s25 + $0xf4] ss:$8 sps:$4 sm:$0xff]  }
  0x2d   : > { %758 = vmatprep.mubr.bf16.mxu1 %v926_v52  ;;  %v1114_v2 = vld [vmem:[%s1197_s25 + $0x1f4] ss:$8 sps:$4 sm:$0xff]   ;;  %v1116_v3 = vld [vmem:[%s1197_s25 + $0xf0] ss:$8 sps:$4 sm:$0xff]   ;;  %v283_v8 = vld [vmem:[#allocation2] sm:$0xff]  ;;  %v780_v22 = vshrl.u32 (!%p991_p7), %v779_v21, 7 }
  0x2e   : > { %696 = vmatpush1.bf16.msra.mxu0 %v1056_v23  ;;  %v1117_v4 = vld [vmem:[%s1197_s25 + $0x1f0] ss:$8 sps:$4 sm:$0xff]   ;;  %v284_v12 = vld [vmem:[#allocation2 + $0x8] sm:$0xff]  ;;  %v777_v23 = vld [vmem:[%s1287_s2] sm:$0x3] (!%p991_p7) }
  0x2f   : > { %737 = vmatpush1.bf16.msra.mxu1 %v1057_v24  ;;  %697 = vmatprep.subr.bf16.mxu0 %v1058_v25  ;;  %v781_v24 = vsub.s32 (!%p991_p7), 0, %v780_v22  ;;  %v785_v25 = vsub.s32 (!%p991_p7), 1, %v780_v22 }
  0x30   : > { %738 = vmatprep.subr.bf16.mxu1 %v1060_v26 }
  0x32   : > { %698 = vmatpush1.bf16.msra.mxu0 %v1062_v27 }
  0x33   : > { %739 = vmatpush1.bf16.msra.mxu1 %v1063_v28  ;;  %699 = vmatprep.subr.bf16.mxu0 %v1064_v29  ;;  %v782_v28 = vrot.slane (!%p991_p7), %v777_v23, %v781_v24  ;;  %v786_v29 = vrot.slane (!%p991_p7), %v777_v23, %v785_v25 }
  0x34   : > { %740 = vmatprep.subr.bf16.mxu1 %v1066_v30 }
  0x36   : > { %700 = vmatpush1.bf16.msra.mxu0 %v1068_v31 }
  0x37   : > { %741 = vmatpush1.bf16.msra.mxu1 %v1069_v32  ;;  %701 = vmatprep.subr.bf16.mxu0 %v1070_v33 }
  0x38   : > { %742 = vmatprep.subr.bf16.mxu1 %v1072_v34 }
  0x3a   : > { %702 = vmatpush1.bf16.msra.mxu0 %v1074_v35 }
  0x3b   : > { %743 = vmatpush1.bf16.msra.mxu1 %v1075_v36  ;;  %703 = vmatprep.subr.bf16.mxu0 %v1076_v37 }
  0x3c   : > { %744 = vmatprep.subr.bf16.mxu1 %v1078_v38 }
  0x3e   : > { %704 = vmatpush1.bf16.msra.mxu0 %v1080_v39 }
  0x3f   : > { %745 = vmatpush1.bf16.msra.mxu1 %v1081_v40  ;;  %705 = vmatprep.subr.bf16.mxu0 %v1082_v41 }
  0x40   : > { %746 = vmatprep.subr.bf16.mxu1 %v1084_v42 }
  0x42   : > { %706 = vmatpush1.bf16.msra.mxu0 %v1086_v43 }
  0x43   : > { %747 = vmatpush1.bf16.msra.mxu1 %v1087_v44  ;;  %707 = vmatprep.subr.bf16.mxu0 %v1088_v45 }
  0x44   : > { %748 = vmatprep.subr.bf16.mxu1 %v1090_v46 }
  0x46   : > { %708 = vmatpush1.bf16.msra.mxu0 %v1092_v50 }
  0x47   : > { %749 = vmatpush1.bf16.msra.mxu1 %v1093_v51  ;;  %709 = vmatprep.subr.bf16.mxu0 %v1094_v53 }
  0x48   : > { %750 = vmatprep.subr.bf16.mxu1 %v1096_v54 }
  0x4a   : > { %710 = vmatpush1.bf16.msra.mxu0 %v1098_v55 }
  0x4b   : > { %751 = vmatpush1.bf16.msra.mxu1 %v1099_v56  ;;  %711 = vmatprep.subr.bf16.mxu0 %v1100_v57 }
  0x4c   : > { %752 = vmatprep.subr.bf16.mxu1 %v1102_v58 }
  0x4e   : > { %712 = vmatpush1.bf16.msra.mxu0 %v1104_v59 }
  0x4f   : > { %753 = vmatpush1.bf16.msra.mxu1 %v1105_v60  ;;  %713 = vmatprep.subr.bf16.mxu0 %v1106_v61 }
  0x50   : > { %754 = vmatprep.subr.bf16.mxu1 %v1108_v62 }
  0x52   : > { %714 = vmatpush1.bf16.msra.mxu0 %v1110_v63 }
  0x53   : > { %755 = vmatpush1.bf16.msra.mxu1 %v1111_v0  ;;  %715 = vmatprep.subr.bf16.mxu0 %v1112_v1 }
  0x54   : > { %756 = vmatprep.subr.bf16.mxu1 %v1114_v2 }
  0x56   : > { %716 = vmatpush1.bf16.msra.mxu0 %v1116_v3 }
  0x57   : > { %757 = vmatpush1.bf16.msra.mxu1 %v1117_v4 }
  0x59   : > { %718 = vmatmul.mubr.bf16.vlgmr.msra.gmra.mrb[0].mxu0 %v923_v5 }
  0x5a   : > { %759 = vmatmul.mubr.bf16.vlgmr.msra.gmra.mrb[0].mxu1 %v925_v6 }
 0x12c   : > { %v719_v7 = vpop.f32.mrb[0].mxu0 }
 0x12d   : > { %v760_v9 = vpop.f32.mrb[0].mxu1  ;;  %v721_v11 = vpop.f32.mrb[1].mxu0  ;;  %774 = sbr.rel (%p991_p7) target bundleno = 320 (0x140), region = 40 }
 0x12e   : > { %v761_v10 = vadd.f32 %v760_v9, %v719_v7  ;;  %v762_v13 = vpop.f32.mrb[1].mxu1  ;;  %v723_v15 = vpop.f32.mrb[2].mxu0 }
 0x12f   : > { %v763_v14 = vadd.f32 %v762_v13, %v721_v11  ;;  %v764_v16 = vpop.f32.mrb[2].mxu1  ;;  %v724_v18 = vpop.f32.mrb[3].mxu0 }
 0x130   : > { %v767_v17 = vadd.f32 %v761_v10, %v283_v8  ;;  %v765_v19 = vpop.f32.mrb[3].mxu1 }
 0x131   : > { %v768_v20 = vadd.f32 %v763_v14, %v284_v12 }
 0x132   : > { %769 = vst [vmem:[#allocation2] sm:$0xff] %v767_v17 }
 0x133   : > { %770 = vst [vmem:[#allocation2 + $0x8] sm:$0xff] %v768_v20 }
 0x139   : > { %v775_v26 = vld [vmem:[#allocation2] sm:$0xff] }
 0x13a   : > { %v776_v27 = vld [vmem:[#allocation2 + $0x8] sm:$0xff]  ;;  %v789_v30 = vadd.f32 %v782_v28, %v775_v26 }
 0x13b   : > { %v790_v31 = vadd.f32 %v786_v29, %v776_v27 }
 0x13c   : > { %v791_v32 = vmax.f32 %v789_v30, 0.0 }
 0x13d   : > { %v792_v33 = vmax.f32 %v790_v31, 0.0 }
 0x13e   : > { %793 = vst [vmem:[%s1288_s3] sm:$0xff] %v791_v32 }
 0x13f   : > { %794 = vst [vmem:[%s1288_s3 + $0x8] sm:$0xff] %v792_v33 }
 0x140 PF: > { %s13_s14 = sadd.s32 1, %s1144_s14   ;;  %s1289_s12 = smov %s1140_s13 }
 0x141   : > { %p10_p8 = scmp.ge.s32.totalorder %s13_s14, 5   ;;  %s1290_s13 = smov %s1292_s15 }
 0x143   :  { %12 = sbr.rel (!%p10_p8) target bundleno = 2 (0x2), region = 76 }

// kernel: forward.48
= control target key start
LH: loop header
LB: loop body
LE: loop exit
PB: predicated region body
PF: predicated region fallthrough
CT: control target
= control target key end

     0   :  { %s352_s1 = inlined_call_operand.vmem [shape: bf16[256,128], index: 1, kind: input, shape index: {}]   ;;  %s353_s0 = inlined_call_operand.vmem [shape: bf16[8,256], index: 0, kind: input, shape index: {}]   ;;  %s354_s2 = inlined_call_operand.vmem [shape: f32[1,128], index: 2, kind: input, shape index: {}]   ;;  %s355_s3 = inlined_call_operand.vmem [shape: f32[8,128], index: 3, kind: output, shape index: {}]  }
   0x1   :  { %v257_v0 = vld [vmem:[%s352_s1 + $0x40] sm:$0xff]   ;;  %v259_v2 = vld [vmem:[%s352_s1 + $0x48] sm:$0xff]   ;;  %v261_v4 = vld [vmem:[%s352_s1 + $0x50] sm:$0xff]  }
   0x2   :  { %v258_v1 = vld [vmem:[%s352_s1] sm:$0xff]   ;;  %235 = vmatprep.subr.bf16.mxu0 %v257_v0  ;;  %v260_v3 = vld [vmem:[%s352_s1 + $0x8] sm:$0xff]   ;;  %v262_v5 = vld [vmem:[%s352_s1 + $0x10] sm:$0xff]  }
   0x3   :  { %236 = vmatpush3.bf16.msra.mxu0 %v258_v1  ;;  %v263_v6 = vld [vmem:[%s352_s1 + $0x58] sm:$0xff]   ;;  %v265_v8 = vld [vmem:[%s352_s1 + $0x60] sm:$0xff]   ;;  %v267_v10 = vld [vmem:[%s352_s1 + $0x68] sm:$0xff]  }
   0x4   :  { %237 = vmatprep.subr.bf16.mxu0 %v259_v2  ;;  %v264_v7 = vld [vmem:[%s352_s1 + $0x18] sm:$0xff]   ;;  %v266_v9 = vld [vmem:[%s352_s1 + $0x20] sm:$0xff]   ;;  %v268_v13 = vld [vmem:[%s352_s1 + $0x28] sm:$0xff]  }
   0x5   :  { %v21_v11 = vld [vmem:[%s353_s0] sm:$0xff]  ;;  %v269_v14 = vld [vmem:[%s352_s1 + $0x70] sm:$0xff]   ;;  %v271_v16 = vld [vmem:[%s352_s1 + $0x78] sm:$0xff]  }
   0x6   :  { %v217_v12 = vcombine.high %v21_v11, %v21_v11  ;;  %v270_v15 = vld [vmem:[%s352_s1 + $0x30] sm:$0xff]   ;;  %v272_v17 = vld [vmem:[%s352_s1 + $0x38] sm:$0xff]   ;;  %v216_v18 = vcombine.low %v21_v11, %v21_v11  ;;  %v234_v21 = vld [vmem:[%s354_s2] ss:$0 sm:$0xff] }
   0x7   :  { %238 = vmatpush3.bf16.msra.mxu0 %v260_v3 }
   0x8   :  { %239 = vmatprep.subr.bf16.mxu0 %v261_v4  ;;  %189 = vmatprep.mubr.bf16.mxu0 %v217_v12 }
   0xb   :  { %240 = vmatpush3.bf16.msra.mxu0 %v262_v5 }
   0xc   :  { %241 = vmatprep.subr.bf16.mxu0 %v263_v6 }
   0xf   :  { %242 = vmatpush3.bf16.msra.mxu0 %v264_v7 }
  0x10   :  { %243 = vmatprep.subr.bf16.mxu0 %v265_v8 }
  0x13   :  { %244 = vmatpush3.bf16.msra.mxu0 %v266_v9 }
  0x14   :  { %245 = vmatprep.subr.bf16.mxu0 %v267_v10 }
  0x17   :  { %246 = vmatpush3.bf16.msra.mxu0 %v268_v13 }
  0x18   :  { %247 = vmatprep.subr.bf16.mxu0 %v269_v14 }
  0x1b   :  { %248 = vmatpush3.bf16.msra.mxu0 %v270_v15 }
  0x1c   :  { %249 = vmatprep.subr.bf16.mxu0 %v271_v16 }
  0x1f   :  { %250 = vmatpush3.bf16.msra.mxu0 %v272_v17 }
  0x22   :  { %190 = vmatmul.mubr.bf16.vlgmr.msra.gmra.mrb[0].mxu0 %v216_v18 }
  0xf5   :  { %v251_v19 = vpop.f32.mrb[0].mxu0 }
  0xf6   :  { %v252_v20 = vpop.f32.mrb[1].mxu0 }
  0xf7   :  { %v253_v22 = vadd.f32 %v252_v20, %v251_v19  ;;  %v254_v23 = vpop.f32.mrb[2].mxu0 }
  0xf8   :  { %v255_v24 = vpop.f32.mrb[3].mxu0 }
  0xf9   :  { %v210_v25 = vadd.f32 %v253_v22, %v234_v21 }
  0xfb   :  { %211 = vst [vmem:[%s355_s3] sm:$0xff] %v210_v25 }

// kernel: forward.42
= control target key start
LH: loop header
LB: loop body
LE: loop exit
PB: predicated region body
PF: predicated region fallthrough
CT: control target
= control target key end

     0   :  { %s306_s1 = inlined_call_operand.vmem [shape: bf16[128,128], index: 1, kind: input, shape index: {}]   ;;  %s307_s0 = inlined_call_operand.vmem [shape: bf16[32,128], index: 0, kind: input, shape index: {}]   ;;  %s308_s2 = inlined_call_operand.vmem [shape: f32[1,128], index: 2, kind: input, shape index: {}]   ;;  %s309_s3 = inlined_call_operand.vmem [shape: f32[32,128], index: 3, kind: output, shape index: {}]  }
   0x1   :  { %v231_v0 = vld [vmem:[%s306_s1] sm:$0xff]   ;;  %v232_v1 = vld [vmem:[%s306_s1 + $0x8] sm:$0xff]   ;;  %v233_v2 = vld [vmem:[%s306_s1 + $0x10] sm:$0xff]  }
   0x2   :  { %211 = vmatprep.subr.bf16.mxu0 %v231_v0  ;;  %v234_v3 = vld [vmem:[%s306_s1 + $0x18] sm:$0xff]   ;;  %v239_v4 = vld [vmem:[%s307_s0] sm:$0xff]   ;;  %v236_v6 = vld [vmem:[%s306_s1 + $0x28] sm:$0xff]  }
   0x3   :  { %212 = vmatpush3.bf16.msra.mxu0 %v231_v0  ;;  %227 = vmatprep.mubr.bf16.mxu0 %v239_v4  ;;  %v235_v5 = vld [vmem:[%s306_s1 + $0x20] sm:$0xff]   ;;  %v237_v7 = vld [vmem:[%s306_s1 + $0x30] sm:$0xff]   ;;  %v238_v8 = vld [vmem:[%s306_s1 + $0x38] sm:$0xff]  }
   0x4   :  { %213 = vmatprep.subr.bf16.mxu0 %v232_v1  ;;  %v240_v9 = vld [vmem:[%s307_s0 + $0x8] sm:$0xff]   ;;  %v200_v10 = vld [vmem:[%s308_s2] ss:$0 sm:$0xff] }
   0x7   :  { %214 = vmatpush3.bf16.msra.mxu0 %v232_v1 }
   0x8   :  { %215 = vmatprep.subr.bf16.mxu0 %v233_v2 }
   0xb   :  { %216 = vmatpush3.bf16.msra.mxu0 %v233_v2 }
   0xc   :  { %217 = vmatprep.subr.bf16.mxu0 %v234_v3 }
   0xf   :  { %218 = vmatpush3.bf16.msra.mxu0 %v234_v3 }
  0x10   :  { %219 = vmatprep.subr.bf16.mxu0 %v235_v5 }
  0x13   :  { %220 = vmatpush3.bf16.msra.mxu0 %v235_v5 }
  0x14   :  { %221 = vmatprep.subr.bf16.mxu0 %v236_v6 }
  0x17   :  { %222 = vmatpush3.bf16.msra.mxu0 %v236_v6 }
  0x18   :  { %223 = vmatprep.subr.bf16.mxu0 %v237_v7 }
  0x1b   :  { %224 = vmatpush3.bf16.msra.mxu0 %v237_v7 }
  0x1c   :  { %225 = vmatprep.subr.bf16.mxu0 %v238_v8 }
  0x1f   :  { %226 = vmatpush3.bf16.msra.mxu0 %v238_v8 }
  0x22   :  { %228 = vmatmul.mubr.bf16.vlgmr.msra.gmra.mrb[0].mxu0 %v240_v9 }
  0xf5   :  { %v229_v11 = vpop.f32.mrb[0].mxu0 }
  0xf6   :  { %v180_v12 = vadd.f32 %v229_v11, %v200_v10  ;;  %v141_v13 = vpop.f32.mrb[1].mxu0 }
  0xf7   :  { %v178_v14 = vadd.f32 %v200_v10, %v141_v13  ;;  %v230_v15 = vpop.f32.mrb[2].mxu0 }
  0xf8   :  { %184 = vst [vmem:[%s309_s3 + $0x10] sm:$0xff] %v180_v12  ;;  %v181_v16 = vadd.f32 %v230_v15, %v200_v10  ;;  %v144_v17 = vpop.f32.mrb[3].mxu0 }
  0xf9   :  { %182 = vst [vmem:[%s309_s3] sm:$0xff] %v178_v14  ;;  %v179_v18 = vadd.f32 %v200_v10, %v144_v17 }
  0xfa   :  { %185 = vst [vmem:[%s309_s3 + $0x18] sm:$0xff] %v181_v16 }
  0xfb   :  { %183 = vst [vmem:[%s309_s3 + $0x8] sm:$0xff] %v179_v18 }

// kernel: forward.46
= control target key start
LH: loop header
LB: loop body
LE: loop exit
PB: predicated region body
PF: predicated region fallthrough
CT: control target
= control target key end

     0   :  { %s444_s1 = inlined_call_operand.vmem [shape: bf16[256,128], index: 1, kind: input, shape index: {}]   ;;  %s445_s0 = inlined_call_operand.vmem [shape: bf16[32,256], index: 0, kind: input, shape index: {}]   ;;  %s446_s2 = inlined_call_operand.vmem [shape: f32[1,128], index: 2, kind: input, shape index: {}]   ;;  %s447_s3 = inlined_call_operand.vmem [shape: f32[32,128], index: 3, kind: output, shape index: {}]  }
   0x1   :  { %v327_v0 = vld [vmem:[%s444_s1 + $0x40] sm:$0xff]   ;;  %v329_v2 = vld [vmem:[%s444_s1 + $0x48] sm:$0xff]   ;;  %v331_v4 = vld [vmem:[%s444_s1 + $0x50] sm:$0xff]  }
   0x2   :  { %v328_v1 = vld [vmem:[%s444_s1] sm:$0xff]   ;;  %283 = vmatprep.subr.bf16.mxu0 %v327_v0  ;;  %311 = vmatprep.subr.bf16.mxu1 %v327_v0  ;;  %v330_v3 = vld [vmem:[%s444_s1 + $0x8] sm:$0xff]   ;;  %v332_v5 = vld [vmem:[%s444_s1 + $0x10] sm:$0xff]  }
   0x3   :  { %284 = vmatpush3.bf16.msra.mxu0 %v328_v1  ;;  %319 = vmatpush3.bf16.msra.mxu1 %v328_v1  ;;  %v333_v6 = vld [vmem:[%s444_s1 + $0x58] sm:$0xff]   ;;  %v335_v8 = vld [vmem:[%s444_s1 + $0x60] sm:$0xff]   ;;  %v337_v10 = vld [vmem:[%s444_s1 + $0x68] sm:$0xff]  }
   0x4   :  { %285 = vmatprep.subr.bf16.mxu0 %v329_v2  ;;  %312 = vmatprep.subr.bf16.mxu1 %v329_v2  ;;  %v334_v7 = vld [vmem:[%s444_s1 + $0x18] sm:$0xff]   ;;  %v336_v9 = vld [vmem:[%s444_s1 + $0x20] sm:$0xff]   ;;  %v338_v13 = vld [vmem:[%s444_s1 + $0x28] sm:$0xff]  }
   0x5   :  { %v345_v11 = vld [vmem:[%s445_s0 + $0x4] ss:$8 sps:$4 sm:$0xff]   ;;  %v348_v12 = vld [vmem:[%s445_s0 + $0x14] ss:$8 sps:$4 sm:$0xff]   ;;  %v343_v18 = vld [vmem:[%s445_s0] ss:$8 sps:$4 sm:$0xff]  }
   0x6   :  { %v339_v14 = vld [vmem:[%s444_s1 + $0x70] sm:$0xff]   ;;  %211 = vmatprep.mubr.bf16.mxu0 %v345_v11  ;;  %219 = vmatprep.mubr.bf16.mxu1 %v348_v12  ;;  %v341_v16 = vld [vmem:[%s444_s1 + $0x78] sm:$0xff]   ;;  %v282_v23 = vld [vmem:[%s446_s2] ss:$0 sm:$0xff] }
   0x7   :  { %286 = vmatpush3.bf16.msra.mxu0 %v330_v3  ;;  %320 = vmatpush3.bf16.msra.mxu1 %v330_v3  ;;  %v340_v15 = vld [vmem:[%s444_s1 + $0x30] sm:$0xff]   ;;  %v342_v17 = vld [vmem:[%s444_s1 + $0x38] sm:$0xff]  }
   0x8   :  { %287 = vmatprep.subr.bf16.mxu0 %v331_v4  ;;  %313 = vmatprep.subr.bf16.mxu1 %v331_v4  ;;  %v346_v19 = vld [vmem:[%s445_s0 + $0x10] ss:$8 sps:$4 sm:$0xff]  }
   0xb   :  { %288 = vmatpush3.bf16.msra.mxu0 %v332_v5  ;;  %321 = vmatpush3.bf16.msra.mxu1 %v332_v5 }
   0xc   :  { %289 = vmatprep.subr.bf16.mxu0 %v333_v6  ;;  %314 = vmatprep.subr.bf16.mxu1 %v333_v6 }
   0xf   :  { %290 = vmatpush3.bf16.msra.mxu0 %v334_v7  ;;  %322 = vmatpush3.bf16.msra.mxu1 %v334_v7 }
  0x10   :  { %291 = vmatprep.subr.bf16.mxu0 %v335_v8  ;;  %315 = vmatprep.subr.bf16.mxu1 %v335_v8 }
  0x13   :  { %292 = vmatpush3.bf16.msra.mxu0 %v336_v9  ;;  %323 = vmatpush3.bf16.msra.mxu1 %v336_v9 }
  0x14   :  { %293 = vmatprep.subr.bf16.mxu0 %v337_v10  ;;  %316 = vmatprep.subr.bf16.mxu1 %v337_v10 }
  0x17   :  { %294 = vmatpush3.bf16.msra.mxu0 %v338_v13  ;;  %324 = vmatpush3.bf16.msra.mxu1 %v338_v13 }
  0x18   :  { %295 = vmatprep.subr.bf16.mxu0 %v339_v14  ;;  %317 = vmatprep.subr.bf16.mxu1 %v339_v14 }
  0x1b   :  { %296 = vmatpush3.bf16.msra.mxu0 %v340_v15  ;;  %325 = vmatpush3.bf16.msra.mxu1 %v340_v15 }
  0x1c   :  { %297 = vmatprep.subr.bf16.mxu0 %v341_v16  ;;  %318 = vmatprep.subr.bf16.mxu1 %v341_v16 }
  0x1f   :  { %298 = vmatpush3.bf16.msra.mxu0 %v342_v17  ;;  %326 = vmatpush3.bf16.msra.mxu1 %v342_v17 }
  0x22   :  { %212 = vmatmul.mubr.bf16.vlgmr.msra.gmra.mrb[0].mxu0 %v343_v18  ;;  %220 = vmatmul.mubr.bf16.vlgmr.msra.gmra.mrb[0].mxu1 %v346_v19 }
  0xf5   :  { %v299_v20 = vpop.f32.mrb[0].mxu0  ;;  %v305_v21 = vpop.f32.mrb[0].mxu1 }
  0xf6   :  { %v300_v22 = vpop.f32.mrb[1].mxu0  ;;  %v306_v24 = vpop.f32.mrb[1].mxu1 }
  0xf7   :  { %v301_v25 = vadd.f32 %v300_v22, %v299_v20  ;;  %v307_v26 = vadd.f32 %v306_v24, %v305_v21  ;;  %v302_v27 = vpop.f32.mrb[2].mxu0  ;;  %v308_v28 = vpop.f32.mrb[2].mxu1 }
  0xf8   :  { %v303_v29 = vpop.f32.mrb[3].mxu0  ;;  %v309_v30 = vpop.f32.mrb[3].mxu1 }
  0xf9   :  { %v250_v31 = vadd.f32 %v301_v25, %v282_v23  ;;  %v252_v32 = vadd.f32 %v307_v26, %v282_v23  ;;  %v304_v33 = vadd.f32 %v303_v29, %v302_v27  ;;  %v310_v34 = vadd.f32 %v309_v30, %v308_v28 }
  0xfb   :  { %254 = vst [vmem:[%s447_s3] sm:$0xff] %v250_v31  ;;  %256 = vst [vmem:[%s447_s3 + $0x10] sm:$0xff] %v252_v32  ;;  %v251_v35 = vadd.f32 %v304_v33, %v282_v23  ;;  %v253_v36 = vadd.f32 %v310_v34, %v282_v23 }
  0xfd   :  { %255 = vst [vmem:[%s447_s3 + $0x8] sm:$0xff] %v251_v35  ;;  %257 = vst [vmem:[%s447_s3 + $0x18] sm:$0xff] %v253_v36 }

// kernel: forward.50
= control target key start
LH: loop header
LB: loop body
LE: loop exit
PB: predicated region body
PF: predicated region fallthrough
CT: control target
= control target key end

     0   :  { %s448_s1 = inlined_call_operand.vmem [shape: bf16[256,128], index: 1, kind: input, shape index: {}]   ;;  %s449_s0 = inlined_call_operand.vmem [shape: bf16[32,256], index: 0, kind: input, shape index: {}]   ;;  %s450_s2 = inlined_call_operand.vmem [shape: f32[1,128], index: 2, kind: input, shape index: {}]   ;;  %s451_s3 = inlined_call_operand.vmem [shape: f32[32,128], index: 3, kind: output, shape index: {}]  }
   0x1   :  { %v331_v0 = vld [vmem:[%s448_s1 + $0x40] sm:$0xff]   ;;  %v333_v2 = vld [vmem:[%s448_s1 + $0x48] sm:$0xff]   ;;  %v335_v4 = vld [vmem:[%s448_s1 + $0x50] sm:$0xff]  }
   0x2   :  { %v332_v1 = vld [vmem:[%s448_s1] sm:$0xff]   ;;  %287 = vmatprep.subr.bf16.mxu0 %v331_v0  ;;  %315 = vmatprep.subr.bf16.mxu1 %v331_v0  ;;  %v334_v3 = vld [vmem:[%s448_s1 + $0x8] sm:$0xff]   ;;  %v336_v5 = vld [vmem:[%s448_s1 + $0x10] sm:$0xff]  }
   0x3   :  { %288 = vmatpush3.bf16.msra.mxu0 %v332_v1  ;;  %323 = vmatpush3.bf16.msra.mxu1 %v332_v1  ;;  %v337_v6 = vld [vmem:[%s448_s1 + $0x58] sm:$0xff]   ;;  %v339_v8 = vld [vmem:[%s448_s1 + $0x60] sm:$0xff]   ;;  %v341_v10 = vld [vmem:[%s448_s1 + $0x68] sm:$0xff]  }
   0x4   :  { %289 = vmatprep.subr.bf16.mxu0 %v333_v2  ;;  %316 = vmatprep.subr.bf16.mxu1 %v333_v2  ;;  %v338_v7 = vld [vmem:[%s448_s1 + $0x18] sm:$0xff]   ;;  %v340_v9 = vld [vmem:[%s448_s1 + $0x20] sm:$0xff]   ;;  %v342_v13 = vld [vmem:[%s448_s1 + $0x28] sm:$0xff]  }
   0x5   :  { %v349_v11 = vld [vmem:[%s449_s0 + $0x4] ss:$8 sps:$4 sm:$0xff]   ;;  %v352_v12 = vld [vmem:[%s449_s0 + $0x14] ss:$8 sps:$4 sm:$0xff]   ;;  %v347_v18 = vld [vmem:[%s449_s0] ss:$8 sps:$4 sm:$0xff]  }
   0x6   :  { %v343_v14 = vld [vmem:[%s448_s1 + $0x70] sm:$0xff]   ;;  %211 = vmatprep.mubr.bf16.mxu0 %v349_v11  ;;  %219 = vmatprep.mubr.bf16.mxu1 %v352_v12  ;;  %v345_v16 = vld [vmem:[%s448_s1 + $0x78] sm:$0xff]   ;;  %v286_v23 = vld [vmem:[%s450_s2] ss:$0 sm:$0xff] }
   0x7   :  { %290 = vmatpush3.bf16.msra.mxu0 %v334_v3  ;;  %324 = vmatpush3.bf16.msra.mxu1 %v334_v3  ;;  %v344_v15 = vld [vmem:[%s448_s1 + $0x30] sm:$0xff]   ;;  %v346_v17 = vld [vmem:[%s448_s1 + $0x38] sm:$0xff]  }
   0x8   :  { %291 = vmatprep.subr.bf16.mxu0 %v335_v4  ;;  %317 = vmatprep.subr.bf16.mxu1 %v335_v4  ;;  %v350_v19 = vld [vmem:[%s449_s0 + $0x10] ss:$8 sps:$4 sm:$0xff]  }
   0xb   :  { %292 = vmatpush3.bf16.msra.mxu0 %v336_v5  ;;  %325 = vmatpush3.bf16.msra.mxu1 %v336_v5 }
   0xc   :  { %293 = vmatprep.subr.bf16.mxu0 %v337_v6  ;;  %318 = vmatprep.subr.bf16.mxu1 %v337_v6 }
   0xf   :  { %294 = vmatpush3.bf16.msra.mxu0 %v338_v7  ;;  %326 = vmatpush3.bf16.msra.mxu1 %v338_v7 }
  0x10   :  { %295 = vmatprep.subr.bf16.mxu0 %v339_v8  ;;  %319 = vmatprep.subr.bf16.mxu1 %v339_v8 }
  0x13   :  { %296 = vmatpush3.bf16.msra.mxu0 %v340_v9  ;;  %327 = vmatpush3.bf16.msra.mxu1 %v340_v9 }
  0x14   :  { %297 = vmatprep.subr.bf16.mxu0 %v341_v10  ;;  %320 = vmatprep.subr.bf16.mxu1 %v341_v10 }
  0x17   :  { %298 = vmatpush3.bf16.msra.mxu0 %v342_v13  ;;  %328 = vmatpush3.bf16.msra.mxu1 %v342_v13 }
  0x18   :  { %299 = vmatprep.subr.bf16.mxu0 %v343_v14  ;;  %321 = vmatprep.subr.bf16.mxu1 %v343_v14 }
  0x1b   :  { %300 = vmatpush3.bf16.msra.mxu0 %v344_v15  ;;  %329 = vmatpush3.bf16.msra.mxu1 %v344_v15 }
  0x1c   :  { %301 = vmatprep.subr.bf16.mxu0 %v345_v16  ;;  %322 = vmatprep.subr.bf16.mxu1 %v345_v16 }
  0x1f   :  { %302 = vmatpush3.bf16.msra.mxu0 %v346_v17  ;;  %330 = vmatpush3.bf16.msra.mxu1 %v346_v17 }
  0x22   :  { %212 = vmatmul.mubr.bf16.vlgmr.msra.gmra.mrb[0].mxu0 %v347_v18  ;;  %220 = vmatmul.mubr.bf16.vlgmr.msra.gmra.mrb[0].mxu1 %v350_v19 }
  0xf5   :  { %v303_v20 = vpop.f32.mrb[0].mxu0  ;;  %v309_v21 = vpop.f32.mrb[0].mxu1 }
  0xf6   :  { %v304_v22 = vpop.f32.mrb[1].mxu0  ;;  %v310_v24 = vpop.f32.mrb[1].mxu1 }
  0xf7   :  { %v305_v25 = vadd.f32 %v304_v22, %v303_v20  ;;  %v311_v26 = vadd.f32 %v310_v24, %v309_v21  ;;  %v306_v27 = vpop.f32.mrb[2].mxu0  ;;  %v312_v28 = vpop.f32.mrb[2].mxu1 }
  0xf8   :  { %v307_v29 = vpop.f32.mrb[3].mxu0  ;;  %v313_v30 = vpop.f32.mrb[3].mxu1 }
  0xf9   :  { %v250_v31 = vadd.f32 %v305_v25, %v286_v23  ;;  %v252_v32 = vadd.f32 %v311_v26, %v286_v23  ;;  %v308_v33 = vadd.f32 %v307_v29, %v306_v27  ;;  %v314_v34 = vadd.f32 %v313_v30, %v312_v28 }
  0xfb   :  { %v254_v35 = vmax.f32 %v250_v31, 0.0  ;;  %v256_v36 = vmax.f32 %v252_v32, 0.0  ;;  %v251_v37 = vadd.f32 %v308_v33, %v286_v23  ;;  %v253_v38 = vadd.f32 %v314_v34, %v286_v23 }
  0xfd   :  { %258 = vst [vmem:[%s451_s3] sm:$0xff] %v254_v35  ;;  %260 = vst [vmem:[%s451_s3 + $0x10] sm:$0xff] %v256_v36  ;;  %v255_v39 = vmax.f32 %v251_v37, 0.0  ;;  %v257_v40 = vmax.f32 %v253_v38, 0.0 }
  0xff   :  { %259 = vst [vmem:[%s451_s3 + $0x8] sm:$0xff] %v255_v39  ;;  %261 = vst [vmem:[%s451_s3 + $0x18] sm:$0xff] %v257_v40 }

// kernel: forward.41
= control target key start
LH: loop header
LB: loop body
LE: loop exit
PB: predicated region body
PF: predicated region fallthrough
CT: control target
= control target key end

     0   :  { %s586_s1 = inlined_call_operand.vmem [shape: bf16[128,128], index: 1, kind: input, shape index: {}]   ;;  %s587_s0 = inlined_call_operand.vmem [shape: bf16[128,128], index: 0, kind: input, shape index: {}]   ;;  %s588_s2 = inlined_call_operand.vmem [shape: f32[1,128], index: 2, kind: input, shape index: {}]   ;;  %s589_s3 = inlined_call_operand.vmem [shape: f32[128,128], index: 3, kind: output, shape index: {}]  }
   0x1   :  { %v451_v0 = vld [vmem:[%s586_s1] sm:$0xff]   ;;  %v452_v1 = vld [vmem:[%s586_s1 + $0x8] sm:$0xff]   ;;  %v453_v2 = vld [vmem:[%s586_s1 + $0x10] sm:$0xff]  }
   0x2   :  { %403 = vmatprep.subr.bf16.mxu0 %v451_v0  ;;  %435 = vmatprep.subr.bf16.mxu1 %v451_v0  ;;  %v454_v3 = vld [vmem:[%s586_s1 + $0x18] sm:$0xff]   ;;  %v459_v4 = vld [vmem:[%s587_s0] sm:$0xff]   ;;  %v456_v7 = vld [vmem:[%s586_s1 + $0x28] sm:$0xff]  }
   0x3   :  { %404 = vmatpush3.bf16.msra.mxu0 %v451_v0  ;;  %443 = vmatpush3.bf16.msra.mxu1 %v451_v0  ;;  %v460_v5 = vld [vmem:[%s587_s0 + $0x20] sm:$0xff]   ;;  %v457_v8 = vld [vmem:[%s586_s1 + $0x30] sm:$0xff]   ;;  %v458_v9 = vld [vmem:[%s586_s1 + $0x38] sm:$0xff]  }
   0x4   :  { %405 = vmatprep.subr.bf16.mxu0 %v452_v1  ;;  %436 = vmatprep.subr.bf16.mxu1 %v452_v1  ;;  %v455_v6 = vld [vmem:[%s586_s1 + $0x20] sm:$0xff]   ;;  %v461_v10 = vld [vmem:[%s587_s0 + $0x8] sm:$0xff]   ;;  %v463_v12 = vld [vmem:[%s587_s0 + $0x10] sm:$0xff]  }
   0x5   :  { %419 = vmatprep.mubr.bf16.mxu0 %v459_v4  ;;  %427 = vmatprep.mubr.bf16.mxu1 %v460_v5  ;;  %v462_v11 = vld [vmem:[%s587_s0 + $0x28] sm:$0xff]   ;;  %v464_v13 = vld [vmem:[%s587_s0 + $0x30] sm:$0xff]   ;;  %v465_v14 = vld [vmem:[%s587_s0 + $0x18] sm:$0xff]  }
   0x6   :  { %v466_v15 = vld [vmem:[%s587_s0 + $0x38] sm:$0xff]   ;;  %v386_v16 = vld [vmem:[%s588_s2] ss:$0 sm:$0xff] }
   0x7   :  { %406 = vmatpush3.bf16.msra.mxu0 %v452_v1  ;;  %444 = vmatpush3.bf16.msra.mxu1 %v452_v1 }
   0x8   :  { %407 = vmatprep.subr.bf16.mxu0 %v453_v2  ;;  %437 = vmatprep.subr.bf16.mxu1 %v453_v2 }
   0xb   :  { %408 = vmatpush3.bf16.msra.mxu0 %v453_v2  ;;  %445 = vmatpush3.bf16.msra.mxu1 %v453_v2 }
   0xc   :  { %409 = vmatprep.subr.bf16.mxu0 %v454_v3  ;;  %438 = vmatprep.subr.bf16.mxu1 %v454_v3 }
   0xf   :  { %410 = vmatpush3.bf16.msra.mxu0 %v454_v3  ;;  %446 = vmatpush3.bf16.msra.mxu1 %v454_v3 }
  0x10   :  { %411 = vmatprep.subr.bf16.mxu0 %v455_v6  ;;  %439 = vmatprep.subr.bf16.mxu1 %v455_v6 }
  0x13   :  { %412 = vmatpush3.bf16.msra.mxu0 %v455_v6  ;;  %447 = vmatpush3.bf16.msra.mxu1 %v455_v6 }
  0x14   :  { %413 = vmatprep.subr.bf16.mxu0 %v456_v7  ;;  %440 = vmatprep.subr.bf16.mxu1 %v456_v7 }
  0x17   :  { %414 = vmatpush3.bf16.msra.mxu0 %v456_v7  ;;  %448 = vmatpush3.bf16.msra.mxu1 %v456_v7 }
  0x18   :  { %415 = vmatprep.subr.bf16.mxu0 %v457_v8  ;;  %441 = vmatprep.subr.bf16.mxu1 %v457_v8 }
  0x1b   :  { %416 = vmatpush3.bf16.msra.mxu0 %v457_v8  ;;  %449 = vmatpush3.bf16.msra.mxu1 %v457_v8 }
  0x1c   :  { %417 = vmatprep.subr.bf16.mxu0 %v458_v9  ;;  %442 = vmatprep.subr.bf16.mxu1 %v458_v9 }
  0x1f   :  { %418 = vmatpush3.bf16.msra.mxu0 %v458_v9  ;;  %450 = vmatpush3.bf16.msra.mxu1 %v458_v9 }
  0x22   :  { %420 = vmatmul.mubr.bf16.vlgmr.msra.gmra.mrb[0].mxu0 %v461_v10  ;;  %428 = vmatmul.mubr.bf16.vlgmr.msra.gmra.mrb[0].mxu1 %v462_v11 }
  0x23   :  { %423 = vmatprep.mubr.bf16.mxu0 %v463_v12  ;;  %431 = vmatprep.mubr.bf16.mxu1 %v464_v13 }
  0x2a   :  { %424 = vmatmul.mubr.bf16.gmra.mrb[4].mxu0 %v465_v14  ;;  %432 = vmatmul.mubr.bf16.gmra.mrb[4].mxu1 %v466_v15 }
  0xf5   :  { %v421_v17 = vpop.f32.mrb[0].mxu0  ;;  %v429_v18 = vpop.f32.mrb[0].mxu1 }
  0xf6   :  { %v336_v19 = vadd.f32 %v421_v17, %v386_v16  ;;  %v344_v20 = vadd.f32 %v429_v18, %v386_v16  ;;  %v213_v21 = vpop.f32.mrb[1].mxu0  ;;  %v245_v22 = vpop.f32.mrb[1].mxu1 }
  0xf7   :  { %v334_v23 = vadd.f32 %v386_v16, %v213_v21  ;;  %v342_v24 = vadd.f32 %v386_v16, %v245_v22  ;;  %v422_v25 = vpop.f32.mrb[2].mxu0  ;;  %v430_v26 = vpop.f32.mrb[2].mxu1 }
  0xf8   :  { %352 = vst [vmem:[%s589_s3 + $0x10] sm:$0xff] %v336_v19  ;;  %360 = vst [vmem:[%s589_s3 + $0x50] sm:$0xff] %v344_v20  ;;  %v337_v27 = vadd.f32 %v422_v25, %v386_v16  ;;  %v345_v28 = vadd.f32 %v430_v26, %v386_v16  ;;  %v216_v29 = vpop.f32.mrb[3].mxu0  ;;  %v248_v30 = vpop.f32.mrb[3].mxu1 }
  0xf9   :  { %350 = vst [vmem:[%s589_s3] sm:$0xff] %v334_v23  ;;  %358 = vst [vmem:[%s589_s3 + $0x40] sm:$0xff] %v342_v24  ;;  %v335_v31 = vadd.f32 %v386_v16, %v216_v29  ;;  %v343_v32 = vadd.f32 %v386_v16, %v248_v30 }
  0xfa   :  { %353 = vst [vmem:[%s589_s3 + $0x18] sm:$0xff] %v337_v27  ;;  %361 = vst [vmem:[%s589_s3 + $0x58] sm:$0xff] %v345_v28 }
  0xfb   :  { %351 = vst [vmem:[%s589_s3 + $0x8] sm:$0xff] %v335_v31  ;;  %359 = vst [vmem:[%s589_s3 + $0x48] sm:$0xff] %v343_v32 }
  0xfd   :  { %v425_v33 = vpop.f32.mrb[4].mxu0  ;;  %v433_v34 = vpop.f32.mrb[4].mxu1 }
  0xfe   :  { %v340_v35 = vadd.f32 %v425_v33, %v386_v16  ;;  %v348_v36 = vadd.f32 %v433_v34, %v386_v16  ;;  %v229_v37 = vpop.f32.mrb[5].mxu0  ;;  %v261_v38 = vpop.f32.mrb[5].mxu1 }
  0xff   :  { %v338_v39 = vadd.f32 %v386_v16, %v229_v37  ;;  %v346_v40 = vadd.f32 %v386_v16, %v261_v38  ;;  %v426_v41 = vpop.f32.mrb[6].mxu0  ;;  %v434_v42 = vpop.f32.mrb[6].mxu1 }
 0x100   :  { %356 = vst [vmem:[%s589_s3 + $0x30] sm:$0xff] %v340_v35  ;;  %364 = vst [vmem:[%s589_s3 + $0x70] sm:$0xff] %v348_v36  ;;  %v341_v43 = vadd.f32 %v426_v41, %v386_v16  ;;  %v349_v44 = vadd.f32 %v434_v42, %v386_v16  ;;  %v232_v45 = vpop.f32.mrb[7].mxu0  ;;  %v264_v46 = vpop.f32.mrb[7].mxu1 }
 0x101   :  { %354 = vst [vmem:[%s589_s3 + $0x20] sm:$0xff] %v338_v39  ;;  %362 = vst [vmem:[%s589_s3 + $0x60] sm:$0xff] %v346_v40  ;;  %v339_v47 = vadd.f32 %v386_v16, %v232_v45  ;;  %v347_v48 = vadd.f32 %v386_v16, %v264_v46 }
 0x102   :  { %357 = vst [vmem:[%s589_s3 + $0x38] sm:$0xff] %v341_v43  ;;  %365 = vst [vmem:[%s589_s3 + $0x78] sm:$0xff] %v349_v44 }
 0x103   :  { %355 = vst [vmem:[%s589_s3 + $0x28] sm:$0xff] %v339_v47  ;;  %363 = vst [vmem:[%s589_s3 + $0x68] sm:$0xff] %v347_v48 }

// kernel: forward.45
= control target key start
LH: loop header
LB: loop body
LE: loop exit
PB: predicated region body
PF: predicated region fallthrough
CT: control target
= control target key end

     0   :  { %s804_s1 = inlined_call_operand.vmem [shape: bf16[256,128], index: 1, kind: input, shape index: {}]   ;;  %s805_s0 = inlined_call_operand.vmem [shape: bf16[128,256], index: 0, kind: input, shape index: {}]   ;;  %s806_s2 = inlined_call_operand.vmem [shape: f32[1,128], index: 2, kind: input, shape index: {}]   ;;  %s807_s3 = inlined_call_operand.vmem [shape: f32[128,128], index: 3, kind: output, shape index: {}]  }
   0x1   :  { %v579_v0 = vld [vmem:[%s804_s1 + $0x40] sm:$0xff]   ;;  %v581_v2 = vld [vmem:[%s804_s1 + $0x48] sm:$0xff]   ;;  %v583_v4 = vld [vmem:[%s804_s1 + $0x50] sm:$0xff]  }
   0x2   :  { %v580_v1 = vld [vmem:[%s804_s1] sm:$0xff]   ;;  %499 = vmatprep.subr.bf16.mxu0 %v579_v0  ;;  %563 = vmatprep.subr.bf16.mxu1 %v579_v0  ;;  %v582_v3 = vld [vmem:[%s804_s1 + $0x8] sm:$0xff]   ;;  %v584_v5 = vld [vmem:[%s804_s1 + $0x10] sm:$0xff]  }
   0x3   :  { %500 = vmatpush3.bf16.msra.mxu0 %v580_v1  ;;  %571 = vmatpush3.bf16.msra.mxu1 %v580_v1  ;;  %v585_v6 = vld [vmem:[%s804_s1 + $0x58] sm:$0xff]   ;;  %v587_v8 = vld [vmem:[%s804_s1 + $0x60] sm:$0xff]   ;;  %v589_v10 = vld [vmem:[%s804_s1 + $0x68] sm:$0xff]  }
   0x4   :  { %501 = vmatprep.subr.bf16.mxu0 %v581_v2  ;;  %564 = vmatprep.subr.bf16.mxu1 %v581_v2  ;;  %v586_v7 = vld [vmem:[%s804_s1 + $0x18] sm:$0xff]   ;;  %v588_v9 = vld [vmem:[%s804_s1 + $0x20] sm:$0xff]   ;;  %v590_v13 = vld [vmem:[%s804_s1 + $0x28] sm:$0xff]  }
   0x5   :  { %v597_v11 = vld [vmem:[%s805_s0 + $0x4] ss:$8 sps:$4 sm:$0xff]   ;;  %v591_v14 = vld [vmem:[%s804_s1 + $0x70] sm:$0xff]   ;;  %v593_v16 = vld [vmem:[%s804_s1 + $0x78] sm:$0xff]  }
   0x6   :  { %v600_v12 = vld [vmem:[%s805_s0 + $0x44] ss:$8 sps:$4 sm:$0xff]   ;;  %307 = vmatprep.mubr.bf16.mxu0 %v597_v11  ;;  %v592_v15 = vld [vmem:[%s804_s1 + $0x30] sm:$0xff]   ;;  %v594_v17 = vld [vmem:[%s804_s1 + $0x38] sm:$0xff]  }
   0x7   :  { %502 = vmatpush3.bf16.msra.mxu0 %v582_v3  ;;  %572 = vmatpush3.bf16.msra.mxu1 %v582_v3  ;;  %v595_v18 = vld [vmem:[%s805_s0] ss:$8 sps:$4 sm:$0xff]   ;;  %v601_v20 = vld [vmem:[%s805_s0 + $0x14] ss:$8 sps:$4 sm:$0xff]   ;;  %v605_v22 = vld [vmem:[%s805_s0 + $0x10] ss:$8 sps:$4 sm:$0xff]  }
   0x8   :  { %503 = vmatprep.subr.bf16.mxu0 %v583_v4  ;;  %565 = vmatprep.subr.bf16.mxu1 %v583_v4  ;;  %v598_v19 = vld [vmem:[%s805_s0 + $0x40] ss:$8 sps:$4 sm:$0xff]   ;;  %v603_v21 = vld [vmem:[%s805_s0 + $0x54] ss:$8 sps:$4 sm:$0xff]   ;;  %v606_v23 = vld [vmem:[%s805_s0 + $0x50] ss:$8 sps:$4 sm:$0xff]  }
   0x9   :  { %339 = vmatprep.mubr.bf16.mxu1 %v600_v12  ;;  %v607_v24 = vld [vmem:[%s805_s0 + $0x24] ss:$8 sps:$4 sm:$0xff]   ;;  %v611_v26 = vld [vmem:[%s805_s0 + $0x20] ss:$8 sps:$4 sm:$0xff]   ;;  %v613_v28 = vld [vmem:[%s805_s0 + $0x34] ss:$8 sps:$4 sm:$0xff]  }
   0xa   :  { %v609_v25 = vld [vmem:[%s805_s0 + $0x64] ss:$8 sps:$4 sm:$0xff]   ;;  %v612_v27 = vld [vmem:[%s805_s0 + $0x60] ss:$8 sps:$4 sm:$0xff]   ;;  %v615_v29 = vld [vmem:[%s805_s0 + $0x74] ss:$8 sps:$4 sm:$0xff]  }
   0xb   :  { %504 = vmatpush3.bf16.msra.mxu0 %v584_v5  ;;  %573 = vmatpush3.bf16.msra.mxu1 %v584_v5  ;;  %v617_v30 = vld [vmem:[%s805_s0 + $0x30] ss:$8 sps:$4 sm:$0xff]   ;;  %v738_v35 = vld [vmem:[%s806_s2] ss:$0 sm:$0xff] }
   0xc   :  { %505 = vmatprep.subr.bf16.mxu0 %v585_v6  ;;  %566 = vmatprep.subr.bf16.mxu1 %v585_v6  ;;  %v618_v31 = vld [vmem:[%s805_s0 + $0x70] ss:$8 sps:$4 sm:$0xff]  }
   0xf   :  { %506 = vmatpush3.bf16.msra.mxu0 %v586_v7  ;;  %574 = vmatpush3.bf16.msra.mxu1 %v586_v7 }
  0x10   :  { %507 = vmatprep.subr.bf16.mxu0 %v587_v8  ;;  %567 = vmatprep.subr.bf16.mxu1 %v587_v8 }
  0x13   :  { %508 = vmatpush3.bf16.msra.mxu0 %v588_v9  ;;  %575 = vmatpush3.bf16.msra.mxu1 %v588_v9 }
  0x14   :  { %509 = vmatprep.subr.bf16.mxu0 %v589_v10  ;;  %568 = vmatprep.subr.bf16.mxu1 %v589_v10 }
  0x17   :  { %510 = vmatpush3.bf16.msra.mxu0 %v590_v13  ;;  %576 = vmatpush3.bf16.msra.mxu1 %v590_v13 }
  0x18   :  { %511 = vmatprep.subr.bf16.mxu0 %v591_v14  ;;  %569 = vmatprep.subr.bf16.mxu1 %v591_v14 }
  0x1b   :  { %512 = vmatpush3.bf16.msra.mxu0 %v592_v15  ;;  %577 = vmatpush3.bf16.msra.mxu1 %v592_v15 }
  0x1c   :  { %513 = vmatprep.subr.bf16.mxu0 %v593_v16  ;;  %570 = vmatprep.subr.bf16.mxu1 %v593_v16 }
  0x1f   :  { %514 = vmatpush3.bf16.msra.mxu0 %v594_v17  ;;  %578 = vmatpush3.bf16.msra.mxu1 %v594_v17 }
  0x22   :  { %308 = vmatmul.mubr.bf16.vlgmr.msra.gmra.mrb[0].mxu0 %v595_v18  ;;  %340 = vmatmul.mubr.bf16.vlgmr.msra.gmra.mrb[0].mxu1 %v598_v19 }
  0x23   :  { %315 = vmatprep.mubr.bf16.mxu0 %v601_v20  ;;  %347 = vmatprep.mubr.bf16.mxu1 %v603_v21 }
  0x2a   :  { %316 = vmatmul.mubr.bf16.gmra.mrb[4].mxu0 %v605_v22  ;;  %348 = vmatmul.mubr.bf16.gmra.mrb[4].mxu1 %v606_v23 }
  0x2b   :  { %323 = vmatprep.mubr.bf16.mxu0 %v607_v24  ;;  %355 = vmatprep.mubr.bf16.mxu1 %v609_v25 }
  0x32   :  { %324 = vmatmul.mubr.bf16.gmra.mrb[8].mxu0 %v611_v26  ;;  %356 = vmatmul.mubr.bf16.gmra.mrb[8].mxu1 %v612_v27 }
  0x33   :  { %331 = vmatprep.mubr.bf16.mxu0 %v613_v28  ;;  %363 = vmatprep.mubr.bf16.mxu1 %v615_v29 }
  0x3a   :  { %332 = vmatmul.mubr.bf16.gmra.mrb[12].mxu0 %v617_v30  ;;  %364 = vmatmul.mubr.bf16.gmra.mrb[12].mxu1 %v618_v31 }
  0xf5   :  { %v515_v32 = vpop.f32.mrb[0].mxu0  ;;  %v539_v33 = vpop.f32.mrb[0].mxu1 }
  0xf6   :  { %v516_v34 = vpop.f32.mrb[1].mxu0  ;;  %v540_v36 = vpop.f32.mrb[1].mxu1 }
  0xf7   :  { %v517_v37 = vadd.f32 %v516_v34, %v515_v32  ;;  %v541_v38 = vadd.f32 %v540_v36, %v539_v33  ;;  %v518_v39 = vpop.f32.mrb[2].mxu0  ;;  %v542_v40 = vpop.f32.mrb[2].mxu1 }
  0xf8   :  { %v519_v41 = vpop.f32.mrb[3].mxu0  ;;  %v543_v42 = vpop.f32.mrb[3].mxu1 }
  0xf9   :  { %v430_v43 = vadd.f32 %v517_v37, %v738_v35  ;;  %v438_v44 = vadd.f32 %v541_v38, %v738_v35  ;;  %v520_v45 = vadd.f32 %v519_v41, %v518_v39  ;;  %v544_v46 = vadd.f32 %v543_v42, %v542_v40 }
  0xfb   :  { %446 = vst [vmem:[%s807_s3] sm:$0xff] %v430_v43  ;;  %454 = vst [vmem:[%s807_s3 + $0x40] sm:$0xff] %v438_v44  ;;  %v431_v47 = vadd.f32 %v520_v45, %v738_v35  ;;  %v439_v48 = vadd.f32 %v544_v46, %v738_v35 }
  0xfd   :  { %447 = vst [vmem:[%s807_s3 + $0x8] sm:$0xff] %v431_v47  ;;  %455 = vst [vmem:[%s807_s3 + $0x48] sm:$0xff] %v439_v48  ;;  %v521_v49 = vpop.f32.mrb[4].mxu0  ;;  %v545_v50 = vpop.f32.mrb[4].mxu1 }
  0xfe   :  { %v522_v51 = vpop.f32.mrb[5].mxu0  ;;  %v546_v52 = vpop.f32.mrb[5].mxu1 }
  0xff   :  { %v523_v53 = vadd.f32 %v522_v51, %v521_v49  ;;  %v547_v54 = vadd.f32 %v546_v52, %v545_v50  ;;  %v524_v55 = vpop.f32.mrb[6].mxu0  ;;  %v548_v56 = vpop.f32.mrb[6].mxu1 }
 0x100   :  { %v525_v57 = vpop.f32.mrb[7].mxu0  ;;  %v549_v58 = vpop.f32.mrb[7].mxu1 }
 0x101   :  { %v432_v59 = vadd.f32 %v523_v53, %v738_v35  ;;  %v440_v60 = vadd.f32 %v547_v54, %v738_v35  ;;  %v526_v61 = vadd.f32 %v525_v57, %v524_v55  ;;  %v550_v62 = vadd.f32 %v549_v58, %v548_v56 }
 0x103   :  { %448 = vst [vmem:[%s807_s3 + $0x10] sm:$0xff] %v432_v59  ;;  %456 = vst [vmem:[%s807_s3 + $0x50] sm:$0xff] %v440_v60  ;;  %v433_v63 = vadd.f32 %v526_v61, %v738_v35  ;;  %v441_v0 = vadd.f32 %v550_v62, %v738_v35 }
 0x105   :  { %449 = vst [vmem:[%s807_s3 + $0x18] sm:$0xff] %v433_v63  ;;  %457 = vst [vmem:[%s807_s3 + $0x58] sm:$0xff] %v441_v0  ;;  %v527_v1 = vpop.f32.mrb[8].mxu0  ;;  %v551_v2 = vpop.f32.mrb[8].mxu1 }
 0x106   :  { %v528_v3 = vpop.f32.mrb[9].mxu0  ;;  %v552_v4 = vpop.f32.mrb[9].mxu1 }
 0x107   :  { %v529_v5 = vadd.f32 %v528_v3, %v527_v1  ;;  %v553_v6 = vadd.f32 %v552_v4, %v551_v2  ;;  %v530_v7 = vpop.f32.mrb[10].mxu0  ;;  %v554_v8 = vpop.f32.mrb[10].mxu1 }
 0x108   :  { %v531_v9 = vpop.f32.mrb[11].mxu0  ;;  %v555_v10 = vpop.f32.mrb[11].mxu1 }
 0x109   :  { %v434_v11 = vadd.f32 %v529_v5, %v738_v35  ;;  %v442_v12 = vadd.f32 %v553_v6, %v738_v35  ;;  %v532_v13 = vadd.f32 %v531_v9, %v530_v7  ;;  %v556_v14 = vadd.f32 %v555_v10, %v554_v8 }
 0x10b   :  { %450 = vst [vmem:[%s807_s3 + $0x20] sm:$0xff] %v434_v11  ;;  %458 = vst [vmem:[%s807_s3 + $0x60] sm:$0xff] %v442_v12  ;;  %v435_v15 = vadd.f32 %v532_v13, %v738_v35  ;;  %v443_v16 = vadd.f32 %v556_v14, %v738_v35 }
 0x10d   :  { %451 = vst [vmem:[%s807_s3 + $0x28] sm:$0xff] %v435_v15  ;;  %459 = vst [vmem:[%s807_s3 + $0x68] sm:$0xff] %v443_v16  ;;  %v533_v17 = vpop.f32.mrb[12].mxu0  ;;  %v557_v18 = vpop.f32.mrb[12].mxu1 }
 0x10e   :  { %v534_v19 = vpop.f32.mrb[13].mxu0  ;;  %v558_v20 = vpop.f32.mrb[13].mxu1 }
 0x10f   :  { %v535_v21 = vadd.f32 %v534_v19, %v533_v17  ;;  %v559_v22 = vadd.f32 %v558_v20, %v557_v18  ;;  %v536_v23 = vpop.f32.mrb[14].mxu0  ;;  %v560_v24 = vpop.f32.mrb[14].mxu1 }
 0x110   :  { %v537_v25 = vpop.f32.mrb[15].mxu0  ;;  %v561_v26 = vpop.f32.mrb[15].mxu1 }
 0x111   :  { %v436_v27 = vadd.f32 %v535_v21, %v738_v35  ;;  %v444_v28 = vadd.f32 %v559_v22, %v738_v35  ;;  %v538_v29 = vadd.f32 %v537_v25, %v536_v23  ;;  %v562_v30 = vadd.f32 %v561_v26, %v560_v24 }
 0x113   :  { %452 = vst [vmem:[%s807_s3 + $0x30] sm:$0xff] %v436_v27  ;;  %460 = vst [vmem:[%s807_s3 + $0x70] sm:$0xff] %v444_v28  ;;  %v437_v31 = vadd.f32 %v538_v29, %v738_v35  ;;  %v445_v32 = vadd.f32 %v562_v30, %v738_v35 }
 0x115   :  { %453 = vst [vmem:[%s807_s3 + $0x38] sm:$0xff] %v437_v31  ;;  %461 = vst [vmem:[%s807_s3 + $0x78] sm:$0xff] %v445_v32 }

// kernel: forward.49
= control target key start
LH: loop header
LB: loop body
LE: loop exit
PB: predicated region body
PF: predicated region fallthrough
CT: control target
= control target key end

     0   :  { %s820_s1 = inlined_call_operand.vmem [shape: bf16[256,128], index: 1, kind: input, shape index: {}]   ;;  %s821_s0 = inlined_call_operand.vmem [shape: bf16[128,256], index: 0, kind: input, shape index: {}]   ;;  %s822_s2 = inlined_call_operand.vmem [shape: f32[1,128], index: 2, kind: input, shape index: {}]   ;;  %s823_s3 = inlined_call_operand.vmem [shape: f32[128,128], index: 3, kind: output, shape index: {}]  }
   0x1   :  { %v595_v0 = vld [vmem:[%s820_s1 + $0x40] sm:$0xff]   ;;  %v597_v2 = vld [vmem:[%s820_s1 + $0x48] sm:$0xff]   ;;  %v599_v4 = vld [vmem:[%s820_s1 + $0x50] sm:$0xff]  }
   0x2   :  { %v596_v1 = vld [vmem:[%s820_s1] sm:$0xff]   ;;  %515 = vmatprep.subr.bf16.mxu0 %v595_v0  ;;  %579 = vmatprep.subr.bf16.mxu1 %v595_v0  ;;  %v598_v3 = vld [vmem:[%s820_s1 + $0x8] sm:$0xff]   ;;  %v600_v5 = vld [vmem:[%s820_s1 + $0x10] sm:$0xff]  }
   0x3   :  { %516 = vmatpush3.bf16.msra.mxu0 %v596_v1  ;;  %587 = vmatpush3.bf16.msra.mxu1 %v596_v1  ;;  %v601_v6 = vld [vmem:[%s820_s1 + $0x58] sm:$0xff]   ;;  %v603_v8 = vld [vmem:[%s820_s1 + $0x60] sm:$0xff]   ;;  %v605_v10 = vld [vmem:[%s820_s1 + $0x68] sm:$0xff]  }
   0x4   :  { %517 = vmatprep.subr.bf16.mxu0 %v597_v2  ;;  %580 = vmatprep.subr.bf16.mxu1 %v597_v2  ;;  %v602_v7 = vld [vmem:[%s820_s1 + $0x18] sm:$0xff]   ;;  %v604_v9 = vld [vmem:[%s820_s1 + $0x20] sm:$0xff]   ;;  %v606_v13 = vld [vmem:[%s820_s1 + $0x28] sm:$0xff]  }
   0x5   :  { %v613_v11 = vld [vmem:[%s821_s0 + $0x4] ss:$8 sps:$4 sm:$0xff]   ;;  %v607_v14 = vld [vmem:[%s820_s1 + $0x70] sm:$0xff]   ;;  %v609_v16 = vld [vmem:[%s820_s1 + $0x78] sm:$0xff]  }
   0x6   :  { %v616_v12 = vld [vmem:[%s821_s0 + $0x44] ss:$8 sps:$4 sm:$0xff]   ;;  %307 = vmatprep.mubr.bf16.mxu0 %v613_v11  ;;  %v608_v15 = vld [vmem:[%s820_s1 + $0x30] sm:$0xff]   ;;  %v610_v17 = vld [vmem:[%s820_s1 + $0x38] sm:$0xff]  }
   0x7   :  { %518 = vmatpush3.bf16.msra.mxu0 %v598_v3  ;;  %588 = vmatpush3.bf16.msra.mxu1 %v598_v3  ;;  %v611_v18 = vld [vmem:[%s821_s0] ss:$8 sps:$4 sm:$0xff]   ;;  %v617_v20 = vld [vmem:[%s821_s0 + $0x14] ss:$8 sps:$4 sm:$0xff]   ;;  %v621_v22 = vld [vmem:[%s821_s0 + $0x10] ss:$8 sps:$4 sm:$0xff]  }
   0x8   :  { %519 = vmatprep.subr.bf16.mxu0 %v599_v4  ;;  %581 = vmatprep.subr.bf16.mxu1 %v599_v4  ;;  %v614_v19 = vld [vmem:[%s821_s0 + $0x40] ss:$8 sps:$4 sm:$0xff]   ;;  %v619_v21 = vld [vmem:[%s821_s0 + $0x54] ss:$8 sps:$4 sm:$0xff]   ;;  %v622_v23 = vld [vmem:[%s821_s0 + $0x50] ss:$8 sps:$4 sm:$0xff]  }
   0x9   :  { %339 = vmatprep.mubr.bf16.mxu1 %v616_v12  ;;  %v623_v24 = vld [vmem:[%s821_s0 + $0x24] ss:$8 sps:$4 sm:$0xff]   ;;  %v627_v26 = vld [vmem:[%s821_s0 + $0x20] ss:$8 sps:$4 sm:$0xff]   ;;  %v629_v28 = vld [vmem:[%s821_s0 + $0x34] ss:$8 sps:$4 sm:$0xff]  }
   0xa   :  { %v625_v25 = vld [vmem:[%s821_s0 + $0x64] ss:$8 sps:$4 sm:$0xff]   ;;  %v628_v27 = vld [vmem:[%s821_s0 + $0x60] ss:$8 sps:$4 sm:$0xff]   ;;  %v631_v29 = vld [vmem:[%s821_s0 + $0x74] ss:$8 sps:$4 sm:$0xff]  }
   0xb   :  { %520 = vmatpush3.bf16.msra.mxu0 %v600_v5  ;;  %589 = vmatpush3.bf16.msra.mxu1 %v600_v5  ;;  %v633_v30 = vld [vmem:[%s821_s0 + $0x30] ss:$8 sps:$4 sm:$0xff]   ;;  %v754_v35 = vld [vmem:[%s822_s2] ss:$0 sm:$0xff] }
   0xc   :  { %521 = vmatprep.subr.bf16.mxu0 %v601_v6  ;;  %582 = vmatprep.subr.bf16.mxu1 %v601_v6  ;;  %v634_v31 = vld [vmem:[%s821_s0 + $0x70] ss:$8 sps:$4 sm:$0xff]  }
   0xf   :  { %522 = vmatpush3.bf16.msra.mxu0 %v602_v7  ;;  %590 = vmatpush3.bf16.msra.mxu1 %v602_v7 }
  0x10   :  { %523 = vmatprep.subr.bf16.mxu0 %v603_v8  ;;  %583 = vmatprep.subr.bf16.mxu1 %v603_v8 }
  0x13   :  { %524 = vmatpush3.bf16.msra.mxu0 %v604_v9  ;;  %591 = vmatpush3.bf16.msra.mxu1 %v604_v9 }
  0x14   :  { %525 = vmatprep.subr.bf16.mxu0 %v605_v10  ;;  %584 = vmatprep.subr.bf16.mxu1 %v605_v10 }
  0x17   :  { %526 = vmatpush3.bf16.msra.mxu0 %v606_v13  ;;  %592 = vmatpush3.bf16.msra.mxu1 %v606_v13 }
  0x18   :  { %527 = vmatprep.subr.bf16.mxu0 %v607_v14  ;;  %585 = vmatprep.subr.bf16.mxu1 %v607_v14 }
  0x1b   :  { %528 = vmatpush3.bf16.msra.mxu0 %v608_v15  ;;  %593 = vmatpush3.bf16.msra.mxu1 %v608_v15 }
  0x1c   :  { %529 = vmatprep.subr.bf16.mxu0 %v609_v16  ;;  %586 = vmatprep.subr.bf16.mxu1 %v609_v16 }
  0x1f   :  { %530 = vmatpush3.bf16.msra.mxu0 %v610_v17  ;;  %594 = vmatpush3.bf16.msra.mxu1 %v610_v17 }
  0x22   :  { %308 = vmatmul.mubr.bf16.vlgmr.msra.gmra.mrb[0].mxu0 %v611_v18  ;;  %340 = vmatmul.mubr.bf16.vlgmr.msra.gmra.mrb[0].mxu1 %v614_v19 }
  0x23   :  { %315 = vmatprep.mubr.bf16.mxu0 %v617_v20  ;;  %347 = vmatprep.mubr.bf16.mxu1 %v619_v21 }
  0x2a   :  { %316 = vmatmul.mubr.bf16.gmra.mrb[4].mxu0 %v621_v22  ;;  %348 = vmatmul.mubr.bf16.gmra.mrb[4].mxu1 %v622_v23 }
  0x2b   :  { %323 = vmatprep.mubr.bf16.mxu0 %v623_v24  ;;  %355 = vmatprep.mubr.bf16.mxu1 %v625_v25 }
  0x32   :  { %324 = vmatmul.mubr.bf16.gmra.mrb[8].mxu0 %v627_v26  ;;  %356 = vmatmul.mubr.bf16.gmra.mrb[8].mxu1 %v628_v27 }
  0x33   :  { %331 = vmatprep.mubr.bf16.mxu0 %v629_v28  ;;  %363 = vmatprep.mubr.bf16.mxu1 %v631_v29 }
  0x3a   :  { %332 = vmatmul.mubr.bf16.gmra.mrb[12].mxu0 %v633_v30  ;;  %364 = vmatmul.mubr.bf16.gmra.mrb[12].mxu1 %v634_v31 }
  0xf5   :  { %v531_v32 = vpop.f32.mrb[0].mxu0  ;;  %v555_v33 = vpop.f32.mrb[0].mxu1 }
  0xf6   :  { %v532_v34 = vpop.f32.mrb[1].mxu0  ;;  %v556_v36 = vpop.f32.mrb[1].mxu1 }
  0xf7   :  { %v533_v37 = vadd.f32 %v532_v34, %v531_v32  ;;  %v557_v38 = vadd.f32 %v556_v36, %v555_v33  ;;  %v534_v39 = vpop.f32.mrb[2].mxu0  ;;  %v558_v40 = vpop.f32.mrb[2].mxu1 }
  0xf8   :  { %v535_v41 = vpop.f32.mrb[3].mxu0  ;;  %v559_v42 = vpop.f32.mrb[3].mxu1 }
  0xf9   :  { %v430_v43 = vadd.f32 %v533_v37, %v754_v35  ;;  %v438_v44 = vadd.f32 %v557_v38, %v754_v35  ;;  %v536_v45 = vadd.f32 %v535_v41, %v534_v39  ;;  %v560_v46 = vadd.f32 %v559_v42, %v558_v40 }
  0xfb   :  { %v446_v47 = vmax.f32 %v430_v43, 0.0  ;;  %v454_v48 = vmax.f32 %v438_v44, 0.0  ;;  %v431_v49 = vadd.f32 %v536_v45, %v754_v35  ;;  %v439_v50 = vadd.f32 %v560_v46, %v754_v35 }
  0xfd   :  { %462 = vst [vmem:[%s823_s3] sm:$0xff] %v446_v47  ;;  %470 = vst [vmem:[%s823_s3 + $0x40] sm:$0xff] %v454_v48  ;;  %v447_v51 = vmax.f32 %v431_v49, 0.0  ;;  %v455_v52 = vmax.f32 %v439_v50, 0.0  ;;  %v537_v53 = vpop.f32.mrb[4].mxu0  ;;  %v561_v54 = vpop.f32.mrb[4].mxu1 }
  0xfe   :  { %v538_v55 = vpop.f32.mrb[5].mxu0  ;;  %v562_v56 = vpop.f32.mrb[5].mxu1 }
  0xff   :  { %463 = vst [vmem:[%s823_s3 + $0x8] sm:$0xff] %v447_v51  ;;  %471 = vst [vmem:[%s823_s3 + $0x48] sm:$0xff] %v455_v52  ;;  %v539_v57 = vadd.f32 %v538_v55, %v537_v53  ;;  %v563_v58 = vadd.f32 %v562_v56, %v561_v54  ;;  %v540_v59 = vpop.f32.mrb[6].mxu0  ;;  %v564_v60 = vpop.f32.mrb[6].mxu1 }
 0x100   :  { %v541_v61 = vpop.f32.mrb[7].mxu0  ;;  %v565_v62 = vpop.f32.mrb[7].mxu1 }
 0x101   :  { %v432_v63 = vadd.f32 %v539_v57, %v754_v35  ;;  %v440_v0 = vadd.f32 %v563_v58, %v754_v35  ;;  %v542_v1 = vadd.f32 %v541_v61, %v540_v59  ;;  %v566_v2 = vadd.f32 %v565_v62, %v564_v60 }
 0x103   :  { %v448_v3 = vmax.f32 %v432_v63, 0.0  ;;  %v456_v4 = vmax.f32 %v440_v0, 0.0  ;;  %v433_v5 = vadd.f32 %v542_v1, %v754_v35  ;;  %v441_v6 = vadd.f32 %v566_v2, %v754_v35 }
 0x105   :  { %464 = vst [vmem:[%s823_s3 + $0x10] sm:$0xff] %v448_v3  ;;  %472 = vst [vmem:[%s823_s3 + $0x50] sm:$0xff] %v456_v4  ;;  %v449_v7 = vmax.f32 %v433_v5, 0.0  ;;  %v457_v8 = vmax.f32 %v441_v6, 0.0  ;;  %v543_v9 = vpop.f32.mrb[8].mxu0  ;;  %v567_v10 = vpop.f32.mrb[8].mxu1 }
 0x106   :  { %v544_v11 = vpop.f32.mrb[9].mxu0  ;;  %v568_v12 = vpop.f32.mrb[9].mxu1 }
 0x107   :  { %465 = vst [vmem:[%s823_s3 + $0x18] sm:$0xff] %v449_v7  ;;  %473 = vst [vmem:[%s823_s3 + $0x58] sm:$0xff] %v457_v8  ;;  %v545_v13 = vadd.f32 %v544_v11, %v543_v9  ;;  %v569_v14 = vadd.f32 %v568_v12, %v567_v10  ;;  %v546_v15 = vpop.f32.mrb[10].mxu0  ;;  %v570_v16 = vpop.f32.mrb[10].mxu1 }
 0x108   :  { %v547_v17 = vpop.f32.mrb[11].mxu0  ;;  %v571_v18 = vpop.f32.mrb[11].mxu1 }
 0x109   :  { %v434_v19 = vadd.f32 %v545_v13, %v754_v35  ;;  %v442_v20 = vadd.f32 %v569_v14, %v754_v35  ;;  %v548_v21 = vadd.f32 %v547_v17, %v546_v15  ;;  %v572_v22 = vadd.f32 %v571_v18, %v570_v16 }
 0x10b   :  { %v450_v23 = vmax.f32 %v434_v19, 0.0  ;;  %v458_v24 = vmax.f32 %v442_v20, 0.0  ;;  %v435_v25 = vadd.f32 %v548_v21, %v754_v35  ;;  %v443_v26 = vadd.f32 %v572_v22, %v754_v35 }
 0x10d   :  { %466 = vst [vmem:[%s823_s3 + $0x20] sm:$0xff] %v450_v23  ;;  %474 = vst [vmem:[%s823_s3 + $0x60] sm:$0xff] %v458_v24  ;;  %v451_v27 = vmax.f32 %v435_v25, 0.0  ;;  %v459_v28 = vmax.f32 %v443_v26, 0.0  ;;  %v549_v29 = vpop.f32.mrb[12].mxu0  ;;  %v573_v30 = vpop.f32.mrb[12].mxu1 }
 0x10e   :  { %v550_v31 = vpop.f32.mrb[13].mxu0  ;;  %v574_v32 = vpop.f32.mrb[13].mxu1 }
 0x10f   :  { %467 = vst [vmem:[%s823_s3 + $0x28] sm:$0xff] %v451_v27  ;;  %475 = vst [vmem:[%s823_s3 + $0x68] sm:$0xff] %v459_v28  ;;  %v551_v33 = vadd.f32 %v550_v31, %v549_v29  ;;  %v575_v34 = vadd.f32 %v574_v32, %v573_v30  ;;  %v552_v36 = vpop.f32.mrb[14].mxu0  ;;  %v576_v37 = vpop.f32.mrb[14].mxu1 }
 0x110   :  { %v553_v38 = vpop.f32.mrb[15].mxu0  ;;  %v577_v39 = vpop.f32.mrb[15].mxu1 }
 0x111   :  { %v436_v40 = vadd.f32 %v551_v33, %v754_v35  ;;  %v444_v41 = vadd.f32 %v575_v34, %v754_v35  ;;  %v554_v42 = vadd.f32 %v553_v38, %v552_v36  ;;  %v578_v43 = vadd.f32 %v577_v39, %v576_v37 }
 0x113   :  { %v452_v44 = vmax.f32 %v436_v40, 0.0  ;;  %v460_v45 = vmax.f32 %v444_v41, 0.0  ;;  %v437_v46 = vadd.f32 %v554_v42, %v754_v35  ;;  %v445_v47 = vadd.f32 %v578_v43, %v754_v35 }
 0x115   :  { %468 = vst [vmem:[%s823_s3 + $0x30] sm:$0xff] %v452_v44  ;;  %476 = vst [vmem:[%s823_s3 + $0x70] sm:$0xff] %v460_v45  ;;  %v453_v48 = vmax.f32 %v437_v46, 0.0  ;;  %v461_v49 = vmax.f32 %v445_v47, 0.0 }
 0x117   :  { %469 = vst [vmem:[%s823_s3 + $0x38] sm:$0xff] %v453_v48  ;;  %477 = vst [vmem:[%s823_s3 + $0x78] sm:$0xff] %v461_v49 }

// kernel: forward.57
= control target key start
LH: loop header
LB: loop body
LE: loop exit
PB: predicated region body
PF: predicated region fallthrough
CT: control target
= control target key end

     0   :  { %s1948_s12 = smov 0   ;;  %s1950_s13 = smov 0   ;;  %s2318_s0 = inlined_call_operand.vmem [shape: bf16[128,3072], index: 0, kind: input, shape index: {}]   ;;  %s2319_s1 = inlined_call_operand.vmem [shape: bf16[3072,256], index: 1, kind: input, shape index: {}]   ;;  %s2320_s2 = inlined_call_operand.vmem [shape: f32[1,256], index: 2, kind: input, shape index: {}]   ;;  %s2321_s3 = inlined_call_operand.vmem [shape: f32[128,256], index: 3, kind: output, shape index: {}]  }
   0x1   :  { %s1952_s14 = smov 0   ;;  %s1954_s15 = smov 0  }
   0x2   :  { %s1956_s16 = smov 0  }
   0x3 LB: > { %s25_s17 = sadd.s32 1, %s1921_s15  ;;  %p48_p1 = scmp.ne.s32.totalorder %s1913_s13, %s1909_s12  ;;  %s1925_s16 = sphi %s1956_s16, %s13_s16   ;;  %s1921_s15 = sphi %s1954_s15, %s2325_s15   ;;  %s1917_s14 = sphi %s1952_s14, %s2324_s14   ;;  %s1913_s13 = sphi %s1950_s13, %s2323_s13   ;;  %s1909_s12 = sphi %s1948_s12, %s2322_s12  }
   0x4   : > { %p26_p0 = scmp.ge.s32.totalorder %s25_s17, 6  ;;  %p49_p2 = scmp.eq.s32.totalorder %s1925_s16, 0 }
   0x5   : > { %s41_s19 = sadd.s32 1, %s1913_s13  ;;  %p1557_p5 = scmp.ge.s32.totalorder %s1925_s16, 6 }
   0x6   : > { %s2327_s17 = smov (%p26_p0, %s25_s17), 0  ;;  %p50_p3 = por %p49_p2, %p48_p1 }
   0x7   : > { %s37_s18 = ssub.s32 %s1921_s15, %s2327_s17  ;;  %164 = sbr.rel (%p1557_p5) target bundleno = 34 (0x22), region = 20 }
   0x8   : > { %p39_p4 = scmp.eq.s32.totalorder %s37_s18, 0 }
   0xa   : > { %s1983_s20 = scalar_select %p39_p4, %s1913_s13, %s41_s19  }
   0xe   : > { %167 = sbr.rel (!%p50_p3) target bundleno = 34 (0x22), region = 24  ;;  %s169_s21 = sand.u32 (%p50_p3), 1, %s1913_s13  }
   0xf   : > { %s1668_s22 = sshll.u32 (%p50_p3), %s1921_s15, 4  ;;  %s1558_s23 = sshll.u32 (%p50_p3), %s169_s21, 8 }
  0x10   : > { %s1991_s26 = scalar_lea.vmem (%p50_p3), %s2318_s0, %s1668_s22  ;;  %s1996_s27 = scalar_lea.vmem (%p50_p3), [#allocation3], %s1558_s23 }
  0x11   : > { %v190_v0 = vld [vmem:[%s1991_s26] sm:$0xff] (%p50_p3)  ;;  %v192_v1 = vld [vmem:[%s1991_s26 + $0x8] sm:$0xff] (%p50_p3) }
  0x12   : > { %v194_v2 = vld [vmem:[%s1991_s26 + $0x60] sm:$0xff] (%p50_p3)  ;;  %191 = vst [vmem:[%s1996_s27] sm:$0xff] (%p50_p3), %v190_v0  ;;  %193 = vst [vmem:[%s1996_s27 + $0x8] sm:$0xff] (%p50_p3), %v192_v1  ;;  %v196_v3 = vld [vmem:[%s1991_s26 + $0x68] sm:$0xff] (%p50_p3) }
  0x13   : > { %195 = vst [vmem:[%s1996_s27 + $0x10] sm:$0xff] (%p50_p3), %v194_v2  ;;  %v198_v4 = vld [vmem:[%s1991_s26 + $0xc0] sm:$0xff] (%p50_p3)  ;;  %v200_v5 = vld [vmem:[%s1991_s26 + $0xc8] sm:$0xff] (%p50_p3)  ;;  %197 = vst [vmem:[%s1996_s27 + $0x18] sm:$0xff] (%p50_p3), %v196_v3 }
  0x14   : > { %199 = vst [vmem:[%s1996_s27 + $0x20] sm:$0xff] (%p50_p3), %v198_v4  ;;  %201 = vst [vmem:[%s1996_s27 + $0x28] sm:$0xff] (%p50_p3), %v200_v5  ;;  %v202_v6 = vld [vmem:[%s1991_s26 + $0x120] sm:$0xff] (%p50_p3)  ;;  %v204_v7 = vld [vmem:[%s1991_s26 + $0x128] sm:$0xff] (%p50_p3) }
  0x15   : > { %v206_v8 = vld [vmem:[%s1991_s26 + $0x180] sm:$0xff]  ;;  %203 = vst [vmem:[%s1996_s27 + $0x30] sm:$0xff] %v202_v6  ;;  %205 = vst [vmem:[%s1996_s27 + $0x38] sm:$0xff] %v204_v7  ;;  %v208_v9 = vld [vmem:[%s1991_s26 + $0x188] sm:$0xff] }
  0x16   : > { %207 = vst [vmem:[%s1996_s27 + $0x40] sm:$0xff] %v206_v8  ;;  %v210_v10 = vld [vmem:[%s1991_s26 + $0x1e0] sm:$0xff]  ;;  %v212_v11 = vld [vmem:[%s1991_s26 + $0x1e8] sm:$0xff]  ;;  %209 = vst [vmem:[%s1996_s27 + $0x48] sm:$0xff] %v208_v9 }
  0x17   : > { %211 = vst [vmem:[%s1996_s27 + $0x50] sm:$0xff] %v210_v10  ;;  %213 = vst [vmem:[%s1996_s27 + $0x58] sm:$0xff] %v212_v11  ;;  %v214_v12 = vld [vmem:[%s1991_s26 + $0x240] sm:$0xff]  ;;  %v216_v13 = vld [vmem:[%s1991_s26 + $0x248] sm:$0xff] }
  0x18   : > { %v218_v14 = vld [vmem:[%s1991_s26 + $0x2a0] sm:$0xff]  ;;  %215 = vst [vmem:[%s1996_s27 + $0x60] sm:$0xff] %v214_v12  ;;  %217 = vst [vmem:[%s1996_s27 + $0x68] sm:$0xff] %v216_v13  ;;  %v220_v15 = vld [vmem:[%s1991_s26 + $0x2a8] sm:$0xff] }
  0x19   : > { %219 = vst [vmem:[%s1996_s27 + $0x70] sm:$0xff] %v218_v14  ;;  %v222_v16 = vld [vmem:[%s1991_s26 + $0x300] sm:$0xff]  ;;  %v224_v17 = vld [vmem:[%s1991_s26 + $0x308] sm:$0xff]  ;;  %221 = vst [vmem:[%s1996_s27 + $0x78] sm:$0xff] %v220_v15 }
  0x1a   : > { %223 = vst [vmem:[%s1996_s27 + $0x80] sm:$0xff] %v222_v16  ;;  %225 = vst [vmem:[%s1996_s27 + $0x88] sm:$0xff] %v224_v17  ;;  %v226_v18 = vld [vmem:[%s1991_s26 + $0x360] sm:$0xff]  ;;  %v228_v19 = vld [vmem:[%s1991_s26 + $0x368] sm:$0xff] }
  0x1b   : > { %v230_v20 = vld [vmem:[%s1991_s26 + $0x3c0] sm:$0xff]  ;;  %227 = vst [vmem:[%s1996_s27 + $0x90] sm:$0xff] %v226_v18  ;;  %229 = vst [vmem:[%s1996_s27 + $0x98] sm:$0xff] %v228_v19  ;;  %v232_v21 = vld [vmem:[%s1991_s26 + $0x3c8] sm:$0xff] }
  0x1c   : > { %231 = vst [vmem:[%s1996_s27 + $0xa0] sm:$0xff] %v230_v20  ;;  %v234_v22 = vld [vmem:[%s1991_s26 + $0x420] sm:$0xff]  ;;  %v236_v23 = vld [vmem:[%s1991_s26 + $0x428] sm:$0xff]  ;;  %233 = vst [vmem:[%s1996_s27 + $0xa8] sm:$0xff] %v232_v21 }
  0x1d   : > { %235 = vst [vmem:[%s1996_s27 + $0xb0] sm:$0xff] %v234_v22  ;;  %237 = vst [vmem:[%s1996_s27 + $0xb8] sm:$0xff] %v236_v23  ;;  %v238_v24 = vld [vmem:[%s1991_s26 + $0x480] sm:$0xff]  ;;  %v240_v25 = vld [vmem:[%s1991_s26 + $0x488] sm:$0xff] }
  0x1e   : > { %v242_v26 = vld [vmem:[%s1991_s26 + $0x4e0] sm:$0xff]  ;;  %239 = vst [vmem:[%s1996_s27 + $0xc0] sm:$0xff] %v238_v24  ;;  %241 = vst [vmem:[%s1996_s27 + $0xc8] sm:$0xff] %v240_v25  ;;  %v244_v27 = vld [vmem:[%s1991_s26 + $0x4e8] sm:$0xff] }
  0x1f   : > { %243 = vst [vmem:[%s1996_s27 + $0xd0] sm:$0xff] %v242_v26  ;;  %v246_v28 = vld [vmem:[%s1991_s26 + $0x540] sm:$0xff]  ;;  %v248_v29 = vld [vmem:[%s1991_s26 + $0x548] sm:$0xff]  ;;  %245 = vst [vmem:[%s1996_s27 + $0xd8] sm:$0xff] %v244_v27 }
  0x20   : > { %247 = vst [vmem:[%s1996_s27 + $0xe0] sm:$0xff] %v246_v28  ;;  %249 = vst [vmem:[%s1996_s27 + $0xe8] sm:$0xff] %v248_v29  ;;  %v250_v30 = vld [vmem:[%s1991_s26 + $0x5a0] sm:$0xff]  ;;  %v252_v31 = vld [vmem:[%s1991_s26 + $0x5a8] sm:$0xff] }
  0x21   : > { %251 = vst [vmem:[%s1996_s27 + $0xf0] sm:$0xff] %v250_v30  ;;  %253 = vst [vmem:[%s1996_s27 + $0xf8] sm:$0xff] %v252_v31 }
  0x22 PF: > { %p1561_p6 = scmp.ge.s32.totalorder %s1925_s16, 1  ;;  %p273_p7 = scmp.lt.s32.totalorder %s1925_s16, 7 }
  0x24   : > { %p274_p8 = pnand %p1561_p6, %p273_p7 }
  0x25   : > { %s280_s28 = sand.u32 (!%p274_p8), 1, %s1909_s12   ;;  %s1563_s29 = sshll.u32 (!%p274_p8), %s1917_s14, 6 }
  0x26   : > { %277 = sbr.rel (%p274_p8) target bundleno = 417 (0x1a1), region = 51  ;;  %s1562_s30 = sshll.u32 (!%p274_p8), %s280_s28, 8 }
  0x27   : > { %p326_p9 = scmp.lt.s32.totalorder (!%p274_p8), %s1563_s29, 383  ;;  %s2068_s8 = scalar_lea.vmem (!%p274_p8), [#allocation3], %s1562_s30 }
  0x28   : > { %p1566_p10 = scmp.ne.s32.totalorder (!%p274_p8), %s1917_s14, 0 }
  0x2d   : > { %s2329_s29 = smov (!%p326_p9, %s1563_s29), 383  ;;  %356 = sbr.rel (%p1566_p10) target bundleno = 63 (0x3f), region = 59 }
  0x2e   : > { %s1669_s4 = sshll.u32 %s2329_s29, 3  ;;  %v1927_v32 = vmov (!%p1566_p10), 0.0  }
  0x2f   : > { %s2066_s7 = scalar_lea.vmem %s2319_s1, %s1669_s4  ;;  %357 = vst [vmem:[#allocation2] sm:$0xff] (!%p1566_p10), %v1927_v32  ;;  %358 = vst [vmem:[#allocation2 + $0x8] sm:$0xff] (!%p1566_p10), %v1927_v32 }
  0x30   : > { %359 = vst [vmem:[#allocation2 + $0x10] sm:$0xff] (!%p1566_p10), %v1927_v32  ;;  %360 = vst [vmem:[#allocation2 + $0x18] sm:$0xff] (!%p1566_p10), %v1927_v32 }
  0x31   : > { %361 = vst [vmem:[#allocation2 + $0x20] sm:$0xff] (!%p1566_p10), %v1927_v32  ;;  %362 = vst [vmem:[#allocation2 + $0x28] sm:$0xff] (!%p1566_p10), %v1927_v32 }
  0x32   : > { %363 = vst [vmem:[#allocation2 + $0x30] sm:$0xff] (!%p1566_p10), %v1927_v32  ;;  %364 = vst [vmem:[#allocation2 + $0x38] sm:$0xff] (!%p1566_p10), %v1927_v32 }
  0x33   : > { %365 = vst [vmem:[#allocation2 + $0x40] sm:$0xff] (!%p1566_p10), %v1927_v32  ;;  %366 = vst [vmem:[#allocation2 + $0x48] sm:$0xff] (!%p1566_p10), %v1927_v32 }
  0x34   : > { %367 = vst [vmem:[#allocation2 + $0x50] sm:$0xff] %v1927_v32  ;;  %368 = vst [vmem:[#allocation2 + $0x58] sm:$0xff] %v1927_v32 }
  0x35   : > { %369 = vst [vmem:[#allocation2 + $0x60] sm:$0xff] %v1927_v32  ;;  %370 = vst [vmem:[#allocation2 + $0x68] sm:$0xff] %v1927_v32 }
  0x36   : > { %371 = vst [vmem:[#allocation2 + $0x70] sm:$0xff] %v1927_v32  ;;  %372 = vst [vmem:[#allocation2 + $0x78] sm:$0xff] %v1927_v32 }
  0x37   : > { %373 = vst [vmem:[#allocation2 + $0x80] sm:$0xff] %v1927_v32  ;;  %374 = vst [vmem:[#allocation2 + $0x88] sm:$0xff] %v1927_v32 }
  0x38   : > { %375 = vst [vmem:[#allocation2 + $0x90] sm:$0xff] %v1927_v32  ;;  %376 = vst [vmem:[#allocation2 + $0x98] sm:$0xff] %v1927_v32 }
  0x39   : > { %377 = vst [vmem:[#allocation2 + $0xa0] sm:$0xff] %v1927_v32  ;;  %378 = vst [vmem:[#allocation2 + $0xa8] sm:$0xff] %v1927_v32 }
  0x3a   : > { %379 = vst [vmem:[#allocation2 + $0xb0] sm:$0xff] %v1927_v32  ;;  %380 = vst [vmem:[#allocation2 + $0xb8] sm:$0xff] %v1927_v32 }
  0x3b   : > { %381 = vst [vmem:[#allocation2 + $0xc0] sm:$0xff] %v1927_v32  ;;  %382 = vst [vmem:[#allocation2 + $0xc8] sm:$0xff] %v1927_v32 }
  0x3c   : > { %383 = vst [vmem:[#allocation2 + $0xd0] sm:$0xff] %v1927_v32  ;;  %384 = vst [vmem:[#allocation2 + $0xd8] sm:$0xff] %v1927_v32 }
  0x3d   : > { %385 = vst [vmem:[#allocation2 + $0xe0] sm:$0xff] %v1927_v32  ;;  %386 = vst [vmem:[#allocation2 + $0xe8] sm:$0xff] %v1927_v32 }
  0x3e   : > { %387 = vst [vmem:[#allocation2 + $0xf0] sm:$0xff] %v1927_v32  ;;  %388 = vst [vmem:[#allocation2 + $0xf8] sm:$0xff] %v1927_v32 }
  0x3f PF: > { %v1743_v33 = vld [vmem:[%s2066_s7 + $0x4] ss:$8 sps:$4 sm:$0xff]   ;;  %v1747_v35 = vld [vmem:[%s2066_s7] ss:$8 sps:$4 sm:$0xff]   ;;  %v1749_v37 = vld [vmem:[%s2066_s7 + $0x14] ss:$8 sps:$4 sm:$0xff]  }
  0x40   : > { %v1745_v34 = vld [vmem:[%s2066_s7 + $0x104] ss:$8 sps:$4 sm:$0xff]   ;;  %997 = vmatprep.subr.bf16.mxu1 %v1743_v33  ;;  %v1748_v36 = vld [vmem:[%s2066_s7 + $0x100] ss:$8 sps:$4 sm:$0xff]   ;;  %v1751_v38 = vld [vmem:[%s2066_s7 + $0x114] ss:$8 sps:$4 sm:$0xff]  }
  0x41   : > { %1110 = vmatprep.subr.bf16.mxu0 %v1745_v34  ;;  %998 = vmatpush1.bf16.msra.mxu1 %v1747_v35  ;;  %v1753_v39 = vld [vmem:[%s2066_s7 + $0x10] ss:$8 sps:$4 sm:$0xff]   ;;  %v1755_v41 = vld [vmem:[%s2066_s7 + $0x24] ss:$8 sps:$4 sm:$0xff]   ;;  %v1759_v43 = vld [vmem:[%s2066_s7 + $0x20] ss:$8 sps:$4 sm:$0xff]  }
  0x42   : > { %1111 = vmatpush1.bf16.msra.mxu0 %v1748_v36  ;;  %999 = vmatprep.subr.bf16.mxu1 %v1749_v37  ;;  %v1754_v40 = vld [vmem:[%s2066_s7 + $0x110] ss:$8 sps:$4 sm:$0xff]   ;;  %v1757_v42 = vld [vmem:[%s2066_s7 + $0x124] ss:$8 sps:$4 sm:$0xff]   ;;  %v1760_v44 = vld [vmem:[%s2066_s7 + $0x120] ss:$8 sps:$4 sm:$0xff]  }
  0x43   : > { %1112 = vmatprep.subr.bf16.mxu0 %v1751_v38  ;;  %v1761_v45 = vld [vmem:[%s2066_s7 + $0x34] ss:$8 sps:$4 sm:$0xff]   ;;  %v1765_v47 = vld [vmem:[%s2066_s7 + $0x30] ss:$8 sps:$4 sm:$0xff]   ;;  %v1767_v49 = vld [vmem:[%s2066_s7 + $0x44] ss:$8 sps:$4 sm:$0xff]  }
  0x44   : > { %v1763_v46 = vld [vmem:[%s2066_s7 + $0x134] ss:$8 sps:$4 sm:$0xff]   ;;  %v1766_v48 = vld [vmem:[%s2066_s7 + $0x130] ss:$8 sps:$4 sm:$0xff]   ;;  %v1769_v50 = vld [vmem:[%s2066_s7 + $0x144] ss:$8 sps:$4 sm:$0xff]  }
  0x45   : > { %1000 = vmatpush1.bf16.msra.mxu1 %v1753_v39  ;;  %v1771_v51 = vld [vmem:[%s2066_s7 + $0x40] ss:$8 sps:$4 sm:$0xff]   ;;  %v1773_v53 = vld [vmem:[%s2066_s7 + $0x54] ss:$8 sps:$4 sm:$0xff]   ;;  %v1777_v55 = vld [vmem:[%s2066_s7 + $0x50] ss:$8 sps:$4 sm:$0xff]  }
  0x46   : > { %1113 = vmatpush1.bf16.msra.mxu0 %v1754_v40  ;;  %1001 = vmatprep.subr.bf16.mxu1 %v1755_v41  ;;  %v1772_v52 = vld [vmem:[%s2066_s7 + $0x140] ss:$8 sps:$4 sm:$0xff]   ;;  %v1775_v54 = vld [vmem:[%s2066_s7 + $0x154] ss:$8 sps:$4 sm:$0xff]   ;;  %v1778_v56 = vld [vmem:[%s2066_s7 + $0x150] ss:$8 sps:$4 sm:$0xff]  }
  0x47   : > { %1114 = vmatprep.subr.bf16.mxu0 %v1757_v42  ;;  %v1779_v57 = vld [vmem:[%s2066_s7 + $0x64] ss:$8 sps:$4 sm:$0xff]   ;;  %v1783_v59 = vld [vmem:[%s2066_s7 + $0x60] ss:$8 sps:$4 sm:$0xff]   ;;  %v1785_v61 = vld [vmem:[%s2066_s7 + $0x74] ss:$8 sps:$4 sm:$0xff]  }
  0x48   : > { %v1781_v58 = vld [vmem:[%s2066_s7 + $0x164] ss:$8 sps:$4 sm:$0xff]   ;;  %v1784_v60 = vld [vmem:[%s2066_s7 + $0x160] ss:$8 sps:$4 sm:$0xff]   ;;  %v1787_v62 = vld [vmem:[%s2066_s7 + $0x174] ss:$8 sps:$4 sm:$0xff]  }
  0x49   : > { %1002 = vmatpush1.bf16.msra.mxu1 %v1759_v43  ;;  %v1789_v63 = vld [vmem:[%s2066_s7 + $0x70] ss:$8 sps:$4 sm:$0xff]   ;;  %v1791_v1 = vld [vmem:[%s2066_s7 + $0x84] ss:$8 sps:$4 sm:$0xff]   ;;  %v1795_v3 = vld [vmem:[%s2066_s7 + $0x80] ss:$8 sps:$4 sm:$0xff]  }
  0x4a   : > { %1115 = vmatpush1.bf16.msra.mxu0 %v1760_v44  ;;  %1003 = vmatprep.subr.bf16.mxu1 %v1761_v45  ;;  %v1790_v0 = vld [vmem:[%s2066_s7 + $0x170] ss:$8 sps:$4 sm:$0xff]   ;;  %v1793_v2 = vld [vmem:[%s2066_s7 + $0x184] ss:$8 sps:$4 sm:$0xff]   ;;  %v1796_v4 = vld [vmem:[%s2066_s7 + $0x180] ss:$8 sps:$4 sm:$0xff]  }
  0x4b   : > { %1116 = vmatprep.subr.bf16.mxu0 %v1763_v46  ;;  %v1797_v5 = vld [vmem:[%s2066_s7 + $0x94] ss:$8 sps:$4 sm:$0xff]   ;;  %v1801_v7 = vld [vmem:[%s2066_s7 + $0x90] ss:$8 sps:$4 sm:$0xff]   ;;  %v1803_v9 = vld [vmem:[%s2066_s7 + $0xa4] ss:$8 sps:$4 sm:$0xff]  }
  0x4c   : > { %v1799_v6 = vld [vmem:[%s2066_s7 + $0x194] ss:$8 sps:$4 sm:$0xff]   ;;  %v1802_v8 = vld [vmem:[%s2066_s7 + $0x190] ss:$8 sps:$4 sm:$0xff]   ;;  %v1805_v10 = vld [vmem:[%s2066_s7 + $0x1a4] ss:$8 sps:$4 sm:$0xff]  }
  0x4d   : > { %1004 = vmatpush1.bf16.msra.mxu1 %v1765_v47  ;;  %v1807_v11 = vld [vmem:[%s2066_s7 + $0xa0] ss:$8 sps:$4 sm:$0xff]   ;;  %v1809_v13 = vld [vmem:[%s2066_s7 + $0xb4] ss:$8 sps:$4 sm:$0xff]   ;;  %v1813_v15 = vld [vmem:[%s2066_s7 + $0xb0] ss:$8 sps:$4 sm:$0xff]  }
  0x4e   : > { %1117 = vmatpush1.bf16.msra.mxu0 %v1766_v48  ;;  %1005 = vmatprep.subr.bf16.mxu1 %v1767_v49  ;;  %v1808_v12 = vld [vmem:[%s2066_s7 + $0x1a0] ss:$8 sps:$4 sm:$0xff]   ;;  %v1811_v14 = vld [vmem:[%s2066_s7 + $0x1b4] ss:$8 sps:$4 sm:$0xff]   ;;  %v1814_v16 = vld [vmem:[%s2066_s7 + $0x1b0] ss:$8 sps:$4 sm:$0xff]  }
  0x4f   : > { %1118 = vmatprep.subr.bf16.mxu0 %v1769_v50  ;;  %v1815_v17 = vld [vmem:[%s2066_s7 + $0xc4] ss:$8 sps:$4 sm:$0xff]   ;;  %v1819_v21 = vld [vmem:[%s2066_s7 + $0xc0] ss:$8 sps:$4 sm:$0xff]   ;;  %v1821_v23 = vld [vmem:[%s2066_s7 + $0xd4] ss:$8 sps:$4 sm:$0xff]  }
  0x50   : > { %v1841_v18 = vld [vmem:[%s2068_s8 + $0x4] ss:$16 sps:$4 sm:$0xff]   ;;  %v1844_v20 = vld [vmem:[%s2068_s8 + $0xc] ss:$16 sps:$4 sm:$0xff]   ;;  %v1820_v22 = vld [vmem:[%s2066_s7 + $0x1c0] ss:$8 sps:$4 sm:$0xff]  }
  0x51   : > { %1006 = vmatpush1.bf16.msra.mxu1 %v1771_v51  ;;  %v1817_v19 = vld [vmem:[%s2066_s7 + $0x1c4] ss:$8 sps:$4 sm:$0xff]   ;;  %1029 = vmatprep.mubr.bf16.mxu1 %v1841_v18  ;;  %v1823_v24 = vld [vmem:[%s2066_s7 + $0x1d4] ss:$8 sps:$4 sm:$0xff]   ;;  %v1825_v25 = vld [vmem:[%s2066_s7 + $0xd0] ss:$8 sps:$4 sm:$0xff]  }
  0x52   : > { %1119 = vmatpush1.bf16.msra.mxu0 %v1772_v52  ;;  %1007 = vmatprep.subr.bf16.mxu1 %v1773_v53  ;;  %v1826_v26 = vld [vmem:[%s2066_s7 + $0x1d0] ss:$8 sps:$4 sm:$0xff]   ;;  %v1827_v27 = vld [vmem:[%s2066_s7 + $0xe4] ss:$8 sps:$4 sm:$0xff]   ;;  %v1831_v29 = vld [vmem:[%s2066_s7 + $0xe0] ss:$8 sps:$4 sm:$0xff]  }
  0x53   : > { %1120 = vmatprep.subr.bf16.mxu0 %v1775_v54  ;;  %1142 = vmatprep.mubr.bf16.mxu0 %v1844_v20  ;;  %v1829_v28 = vld [vmem:[%s2066_s7 + $0x1e4] ss:$8 sps:$4 sm:$0xff]   ;;  %v1832_v30 = vld [vmem:[%s2066_s7 + $0x1e0] ss:$8 sps:$4 sm:$0xff]   ;;  %v1833_v31 = vld [vmem:[%s2066_s7 + $0xf4] ss:$8 sps:$4 sm:$0xff]  }
  0x54   : > { %v1835_v32 = vld [vmem:[%s2066_s7 + $0x1f4] ss:$8 sps:$4 sm:$0xff]   ;;  %v1837_v33 = vld [vmem:[%s2066_s7 + $0xf0] ss:$8 sps:$4 sm:$0xff]   ;;  %p1663_p11 = scmp.ne.s32.totalorder %s1917_s14, 5 }
  0x55   : > { %1008 = vmatpush1.bf16.msra.mxu1 %v1777_v55  ;;  %v1838_v34 = vld [vmem:[%s2066_s7 + $0x1f0] ss:$8 sps:$4 sm:$0xff]   ;;  %v1845_v37 = vld [vmem:[%s2068_s8 + $0x24] ss:$16 sps:$4 sm:$0xff]   ;;  %v1847_v38 = vld [vmem:[%s2068_s8 + $0x2c] ss:$16 sps:$4 sm:$0xff]  }
  0x56   : > { %1121 = vmatpush1.bf16.msra.mxu0 %v1778_v56  ;;  %1009 = vmatprep.subr.bf16.mxu1 %v1779_v57  ;;  %v1839_v35 = vld [vmem:[%s2068_s8] ss:$16 sps:$4 sm:$0xff]   ;;  %v1842_v36 = vld [vmem:[%s2068_s8 + $0x8] ss:$16 sps:$4 sm:$0xff]   ;;  %v1851_v41 = vld [vmem:[%s2068_s8 + $0x44] ss:$16 sps:$4 sm:$0xff]  }
  0x57   : > { %1122 = vmatprep.subr.bf16.mxu0 %v1781_v58  ;;  %v1849_v39 = vld [vmem:[%s2068_s8 + $0x20] ss:$16 sps:$4 sm:$0xff]   ;;  %v1850_v40 = vld [vmem:[%s2068_s8 + $0x28] ss:$16 sps:$4 sm:$0xff]   ;;  %v1853_v42 = vld [vmem:[%s2068_s8 + $0x4c] ss:$16 sps:$4 sm:$0xff]  }
  0x58   : > { %v1855_v43 = vld [vmem:[%s2068_s8 + $0x40] ss:$16 sps:$4 sm:$0xff]   ;;  %v1856_v44 = vld [vmem:[%s2068_s8 + $0x48] ss:$16 sps:$4 sm:$0xff]   ;;  %v1857_v45 = vld [vmem:[%s2068_s8 + $0x64] ss:$16 sps:$4 sm:$0xff]  }
  0x59   : > { %1010 = vmatpush1.bf16.msra.mxu1 %v1783_v59  ;;  %v1859_v46 = vld [vmem:[%s2068_s8 + $0x6c] ss:$16 sps:$4 sm:$0xff]   ;;  %v1861_v47 = vld [vmem:[%s2068_s8 + $0x60] ss:$16 sps:$4 sm:$0xff]   ;;  %v1862_v48 = vld [vmem:[%s2068_s8 + $0x68] ss:$16 sps:$4 sm:$0xff]  }
  0x5a   : > { %1123 = vmatpush1.bf16.msra.mxu0 %v1784_v60  ;;  %1011 = vmatprep.subr.bf16.mxu1 %v1785_v61  ;;  %v1863_v49 = vld [vmem:[%s2068_s8 + $0x84] ss:$16 sps:$4 sm:$0xff]   ;;  %v1865_v50 = vld [vmem:[%s2068_s8 + $0x8c] ss:$16 sps:$4 sm:$0xff]   ;;  %v1867_v51 = vld [vmem:[%s2068_s8 + $0x80] ss:$16 sps:$4 sm:$0xff]  }
  0x5b   : > { %1124 = vmatprep.subr.bf16.mxu0 %v1787_v62  ;;  %v1868_v52 = vld [vmem:[%s2068_s8 + $0x88] ss:$16 sps:$4 sm:$0xff]   ;;  %v1869_v53 = vld [vmem:[%s2068_s8 + $0xa4] ss:$16 sps:$4 sm:$0xff]   ;;  %v1871_v54 = vld [vmem:[%s2068_s8 + $0xac] ss:$16 sps:$4 sm:$0xff]  }
  0x5c   : > { %v1873_v55 = vld [vmem:[%s2068_s8 + $0xa0] ss:$16 sps:$4 sm:$0xff]   ;;  %v1874_v56 = vld [vmem:[%s2068_s8 + $0xa8] ss:$16 sps:$4 sm:$0xff]   ;;  %v1875_v57 = vld [vmem:[%s2068_s8 + $0xc4] ss:$16 sps:$4 sm:$0xff]  }
  0x5d   : > { %1012 = vmatpush1.bf16.msra.mxu1 %v1789_v63  ;;  %v1877_v58 = vld [vmem:[%s2068_s8 + $0xcc] ss:$16 sps:$4 sm:$0xff]   ;;  %v1879_v59 = vld [vmem:[%s2068_s8 + $0xc0] ss:$16 sps:$4 sm:$0xff]   ;;  %v1880_v60 = vld [vmem:[%s2068_s8 + $0xc8] ss:$16 sps:$4 sm:$0xff]  }
  0x5e   : > { %1125 = vmatpush1.bf16.msra.mxu0 %v1790_v0  ;;  %1013 = vmatprep.subr.bf16.mxu1 %v1791_v1  ;;  %v1881_v61 = vld [vmem:[%s2068_s8 + $0xe4] ss:$16 sps:$4 sm:$0xff]   ;;  %v1883_v62 = vld [vmem:[%s2068_s8 + $0xec] ss:$16 sps:$4 sm:$0xff]   ;;  %v1885_v63 = vld [vmem:[%s2068_s8 + $0xe0] ss:$16 sps:$4 sm:$0xff]  }
  0x5f   : > { %1126 = vmatprep.subr.bf16.mxu0 %v1793_v2  ;;  %v1886_v0 = vld [vmem:[%s2068_s8 + $0xe8] ss:$16 sps:$4 sm:$0xff]   ;;  %v389_v2 = vld [vmem:[#allocation2] sm:$0xff] }
  0x61   : > { %1014 = vmatpush1.bf16.msra.mxu1 %v1795_v3 }
  0x62   : > { %1127 = vmatpush1.bf16.msra.mxu0 %v1796_v4  ;;  %1015 = vmatprep.subr.bf16.mxu1 %v1797_v5 }
  0x63   : > { %1128 = vmatprep.subr.bf16.mxu0 %v1799_v6  ;;  %v390_v6 = vld [vmem:[#allocation2 + $0x8] sm:$0xff] }
  0x65   : > { %1016 = vmatpush1.bf16.msra.mxu1 %v1801_v7 }
  0x66   : > { %1129 = vmatpush1.bf16.msra.mxu0 %v1802_v8  ;;  %1017 = vmatprep.subr.bf16.mxu1 %v1803_v9 }
  0x67   : > { %1130 = vmatprep.subr.bf16.mxu0 %v1805_v10  ;;  %v391_v10 = vld [vmem:[#allocation2 + $0x10] sm:$0xff] }
  0x69   : > { %1018 = vmatpush1.bf16.msra.mxu1 %v1807_v11 }
  0x6a   : > { %1131 = vmatpush1.bf16.msra.mxu0 %v1808_v12  ;;  %1019 = vmatprep.subr.bf16.mxu1 %v1809_v13 }
  0x6b   : > { %1132 = vmatprep.subr.bf16.mxu0 %v1811_v14 }
  0x6d   : > { %1020 = vmatpush1.bf16.msra.mxu1 %v1813_v15  ;;  %v392_v15 = vld [vmem:[#allocation2 + $0x18] sm:$0xff] }
  0x6e   : > { %1133 = vmatpush1.bf16.msra.mxu0 %v1814_v16  ;;  %1021 = vmatprep.subr.bf16.mxu1 %v1815_v17 }
  0x6f   : > { %1134 = vmatprep.subr.bf16.mxu0 %v1817_v19 }
  0x71   : > { %1022 = vmatpush1.bf16.msra.mxu1 %v1819_v21 }
  0x72   : > { %1135 = vmatpush1.bf16.msra.mxu0 %v1820_v22  ;;  %1023 = vmatprep.subr.bf16.mxu1 %v1821_v23  ;;  %v393_v22 = vld [vmem:[#allocation2 + $0x20] sm:$0xff] }
  0x73   : > { %1136 = vmatprep.subr.bf16.mxu0 %v1823_v24 }
  0x75   : > { %1024 = vmatpush1.bf16.msra.mxu1 %v1825_v25 }
  0x76   : > { %1137 = vmatpush1.bf16.msra.mxu0 %v1826_v26  ;;  %1025 = vmatprep.subr.bf16.mxu1 %v1827_v27  ;;  %v394_v26 = vld [vmem:[#allocation2 + $0x28] sm:$0xff] }
  0x77   : > { %1138 = vmatprep.subr.bf16.mxu0 %v1829_v28 }
  0x79   : > { %1026 = vmatpush1.bf16.msra.mxu1 %v1831_v29 }
  0x7a   : > { %1139 = vmatpush1.bf16.msra.mxu0 %v1832_v30  ;;  %1027 = vmatprep.subr.bf16.mxu1 %v1833_v31  ;;  %v395_v30 = vld [vmem:[#allocation2 + $0x30] sm:$0xff] }
  0x7b   : > { %1140 = vmatprep.subr.bf16.mxu0 %v1835_v32 }
  0x7d   : > { %1028 = vmatpush1.bf16.msra.mxu1 %v1837_v33 }
  0x7e   : > { %1141 = vmatpush1.bf16.msra.mxu0 %v1838_v34 }
  0x80   : > { %1030 = vmatmul.mubr.bf16.vlgmr.msra.gmra.mrb[0].mxu1 %v1839_v35  ;;  %v396_v35 = vld [vmem:[#allocation2 + $0x38] sm:$0xff] }
  0x81   : > { %1143 = vmatmul.mubr.bf16.vlgmr.msra.gmra.mrb[0].mxu0 %v1842_v36  ;;  %1039 = vmatprep.mubr.bf16.mxu1 %v1845_v37 }
  0x82   : > { %1152 = vmatprep.mubr.bf16.mxu0 %v1847_v38 }
  0x88   : > { %1040 = vmatmul.mubr.bf16.gmra.mrb[4].mxu1 %v1849_v39 }
  0x89   : > { %1153 = vmatmul.mubr.bf16.gmra.mrb[4].mxu0 %v1850_v40  ;;  %1049 = vmatprep.mubr.bf16.mxu1 %v1851_v41 }
  0x8a   : > { %1162 = vmatprep.mubr.bf16.mxu0 %v1853_v42  ;;  %v397_v42 = vld [vmem:[#allocation2 + $0x40] sm:$0xff] }
  0x90   : > { %1050 = vmatmul.mubr.bf16.gmra.mrb[8].mxu1 %v1855_v43 }
  0x91   : > { %1163 = vmatmul.mubr.bf16.gmra.mrb[8].mxu0 %v1856_v44  ;;  %1059 = vmatprep.mubr.bf16.mxu1 %v1857_v45 }
  0x92   : > { %1172 = vmatprep.mubr.bf16.mxu0 %v1859_v46  ;;  %v398_v46 = vld [vmem:[#allocation2 + $0x48] sm:$0xff] }
  0x98   : > { %1060 = vmatmul.mubr.bf16.gmra.mrb[12].mxu1 %v1861_v47 }
  0x99   : > { %1173 = vmatmul.mubr.bf16.gmra.mrb[12].mxu0 %v1862_v48  ;;  %1069 = vmatprep.mubr.bf16.mxu1 %v1863_v49 }
  0x9a   : > { %1182 = vmatprep.mubr.bf16.mxu0 %v1865_v50  ;;  %v399_v50 = vld [vmem:[#allocation2 + $0x50] sm:$0xff] }
  0xa0   : > { %1070 = vmatmul.mubr.bf16.gmra.mrb[16].mxu1 %v1867_v51 }
  0xa1   : > { %1183 = vmatmul.mubr.bf16.gmra.mrb[16].mxu0 %v1868_v52  ;;  %1079 = vmatprep.mubr.bf16.mxu1 %v1869_v53 }
  0xa2   : > { %1192 = vmatprep.mubr.bf16.mxu0 %v1871_v54 }
  0xa8   : > { %1080 = vmatmul.mubr.bf16.gmra.mrb[20].mxu1 %v1873_v55  ;;  %v400_v55 = vld [vmem:[#allocation2 + $0x58] sm:$0xff] }
  0xa9   : > { %1193 = vmatmul.mubr.bf16.gmra.mrb[20].mxu0 %v1874_v56  ;;  %1089 = vmatprep.mubr.bf16.mxu1 %v1875_v57 }
  0xaa   : > { %1202 = vmatprep.mubr.bf16.mxu0 %v1877_v58 }
  0xb0   : > { %1090 = vmatmul.mubr.bf16.gmra.mrb[24].mxu1 %v1879_v59 }
  0xb1   : > { %1203 = vmatmul.mubr.bf16.gmra.mrb[24].mxu0 %v1880_v60  ;;  %1099 = vmatprep.mubr.bf16.mxu1 %v1881_v61 }
  0xb2   : > { %1212 = vmatprep.mubr.bf16.mxu0 %v1883_v62  ;;  %v401_v62 = vld [vmem:[#allocation2 + $0x60] sm:$0xff] }
  0xb8   : > { %1100 = vmatmul.mubr.bf16.gmra.mrb[28].mxu1 %v1885_v63 }
  0xb9   : > { %1213 = vmatmul.mubr.bf16.gmra.mrb[28].mxu0 %v1886_v0 }
 0x153   : > { %v1031_v1 = vpop.f32.mrb[0].mxu1 }
 0x154   : > { %v1144_v3 = vpop.f32.mrb[0].mxu0  ;;  %v1033_v5 = vpop.f32.mrb[1].mxu1 }
 0x155   : > { %v1145_v4 = vadd.f32 %v1144_v3, %v1031_v1  ;;  %v1146_v7 = vpop.f32.mrb[1].mxu0  ;;  %v1035_v9 = vpop.f32.mrb[2].mxu1 }
 0x156   : > { %v1147_v8 = vadd.f32 %v1146_v7, %v1033_v5  ;;  %v1148_v11 = vpop.f32.mrb[2].mxu0  ;;  %v1037_v14 = vpop.f32.mrb[3].mxu1 }
 0x157   : > { %v1223_v12 = vadd.f32 %v1145_v4, %v389_v2  ;;  %v1149_v13 = vadd.f32 %v1148_v11, %v1035_v9  ;;  %v1150_v16 = vpop.f32.mrb[3].mxu0  ;;  %v402_v2 = vld [vmem:[#allocation2 + $0x68] sm:$0xff]  ;;  %v404_v11 = vld [vmem:[#allocation2 + $0x78] sm:$0xff] }
 0x158   : > { %v1224_v17 = vadd.f32 %v1147_v8, %v390_v6  ;;  %v1151_v18 = vadd.f32 %v1150_v16, %v1037_v14  ;;  %v403_v6 = vld [vmem:[#allocation2 + $0x70] sm:$0xff] }
 0x159   : > { %1255 = vst [vmem:[#allocation2] sm:$0xff] %v1223_v12  ;;  %v1225_v19 = vadd.f32 %v1149_v13, %v391_v10 }
 0x15a   : > { %1256 = vst [vmem:[#allocation2 + $0x8] sm:$0xff] %v1224_v17  ;;  %v1226_v20 = vadd.f32 %v1151_v18, %v392_v15  ;;  %v405_v18 = vld [vmem:[#allocation2 + $0x80] sm:$0xff] }
 0x15b   : > { %1257 = vst [vmem:[#allocation2 + $0x10] sm:$0xff] %v1225_v19  ;;  %v1041_v21 = vpop.f32.mrb[4].mxu1 }
 0x15c   : > { %1258 = vst [vmem:[#allocation2 + $0x18] sm:$0xff] %v1226_v20  ;;  %v1154_v23 = vpop.f32.mrb[4].mxu0  ;;  %v1043_v25 = vpop.f32.mrb[5].mxu1 }
 0x15d   : > { %v1155_v24 = vadd.f32 %v1154_v23, %v1041_v21  ;;  %v1156_v27 = vpop.f32.mrb[5].mxu0  ;;  %v1045_v29 = vpop.f32.mrb[6].mxu1 }
 0x15e   : > { %v1157_v28 = vadd.f32 %v1156_v27, %v1043_v25  ;;  %v1158_v31 = vpop.f32.mrb[6].mxu0  ;;  %v1047_v34 = vpop.f32.mrb[7].mxu1 }
 0x15f   : > { %v1227_v32 = vadd.f32 %v1155_v24, %v393_v22  ;;  %v1159_v33 = vadd.f32 %v1158_v31, %v1045_v29  ;;  %v1160_v36 = vpop.f32.mrb[7].mxu0  ;;  %v406_v22 = vld [vmem:[#allocation2 + $0x88] sm:$0xff]  ;;  %v408_v31 = vld [vmem:[#allocation2 + $0x98] sm:$0xff] }
 0x160   : > { %v1228_v37 = vadd.f32 %v1157_v28, %v394_v26  ;;  %v1161_v38 = vadd.f32 %v1160_v36, %v1047_v34  ;;  %v407_v26 = vld [vmem:[#allocation2 + $0x90] sm:$0xff] }
 0x161   : > { %1259 = vst [vmem:[#allocation2 + $0x20] sm:$0xff] %v1227_v32  ;;  %v1229_v39 = vadd.f32 %v1159_v33, %v395_v30 }
 0x162   : > { %1260 = vst [vmem:[#allocation2 + $0x28] sm:$0xff] %v1228_v37  ;;  %v1230_v40 = vadd.f32 %v1161_v38, %v396_v35  ;;  %v409_v38 = vld [vmem:[#allocation2 + $0xa0] sm:$0xff] }
 0x163   : > { %1261 = vst [vmem:[#allocation2 + $0x30] sm:$0xff] %v1229_v39  ;;  %v1051_v41 = vpop.f32.mrb[8].mxu1 }
 0x164   : > { %1262 = vst [vmem:[#allocation2 + $0x38] sm:$0xff] %v1230_v40  ;;  %v1164_v43 = vpop.f32.mrb[8].mxu0  ;;  %v1053_v45 = vpop.f32.mrb[9].mxu1 }
 0x165   : > { %v1165_v44 = vadd.f32 %v1164_v43, %v1051_v41  ;;  %v1166_v47 = vpop.f32.mrb[9].mxu0  ;;  %v1055_v49 = vpop.f32.mrb[10].mxu1 }
 0x166   : > { %v1167_v48 = vadd.f32 %v1166_v47, %v1053_v45  ;;  %v1168_v51 = vpop.f32.mrb[10].mxu0  ;;  %v1057_v54 = vpop.f32.mrb[11].mxu1 }
 0x167   : > { %v1231_v52 = vadd.f32 %v1165_v44, %v397_v42  ;;  %v1169_v53 = vadd.f32 %v1168_v51, %v1055_v49  ;;  %v1170_v56 = vpop.f32.mrb[11].mxu0  ;;  %v410_v42 = vld [vmem:[#allocation2 + $0xa8] sm:$0xff]  ;;  %v412_v51 = vld [vmem:[#allocation2 + $0xb8] sm:$0xff] }
 0x168   : > { %v1232_v57 = vadd.f32 %v1167_v48, %v398_v46  ;;  %v1171_v58 = vadd.f32 %v1170_v56, %v1057_v54  ;;  %v411_v46 = vld [vmem:[#allocation2 + $0xb0] sm:$0xff] }
 0x169   : > { %1263 = vst [vmem:[#allocation2 + $0x40] sm:$0xff] %v1231_v52  ;;  %v1233_v59 = vadd.f32 %v1169_v53, %v399_v50 }
 0x16a   : > { %1264 = vst [vmem:[#allocation2 + $0x48] sm:$0xff] %v1232_v57  ;;  %v1234_v60 = vadd.f32 %v1171_v58, %v400_v55  ;;  %v413_v58 = vld [vmem:[#allocation2 + $0xc0] sm:$0xff] }
 0x16b   : > { %1265 = vst [vmem:[#allocation2 + $0x50] sm:$0xff] %v1233_v59  ;;  %v1061_v61 = vpop.f32.mrb[12].mxu1 }
 0x16c   : > { %1266 = vst [vmem:[#allocation2 + $0x58] sm:$0xff] %v1234_v60  ;;  %v1174_v63 = vpop.f32.mrb[12].mxu0  ;;  %v1063_v1 = vpop.f32.mrb[13].mxu1 }
 0x16d   : > { %v1175_v0 = vadd.f32 %v1174_v63, %v1061_v61  ;;  %v1176_v3 = vpop.f32.mrb[13].mxu0  ;;  %v1065_v5 = vpop.f32.mrb[14].mxu1 }
 0x16e   : > { %v1177_v4 = vadd.f32 %v1176_v3, %v1063_v1  ;;  %v1178_v7 = vpop.f32.mrb[14].mxu0  ;;  %v1067_v10 = vpop.f32.mrb[15].mxu1 }
 0x16f   : > { %v1235_v8 = vadd.f32 %v1175_v0, %v401_v62  ;;  %v1179_v9 = vadd.f32 %v1178_v7, %v1065_v5  ;;  %v1180_v12 = vpop.f32.mrb[15].mxu0  ;;  %v414_v62 = vld [vmem:[#allocation2 + $0xc8] sm:$0xff]  ;;  %v416_v7 = vld [vmem:[#allocation2 + $0xd8] sm:$0xff] }
 0x170   : > { %v1236_v13 = vadd.f32 %v1177_v4, %v402_v2  ;;  %v1181_v14 = vadd.f32 %v1180_v12, %v1067_v10  ;;  %v415_v2 = vld [vmem:[#allocation2 + $0xd0] sm:$0xff] }
 0x171   : > { %1267 = vst [vmem:[#allocation2 + $0x60] sm:$0xff] %v1235_v8  ;;  %v1237_v15 = vadd.f32 %v1179_v9, %v403_v6 }
 0x172   : > { %1268 = vst [vmem:[#allocation2 + $0x68] sm:$0xff] %v1236_v13  ;;  %v1238_v16 = vadd.f32 %v1181_v14, %v404_v11  ;;  %v417_v14 = vld [vmem:[#allocation2 + $0xe0] sm:$0xff] }
 0x173   : > { %1269 = vst [vmem:[#allocation2 + $0x70] sm:$0xff] %v1237_v15  ;;  %v1071_v17 = vpop.f32.mrb[16].mxu1 }
 0x174   : > { %1270 = vst [vmem:[#allocation2 + $0x78] sm:$0xff] %v1238_v16  ;;  %v1184_v19 = vpop.f32.mrb[16].mxu0  ;;  %v1073_v21 = vpop.f32.mrb[17].mxu1 }
 0x175   : > { %v1185_v20 = vadd.f32 %v1184_v19, %v1071_v17  ;;  %v1186_v23 = vpop.f32.mrb[17].mxu0  ;;  %v1075_v25 = vpop.f32.mrb[18].mxu1 }
 0x176   : > { %v1187_v24 = vadd.f32 %v1186_v23, %v1073_v21  ;;  %v1188_v27 = vpop.f32.mrb[18].mxu0  ;;  %v1077_v30 = vpop.f32.mrb[19].mxu1 }
 0x177   : > { %v1239_v28 = vadd.f32 %v1185_v20, %v405_v18  ;;  %v1189_v29 = vadd.f32 %v1188_v27, %v1075_v25  ;;  %v1190_v32 = vpop.f32.mrb[19].mxu0  ;;  %v418_v18 = vld [vmem:[#allocation2 + $0xe8] sm:$0xff]  ;;  %v420_v27 = vld [vmem:[#allocation2 + $0xf8] sm:$0xff] }
 0x178   : > { %v1240_v33 = vadd.f32 %v1187_v24, %v406_v22  ;;  %v1191_v34 = vadd.f32 %v1190_v32, %v1077_v30  ;;  %v419_v22 = vld [vmem:[#allocation2 + $0xf0] sm:$0xff] }
 0x179   : > { %1271 = vst [vmem:[#allocation2 + $0x80] sm:$0xff] %v1239_v28  ;;  %v1241_v35 = vadd.f32 %v1189_v29, %v407_v26 }
 0x17a   : > { %1272 = vst [vmem:[#allocation2 + $0x88] sm:$0xff] %v1240_v33  ;;  %v1242_v36 = vadd.f32 %v1191_v34, %v408_v31  ;;  %v1325_v33 = vlaneseq (!%p1663_p11) }
 0x17b   : > { %1273 = vst [vmem:[#allocation2 + $0x90] sm:$0xff] %v1241_v35  ;;  %v1081_v37 = vpop.f32.mrb[20].mxu1  ;;  %v1323_v35 = vld [vmem:[%s2320_s2] sm:$0x3] (!%p1663_p11) }
 0x17c   : > { %1274 = vst [vmem:[#allocation2 + $0x98] sm:$0xff] %v1242_v36  ;;  %v1194_v39 = vpop.f32.mrb[20].mxu0  ;;  %v1083_v41 = vpop.f32.mrb[21].mxu1  ;;  %v1326_v34 = vshrl.u32 (!%p1663_p11), %v1325_v33, 7  ;;  %v1291_v36 = vld [vmem:[#allocation2] sm:$0xff] (!%p1663_p11) }
 0x17d   : > { %v1195_v40 = vadd.f32 %v1194_v39, %v1081_v37  ;;  %v1196_v43 = vpop.f32.mrb[21].mxu0  ;;  %v1085_v45 = vpop.f32.mrb[22].mxu1 }
 0x17e   : > { %v1197_v44 = vadd.f32 %v1196_v43, %v1083_v41  ;;  %v1198_v47 = vpop.f32.mrb[22].mxu0  ;;  %v1087_v50 = vpop.f32.mrb[23].mxu1  ;;  %v1327_v37 = vsub.s32 (!%p1663_p11), 0, %v1326_v34  ;;  %v1331_v39 = vsub.s32 (!%p1663_p11), 1, %v1326_v34  ;;  %v1294_v41 = vld [vmem:[#allocation2 + $0x18] sm:$0xff] (!%p1663_p11) }
 0x17f   : > { %v1243_v48 = vadd.f32 %v1195_v40, %v409_v38  ;;  %v1199_v49 = vadd.f32 %v1198_v47, %v1085_v45  ;;  %v1200_v52 = vpop.f32.mrb[23].mxu0  ;;  %v1292_v38 = vld [vmem:[#allocation2 + $0x8] sm:$0xff] (!%p1663_p11)  ;;  %v1293_v40 = vld [vmem:[#allocation2 + $0x10] sm:$0xff] (!%p1663_p11)  ;;  %v1298_v47 = vld [vmem:[#allocation2 + $0x38] sm:$0xff] (!%p1663_p11) }
 0x180   : > { %v1244_v53 = vadd.f32 %v1197_v44, %v410_v42  ;;  %v1201_v54 = vadd.f32 %v1200_v52, %v1087_v50  ;;  %v1295_v42 = vld [vmem:[#allocation2 + $0x20] sm:$0xff] (!%p1663_p11)  ;;  %v2171_v43 = vrot.slane (!%p1663_p11), %v1323_v35, %v1327_v37  ;;  %v2173_v44 = vrot.slane (!%p1663_p11), %v1323_v35, %v1331_v39  ;;  %v1296_v45 = vld [vmem:[#allocation2 + $0x28] sm:$0xff] (!%p1663_p11) }
 0x181   : > { %1275 = vst [vmem:[#allocation2 + $0xa0] sm:$0xff] %v1243_v48  ;;  %v1245_v55 = vadd.f32 %v1199_v49, %v411_v46  ;;  %v1297_v46 = vld [vmem:[#allocation2 + $0x30] sm:$0xff] (!%p1663_p11)  ;;  %v1299_v52 = vld [vmem:[#allocation2 + $0x40] sm:$0xff] (!%p1663_p11) }
 0x182   : > { %1276 = vst [vmem:[#allocation2 + $0xa8] sm:$0xff] %v1244_v53  ;;  %v1246_v56 = vadd.f32 %v1201_v54, %v412_v51  ;;  %v1335_v48 = vadd.f32 (!%p1663_p11), %v2171_v43, %v1291_v36  ;;  %v1336_v49 = vadd.f32 (!%p1663_p11), %v2173_v44, %v1292_v38  ;;  %v1337_v50 = vadd.f32 (!%p1663_p11), %v2171_v43, %v1293_v40  ;;  %v1300_v53 = vld [vmem:[#allocation2 + $0x48] sm:$0xff] (!%p1663_p11)  ;;  %v1301_v54 = vld [vmem:[#allocation2 + $0x50] sm:$0xff] (!%p1663_p11) }
 0x183   : > { %1277 = vst [vmem:[#allocation2 + $0xb0] sm:$0xff] %v1245_v55  ;;  %v1091_v57 = vpop.f32.mrb[24].mxu1  ;;  %v1338_v51 = vadd.f32 (!%p1663_p11), %v2173_v44, %v1294_v41  ;;  %v1339_v55 = vadd.f32 (!%p1663_p11), %v2171_v43, %v1295_v42 }
 0x184   : > { %1278 = vst [vmem:[#allocation2 + $0xb8] sm:$0xff] %v1246_v56  ;;  %v1204_v59 = vpop.f32.mrb[24].mxu0  ;;  %v1093_v61 = vpop.f32.mrb[25].mxu1  ;;  %v1340_v56 = vadd.f32 (!%p1663_p11), %v2173_v44, %v1296_v45 }
 0x185   : > { %v1205_v60 = vadd.f32 %v1204_v59, %v1091_v57  ;;  %v1206_v63 = vpop.f32.mrb[25].mxu0  ;;  %v1095_v1 = vpop.f32.mrb[26].mxu1  ;;  %v1341_v57 = vadd.f32 (!%p1663_p11), %v2171_v43, %v1297_v46  ;;  %v1302_v59 = vld [vmem:[#allocation2 + $0x58] sm:$0xff] (!%p1663_p11) }
 0x186   : > { %v1207_v0 = vadd.f32 %v1206_v63, %v1093_v61  ;;  %v1208_v3 = vpop.f32.mrb[26].mxu0  ;;  %v1097_v6 = vpop.f32.mrb[27].mxu1  ;;  %v1304_v61 = vld [vmem:[#allocation2 + $0x68] sm:$0xff] (!%p1663_p11)  ;;  %v1368_v63 = vmax.f32 (!%p1663_p11), %v1336_v49, 0.0 }
 0x187   : > { %v1247_v4 = vadd.f32 %v1205_v60, %v413_v58  ;;  %v1209_v5 = vadd.f32 %v1208_v3, %v1095_v1  ;;  %v1210_v8 = vpop.f32.mrb[27].mxu0  ;;  %v1342_v58 = vadd.f32 (!%p1663_p11), %v2173_v44, %v1298_v47  ;;  %v1303_v60 = vld [vmem:[#allocation2 + $0x60] sm:$0xff] (!%p1663_p11)  ;;  %v1370_v1 = vmax.f32 (!%p1663_p11), %v1338_v51, 0.0  ;;  %v1306_v3 = vld [vmem:[#allocation2 + $0x78] sm:$0xff] (!%p1663_p11) }
 0x188   : > { %v1248_v9 = vadd.f32 %v1207_v0, %v414_v62  ;;  %v1211_v10 = vadd.f32 %v1210_v8, %v1097_v6  ;;  %v1367_v62 = vmax.f32 (!%p1663_p11), %v1335_v48, 0.0  ;;  %v1369_v0 = vmax.f32 (!%p1663_p11), %v1337_v50, 0.0  ;;  %1400 = vst [vmem:[%s2321_s3 + $0x8] sm:$0xff] (!%p1663_p11), %v1368_v63 }
 0x189   : > { %1279 = vst [vmem:[#allocation2 + $0xc0] sm:$0xff] %v1247_v4  ;;  %v1249_v11 = vadd.f32 %v1209_v5, %v415_v2  ;;  %v1305_v2 = vld [vmem:[#allocation2 + $0x70] sm:$0xff] (!%p1663_p11)  ;;  %v1371_v4 = vmax.f32 (!%p1663_p11), %v1339_v55, 0.0  ;;  %v1372_v5 = vmax.f32 (!%p1663_p11), %v1340_v56, 0.0  ;;  %v1373_v6 = vmax.f32 (!%p1663_p11), %v1341_v57, 0.0  ;;  %1402 = vst [vmem:[%s2321_s3 + $0x18] sm:$0xff] (!%p1663_p11), %v1370_v1 }
 0x18a   : > { %1280 = vst [vmem:[#allocation2 + $0xc8] sm:$0xff] %v1248_v9  ;;  %v1250_v12 = vadd.f32 %v1211_v10, %v416_v7  ;;  %v1374_v7 = vmax.f32 (!%p1663_p11), %v1342_v58, 0.0  ;;  %1399 = vst [vmem:[%s2321_s3] sm:$0xff] (!%p1663_p11), %v1367_v62  ;;  %v1343_v8 = vadd.f32 (!%p1663_p11), %v2171_v43, %v1299_v52  ;;  %v1344_v9 = vadd.f32 (!%p1663_p11), %v2173_v44, %v1300_v53 }
 0x18b   : > { %1281 = vst [vmem:[#allocation2 + $0xd0] sm:$0xff] %v1249_v11  ;;  %v1101_v13 = vpop.f32.mrb[28].mxu1  ;;  %1401 = vst [vmem:[%s2321_s3 + $0x10] sm:$0xff] (!%p1663_p11), %v1369_v0  ;;  %v1345_v10 = vadd.f32 (!%p1663_p11), %v2171_v43, %v1301_v54  ;;  %v1346_v11 = vadd.f32 (!%p1663_p11), %v2173_v44, %v1302_v59 }
 0x18c   : > { %1282 = vst [vmem:[#allocation2 + $0xd8] sm:$0xff] %v1250_v12  ;;  %v1214_v15 = vpop.f32.mrb[28].mxu0  ;;  %v1103_v17 = vpop.f32.mrb[29].mxu1  ;;  %v1307_v12 = vld [vmem:[#allocation2 + $0x80] sm:$0xff] (!%p1663_p11)  ;;  %1403 = vst [vmem:[%s2321_s3 + $0x20] sm:$0xff] (!%p1663_p11), %v1371_v4 }
 0x18d   : > { %v1215_v16 = vadd.f32 %v1214_v15, %v1101_v13  ;;  %v1216_v19 = vpop.f32.mrb[29].mxu0  ;;  %v1105_v21 = vpop.f32.mrb[30].mxu1  ;;  %v1308_v13 = vld [vmem:[#allocation2 + $0x88] sm:$0xff] (!%p1663_p11)  ;;  %1404 = vst [vmem:[%s2321_s3 + $0x28] sm:$0xff] (!%p1663_p11), %v1372_v5  ;;  %1405 = vst [vmem:[%s2321_s3 + $0x30] sm:$0xff] (!%p1663_p11), %v1373_v6  ;;  %v1347_v15 = vadd.f32 (!%p1663_p11), %v2171_v43, %v1303_v60 }
 0x18e   : > { %v1217_v20 = vadd.f32 %v1216_v19, %v1103_v17  ;;  %v1218_v23 = vpop.f32.mrb[30].mxu0  ;;  %v1107_v26 = vpop.f32.mrb[31].mxu1  ;;  %1290 = sbr.rel (%p1663_p11) target bundleno = 417 (0x1a1), region = 63  ;;  %1406 = vst [vmem:[%s2321_s3 + $0x38] sm:$0xff] (!%p1663_p11), %v1374_v7  ;;  %v1349_v17 = vadd.f32 (!%p1663_p11), %v2171_v43, %v1305_v2  ;;  %v1310_v19 = vld [vmem:[#allocation2 + $0x98] sm:$0xff] (!%p1663_p11)  ;;  %v1352_v33 = vadd.f32 (!%p1663_p11), %v2173_v44, %v1308_v13 }
 0x18f   : > { %v1251_v24 = vadd.f32 %v1215_v16, %v417_v14  ;;  %v1219_v25 = vadd.f32 %v1218_v23, %v1105_v21  ;;  %v1220_v28 = vpop.f32.mrb[31].mxu0  ;;  %v1309_v14 = vld [vmem:[#allocation2 + $0x90] sm:$0xff] (!%p1663_p11)  ;;  %v1348_v16 = vadd.f32 (!%p1663_p11), %v2173_v44, %v1304_v61  ;;  %v1312_v21 = vld [vmem:[#allocation2 + $0xa8] sm:$0xff] (!%p1663_p11)  ;;  %v1376_v23 = vmax.f32 (!%p1663_p11), %v1344_v9, 0.0 }
 0x190   : > { %v1252_v29 = vadd.f32 %v1217_v20, %v418_v18  ;;  %v1221_v30 = vadd.f32 %v1220_v28, %v1107_v26  ;;  %v1350_v18 = vadd.f32 (!%p1663_p11), %v2173_v44, %v1306_v3  ;;  %v1311_v20 = vld [vmem:[#allocation2 + $0xa0] sm:$0xff] (!%p1663_p11)  ;;  %v1313_v26 = vld [vmem:[#allocation2 + $0xb0] sm:$0xff] (!%p1663_p11)  ;;  %v1379_v28 = vmax.f32 (!%p1663_p11), %v1347_v15, 0.0 }
 0x191   : > { %1283 = vst [vmem:[#allocation2 + $0xe0] sm:$0xff] %v1251_v24  ;;  %v1253_v31 = vadd.f32 %v1219_v25, %v419_v22  ;;  %v1375_v22 = vmax.f32 (!%p1663_p11), %v1343_v8, 0.0  ;;  %v1377_v24 = vmax.f32 (!%p1663_p11), %v1345_v10, 0.0  ;;  %v1378_v25 = vmax.f32 (!%p1663_p11), %v1346_v11, 0.0  ;;  %1408 = vst [vmem:[%s2321_s3 + $0x48] sm:$0xff] (!%p1663_p11), %v1376_v23  ;;  %v1315_v36 = vld [vmem:[#allocation2 + $0xc0] sm:$0xff] (!%p1663_p11) }
 0x192   : > { %1284 = vst [vmem:[#allocation2 + $0xe8] sm:$0xff] %v1252_v29  ;;  %v1254_v32 = vadd.f32 %v1221_v30, %v420_v27  ;;  %v1314_v27 = vld [vmem:[#allocation2 + $0xb8] sm:$0xff] (!%p1663_p11)  ;;  %v1380_v29 = vmax.f32 (!%p1663_p11), %v1348_v16, 0.0  ;;  %v1381_v30 = vmax.f32 (!%p1663_p11), %v1349_v17, 0.0  ;;  %v1353_v34 = vadd.f32 (!%p1663_p11), %v2171_v43, %v1309_v14  ;;  %v1316_v37 = vld [vmem:[#allocation2 + $0xc8] sm:$0xff] (!%p1663_p11)  ;;  %v1317_v38 = vld [vmem:[#allocation2 + $0xd0] sm:$0xff] (!%p1663_p11) }
 0x193   : > { %1285 = vst [vmem:[#allocation2 + $0xf0] sm:$0xff] %v1253_v31  ;;  %v1382_v31 = vmax.f32 (!%p1663_p11), %v1350_v18, 0.0  ;;  %1407 = vst [vmem:[%s2321_s3 + $0x40] sm:$0xff] (!%p1663_p11), %v1375_v22  ;;  %v1354_v35 = vadd.f32 (!%p1663_p11), %v2173_v44, %v1310_v19  ;;  %v1355_v39 = vadd.f32 (!%p1663_p11), %v2171_v43, %v1311_v20  ;;  %v1356_v40 = vadd.f32 (!%p1663_p11), %v2173_v44, %v1312_v21  ;;  %v1318_v45 = vld [vmem:[#allocation2 + $0xd8] sm:$0xff] (!%p1663_p11) }
 0x194   : > { %1286 = vst [vmem:[#allocation2 + $0xf8] sm:$0xff] %v1254_v32  ;;  %1409 = vst [vmem:[%s2321_s3 + $0x50] sm:$0xff] (!%p1663_p11), %v1377_v24  ;;  %v1351_v32 = vadd.f32 (!%p1663_p11), %v2171_v43, %v1307_v12  ;;  %v1357_v41 = vadd.f32 (!%p1663_p11), %v2171_v43, %v1313_v26  ;;  %v1358_v42 = vadd.f32 (!%p1663_p11), %v2173_v44, %v1314_v27  ;;  %v1384_v49 = vmax.f32 (!%p1663_p11), %v1352_v33, 0.0 }
 0x195   : > { %1410 = vst [vmem:[%s2321_s3 + $0x58] sm:$0xff] %v1378_v25  ;;  %1411 = vst [vmem:[%s2321_s3 + $0x60] sm:$0xff] %v1379_v28  ;;  %v1385_v50 = vmax.f32 %v1353_v34, 0.0  ;;  %v1386_v51 = vmax.f32 %v1354_v35, 0.0  ;;  %v1387_v54 = vmax.f32 %v1355_v39, 0.0  ;;  %v1388_v55 = vmax.f32 %v1356_v40, 0.0 }
 0x196   : > { %1412 = vst [vmem:[%s2321_s3 + $0x68] sm:$0xff] %v1380_v29  ;;  %1413 = vst [vmem:[%s2321_s3 + $0x70] sm:$0xff] %v1381_v30  ;;  %v1383_v48 = vmax.f32 %v1351_v32, 0.0  ;;  %v1389_v56 = vmax.f32 %v1357_v41, 0.0  ;;  %v1390_v57 = vmax.f32 %v1358_v42, 0.0  ;;  %v1359_v58 = vadd.f32 %v2171_v43, %v1315_v36 }
 0x197   : > { %1414 = vst [vmem:[%s2321_s3 + $0x78] sm:$0xff] %v1382_v31  ;;  %1416 = vst [vmem:[%s2321_s3 + $0x88] sm:$0xff] %v1384_v49  ;;  %v1360_v59 = vadd.f32 %v2173_v44, %v1316_v37  ;;  %v1361_v60 = vadd.f32 %v2171_v43, %v1317_v38  ;;  %v1362_v61 = vadd.f32 %v2173_v44, %v1318_v45 }
 0x198   : > { %v1319_v46 = vld [vmem:[#allocation2 + $0xe0] sm:$0xff]  ;;  %1415 = vst [vmem:[%s2321_s3 + $0x80] sm:$0xff] %v1383_v48  ;;  %1417 = vst [vmem:[%s2321_s3 + $0x90] sm:$0xff] %v1385_v50  ;;  %v1391_v2 = vmax.f32 %v1359_v58, 0.0 }
 0x199   : > { %v1320_v47 = vld [vmem:[#allocation2 + $0xe8] sm:$0xff]  ;;  %1418 = vst [vmem:[%s2321_s3 + $0x98] sm:$0xff] %v1386_v51  ;;  %1419 = vst [vmem:[%s2321_s3 + $0xa0] sm:$0xff] %v1387_v54  ;;  %v1363_v62 = vadd.f32 %v2171_v43, %v1319_v46  ;;  %v1392_v3 = vmax.f32 %v1360_v59, 0.0  ;;  %v1393_v4 = vmax.f32 %v1361_v60, 0.0  ;;  %v1394_v5 = vmax.f32 %v1362_v61, 0.0 }
 0x19a   : > { %v1321_v52 = vld [vmem:[#allocation2 + $0xf0] sm:$0xff]  ;;  %1420 = vst [vmem:[%s2321_s3 + $0xa8] sm:$0xff] %v1388_v55  ;;  %1421 = vst [vmem:[%s2321_s3 + $0xb0] sm:$0xff] %v1389_v56  ;;  %v1364_v63 = vadd.f32 %v2173_v44, %v1320_v47 }
 0x19b   : > { %v1322_v53 = vld [vmem:[#allocation2 + $0xf8] sm:$0xff]  ;;  %1422 = vst [vmem:[%s2321_s3 + $0xb8] sm:$0xff] %v1390_v57  ;;  %v1365_v0 = vadd.f32 %v2171_v43, %v1321_v52  ;;  %v1395_v6 = vmax.f32 %v1363_v62, 0.0  ;;  %1423 = vst [vmem:[%s2321_s3 + $0xc0] sm:$0xff] %v1391_v2 }
 0x19c   : > { %v1366_v1 = vadd.f32 %v2173_v44, %v1322_v53  ;;  %v1396_v7 = vmax.f32 %v1364_v63, 0.0  ;;  %1424 = vst [vmem:[%s2321_s3 + $0xc8] sm:$0xff] %v1392_v3  ;;  %1425 = vst [vmem:[%s2321_s3 + $0xd0] sm:$0xff] %v1393_v4 }
 0x19d   : > { %v1397_v8 = vmax.f32 %v1365_v0, 0.0  ;;  %1426 = vst [vmem:[%s2321_s3 + $0xd8] sm:$0xff] %v1394_v5  ;;  %1427 = vst [vmem:[%s2321_s3 + $0xe0] sm:$0xff] %v1395_v6 }
 0x19e   : > { %v1398_v9 = vmax.f32 %v1366_v1, 0.0  ;;  %1428 = vst [vmem:[%s2321_s3 + $0xe8] sm:$0xff] %v1396_v7 }
 0x19f   : > { %1429 = vst [vmem:[%s2321_s3 + $0xf0] sm:$0xff] %v1397_v8 }
 0x1a0   : > { %1430 = vst [vmem:[%s2321_s3 + $0xf8] sm:$0xff] %v1398_v9 }
 0x1a1 PF: > { %s13_s16 = sadd.s32 1, %s1925_s16   ;;  %s2322_s12 = smov %s1913_s13 }
 0x1a2   : > { %p10_p12 = scmp.ge.s32.totalorder %s13_s16, 8   ;;  %s2323_s13 = smov %s1983_s20 }
 0x1a3   : > { %s2324_s14 = smov %s1921_s15  ;;  %s2325_s15 = smov %s2327_s17 }
 0x1a4   :  { %12 = sbr.rel (!%p10_p12) target bundleno = 3 (0x3), region = 104 }

// kernel: forward.58
= control target key start
LH: loop header
LB: loop body
LE: loop exit
PB: predicated region body
PF: predicated region fallthrough
CT: control target
= control target key end

     0   :  { %s1948_s12 = smov 0   ;;  %s1950_s13 = smov 0   ;;  %s2318_s0 = inlined_call_operand.vmem [shape: bf16[128,2560], index: 0, kind: input, shape index: {}]   ;;  %s2319_s1 = inlined_call_operand.vmem [shape: bf16[2560,256], index: 1, kind: input, shape index: {}]   ;;  %s2320_s2 = inlined_call_operand.vmem [shape: f32[1,256], index: 2, kind: input, shape index: {}]   ;;  %s2321_s3 = inlined_call_operand.vmem [shape: f32[128,256], index: 3, kind: output, shape index: {}]  }
   0x1   :  { %s1952_s14 = smov 0   ;;  %s1954_s15 = smov 0  }
   0x2   :  { %s1956_s16 = smov 0  }
   0x3 LB: > { %s25_s17 = sadd.s32 1, %s1921_s15  ;;  %p48_p1 = scmp.ne.s32.totalorder %s1913_s13, %s1909_s12  ;;  %s1925_s16 = sphi %s1956_s16, %s13_s16   ;;  %s1921_s15 = sphi %s1954_s15, %s2325_s15   ;;  %s1917_s14 = sphi %s1952_s14, %s2324_s14   ;;  %s1913_s13 = sphi %s1950_s13, %s2323_s13   ;;  %s1909_s12 = sphi %s1948_s12, %s2322_s12  }
   0x4   : > { %p26_p0 = scmp.ge.s32.totalorder %s25_s17, 5  ;;  %p49_p2 = scmp.eq.s32.totalorder %s1925_s16, 0 }
   0x5   : > { %s41_s19 = sadd.s32 1, %s1913_s13  ;;  %p1557_p5 = scmp.ge.s32.totalorder %s1925_s16, 5 }
   0x6   : > { %s2327_s17 = smov (%p26_p0, %s25_s17), 0  ;;  %p50_p3 = por %p49_p2, %p48_p1 }
   0x7   : > { %s37_s18 = ssub.s32 %s1921_s15, %s2327_s17  ;;  %164 = sbr.rel (%p1557_p5) target bundleno = 34 (0x22), region = 20 }
   0x8   : > { %p39_p4 = scmp.eq.s32.totalorder %s37_s18, 0 }
   0xa   : > { %s1983_s20 = scalar_select %p39_p4, %s1913_s13, %s41_s19  }
   0xe   : > { %167 = sbr.rel (!%p50_p3) target bundleno = 34 (0x22), region = 24  ;;  %s169_s21 = sand.u32 (%p50_p3), 1, %s1913_s13  }
   0xf   : > { %s1668_s22 = sshll.u32 (%p50_p3), %s1921_s15, 4  ;;  %s1558_s23 = sshll.u32 (%p50_p3), %s169_s21, 8 }
  0x10   : > { %s1991_s26 = scalar_lea.vmem (%p50_p3), %s2318_s0, %s1668_s22  ;;  %s1996_s27 = scalar_lea.vmem (%p50_p3), [#allocation3], %s1558_s23 }
  0x11   : > { %v190_v0 = vld [vmem:[%s1991_s26] sm:$0xff] (%p50_p3)  ;;  %v192_v1 = vld [vmem:[%s1991_s26 + $0x8] sm:$0xff] (%p50_p3)  ;;  %v194_v2 = vld [vmem:[%s1991_s26 + $0x50] sm:$0xff] (%p50_p3) }
  0x12   : > { %191 = vst [vmem:[%s1996_s27] sm:$0xff] (%p50_p3), %v190_v0  ;;  %193 = vst [vmem:[%s1996_s27 + $0x8] sm:$0xff] (%p50_p3), %v192_v1  ;;  %v196_v3 = vld [vmem:[%s1991_s26 + $0x58] sm:$0xff] (%p50_p3)  ;;  %v198_v4 = vld [vmem:[%s1991_s26 + $0xa0] sm:$0xff] (%p50_p3) }
  0x13   : > { %195 = vst [vmem:[%s1996_s27 + $0x10] sm:$0xff] (%p50_p3), %v194_v2  ;;  %v200_v5 = vld [vmem:[%s1991_s26 + $0xa8] sm:$0xff] (%p50_p3)  ;;  %197 = vst [vmem:[%s1996_s27 + $0x18] sm:$0xff] (%p50_p3), %v196_v3  ;;  %v202_v6 = vld [vmem:[%s1991_s26 + $0xf0] sm:$0xff] (%p50_p3) }
  0x14   : > { %199 = vst [vmem:[%s1996_s27 + $0x20] sm:$0xff] (%p50_p3), %v198_v4  ;;  %201 = vst [vmem:[%s1996_s27 + $0x28] sm:$0xff] (%p50_p3), %v200_v5  ;;  %v204_v7 = vld [vmem:[%s1991_s26 + $0xf8] sm:$0xff] (%p50_p3)  ;;  %v206_v8 = vld [vmem:[%s1991_s26 + $0x140] sm:$0xff] (%p50_p3) }
  0x15   : > { %203 = vst [vmem:[%s1996_s27 + $0x30] sm:$0xff] %v202_v6  ;;  %205 = vst [vmem:[%s1996_s27 + $0x38] sm:$0xff] %v204_v7  ;;  %v208_v9 = vld [vmem:[%s1991_s26 + $0x148] sm:$0xff]  ;;  %v210_v10 = vld [vmem:[%s1991_s26 + $0x190] sm:$0xff] }
  0x16   : > { %207 = vst [vmem:[%s1996_s27 + $0x40] sm:$0xff] %v206_v8  ;;  %v212_v11 = vld [vmem:[%s1991_s26 + $0x198] sm:$0xff]  ;;  %209 = vst [vmem:[%s1996_s27 + $0x48] sm:$0xff] %v208_v9  ;;  %v214_v12 = vld [vmem:[%s1991_s26 + $0x1e0] sm:$0xff] }
  0x17   : > { %211 = vst [vmem:[%s1996_s27 + $0x50] sm:$0xff] %v210_v10  ;;  %213 = vst [vmem:[%s1996_s27 + $0x58] sm:$0xff] %v212_v11  ;;  %v216_v13 = vld [vmem:[%s1991_s26 + $0x1e8] sm:$0xff]  ;;  %v218_v14 = vld [vmem:[%s1991_s26 + $0x230] sm:$0xff] }
  0x18   : > { %215 = vst [vmem:[%s1996_s27 + $0x60] sm:$0xff] %v214_v12  ;;  %217 = vst [vmem:[%s1996_s27 + $0x68] sm:$0xff] %v216_v13  ;;  %v220_v15 = vld [vmem:[%s1991_s26 + $0x238] sm:$0xff]  ;;  %v222_v16 = vld [vmem:[%s1991_s26 + $0x280] sm:$0xff] }
  0x19   : > { %219 = vst [vmem:[%s1996_s27 + $0x70] sm:$0xff] %v218_v14  ;;  %v224_v17 = vld [vmem:[%s1991_s26 + $0x288] sm:$0xff]  ;;  %221 = vst [vmem:[%s1996_s27 + $0x78] sm:$0xff] %v220_v15  ;;  %v226_v18 = vld [vmem:[%s1991_s26 + $0x2d0] sm:$0xff] }
  0x1a   : > { %223 = vst [vmem:[%s1996_s27 + $0x80] sm:$0xff] %v222_v16  ;;  %225 = vst [vmem:[%s1996_s27 + $0x88] sm:$0xff] %v224_v17  ;;  %v228_v19 = vld [vmem:[%s1991_s26 + $0x2d8] sm:$0xff]  ;;  %v230_v20 = vld [vmem:[%s1991_s26 + $0x320] sm:$0xff] }
  0x1b   : > { %227 = vst [vmem:[%s1996_s27 + $0x90] sm:$0xff] %v226_v18  ;;  %229 = vst [vmem:[%s1996_s27 + $0x98] sm:$0xff] %v228_v19  ;;  %v232_v21 = vld [vmem:[%s1991_s26 + $0x328] sm:$0xff]  ;;  %v234_v22 = vld [vmem:[%s1991_s26 + $0x370] sm:$0xff] }
  0x1c   : > { %231 = vst [vmem:[%s1996_s27 + $0xa0] sm:$0xff] %v230_v20  ;;  %v236_v23 = vld [vmem:[%s1991_s26 + $0x378] sm:$0xff]  ;;  %233 = vst [vmem:[%s1996_s27 + $0xa8] sm:$0xff] %v232_v21  ;;  %v238_v24 = vld [vmem:[%s1991_s26 + $0x3c0] sm:$0xff] }
  0x1d   : > { %235 = vst [vmem:[%s1996_s27 + $0xb0] sm:$0xff] %v234_v22  ;;  %237 = vst [vmem:[%s1996_s27 + $0xb8] sm:$0xff] %v236_v23  ;;  %v240_v25 = vld [vmem:[%s1991_s26 + $0x3c8] sm:$0xff]  ;;  %v242_v26 = vld [vmem:[%s1991_s26 + $0x410] sm:$0xff] }
  0x1e   : > { %239 = vst [vmem:[%s1996_s27 + $0xc0] sm:$0xff] %v238_v24  ;;  %241 = vst [vmem:[%s1996_s27 + $0xc8] sm:$0xff] %v240_v25  ;;  %v244_v27 = vld [vmem:[%s1991_s26 + $0x418] sm:$0xff]  ;;  %v246_v28 = vld [vmem:[%s1991_s26 + $0x460] sm:$0xff] }
  0x1f   : > { %243 = vst [vmem:[%s1996_s27 + $0xd0] sm:$0xff] %v242_v26  ;;  %v248_v29 = vld [vmem:[%s1991_s26 + $0x468] sm:$0xff]  ;;  %245 = vst [vmem:[%s1996_s27 + $0xd8] sm:$0xff] %v244_v27  ;;  %v250_v30 = vld [vmem:[%s1991_s26 + $0x4b0] sm:$0xff] }
  0x20   : > { %247 = vst [vmem:[%s1996_s27 + $0xe0] sm:$0xff] %v246_v28  ;;  %249 = vst [vmem:[%s1996_s27 + $0xe8] sm:$0xff] %v248_v29  ;;  %v252_v31 = vld [vmem:[%s1991_s26 + $0x4b8] sm:$0xff] }
  0x21   : > { %251 = vst [vmem:[%s1996_s27 + $0xf0] sm:$0xff] %v250_v30  ;;  %253 = vst [vmem:[%s1996_s27 + $0xf8] sm:$0xff] %v252_v31 }
  0x22 PF: > { %p1561_p6 = scmp.ge.s32.totalorder %s1925_s16, 1  ;;  %p273_p7 = scmp.lt.s32.totalorder %s1925_s16, 6 }
  0x24   : > { %p274_p8 = pnand %p1561_p6, %p273_p7 }
  0x25   : > { %s280_s28 = sand.u32 (!%p274_p8), 1, %s1909_s12   ;;  %s1563_s29 = sshll.u32 (!%p274_p8), %s1917_s14, 6 }
  0x26   : > { %277 = sbr.rel (%p274_p8) target bundleno = 417 (0x1a1), region = 51  ;;  %s1562_s30 = sshll.u32 (!%p274_p8), %s280_s28, 8 }
  0x27   : > { %p326_p9 = scmp.lt.s32.totalorder (!%p274_p8), %s1563_s29, 319  ;;  %s2068_s8 = scalar_lea.vmem (!%p274_p8), [#allocation3], %s1562_s30 }
  0x28   : > { %p1566_p10 = scmp.ne.s32.totalorder (!%p274_p8), %s1917_s14, 0 }
  0x2d   : > { %s2329_s29 = smov (!%p326_p9, %s1563_s29), 319  ;;  %356 = sbr.rel (%p1566_p10) target bundleno = 63 (0x3f), region = 59 }
  0x2e   : > { %s1669_s4 = sshll.u32 %s2329_s29, 3  ;;  %v1927_v32 = vmov (!%p1566_p10), 0.0  }
  0x2f   : > { %s2066_s7 = scalar_lea.vmem %s2319_s1, %s1669_s4  ;;  %357 = vst [vmem:[#allocation2] sm:$0xff] (!%p1566_p10), %v1927_v32  ;;  %358 = vst [vmem:[#allocation2 + $0x8] sm:$0xff] (!%p1566_p10), %v1927_v32 }
  0x30   : > { %359 = vst [vmem:[#allocation2 + $0x10] sm:$0xff] (!%p1566_p10), %v1927_v32  ;;  %360 = vst [vmem:[#allocation2 + $0x18] sm:$0xff] (!%p1566_p10), %v1927_v32 }
  0x31   : > { %361 = vst [vmem:[#allocation2 + $0x20] sm:$0xff] (!%p1566_p10), %v1927_v32  ;;  %362 = vst [vmem:[#allocation2 + $0x28] sm:$0xff] (!%p1566_p10), %v1927_v32 }
  0x32   : > { %363 = vst [vmem:[#allocation2 + $0x30] sm:$0xff] (!%p1566_p10), %v1927_v32  ;;  %364 = vst [vmem:[#allocation2 + $0x38] sm:$0xff] (!%p1566_p10), %v1927_v32 }
  0x33   : > { %365 = vst [vmem:[#allocation2 + $0x40] sm:$0xff] (!%p1566_p10), %v1927_v32  ;;  %366 = vst [vmem:[#allocation2 + $0x48] sm:$0xff] (!%p1566_p10), %v1927_v32 }
  0x34   : > { %367 = vst [vmem:[#allocation2 + $0x50] sm:$0xff] %v1927_v32  ;;  %368 = vst [vmem:[#allocation2 + $0x58] sm:$0xff] %v1927_v32 }
  0x35   : > { %369 = vst [vmem:[#allocation2 + $0x60] sm:$0xff] %v1927_v32  ;;  %370 = vst [vmem:[#allocation2 + $0x68] sm:$0xff] %v1927_v32 }
  0x36   : > { %371 = vst [vmem:[#allocation2 + $0x70] sm:$0xff] %v1927_v32  ;;  %372 = vst [vmem:[#allocation2 + $0x78] sm:$0xff] %v1927_v32 }
  0x37   : > { %373 = vst [vmem:[#allocation2 + $0x80] sm:$0xff] %v1927_v32  ;;  %374 = vst [vmem:[#allocation2 + $0x88] sm:$0xff] %v1927_v32 }
  0x38   : > { %375 = vst [vmem:[#allocation2 + $0x90] sm:$0xff] %v1927_v32  ;;  %376 = vst [vmem:[#allocation2 + $0x98] sm:$0xff] %v1927_v32 }
  0x39   : > { %377 = vst [vmem:[#allocation2 + $0xa0] sm:$0xff] %v1927_v32  ;;  %378 = vst [vmem:[#allocation2 + $0xa8] sm:$0xff] %v1927_v32 }
  0x3a   : > { %379 = vst [vmem:[#allocation2 + $0xb0] sm:$0xff] %v1927_v32  ;;  %380 = vst [vmem:[#allocation2 + $0xb8] sm:$0xff] %v1927_v32 }
  0x3b   : > { %381 = vst [vmem:[#allocation2 + $0xc0] sm:$0xff] %v1927_v32  ;;  %382 = vst [vmem:[#allocation2 + $0xc8] sm:$0xff] %v1927_v32 }
  0x3c   : > { %383 = vst [vmem:[#allocation2 + $0xd0] sm:$0xff] %v1927_v32  ;;  %384 = vst [vmem:[#allocation2 + $0xd8] sm:$0xff] %v1927_v32 }
  0x3d   : > { %385 = vst [vmem:[#allocation2 + $0xe0] sm:$0xff] %v1927_v32  ;;  %386 = vst [vmem:[#allocation2 + $0xe8] sm:$0xff] %v1927_v32 }
  0x3e   : > { %387 = vst [vmem:[#allocation2 + $0xf0] sm:$0xff] %v1927_v32  ;;  %388 = vst [vmem:[#allocation2 + $0xf8] sm:$0xff] %v1927_v32 }
  0x3f PF: > { %v1743_v33 = vld [vmem:[%s2066_s7 + $0x4] ss:$8 sps:$4 sm:$0xff]   ;;  %v1747_v35 = vld [vmem:[%s2066_s7] ss:$8 sps:$4 sm:$0xff]   ;;  %v1749_v37 = vld [vmem:[%s2066_s7 + $0x14] ss:$8 sps:$4 sm:$0xff]  }
  0x40   : > { %v1745_v34 = vld [vmem:[%s2066_s7 + $0x104] ss:$8 sps:$4 sm:$0xff]   ;;  %997 = vmatprep.subr.bf16.mxu1 %v1743_v33  ;;  %v1748_v36 = vld [vmem:[%s2066_s7 + $0x100] ss:$8 sps:$4 sm:$0xff]   ;;  %v1751_v38 = vld [vmem:[%s2066_s7 + $0x114] ss:$8 sps:$4 sm:$0xff]  }
  0x41   : > { %1110 = vmatprep.subr.bf16.mxu0 %v1745_v34  ;;  %998 = vmatpush1.bf16.msra.mxu1 %v1747_v35  ;;  %v1753_v39 = vld [vmem:[%s2066_s7 + $0x10] ss:$8 sps:$4 sm:$0xff]   ;;  %v1755_v41 = vld [vmem:[%s2066_s7 + $0x24] ss:$8 sps:$4 sm:$0xff]   ;;  %v1759_v43 = vld [vmem:[%s2066_s7 + $0x20] ss:$8 sps:$4 sm:$0xff]  }
  0x42   : > { %1111 = vmatpush1.bf16.msra.mxu0 %v1748_v36  ;;  %999 = vmatprep.subr.bf16.mxu1 %v1749_v37  ;;  %v1754_v40 = vld [vmem:[%s2066_s7 + $0x110] ss:$8 sps:$4 sm:$0xff]   ;;  %v1757_v42 = vld [vmem:[%s2066_s7 + $0x124] ss:$8 sps:$4 sm:$0xff]   ;;  %v1760_v44 = vld [vmem:[%s2066_s7 + $0x120] ss:$8 sps:$4 sm:$0xff]  }
  0x43   : > { %1112 = vmatprep.subr.bf16.mxu0 %v1751_v38  ;;  %v1761_v45 = vld [vmem:[%s2066_s7 + $0x34] ss:$8 sps:$4 sm:$0xff]   ;;  %v1765_v47 = vld [vmem:[%s2066_s7 + $0x30] ss:$8 sps:$4 sm:$0xff]   ;;  %v1767_v49 = vld [vmem:[%s2066_s7 + $0x44] ss:$8 sps:$4 sm:$0xff]  }
  0x44   : > { %v1763_v46 = vld [vmem:[%s2066_s7 + $0x134] ss:$8 sps:$4 sm:$0xff]   ;;  %v1766_v48 = vld [vmem:[%s2066_s7 + $0x130] ss:$8 sps:$4 sm:$0xff]   ;;  %v1769_v50 = vld [vmem:[%s2066_s7 + $0x144] ss:$8 sps:$4 sm:$0xff]  }
  0x45   : > { %1000 = vmatpush1.bf16.msra.mxu1 %v1753_v39  ;;  %v1771_v51 = vld [vmem:[%s2066_s7 + $0x40] ss:$8 sps:$4 sm:$0xff]   ;;  %v1773_v53 = vld [vmem:[%s2066_s7 + $0x54] ss:$8 sps:$4 sm:$0xff]   ;;  %v1777_v55 = vld [vmem:[%s2066_s7 + $0x50] ss:$8 sps:$4 sm:$0xff]  }
  0x46   : > { %1113 = vmatpush1.bf16.msra.mxu0 %v1754_v40  ;;  %1001 = vmatprep.subr.bf16.mxu1 %v1755_v41  ;;  %v1772_v52 = vld [vmem:[%s2066_s7 + $0x140] ss:$8 sps:$4 sm:$0xff]   ;;  %v1775_v54 = vld [vmem:[%s2066_s7 + $0x154] ss:$8 sps:$4 sm:$0xff]   ;;  %v1778_v56 = vld [vmem:[%s2066_s7 + $0x150] ss:$8 sps:$4 sm:$0xff]  }
  0x47   : > { %1114 = vmatprep.subr.bf16.mxu0 %v1757_v42  ;;  %v1779_v57 = vld [vmem:[%s2066_s7 + $0x64] ss:$8 sps:$4 sm:$0xff]   ;;  %v1783_v59 = vld [vmem:[%s2066_s7 + $0x60] ss:$8 sps:$4 sm:$0xff]   ;;  %v1785_v61 = vld [vmem:[%s2066_s7 + $0x74] ss:$8 sps:$4 sm:$0xff]  }
  0x48   : > { %v1781_v58 = vld [vmem:[%s2066_s7 + $0x164] ss:$8 sps:$4 sm:$0xff]   ;;  %v1784_v60 = vld [vmem:[%s2066_s7 + $0x160] ss:$8 sps:$4 sm:$0xff]   ;;  %v1787_v62 = vld [vmem:[%s2066_s7 + $0x174] ss:$8 sps:$4 sm:$0xff]  }
  0x49   : > { %1002 = vmatpush1.bf16.msra.mxu1 %v1759_v43  ;;  %v1789_v63 = vld [vmem:[%s2066_s7 + $0x70] ss:$8 sps:$4 sm:$0xff]   ;;  %v1791_v1 = vld [vmem:[%s2066_s7 + $0x84] ss:$8 sps:$4 sm:$0xff]   ;;  %v1795_v3 = vld [vmem:[%s2066_s7 + $0x80] ss:$8 sps:$4 sm:$0xff]  }
  0x4a   : > { %1115 = vmatpush1.bf16.msra.mxu0 %v1760_v44  ;;  %1003 = vmatprep.subr.bf16.mxu1 %v1761_v45  ;;  %v1790_v0 = vld [vmem:[%s2066_s7 + $0x170] ss:$8 sps:$4 sm:$0xff]   ;;  %v1793_v2 = vld [vmem:[%s2066_s7 + $0x184] ss:$8 sps:$4 sm:$0xff]   ;;  %v1796_v4 = vld [vmem:[%s2066_s7 + $0x180] ss:$8 sps:$4 sm:$0xff]  }
  0x4b   : > { %1116 = vmatprep.subr.bf16.mxu0 %v1763_v46  ;;  %v1797_v5 = vld [vmem:[%s2066_s7 + $0x94] ss:$8 sps:$4 sm:$0xff]   ;;  %v1801_v7 = vld [vmem:[%s2066_s7 + $0x90] ss:$8 sps:$4 sm:$0xff]   ;;  %v1803_v9 = vld [vmem:[%s2066_s7 + $0xa4] ss:$8 sps:$4 sm:$0xff]  }
  0x4c   : > { %v1799_v6 = vld [vmem:[%s2066_s7 + $0x194] ss:$8 sps:$4 sm:$0xff]   ;;  %v1802_v8 = vld [vmem:[%s2066_s7 + $0x190] ss:$8 sps:$4 sm:$0xff]   ;;  %v1805_v10 = vld [vmem:[%s2066_s7 + $0x1a4] ss:$8 sps:$4 sm:$0xff]  }
  0x4d   : > { %1004 = vmatpush1.bf16.msra.mxu1 %v1765_v47  ;;  %v1807_v11 = vld [vmem:[%s2066_s7 + $0xa0] ss:$8 sps:$4 sm:$0xff]   ;;  %v1809_v13 = vld [vmem:[%s2066_s7 + $0xb4] ss:$8 sps:$4 sm:$0xff]   ;;  %v1813_v15 = vld [vmem:[%s2066_s7 + $0xb0] ss:$8 sps:$4 sm:$0xff]  }
  0x4e   : > { %1117 = vmatpush1.bf16.msra.mxu0 %v1766_v48  ;;  %1005 = vmatprep.subr.bf16.mxu1 %v1767_v49  ;;  %v1808_v12 = vld [vmem:[%s2066_s7 + $0x1a0] ss:$8 sps:$4 sm:$0xff]   ;;  %v1811_v14 = vld [vmem:[%s2066_s7 + $0x1b4] ss:$8 sps:$4 sm:$0xff]   ;;  %v1814_v16 = vld [vmem:[%s2066_s7 + $0x1b0] ss:$8 sps:$4 sm:$0xff]  }
  0x4f   : > { %1118 = vmatprep.subr.bf16.mxu0 %v1769_v50  ;;  %v1815_v17 = vld [vmem:[%s2066_s7 + $0xc4] ss:$8 sps:$4 sm:$0xff]   ;;  %v1819_v21 = vld [vmem:[%s2066_s7 + $0xc0] ss:$8 sps:$4 sm:$0xff]   ;;  %v1821_v23 = vld [vmem:[%s2066_s7 + $0xd4] ss:$8 sps:$4 sm:$0xff]  }
  0x50   : > { %v1841_v18 = vld [vmem:[%s2068_s8 + $0x4] ss:$16 sps:$4 sm:$0xff]   ;;  %v1844_v20 = vld [vmem:[%s2068_s8 + $0xc] ss:$16 sps:$4 sm:$0xff]   ;;  %v1820_v22 = vld [vmem:[%s2066_s7 + $0x1c0] ss:$8 sps:$4 sm:$0xff]  }
  0x51   : > { %1006 = vmatpush1.bf16.msra.mxu1 %v1771_v51  ;;  %v1817_v19 = vld [vmem:[%s2066_s7 + $0x1c4] ss:$8 sps:$4 sm:$0xff]   ;;  %1029 = vmatprep.mubr.bf16.mxu1 %v1841_v18  ;;  %v1823_v24 = vld [vmem:[%s2066_s7 + $0x1d4] ss:$8 sps:$4 sm:$0xff]   ;;  %v1825_v25 = vld [vmem:[%s2066_s7 + $0xd0] ss:$8 sps:$4 sm:$0xff]  }
  0x52   : > { %1119 = vmatpush1.bf16.msra.mxu0 %v1772_v52  ;;  %1007 = vmatprep.subr.bf16.mxu1 %v1773_v53  ;;  %v1826_v26 = vld [vmem:[%s2066_s7 + $0x1d0] ss:$8 sps:$4 sm:$0xff]   ;;  %v1827_v27 = vld [vmem:[%s2066_s7 + $0xe4] ss:$8 sps:$4 sm:$0xff]   ;;  %v1831_v29 = vld [vmem:[%s2066_s7 + $0xe0] ss:$8 sps:$4 sm:$0xff]  }
  0x53   : > { %1120 = vmatprep.subr.bf16.mxu0 %v1775_v54  ;;  %1142 = vmatprep.mubr.bf16.mxu0 %v1844_v20  ;;  %v1829_v28 = vld [vmem:[%s2066_s7 + $0x1e4] ss:$8 sps:$4 sm:$0xff]   ;;  %v1832_v30 = vld [vmem:[%s2066_s7 + $0x1e0] ss:$8 sps:$4 sm:$0xff]   ;;  %v1833_v31 = vld [vmem:[%s2066_s7 + $0xf4] ss:$8 sps:$4 sm:$0xff]  }
  0x54   : > { %v1835_v32 = vld [vmem:[%s2066_s7 + $0x1f4] ss:$8 sps:$4 sm:$0xff]   ;;  %v1837_v33 = vld [vmem:[%s2066_s7 + $0xf0] ss:$8 sps:$4 sm:$0xff]   ;;  %p1663_p11 = scmp.ne.s32.totalorder %s1917_s14, 4 }
  0x55   : > { %1008 = vmatpush1.bf16.msra.mxu1 %v1777_v55  ;;  %v1838_v34 = vld [vmem:[%s2066_s7 + $0x1f0] ss:$8 sps:$4 sm:$0xff]   ;;  %v1845_v37 = vld [vmem:[%s2068_s8 + $0x24] ss:$16 sps:$4 sm:$0xff]   ;;  %v1847_v38 = vld [vmem:[%s2068_s8 + $0x2c] ss:$16 sps:$4 sm:$0xff]  }
  0x56   : > { %1121 = vmatpush1.bf16.msra.mxu0 %v1778_v56  ;;  %1009 = vmatprep.subr.bf16.mxu1 %v1779_v57  ;;  %v1839_v35 = vld [vmem:[%s2068_s8] ss:$16 sps:$4 sm:$0xff]   ;;  %v1842_v36 = vld [vmem:[%s2068_s8 + $0x8] ss:$16 sps:$4 sm:$0xff]   ;;  %v1851_v41 = vld [vmem:[%s2068_s8 + $0x44] ss:$16 sps:$4 sm:$0xff]  }
  0x57   : > { %1122 = vmatprep.subr.bf16.mxu0 %v1781_v58  ;;  %v1849_v39 = vld [vmem:[%s2068_s8 + $0x20] ss:$16 sps:$4 sm:$0xff]   ;;  %v1850_v40 = vld [vmem:[%s2068_s8 + $0x28] ss:$16 sps:$4 sm:$0xff]   ;;  %v1853_v42 = vld [vmem:[%s2068_s8 + $0x4c] ss:$16 sps:$4 sm:$0xff]  }
  0x58   : > { %v1855_v43 = vld [vmem:[%s2068_s8 + $0x40] ss:$16 sps:$4 sm:$0xff]   ;;  %v1856_v44 = vld [vmem:[%s2068_s8 + $0x48] ss:$16 sps:$4 sm:$0xff]   ;;  %v1857_v45 = vld [vmem:[%s2068_s8 + $0x64] ss:$16 sps:$4 sm:$0xff]  }
  0x59   : > { %1010 = vmatpush1.bf16.msra.mxu1 %v1783_v59  ;;  %v1859_v46 = vld [vmem:[%s2068_s8 + $0x6c] ss:$16 sps:$4 sm:$0xff]   ;;  %v1861_v47 = vld [vmem:[%s2068_s8 + $0x60] ss:$16 sps:$4 sm:$0xff]   ;;  %v1862_v48 = vld [vmem:[%s2068_s8 + $0x68] ss:$16 sps:$4 sm:$0xff]  }
  0x5a   : > { %1123 = vmatpush1.bf16.msra.mxu0 %v1784_v60  ;;  %1011 = vmatprep.subr.bf16.mxu1 %v1785_v61  ;;  %v1863_v49 = vld [vmem:[%s2068_s8 + $0x84] ss:$16 sps:$4 sm:$0xff]   ;;  %v1865_v50 = vld [vmem:[%s2068_s8 + $0x8c] ss:$16 sps:$4 sm:$0xff]   ;;  %v1867_v51 = vld [vmem:[%s2068_s8 + $0x80] ss:$16 sps:$4 sm:$0xff]  }
  0x5b   : > { %1124 = vmatprep.subr.bf16.mxu0 %v1787_v62  ;;  %v1868_v52 = vld [vmem:[%s2068_s8 + $0x88] ss:$16 sps:$4 sm:$0xff]   ;;  %v1869_v53 = vld [vmem:[%s2068_s8 + $0xa4] ss:$16 sps:$4 sm:$0xff]   ;;  %v1871_v54 = vld [vmem:[%s2068_s8 + $0xac] ss:$16 sps:$4 sm:$0xff]  }
  0x5c   : > { %v1873_v55 = vld [vmem:[%s2068_s8 + $0xa0] ss:$16 sps:$4 sm:$0xff]   ;;  %v1874_v56 = vld [vmem:[%s2068_s8 + $0xa8] ss:$16 sps:$4 sm:$0xff]   ;;  %v1875_v57 = vld [vmem:[%s2068_s8 + $0xc4] ss:$16 sps:$4 sm:$0xff]  }
  0x5d   : > { %1012 = vmatpush1.bf16.msra.mxu1 %v1789_v63  ;;  %v1877_v58 = vld [vmem:[%s2068_s8 + $0xcc] ss:$16 sps:$4 sm:$0xff]   ;;  %v1879_v59 = vld [vmem:[%s2068_s8 + $0xc0] ss:$16 sps:$4 sm:$0xff]   ;;  %v1880_v60 = vld [vmem:[%s2068_s8 + $0xc8] ss:$16 sps:$4 sm:$0xff]  }
  0x5e   : > { %1125 = vmatpush1.bf16.msra.mxu0 %v1790_v0  ;;  %1013 = vmatprep.subr.bf16.mxu1 %v1791_v1  ;;  %v1881_v61 = vld [vmem:[%s2068_s8 + $0xe4] ss:$16 sps:$4 sm:$0xff]   ;;  %v1883_v62 = vld [vmem:[%s2068_s8 + $0xec] ss:$16 sps:$4 sm:$0xff]   ;;  %v1885_v63 = vld [vmem:[%s2068_s8 + $0xe0] ss:$16 sps:$4 sm:$0xff]  }
  0x5f   : > { %1126 = vmatprep.subr.bf16.mxu0 %v1793_v2  ;;  %v1886_v0 = vld [vmem:[%s2068_s8 + $0xe8] ss:$16 sps:$4 sm:$0xff]   ;;  %v389_v2 = vld [vmem:[#allocation2] sm:$0xff] }
  0x61   : > { %1014 = vmatpush1.bf16.msra.mxu1 %v1795_v3 }
  0x62   : > { %1127 = vmatpush1.bf16.msra.mxu0 %v1796_v4  ;;  %1015 = vmatprep.subr.bf16.mxu1 %v1797_v5 }
  0x63   : > { %1128 = vmatprep.subr.bf16.mxu0 %v1799_v6  ;;  %v390_v6 = vld [vmem:[#allocation2 + $0x8] sm:$0xff] }
  0x65   : > { %1016 = vmatpush1.bf16.msra.mxu1 %v1801_v7 }
  0x66   : > { %1129 = vmatpush1.bf16.msra.mxu0 %v1802_v8  ;;  %1017 = vmatprep.subr.bf16.mxu1 %v1803_v9 }
  0x67   : > { %1130 = vmatprep.subr.bf16.mxu0 %v1805_v10  ;;  %v391_v10 = vld [vmem:[#allocation2 + $0x10] sm:$0xff] }
  0x69   : > { %1018 = vmatpush1.bf16.msra.mxu1 %v1807_v11 }
  0x6a   : > { %1131 = vmatpush1.bf16.msra.mxu0 %v1808_v12  ;;  %1019 = vmatprep.subr.bf16.mxu1 %v1809_v13 }
  0x6b   : > { %1132 = vmatprep.subr.bf16.mxu0 %v1811_v14 }
  0x6d   : > { %1020 = vmatpush1.bf16.msra.mxu1 %v1813_v15  ;;  %v392_v15 = vld [vmem:[#allocation2 + $0x18] sm:$0xff] }
  0x6e   : > { %1133 = vmatpush1.bf16.msra.mxu0 %v1814_v16  ;;  %1021 = vmatprep.subr.bf16.mxu1 %v1815_v17 }
  0x6f   : > { %1134 = vmatprep.subr.bf16.mxu0 %v1817_v19 }
  0x71   : > { %1022 = vmatpush1.bf16.msra.mxu1 %v1819_v21 }
  0x72   : > { %1135 = vmatpush1.bf16.msra.mxu0 %v1820_v22  ;;  %1023 = vmatprep.subr.bf16.mxu1 %v1821_v23  ;;  %v393_v22 = vld [vmem:[#allocation2 + $0x20] sm:$0xff] }
  0x73   : > { %1136 = vmatprep.subr.bf16.mxu0 %v1823_v24 }
  0x75   : > { %1024 = vmatpush1.bf16.msra.mxu1 %v1825_v25 }
  0x76   : > { %1137 = vmatpush1.bf16.msra.mxu0 %v1826_v26  ;;  %1025 = vmatprep.subr.bf16.mxu1 %v1827_v27  ;;  %v394_v26 = vld [vmem:[#allocation2 + $0x28] sm:$0xff] }
  0x77   : > { %1138 = vmatprep.subr.bf16.mxu0 %v1829_v28 }
  0x79   : > { %1026 = vmatpush1.bf16.msra.mxu1 %v1831_v29 }
  0x7a   : > { %1139 = vmatpush1.bf16.msra.mxu0 %v1832_v30  ;;  %1027 = vmatprep.subr.bf16.mxu1 %v1833_v31  ;;  %v395_v30 = vld [vmem:[#allocation2 + $0x30] sm:$0xff] }
  0x7b   : > { %1140 = vmatprep.subr.bf16.mxu0 %v1835_v32 }
  0x7d   : > { %1028 = vmatpush1.bf16.msra.mxu1 %v1837_v33 }
  0x7e   : > { %1141 = vmatpush1.bf16.msra.mxu0 %v1838_v34 }
  0x80   : > { %1030 = vmatmul.mubr.bf16.vlgmr.msra.gmra.mrb[0].mxu1 %v1839_v35  ;;  %v396_v35 = vld [vmem:[#allocation2 + $0x38] sm:$0xff] }
  0x81   : > { %1143 = vmatmul.mubr.bf16.vlgmr.msra.gmra.mrb[0].mxu0 %v1842_v36  ;;  %1039 = vmatprep.mubr.bf16.mxu1 %v1845_v37 }
  0x82   : > { %1152 = vmatprep.mubr.bf16.mxu0 %v1847_v38 }
  0x88   : > { %1040 = vmatmul.mubr.bf16.gmra.mrb[4].mxu1 %v1849_v39 }
  0x89   : > { %1153 = vmatmul.mubr.bf16.gmra.mrb[4].mxu0 %v1850_v40  ;;  %1049 = vmatprep.mubr.bf16.mxu1 %v1851_v41 }
  0x8a   : > { %1162 = vmatprep.mubr.bf16.mxu0 %v1853_v42  ;;  %v397_v42 = vld [vmem:[#allocation2 + $0x40] sm:$0xff] }
  0x90   : > { %1050 = vmatmul.mubr.bf16.gmra.mrb[8].mxu1 %v1855_v43 }
  0x91   : > { %1163 = vmatmul.mubr.bf16.gmra.mrb[8].mxu0 %v1856_v44  ;;  %1059 = vmatprep.mubr.bf16.mxu1 %v1857_v45 }
  0x92   : > { %1172 = vmatprep.mubr.bf16.mxu0 %v1859_v46  ;;  %v398_v46 = vld [vmem:[#allocation2 + $0x48] sm:$0xff] }
  0x98   : > { %1060 = vmatmul.mubr.bf16.gmra.mrb[12].mxu1 %v1861_v47 }
  0x99   : > { %1173 = vmatmul.mubr.bf16.gmra.mrb[12].mxu0 %v1862_v48  ;;  %1069 = vmatprep.mubr.bf16.mxu1 %v1863_v49 }
  0x9a   : > { %1182 = vmatprep.mubr.bf16.mxu0 %v1865_v50  ;;  %v399_v50 = vld [vmem:[#allocation2 + $0x50] sm:$0xff] }
  0xa0   : > { %1070 = vmatmul.mubr.bf16.gmra.mrb[16].mxu1 %v1867_v51 }
  0xa1   : > { %1183 = vmatmul.mubr.bf16.gmra.mrb[16].mxu0 %v1868_v52  ;;  %1079 = vmatprep.mubr.bf16.mxu1 %v1869_v53 }
  0xa2   : > { %1192 = vmatprep.mubr.bf16.mxu0 %v1871_v54 }
  0xa8   : > { %1080 = vmatmul.mubr.bf16.gmra.mrb[20].mxu1 %v1873_v55  ;;  %v400_v55 = vld [vmem:[#allocation2 + $0x58] sm:$0xff] }
  0xa9   : > { %1193 = vmatmul.mubr.bf16.gmra.mrb[20].mxu0 %v1874_v56  ;;  %1089 = vmatprep.mubr.bf16.mxu1 %v1875_v57 }
  0xaa   : > { %1202 = vmatprep.mubr.bf16.mxu0 %v1877_v58 }
  0xb0   : > { %1090 = vmatmul.mubr.bf16.gmra.mrb[24].mxu1 %v1879_v59 }
  0xb1   : > { %1203 = vmatmul.mubr.bf16.gmra.mrb[24].mxu0 %v1880_v60  ;;  %1099 = vmatprep.mubr.bf16.mxu1 %v1881_v61 }
  0xb2   : > { %1212 = vmatprep.mubr.bf16.mxu0 %v1883_v62  ;;  %v401_v62 = vld [vmem:[#allocation2 + $0x60] sm:$0xff] }
  0xb8   : > { %1100 = vmatmul.mubr.bf16.gmra.mrb[28].mxu1 %v1885_v63 }
  0xb9   : > { %1213 = vmatmul.mubr.bf16.gmra.mrb[28].mxu0 %v1886_v0 }
 0x153   : > { %v1031_v1 = vpop.f32.mrb[0].mxu1 }
 0x154   : > { %v1144_v3 = vpop.f32.mrb[0].mxu0  ;;  %v1033_v5 = vpop.f32.mrb[1].mxu1 }
 0x155   : > { %v1145_v4 = vadd.f32 %v1144_v3, %v1031_v1  ;;  %v1146_v7 = vpop.f32.mrb[1].mxu0  ;;  %v1035_v9 = vpop.f32.mrb[2].mxu1 }
 0x156   : > { %v1147_v8 = vadd.f32 %v1146_v7, %v1033_v5  ;;  %v1148_v11 = vpop.f32.mrb[2].mxu0  ;;  %v1037_v14 = vpop.f32.mrb[3].mxu1 }
 0x157   : > { %v1223_v12 = vadd.f32 %v1145_v4, %v389_v2  ;;  %v1149_v13 = vadd.f32 %v1148_v11, %v1035_v9  ;;  %v1150_v16 = vpop.f32.mrb[3].mxu0  ;;  %v402_v2 = vld [vmem:[#allocation2 + $0x68] sm:$0xff]  ;;  %v404_v11 = vld [vmem:[#allocation2 + $0x78] sm:$0xff] }
 0x158   : > { %v1224_v17 = vadd.f32 %v1147_v8, %v390_v6  ;;  %v1151_v18 = vadd.f32 %v1150_v16, %v1037_v14  ;;  %v403_v6 = vld [vmem:[#allocation2 + $0x70] sm:$0xff] }
 0x159   : > { %1255 = vst [vmem:[#allocation2] sm:$0xff] %v1223_v12  ;;  %v1225_v19 = vadd.f32 %v1149_v13, %v391_v10 }
 0x15a   : > { %1256 = vst [vmem:[#allocation2 + $0x8] sm:$0xff] %v1224_v17  ;;  %v1226_v20 = vadd.f32 %v1151_v18, %v392_v15  ;;  %v405_v18 = vld [vmem:[#allocation2 + $0x80] sm:$0xff] }
 0x15b   : > { %1257 = vst [vmem:[#allocation2 + $0x10] sm:$0xff] %v1225_v19  ;;  %v1041_v21 = vpop.f32.mrb[4].mxu1 }
 0x15c   : > { %1258 = vst [vmem:[#allocation2 + $0x18] sm:$0xff] %v1226_v20  ;;  %v1154_v23 = vpop.f32.mrb[4].mxu0  ;;  %v1043_v25 = vpop.f32.mrb[5].mxu1 }
 0x15d   : > { %v1155_v24 = vadd.f32 %v1154_v23, %v1041_v21  ;;  %v1156_v27 = vpop.f32.mrb[5].mxu0  ;;  %v1045_v29 = vpop.f32.mrb[6].mxu1 }
 0x15e   : > { %v1157_v28 = vadd.f32 %v1156_v27, %v1043_v25  ;;  %v1158_v31 = vpop.f32.mrb[6].mxu0  ;;  %v1047_v34 = vpop.f32.mrb[7].mxu1 }
 0x15f   : > { %v1227_v32 = vadd.f32 %v1155_v24, %v393_v22  ;;  %v1159_v33 = vadd.f32 %v1158_v31, %v1045_v29  ;;  %v1160_v36 = vpop.f32.mrb[7].mxu0  ;;  %v406_v22 = vld [vmem:[#allocation2 + $0x88] sm:$0xff]  ;;  %v408_v31 = vld [vmem:[#allocation2 + $0x98] sm:$0xff] }
 0x160   : > { %v1228_v37 = vadd.f32 %v1157_v28, %v394_v26  ;;  %v1161_v38 = vadd.f32 %v1160_v36, %v1047_v34  ;;  %v407_v26 = vld [vmem:[#allocation2 + $0x90] sm:$0xff] }
 0x161   : > { %1259 = vst [vmem:[#allocation2 + $0x20] sm:$0xff] %v1227_v32  ;;  %v1229_v39 = vadd.f32 %v1159_v33, %v395_v30 }
 0x162   : > { %1260 = vst [vmem:[#allocation2 + $0x28] sm:$0xff] %v1228_v37  ;;  %v1230_v40 = vadd.f32 %v1161_v38, %v396_v35  ;;  %v409_v38 = vld [vmem:[#allocation2 + $0xa0] sm:$0xff] }
 0x163   : > { %1261 = vst [vmem:[#allocation2 + $0x30] sm:$0xff] %v1229_v39  ;;  %v1051_v41 = vpop.f32.mrb[8].mxu1 }
 0x164   : > { %1262 = vst [vmem:[#allocation2 + $0x38] sm:$0xff] %v1230_v40  ;;  %v1164_v43 = vpop.f32.mrb[8].mxu0  ;;  %v1053_v45 = vpop.f32.mrb[9].mxu1 }
 0x165   : > { %v1165_v44 = vadd.f32 %v1164_v43, %v1051_v41  ;;  %v1166_v47 = vpop.f32.mrb[9].mxu0  ;;  %v1055_v49 = vpop.f32.mrb[10].mxu1 }
 0x166   : > { %v1167_v48 = vadd.f32 %v1166_v47, %v1053_v45  ;;  %v1168_v51 = vpop.f32.mrb[10].mxu0  ;;  %v1057_v54 = vpop.f32.mrb[11].mxu1 }
 0x167   : > { %v1231_v52 = vadd.f32 %v1165_v44, %v397_v42  ;;  %v1169_v53 = vadd.f32 %v1168_v51, %v1055_v49  ;;  %v1170_v56 = vpop.f32.mrb[11].mxu0  ;;  %v410_v42 = vld [vmem:[#allocation2 + $0xa8] sm:$0xff]  ;;  %v412_v51 = vld [vmem:[#allocation2 + $0xb8] sm:$0xff] }
 0x168   : > { %v1232_v57 = vadd.f32 %v1167_v48, %v398_v46  ;;  %v1171_v58 = vadd.f32 %v1170_v56, %v1057_v54  ;;  %v411_v46 = vld [vmem:[#allocation2 + $0xb0] sm:$0xff] }
 0x169   : > { %1263 = vst [vmem:[#allocation2 + $0x40] sm:$0xff] %v1231_v52  ;;  %v1233_v59 = vadd.f32 %v1169_v53, %v399_v50 }
 0x16a   : > { %1264 = vst [vmem:[#allocation2 + $0x48] sm:$0xff] %v1232_v57  ;;  %v1234_v60 = vadd.f32 %v1171_v58, %v400_v55  ;;  %v413_v58 = vld [vmem:[#allocation2 + $0xc0] sm:$0xff] }
 0x16b   : > { %1265 = vst [vmem:[#allocation2 + $0x50] sm:$0xff] %v1233_v59  ;;  %v1061_v61 = vpop.f32.mrb[12].mxu1 }
 0x16c   : > { %1266 = vst [vmem:[#allocation2 + $0x58] sm:$0xff] %v1234_v60  ;;  %v1174_v63 = vpop.f32.mrb[12].mxu0  ;;  %v1063_v1 = vpop.f32.mrb[13].mxu1 }
 0x16d   : > { %v1175_v0 = vadd.f32 %v1174_v63, %v1061_v61  ;;  %v1176_v3 = vpop.f32.mrb[13].mxu0  ;;  %v1065_v5 = vpop.f32.mrb[14].mxu1 }
 0x16e   : > { %v1177_v4 = vadd.f32 %v1176_v3, %v1063_v1  ;;  %v1178_v7 = vpop.f32.mrb[14].mxu0  ;;  %v1067_v10 = vpop.f32.mrb[15].mxu1 }
 0x16f   : > { %v1235_v8 = vadd.f32 %v1175_v0, %v401_v62  ;;  %v1179_v9 = vadd.f32 %v1178_v7, %v1065_v5  ;;  %v1180_v12 = vpop.f32.mrb[15].mxu0  ;;  %v414_v62 = vld [vmem:[#allocation2 + $0xc8] sm:$0xff]  ;;  %v416_v7 = vld [vmem:[#allocation2 + $0xd8] sm:$0xff] }
 0x170   : > { %v1236_v13 = vadd.f32 %v1177_v4, %v402_v2  ;;  %v1181_v14 = vadd.f32 %v1180_v12, %v1067_v10  ;;  %v415_v2 = vld [vmem:[#allocation2 + $0xd0] sm:$0xff] }
 0x171   : > { %1267 = vst [vmem:[#allocation2 + $0x60] sm:$0xff] %v1235_v8  ;;  %v1237_v15 = vadd.f32 %v1179_v9, %v403_v6 }
 0x172   : > { %1268 = vst [vmem:[#allocation2 + $0x68] sm:$0xff] %v1236_v13  ;;  %v1238_v16 = vadd.f32 %v1181_v14, %v404_v11  ;;  %v417_v14 = vld [vmem:[#allocation2 + $0xe0] sm:$0xff] }
 0x173   : > { %1269 = vst [vmem:[#allocation2 + $0x70] sm:$0xff] %v1237_v15  ;;  %v1071_v17 = vpop.f32.mrb[16].mxu1 }
 0x174   : > { %1270 = vst [vmem:[#allocation2 + $0x78] sm:$0xff] %v1238_v16  ;;  %v1184_v19 = vpop.f32.mrb[16].mxu0  ;;  %v1073_v21 = vpop.f32.mrb[17].mxu1 }
 0x175   : > { %v1185_v20 = vadd.f32 %v1184_v19, %v1071_v17  ;;  %v1186_v23 = vpop.f32.mrb[17].mxu0  ;;  %v1075_v25 = vpop.f32.mrb[18].mxu1 }
 0x176   : > { %v1187_v24 = vadd.f32 %v1186_v23, %v1073_v21  ;;  %v1188_v27 = vpop.f32.mrb[18].mxu0  ;;  %v1077_v30 = vpop.f32.mrb[19].mxu1 }
 0x177   : > { %v1239_v28 = vadd.f32 %v1185_v20, %v405_v18  ;;  %v1189_v29 = vadd.f32 %v1188_v27, %v1075_v25  ;;  %v1190_v32 = vpop.f32.mrb[19].mxu0  ;;  %v418_v18 = vld [vmem:[#allocation2 + $0xe8] sm:$0xff]  ;;  %v420_v27 = vld [vmem:[#allocation2 + $0xf8] sm:$0xff] }
 0x178   : > { %v1240_v33 = vadd.f32 %v1187_v24, %v406_v22  ;;  %v1191_v34 = vadd.f32 %v1190_v32, %v1077_v30  ;;  %v419_v22 = vld [vmem:[#allocation2 + $0xf0] sm:$0xff] }
 0x179   : > { %1271 = vst [vmem:[#allocation2 + $0x80] sm:$0xff] %v1239_v28  ;;  %v1241_v35 = vadd.f32 %v1189_v29, %v407_v26 }
 0x17a   : > { %1272 = vst [vmem:[#allocation2 + $0x88] sm:$0xff] %v1240_v33  ;;  %v1242_v36 = vadd.f32 %v1191_v34, %v408_v31  ;;  %v1325_v33 = vlaneseq (!%p1663_p11) }
 0x17b   : > { %1273 = vst [vmem:[#allocation2 + $0x90] sm:$0xff] %v1241_v35  ;;  %v1081_v37 = vpop.f32.mrb[20].mxu1  ;;  %v1323_v35 = vld [vmem:[%s2320_s2] sm:$0x3] (!%p1663_p11) }
 0x17c   : > { %1274 = vst [vmem:[#allocation2 + $0x98] sm:$0xff] %v1242_v36  ;;  %v1194_v39 = vpop.f32.mrb[20].mxu0  ;;  %v1083_v41 = vpop.f32.mrb[21].mxu1  ;;  %v1326_v34 = vshrl.u32 (!%p1663_p11), %v1325_v33, 7  ;;  %v1291_v36 = vld [vmem:[#allocation2] sm:$0xff] (!%p1663_p11) }
 0x17d   : > { %v1195_v40 = vadd.f32 %v1194_v39, %v1081_v37  ;;  %v1196_v43 = vpop.f32.mrb[21].mxu0  ;;  %v1085_v45 = vpop.f32.mrb[22].mxu1 }
 0x17e   : > { %v1197_v44 = vadd.f32 %v1196_v43, %v1083_v41  ;;  %v1198_v47 = vpop.f32.mrb[22].mxu0  ;;  %v1087_v50 = vpop.f32.mrb[23].mxu1  ;;  %v1327_v37 = vsub.s32 (!%p1663_p11), 0, %v1326_v34  ;;  %v1331_v39 = vsub.s32 (!%p1663_p11), 1, %v1326_v34  ;;  %v1294_v41 = vld [vmem:[#allocation2 + $0x18] sm:$0xff] (!%p1663_p11) }
 0x17f   : > { %v1243_v48 = vadd.f32 %v1195_v40, %v409_v38  ;;  %v1199_v49 = vadd.f32 %v1198_v47, %v1085_v45  ;;  %v1200_v52 = vpop.f32.mrb[23].mxu0  ;;  %v1292_v38 = vld [vmem:[#allocation2 + $0x8] sm:$0xff] (!%p1663_p11)  ;;  %v1293_v40 = vld [vmem:[#allocation2 + $0x10] sm:$0xff] (!%p1663_p11)  ;;  %v1298_v47 = vld [vmem:[#allocation2 + $0x38] sm:$0xff] (!%p1663_p11) }
 0x180   : > { %v1244_v53 = vadd.f32 %v1197_v44, %v410_v42  ;;  %v1201_v54 = vadd.f32 %v1200_v52, %v1087_v50  ;;  %v1295_v42 = vld [vmem:[#allocation2 + $0x20] sm:$0xff] (!%p1663_p11)  ;;  %v2171_v43 = vrot.slane (!%p1663_p11), %v1323_v35, %v1327_v37  ;;  %v2173_v44 = vrot.slane (!%p1663_p11), %v1323_v35, %v1331_v39  ;;  %v1296_v45 = vld [vmem:[#allocation2 + $0x28] sm:$0xff] (!%p1663_p11) }
 0x181   : > { %1275 = vst [vmem:[#allocation2 + $0xa0] sm:$0xff] %v1243_v48  ;;  %v1245_v55 = vadd.f32 %v1199_v49, %v411_v46  ;;  %v1297_v46 = vld [vmem:[#allocation2 + $0x30] sm:$0xff] (!%p1663_p11)  ;;  %v1299_v52 = vld [vmem:[#allocation2 + $0x40] sm:$0xff] (!%p1663_p11) }
 0x182   : > { %1276 = vst [vmem:[#allocation2 + $0xa8] sm:$0xff] %v1244_v53  ;;  %v1246_v56 = vadd.f32 %v1201_v54, %v412_v51  ;;  %v1335_v48 = vadd.f32 (!%p1663_p11), %v2171_v43, %v1291_v36  ;;  %v1336_v49 = vadd.f32 (!%p1663_p11), %v2173_v44, %v1292_v38  ;;  %v1337_v50 = vadd.f32 (!%p1663_p11), %v2171_v43, %v1293_v40  ;;  %v1300_v53 = vld [vmem:[#allocation2 + $0x48] sm:$0xff] (!%p1663_p11)  ;;  %v1301_v54 = vld [vmem:[#allocation2 + $0x50] sm:$0xff] (!%p1663_p11) }
 0x183   : > { %1277 = vst [vmem:[#allocation2 + $0xb0] sm:$0xff] %v1245_v55  ;;  %v1091_v57 = vpop.f32.mrb[24].mxu1  ;;  %v1338_v51 = vadd.f32 (!%p1663_p11), %v2173_v44, %v1294_v41  ;;  %v1339_v55 = vadd.f32 (!%p1663_p11), %v2171_v43, %v1295_v42 }
 0x184   : > { %1278 = vst [vmem:[#allocation2 + $0xb8] sm:$0xff] %v1246_v56  ;;  %v1204_v59 = vpop.f32.mrb[24].mxu0  ;;  %v1093_v61 = vpop.f32.mrb[25].mxu1  ;;  %v1340_v56 = vadd.f32 (!%p1663_p11), %v2173_v44, %v1296_v45 }
 0x185   : > { %v1205_v60 = vadd.f32 %v1204_v59, %v1091_v57  ;;  %v1206_v63 = vpop.f32.mrb[25].mxu0  ;;  %v1095_v1 = vpop.f32.mrb[26].mxu1  ;;  %v1341_v57 = vadd.f32 (!%p1663_p11), %v2171_v43, %v1297_v46  ;;  %v1302_v59 = vld [vmem:[#allocation2 + $0x58] sm:$0xff] (!%p1663_p11) }
 0x186   : > { %v1207_v0 = vadd.f32 %v1206_v63, %v1093_v61  ;;  %v1208_v3 = vpop.f32.mrb[26].mxu0  ;;  %v1097_v6 = vpop.f32.mrb[27].mxu1  ;;  %v1304_v61 = vld [vmem:[#allocation2 + $0x68] sm:$0xff] (!%p1663_p11)  ;;  %v1368_v63 = vmax.f32 (!%p1663_p11), %v1336_v49, 0.0 }
 0x187   : > { %v1247_v4 = vadd.f32 %v1205_v60, %v413_v58  ;;  %v1209_v5 = vadd.f32 %v1208_v3, %v1095_v1  ;;  %v1210_v8 = vpop.f32.mrb[27].mxu0  ;;  %v1342_v58 = vadd.f32 (!%p1663_p11), %v2173_v44, %v1298_v47  ;;  %v1303_v60 = vld [vmem:[#allocation2 + $0x60] sm:$0xff] (!%p1663_p11)  ;;  %v1370_v1 = vmax.f32 (!%p1663_p11), %v1338_v51, 0.0  ;;  %v1306_v3 = vld [vmem:[#allocation2 + $0x78] sm:$0xff] (!%p1663_p11) }
 0x188   : > { %v1248_v9 = vadd.f32 %v1207_v0, %v414_v62  ;;  %v1211_v10 = vadd.f32 %v1210_v8, %v1097_v6  ;;  %v1367_v62 = vmax.f32 (!%p1663_p11), %v1335_v48, 0.0  ;;  %v1369_v0 = vmax.f32 (!%p1663_p11), %v1337_v50, 0.0  ;;  %1400 = vst [vmem:[%s2321_s3 + $0x8] sm:$0xff] (!%p1663_p11), %v1368_v63 }
 0x189   : > { %1279 = vst [vmem:[#allocation2 + $0xc0] sm:$0xff] %v1247_v4  ;;  %v1249_v11 = vadd.f32 %v1209_v5, %v415_v2  ;;  %v1305_v2 = vld [vmem:[#allocation2 + $0x70] sm:$0xff] (!%p1663_p11)  ;;  %v1371_v4 = vmax.f32 (!%p1663_p11), %v1339_v55, 0.0  ;;  %v1372_v5 = vmax.f32 (!%p1663_p11), %v1340_v56, 0.0  ;;  %v1373_v6 = vmax.f32 (!%p1663_p11), %v1341_v57, 0.0  ;;  %1402 = vst [vmem:[%s2321_s3 + $0x18] sm:$0xff] (!%p1663_p11), %v1370_v1 }
 0x18a   : > { %1280 = vst [vmem:[#allocation2 + $0xc8] sm:$0xff] %v1248_v9  ;;  %v1250_v12 = vadd.f32 %v1211_v10, %v416_v7  ;;  %v1374_v7 = vmax.f32 (!%p1663_p11), %v1342_v58, 0.0  ;;  %1399 = vst [vmem:[%s2321_s3] sm:$0xff] (!%p1663_p11), %v1367_v62  ;;  %v1343_v8 = vadd.f32 (!%p1663_p11), %v2171_v43, %v1299_v52  ;;  %v1344_v9 = vadd.f32 (!%p1663_p11), %v2173_v44, %v1300_v53 }
 0x18b   : > { %1281 = vst [vmem:[#allocation2 + $0xd0] sm:$0xff] %v1249_v11  ;;  %v1101_v13 = vpop.f32.mrb[28].mxu1  ;;  %1401 = vst [vmem:[%s2321_s3 + $0x10] sm:$0xff] (!%p1663_p11), %v1369_v0  ;;  %v1345_v10 = vadd.f32 (!%p1663_p11), %v2171_v43, %v1301_v54  ;;  %v1346_v11 = vadd.f32 (!%p1663_p11), %v2173_v44, %v1302_v59 }
 0x18c   : > { %1282 = vst [vmem:[#allocation2 + $0xd8] sm:$0xff] %v1250_v12  ;;  %v1214_v15 = vpop.f32.mrb[28].mxu0  ;;  %v1103_v17 = vpop.f32.mrb[29].mxu1  ;;  %v1307_v12 = vld [vmem:[#allocation2 + $0x80] sm:$0xff] (!%p1663_p11)  ;;  %1403 = vst [vmem:[%s2321_s3 + $0x20] sm:$0xff] (!%p1663_p11), %v1371_v4 }
 0x18d   : > { %v1215_v16 = vadd.f32 %v1214_v15, %v1101_v13  ;;  %v1216_v19 = vpop.f32.mrb[29].mxu0  ;;  %v1105_v21 = vpop.f32.mrb[30].mxu1  ;;  %v1308_v13 = vld [vmem:[#allocation2 + $0x88] sm:$0xff] (!%p1663_p11)  ;;  %1404 = vst [vmem:[%s2321_s3 + $0x28] sm:$0xff] (!%p1663_p11), %v1372_v5  ;;  %1405 = vst [vmem:[%s2321_s3 + $0x30] sm:$0xff] (!%p1663_p11), %v1373_v6  ;;  %v1347_v15 = vadd.f32 (!%p1663_p11), %v2171_v43, %v1303_v60 }
 0x18e   : > { %v1217_v20 = vadd.f32 %v1216_v19, %v1103_v17  ;;  %v1218_v23 = vpop.f32.mrb[30].mxu0  ;;  %v1107_v26 = vpop.f32.mrb[31].mxu1  ;;  %1290 = sbr.rel (%p1663_p11) target bundleno = 417 (0x1a1), region = 63  ;;  %1406 = vst [vmem:[%s2321_s3 + $0x38] sm:$0xff] (!%p1663_p11), %v1374_v7  ;;  %v1349_v17 = vadd.f32 (!%p1663_p11), %v2171_v43, %v1305_v2  ;;  %v1310_v19 = vld [vmem:[#allocation2 + $0x98] sm:$0xff] (!%p1663_p11)  ;;  %v1352_v33 = vadd.f32 (!%p1663_p11), %v2173_v44, %v1308_v13 }
 0x18f   : > { %v1251_v24 = vadd.f32 %v1215_v16, %v417_v14  ;;  %v1219_v25 = vadd.f32 %v1218_v23, %v1105_v21  ;;  %v1220_v28 = vpop.f32.mrb[31].mxu0  ;;  %v1309_v14 = vld [vmem:[#allocation2 + $0x90] sm:$0xff] (!%p1663_p11)  ;;  %v1348_v16 = vadd.f32 (!%p1663_p11), %v2173_v44, %v1304_v61  ;;  %v1312_v21 = vld [vmem:[#allocation2 + $0xa8] sm:$0xff] (!%p1663_p11)  ;;  %v1376_v23 = vmax.f32 (!%p1663_p11), %v1344_v9, 0.0 }
 0x190   : > { %v1252_v29 = vadd.f32 %v1217_v20, %v418_v18  ;;  %v1221_v30 = vadd.f32 %v1220_v28, %v1107_v26  ;;  %v1350_v18 = vadd.f32 (!%p1663_p11), %v2173_v44, %v1306_v3  ;;  %v1311_v20 = vld [vmem:[#allocation2 + $0xa0] sm:$0xff] (!%p1663_p11)  ;;  %v1313_v26 = vld [vmem:[#allocation2 + $0xb0] sm:$0xff] (!%p1663_p11)  ;;  %v1379_v28 = vmax.f32 (!%p1663_p11), %v1347_v15, 0.0 }
 0x191   : > { %1283 = vst [vmem:[#allocation2 + $0xe0] sm:$0xff] %v1251_v24  ;;  %v1253_v31 = vadd.f32 %v1219_v25, %v419_v22  ;;  %v1375_v22 = vmax.f32 (!%p1663_p11), %v1343_v8, 0.0  ;;  %v1377_v24 = vmax.f32 (!%p1663_p11), %v1345_v10, 0.0  ;;  %v1378_v25 = vmax.f32 (!%p1663_p11), %v1346_v11, 0.0  ;;  %1408 = vst [vmem:[%s2321_s3 + $0x48] sm:$0xff] (!%p1663_p11), %v1376_v23  ;;  %v1315_v36 = vld [vmem:[#allocation2 + $0xc0] sm:$0xff] (!%p1663_p11) }
 0x192   : > { %1284 = vst [vmem:[#allocation2 + $0xe8] sm:$0xff] %v1252_v29  ;;  %v1254_v32 = vadd.f32 %v1221_v30, %v420_v27  ;;  %v1314_v27 = vld [vmem:[#allocation2 + $0xb8] sm:$0xff] (!%p1663_p11)  ;;  %v1380_v29 = vmax.f32 (!%p1663_p11), %v1348_v16, 0.0  ;;  %v1381_v30 = vmax.f32 (!%p1663_p11), %v1349_v17, 0.0  ;;  %v1353_v34 = vadd.f32 (!%p1663_p11), %v2171_v43, %v1309_v14  ;;  %v1316_v37 = vld [vmem:[#allocation2 + $0xc8] sm:$0xff] (!%p1663_p11)  ;;  %v1317_v38 = vld [vmem:[#allocation2 + $0xd0] sm:$0xff] (!%p1663_p11) }
 0x193   : > { %1285 = vst [vmem:[#allocation2 + $0xf0] sm:$0xff] %v1253_v31  ;;  %v1382_v31 = vmax.f32 (!%p1663_p11), %v1350_v18, 0.0  ;;  %1407 = vst [vmem:[%s2321_s3 + $0x40] sm:$0xff] (!%p1663_p11), %v1375_v22  ;;  %v1354_v35 = vadd.f32 (!%p1663_p11), %v2173_v44, %v1310_v19  ;;  %v1355_v39 = vadd.f32 (!%p1663_p11), %v2171_v43, %v1311_v20  ;;  %v1356_v40 = vadd.f32 (!%p1663_p11), %v2173_v44, %v1312_v21  ;;  %v1318_v45 = vld [vmem:[#allocation2 + $0xd8] sm:$0xff] (!%p1663_p11) }
 0x194   : > { %1286 = vst [vmem:[#allocation2 + $0xf8] sm:$0xff] %v1254_v32  ;;  %1409 = vst [vmem:[%s2321_s3 + $0x50] sm:$0xff] (!%p1663_p11), %v1377_v24  ;;  %v1351_v32 = vadd.f32 (!%p1663_p11), %v2171_v43, %v1307_v12  ;;  %v1357_v41 = vadd.f32 (!%p1663_p11), %v2171_v43, %v1313_v26  ;;  %v1358_v42 = vadd.f32 (!%p1663_p11), %v2173_v44, %v1314_v27  ;;  %v1384_v49 = vmax.f32 (!%p1663_p11), %v1352_v33, 0.0 }
 0x195   : > { %1410 = vst [vmem:[%s2321_s3 + $0x58] sm:$0xff] %v1378_v25  ;;  %1411 = vst [vmem:[%s2321_s3 + $0x60] sm:$0xff] %v1379_v28  ;;  %v1385_v50 = vmax.f32 %v1353_v34, 0.0  ;;  %v1386_v51 = vmax.f32 %v1354_v35, 0.0  ;;  %v1387_v54 = vmax.f32 %v1355_v39, 0.0  ;;  %v1388_v55 = vmax.f32 %v1356_v40, 0.0 }
 0x196   : > { %1412 = vst [vmem:[%s2321_s3 + $0x68] sm:$0xff] %v1380_v29  ;;  %1413 = vst [vmem:[%s2321_s3 + $0x70] sm:$0xff] %v1381_v30  ;;  %v1383_v48 = vmax.f32 %v1351_v32, 0.0  ;;  %v1389_v56 = vmax.f32 %v1357_v41, 0.0  ;;  %v1390_v57 = vmax.f32 %v1358_v42, 0.0  ;;  %v1359_v58 = vadd.f32 %v2171_v43, %v1315_v36 }
 0x197   : > { %1414 = vst [vmem:[%s2321_s3 + $0x78] sm:$0xff] %v1382_v31  ;;  %1416 = vst [vmem:[%s2321_s3 + $0x88] sm:$0xff] %v1384_v49  ;;  %v1360_v59 = vadd.f32 %v2173_v44, %v1316_v37  ;;  %v1361_v60 = vadd.f32 %v2171_v43, %v1317_v38  ;;  %v1362_v61 = vadd.f32 %v2173_v44, %v1318_v45 }
 0x198   : > { %v1319_v46 = vld [vmem:[#allocation2 + $0xe0] sm:$0xff]  ;;  %1415 = vst [vmem:[%s2321_s3 + $0x80] sm:$0xff] %v1383_v48  ;;  %1417 = vst [vmem:[%s2321_s3 + $0x90] sm:$0xff] %v1385_v50  ;;  %v1391_v2 = vmax.f32 %v1359_v58, 0.0 }
 0x199   : > { %v1320_v47 = vld [vmem:[#allocation2 + $0xe8] sm:$0xff]  ;;  %1418 = vst [vmem:[%s2321_s3 + $0x98] sm:$0xff] %v1386_v51  ;;  %1419 = vst [vmem:[%s2321_s3 + $0xa0] sm:$0xff] %v1387_v54  ;;  %v1363_v62 = vadd.f32 %v2171_v43, %v1319_v46  ;;  %v1392_v3 = vmax.f32 %v1360_v59, 0.0  ;;  %v1393_v4 = vmax.f32 %v1361_v60, 0.0  ;;  %v1394_v5 = vmax.f32 %v1362_v61, 0.0 }
 0x19a   : > { %v1321_v52 = vld [vmem:[#allocation2 + $0xf0] sm:$0xff]  ;;  %1420 = vst [vmem:[%s2321_s3 + $0xa8] sm:$0xff] %v1388_v55  ;;  %1421 = vst [vmem:[%s2321_s3 + $0xb0] sm:$0xff] %v1389_v56  ;;  %v1364_v63 = vadd.f32 %v2173_v44, %v1320_v47 }
 0x19b   : > { %v1322_v53 = vld [vmem:[#allocation2 + $0xf8] sm:$0xff]  ;;  %1422 = vst [vmem:[%s2321_s3 + $0xb8] sm:$0xff] %v1390_v57  ;;  %v1365_v0 = vadd.f32 %v2171_v43, %v1321_v52  ;;  %v1395_v6 = vmax.f32 %v1363_v62, 0.0  ;;  %1423 = vst [vmem:[%s2321_s3 + $0xc0] sm:$0xff] %v1391_v2 }
 0x19c   : > { %v1366_v1 = vadd.f32 %v2173_v44, %v1322_v53  ;;  %v1396_v7 = vmax.f32 %v1364_v63, 0.0  ;;  %1424 = vst [vmem:[%s2321_s3 + $0xc8] sm:$0xff] %v1392_v3  ;;  %1425 = vst [vmem:[%s2321_s3 + $0xd0] sm:$0xff] %v1393_v4 }
 0x19d   : > { %v1397_v8 = vmax.f32 %v1365_v0, 0.0  ;;  %1426 = vst [vmem:[%s2321_s3 + $0xd8] sm:$0xff] %v1394_v5  ;;  %1427 = vst [vmem:[%s2321_s3 + $0xe0] sm:$0xff] %v1395_v6 }
 0x19e   : > { %v1398_v9 = vmax.f32 %v1366_v1, 0.0  ;;  %1428 = vst [vmem:[%s2321_s3 + $0xe8] sm:$0xff] %v1396_v7 }
 0x19f   : > { %1429 = vst [vmem:[%s2321_s3 + $0xf0] sm:$0xff] %v1397_v8 }
 0x1a0   : > { %1430 = vst [vmem:[%s2321_s3 + $0xf8] sm:$0xff] %v1398_v9 }
 0x1a1 PF: > { %s13_s16 = sadd.s32 1, %s1925_s16   ;;  %s2322_s12 = smov %s1913_s13 }
 0x1a2   : > { %p10_p12 = scmp.ge.s32.totalorder %s13_s16, 7   ;;  %s2323_s13 = smov %s1983_s20 }
 0x1a3   : > { %s2324_s14 = smov %s1921_s15  ;;  %s2325_s15 = smov %s2327_s17 }
 0x1a4   :  { %12 = sbr.rel (!%p10_p12) target bundleno = 3 (0x3), region = 104 }

</bundles_post_ra>
